<compile_context>
chip_gen: v6e
topology: v6e:2x2x1
jax: 0.10.0
libtpu: 0.0.40
codegen_flags: <defaults>
</compile_context>

<pallas_src>
import functools

import jax
import jax.numpy as jnp
from jax.experimental import pallas as pl
from jax.experimental.pallas import tpu as pltpu


# ---------------------------------------------------------------- helpers ----
def _cp():
    # One grid axis over batch; per-batch blocks are independent -> "parallel"
    # (shards across v7x's two TensorCores, harmless on v5e/v6e).
    return pltpu.CompilerParams(
        dimension_semantics=("parallel",),
        vmem_limit_bytes=32 * 1024 * 1024,
    )


def _const_spec(a):
    """Whole-array block reused by every grid step (weights / DFT matrices)."""
    nd = a.ndim
    return pl.BlockSpec(a.shape, lambda *_: (0,) * nd)


def _cost(flops, in_arrays, out_bytes, transcendentals=0):
    in_bytes = sum(int(a.size) * a.dtype.itemsize for a in in_arrays)
    return pl.CostEstimate(
        flops=max(int(flops), 1),
        transcendentals=max(int(transcendentals), 0),
        bytes_accessed=int(in_bytes) + int(out_bytes),
    )


# ----------------------------------------------------------------- kernels ---
def _encoder_core(x_ref, cosT_ref, sinT_ref, w1re_ref, w1im_ref, b1_ref,
                  pool_ref, w2_ref, b2_ref):
    xb = x_ref[0]                                                     # (L, C) f32
    # Band-masked real DFT (mask + zero pad to F_sem baked into cosT/sinT).
    fre = jnp.dot(cosT_ref[...], xb, preferred_element_type=jnp.float32)  # (F_sem, C)
    fim = jnp.dot(sinT_ref[...], xb, preferred_element_type=jnp.float32)  # (F_sem, C)
    # linear1 on [re, im] features + GELU   (bf16 MXU inputs, f32 accumulation)
    h = (jnp.dot(fre.astype(jnp.bfloat16), w1re_ref[...],
                 preferred_element_type=jnp.float32)
         + jnp.dot(fim.astype(jnp.bfloat16), w1im_ref[...],
                   preferred_element_type=jnp.float32)
         + b1_ref[...])
    h = jax.nn.gelu(h).astype(jnp.bfloat16)                           # (F_sem, init)
    # Average-pool over `down_rate` frequency bins; the pool matrix also zeroes
    # the padded bins (matches pad-after-GELU semantics of the reference glue).
    pooled = jnp.dot(pool_ref[...], h, preferred_element_type=jnp.float32)  # (T, init)
    # linear2 -> hid (zero-padded to 128 lanes)
    z = (jnp.dot(pooled.astype(jnp.bfloat16), w2_ref[...],
                 preferred_element_type=jnp.float32) + b2_ref[...])   # (T, hid_pad)
    return fre, fim, z


def _encoder_kernel(x_ref, cosT_ref, sinT_ref, w1re_ref, w1im_ref, b1_ref,
                    pool_ref, w2_ref, b2_ref, z_ref):
    _, _, z = _encoder_core(x_ref, cosT_ref, sinT_ref, w1re_ref, w1im_ref,
                            b1_ref, pool_ref, w2_ref, b2_ref)
    z_ref[0] = z


def _encoder_lf_kernel(x_ref, cosT_ref, sinT_ref, w1re_ref, w1im_ref, b1_ref,
                       pool_ref, w2_ref, b2_ref, icosT_ref, isinT_ref,
                       z_ref, xl_ref):
    fre, fim, z = _encoder_core(x_ref, cosT_ref, sinT_ref, w1re_ref, w1im_ref,
                                b1_ref, pool_ref, w2_ref, b2_ref)
    z_ref[0] = z
    # LF time-domain target x_l = iDFT(masked spectrum).  The HF target is the
    # exact complement x - x_l computed by the caller (no second inverse DFT).
    xl_ref[0] = (jnp.dot(icosT_ref[...], fre, preferred_element_type=jnp.float32)
                 + jnp.dot(isinT_ref[...], fim, preferred_element_type=jnp.float32))


def _vq_kernel(z_ref, e_ref, zq_ref, cnt_ref, cm_ref, *, num_codes):
    z = z_ref[0]                                                      # (T, Dp) f32
    e = e_ref[...]                                                    # (Kp, Dp) f32
    scores = jax.lax.dot_general(z, e, (((1,), (1,)), ((), ())),
                                 preferred_element_type=jnp.float32)  # (T, Kp)
    e_sq = jnp.sum(e * e, axis=1)[None, :]                            # (1, Kp)
    d = e_sq - 2.0 * scores        # ||z||^2 dropped (constant per row for argmin)
    k_iota = jax.lax.broadcasted_iota(jnp.int32, d.shape, 1)
    kp = d.shape[1]
    d = jnp.where(k_iota < num_codes, d, jnp.float32(1e30))           # mask pad codes
    d_min = jnp.min(d, axis=1, keepdims=True)
    first_hit = jnp.where(d == d_min, k_iota, kp)
    idx = jnp.min(first_hit, axis=1, keepdims=True)                   # (T, 1)
    oh = (k_iota == idx).astype(jnp.float32)                          # (T, Kp)
    zq = jnp.dot(oh, e, preferred_element_type=jnp.float32)           # (T, Dp)
    zq_ref[0] = zq
    cnt_ref[0] = jnp.sum(oh, axis=0, keepdims=True)                   # code usage
    diff = zq - z
    row = jnp.sum(diff * diff, axis=1, keepdims=True)                 # (T, 1)
    cm_ref[0] = jnp.sum(row, axis=0, keepdims=True)                   # commit partial


def _decoder_kernel(zq_ref, dw1_ref, db1_ref, up_ref, dw2re_ref, dw2im_ref,
                    db2re_ref, db2im_ref, icosT_ref, isinT_ref, o_ref):
    zq = zq_ref[0].astype(jnp.bfloat16)                               # (T, Dp)
    h = (jnp.dot(zq, dw1_ref[...], preferred_element_type=jnp.float32)
         + db1_ref[...])
    h = jax.nn.gelu(h).astype(jnp.bfloat16)                           # (T, init)
    hup = jnp.dot(up_ref[...], h,
                  preferred_element_type=jnp.float32).astype(jnp.bfloat16)  # (F_sem, init)
    spec_re = (jnp.dot(hup, dw2re_ref[...], preferred_element_type=jnp.float32)
               + db2re_ref[...])                                      # (F_sem, C)
    spec_im = (jnp.dot(hup, dw2im_ref[...], preferred_element_type=jnp.float32)
               + db2im_ref[...])                                      # (F_sem, C)
    # Inverse DFT; padded spectrum rows are killed by zero icosT/isinT columns.
    o_ref[0] = (jnp.dot(icosT_ref[...], spec_re, preferred_element_type=jnp.float32)
                + jnp.dot(isinT_ref[...], spec_im, preferred_element_type=jnp.float32))


# ---------------------------------------------------------------- wrappers ---
def pallas_encoder(x_blc, br, w1re, w1im, b1, w2, b2, *, emit_xl):
    b, l, c = x_blc.shape
    f_sem, t = br["f_sem"], br["t"]
    init_dim = w1re.shape[1]
    hid_pad = w2.shape[1]

    in_specs = [pl.BlockSpec((1, l, c), lambda i: (i, 0, 0)),
                _const_spec(br["cosT"]), _const_spec(br["sinT"]),
                _const_spec(w1re), _const_spec(w1im), _const_spec(b1),
                _const_spec(br["pool"]), _const_spec(w2), _const_spec(b2)]
    args = [x_blc, br["cosT"], br["sinT"], w1re, w1im, b1, br["pool"], w2, b2]

    z_shape = jax.ShapeDtypeStruct((b, t, hid_pad), jnp.float32)
    z_spec = pl.BlockSpec((1, t, hid_pad), lambda i: (i, 0, 0))

    flops = b * (4 * f_sem * l * c + 4 * f_sem * c * init_dim
                 + 2 * t * f_sem * init_dim + 2 * t * init_dim * hid_pad)
    out_bytes = b * t * hid_pad * 4
    if emit_xl:
        in_specs += [_const_spec(br["icosT"]), _const_spec(br["isinT"])]
        args += [br["icosT"], br["isinT"]]
        out_shape = (z_shape, jax.ShapeDtypeStruct((b, l, c), jnp.float32))
        out_specs = (z_spec, pl.BlockSpec((1, l, c), lambda i: (i, 0, 0)))
        kernel = _encoder_lf_kernel
        flops += b * 4 * l * f_sem * c
        out_bytes += b * l * c * 4
    else:
        out_shape = z_shape
        out_specs = z_spec
        kernel = _encoder_kernel

    return pl.pallas_call(
        kernel,
        out_shape=out_shape,
        grid=(b,),
        in_specs=in_specs,
        out_specs=out_specs,
        compiler_params=_cp(),
        cost_estimate=_cost(flops, args, out_bytes,
                            transcendentals=b * f_sem * init_dim),
    )(*args)


def pallas_vq(z, codebook, num_codes):
    b, t, dp = z.shape
    kp = codebook.shape[0]
    flops = b * 4 * t * kp * dp
    out_bytes = (b * t * dp + b * kp + b) * 4
    return pl.pallas_call(
        functools.partial(_vq_kernel, num_codes=num_codes),
        out_shape=(jax.ShapeDtypeStruct((b, t, dp), jnp.float32),
                   jax.ShapeDtypeStruct((b, 1, kp), jnp.float32),
                   jax.ShapeDtypeStruct((b, 1, 1), jnp.float32)),
        grid=(b,),
        in_specs=[pl.BlockSpec((1, t, dp), lambda i: (i, 0, 0)),
                  _const_spec(codebook)],
        out_specs=(pl.BlockSpec((1, t, dp), lambda i: (i, 0, 0)),
                   pl.BlockSpec((1, 1, kp), lambda i: (i, 0, 0)),
                   pl.BlockSpec((1, 1, 1), lambda i: (i, 0, 0))),
        compiler_params=_cp(),
        cost_estimate=_cost(flops, [z, codebook], out_bytes),
    )(z, codebook)


def pallas_decoder(zq, br, dw1, db1, dw2re, dw2im, db2re, db2im, length, c):
    b, t, dp = zq.shape
    f_sem = br["f_sem"]
    init_dim = dw1.shape[1]
    args = [zq, dw1, db1, br["up"], dw2re, dw2im, db2re, db2im,
            br["icosT"], br["isinT"]]
    in_specs = ([pl.BlockSpec((1, t, dp), lambda i: (i, 0, 0))]
                + [_const_spec(a) for a in args[1:]])
    flops = b * (2 * t * dp * init_dim + 2 * f_sem * t * init_dim
                 + 4 * f_sem * init_dim * c + 4 * length * f_sem * c)
    out_bytes = b * length * c * 4
    return pl.pallas_call(
        _decoder_kernel,
        out_shape=jax.ShapeDtypeStruct((b, length, c), jnp.float32),
        grid=(b,),
        in_specs=in_specs,
        out_specs=pl.BlockSpec((1, length, c), lambda i: (i, 0, 0)),
        compiler_params=_cp(),
        cost_estimate=_cost(flops, args, out_bytes,
                            transcendentals=b * t * init_dim),
    )(*args)


# --------------------------------------------------- constants & parameters --
def make_consts(length, lf_cutoff, down_rate_l, down_rate_h):
    n_freq = length // 2 + 1
    n = jnp.arange(length, dtype=jnp.float32)
    kk = jnp.arange(n_freq)
    ang = 2.0 * jnp.pi * n[:, None] * kk[None, :].astype(jnp.float32) / length  # (L, F)
    cos_m = jnp.cos(ang)                                              # (L, F)
    sin_m = -jnp.sin(ang)                                             # (L, F)
    w = jnp.where((kk == 0) | (kk == length // 2), 1.0, 2.0) / length
    icos = w[:, None] * jnp.cos(ang.T)                                # (F, L)
    isin = -w[:, None] * jnp.sin(ang.T)                               # (F, L)
    lf_mask = (kk < lf_cutoff).astype(jnp.float32)                    # (F,)

    def branch(mask, dr):
        f_sem = ((n_freq + dr - 1) // dr) * dr
        t = f_sem // dr
        pad_f = f_sem - n_freq
        cosT = jnp.pad((cos_m * mask[None, :]).T, ((0, pad_f), (0, 0)))  # (f_sem, L)
        sinT = jnp.pad((sin_m * mask[None, :]).T, ((0, pad_f), (0, 0)))
        fi = jnp.arange(f_sem)
        ti = jnp.arange(t)
        pool = (((fi[None, :] // dr) == ti[:, None])
                & (fi[None, :] < n_freq)).astype(jnp.float32) / dr       # (t, f_sem)
        up = ((fi[:, None] // dr) == ti[None, :]).astype(jnp.float32)    # (f_sem, t)
        icosT = jnp.pad(icos.T, ((0, 0), (0, pad_f)))                    # (L, f_sem)
        isinT = jnp.pad(isin.T, ((0, 0), (0, pad_f)))
        return {"cosT": cosT, "sinT": sinT,
                "pool": pool.astype(jnp.bfloat16),
                "up": up.astype(jnp.bfloat16),
                "icosT": icosT, "isinT": isinT,
                "f_sem": int(f_sem), "t": int(t)}

    return {"lf": branch(lf_mask, down_rate_l),
            "hf": branch(1.0 - lf_mask, down_rate_h)}


def init_params(key, c, init_dim, hid_dim, k_l, k_h, hid_pad, k_pad):
    keys = jax.random.split(key, 10)

    def lin(kk, fan_in, fan_out):
        w = jax.random.normal(kk, (fan_in, fan_out), jnp.float32) / jnp.sqrt(
            jnp.float32(fan_in))
        b = jnp.zeros((1, fan_out), jnp.float32)
        return w, b

    p = {}
    for name, ke_w1, ke_w2 in (("l", keys[0], keys[1]), ("h", keys[2], keys[3])):
        w1, b1 = lin(ke_w1, 2 * c, init_dim)
        p[f"enc_{name}_w1re"] = w1[:c].astype(jnp.bfloat16)
        p[f"enc_{name}_w1im"] = w1[c:].astype(jnp.bfloat16)
        p[f"enc_{name}_b1"] = b1
        w2, b2 = lin(ke_w2, init_dim, hid_dim)
        p[f"enc_{name}_w2"] = jnp.pad(
            w2, ((0, 0), (0, hid_pad - hid_dim))).astype(jnp.bfloat16)
        p[f"enc_{name}_b2"] = jnp.pad(b2, ((0, 0), (0, hid_pad - hid_dim)))
    for name, ke_w1, ke_w2 in (("l", keys[4], keys[5]), ("h", keys[6], keys[7])):
        w1, b1 = lin(ke_w1, hid_dim, init_dim)
        p[f"dec_{name}_w1"] = jnp.pad(
            w1, ((0, hid_pad - hid_dim), (0, 0))).astype(jnp.bfloat16)
        p[f"dec_{name}_b1"] = b1
        w2, b2 = lin(ke_w2, init_dim, 2 * c)
        p[f"dec_{name}_w2re"] = w2[:, :c].astype(jnp.bfloat16)
        p[f"dec_{name}_w2im"] = w2[:, c:].astype(jnp.bfloat16)
        p[f"dec_{name}_b2re"] = b2[:, :c]
        p[f"dec_{name}_b2im"] = b2[:, c:]
    cb_l = jax.random.normal(keys[8], (k_l, hid_dim), jnp.float32)
    p["codebook_l"] = jnp.pad(cb_l, ((0, k_pad - k_l), (0, hid_pad - hid_dim)))
    cb_h = jax.random.normal(keys[9], (k_h, hid_dim), jnp.float32)
    p["codebook_h"] = jnp.pad(cb_h, ((0, k_pad - k_h), (0, hid_pad - hid_dim)))
    return p


# ---------------------------------------------------------------- model ------
def quantize(z, codebook, num_codes, hid_dim, commitment_weight=1.0):
    zq, counts, commit_part = pallas_vq(z, codebook, num_codes)
    n_rows = z.shape[0] * z.shape[1]
    # TODO(synk): gradients through the in-kernel commit sum need a custom VJP;
    # the forward value equals mean((z_q - z)^2) over the real (un-padded) dims.
    commit_loss = jnp.sum(commit_part) / jnp.float32(n_rows * hid_dim)
    orthogonal_reg_loss = jnp.float32(0.0)
    loss = commitment_weight * commit_loss + orthogonal_reg_loss
    probs = jnp.sum(counts, axis=(0, 1))[:num_codes] / jnp.float32(n_rows)
    perplexity = jnp.exp(-jnp.sum(probs * jnp.log(probs + 1e-10)))
    zq_st = z + jax.lax.stop_gradient(zq - z)     # straight-through (value == z_q)
    vq_loss = {"loss": loss, "commit_loss": commit_loss,
               "orthogonal_reg_loss": orthogonal_reg_loss}
    return zq_st, vq_loss, perplexity


def vqvae_forward(params, consts, hparams, batch_x, return_x_rec=False):
    """batch_x: (B, L, C); same call semantics as the PyTorch forward."""
    _, length, c = batch_x.shape
    hid_dim = hparams["hid_dim"]

    # ---- LF branch (fused band-DFT + encoder; also emits the x_l target) ----
    z_l, x_l = pallas_encoder(
        batch_x, consts["lf"],
        params["enc_l_w1re"], params["enc_l_w1im"], params["enc_l_b1"],
        params["enc_l_w2"], params["enc_l_b2"], emit_xl=True)
    zq_l, vq_loss_l, perplexity_l = quantize(
        z_l, params["codebook_l"], hparams["k_l"], hid_dim)
    xhat_l = pallas_decoder(
        zq_l, consts["lf"],
        params["dec_l_w1"], params["dec_l_b1"],
        params["dec_l_w2re"], params["dec_l_w2im"],
        params["dec_l_b2re"], params["dec_l_b2im"], length, c)

    # ---- HF branch ----
    z_h = pallas_encoder(
        batch_x, consts["hf"],
        params["enc_h_w1re"], params["enc_h_w1im"], params["enc_h_b1"],
        params["enc_h_w2"], params["enc_h_b2"], emit_xl=False)
    zq_h, vq_loss_h, perplexity_h = quantize(
        z_h, params["codebook_h"], hparams["k_h"], hid_dim)
    xhat_h = pallas_decoder(
        zq_h, consts["hf"],
        params["dec_h_w1"], params["dec_h_b1"],
        params["dec_h_w2re"], params["dec_h_w2im"],
        params["dec_h_b2re"], params["dec_h_b2im"], length, c)

    x_rec = xhat_l + xhat_h                                          # (B, L, C)
    if return_x_rec:
        return x_rec

    x_h = batch_x - x_l               # complementary bands -> exact HF residual
    loss_recon_lf = jnp.mean((x_l - xhat_l) ** 2)                    # F.mse_loss
    loss_recon_hf = jnp.mean(jnp.abs(x_h - xhat_h))                  # F.l1_loss
    loss = loss_recon_lf + loss_recon_hf + (vq_loss_l["loss"] + vq_loss_h["loss"])
    loss_dict = {
        "recon.LF.time": loss_recon_lf,
        "recon.HF.time": loss_recon_hf,
        "vq.LF": vq_loss_l["loss"],
        "vq.HF": vq_loss_h["loss"],
        "vq.commit.LF": vq_loss_l["commit_loss"],
        "vq.orthogonal.LF": vq_loss_l["orthogonal_reg_loss"],
        "vq.commit.HF": vq_loss_h["commit_loss"],
        "vq.orthogonal.HF": vq_loss_h["orthogonal_reg_loss"],
        "perplexity.LF": perplexity_l,
        "perplexity.HF": perplexity_h,
        "total": loss,
    }
    return loss_dict


# --------------------------------------------------------------------------
if __name__ == "__main__":
    B, L, C = 2, 64, 4            # (batch, recon_len, enc_in)
    INIT_DIM, HID_DIM = 16, 32
    K_L, K_H = 32, 64
    HID_PAD, K_PAD = 128, 128     # lane-dense latent / codebook padding

    config = {
        "lf_cutoff": 9,           # first 9 rDFT bins -> LF band, rest -> HF band
        "down_rate_l": 4,         # LF encoder downsampling along the freq axis
        "down_rate_h": 2,         # HF encoder downsampling along the freq axis
    }
    hparams = {"hid_dim": HID_DIM, "k_l": K_L, "k_h": K_H}

    key = jax.random.PRNGKey(0)
    kx, kp = jax.random.split(key)
    batch_x = jax.random.normal(kx, (B, L, C), jnp.float32)
    params = init_params(kp, C, INIT_DIM, HID_DIM, K_L, K_H, HID_PAD, K_PAD)
    consts = make_consts(L, config["lf_cutoff"],
                         config["down_rate_l"], config["down_rate_h"])

    fwd_loss = jax.jit(
        lambda p, x: vqvae_forward(p, consts, hparams, x, return_x_rec=False))
    fwd_rec = jax.jit(
        lambda p, x: vqvae_forward(p, consts, hparams, x, return_x_rec=True))

    loss_dict = fwd_loss(params, batch_x)
    x_rec = fwd_rec(params, batch_x)
    jax.block_until_ready(loss_dict["total"])
    jax.block_until_ready(x_rec)

    assert x_rec.shape == batch_x.shape
    assert bool(jnp.isfinite(loss_dict["total"]))
    print("KERNEL_OK")
</pallas_src>

<mosaic_0001>
module attributes {stable_mosaic.version = 11 : i64} {
  func.func @_encoder_kernel(%arg0: i32, %arg1: memref<1x64x4xf32, #tpu.memory_space<vmem>>, %arg2: memref<34x64xf32, #tpu.memory_space<vmem>>, %arg3: memref<34x64xf32, #tpu.memory_space<vmem>>, %arg4: memref<4x16xbf16, #tpu.memory_space<vmem>>, %arg5: memref<4x16xbf16, #tpu.memory_space<vmem>>, %arg6: memref<1x16xf32, #tpu.memory_space<vmem>>, %arg7: memref<17x34xbf16, #tpu.memory_space<vmem>>, %arg8: memref<16x128xbf16, #tpu.memory_space<vmem>>, %arg9: memref<1x128xf32, #tpu.memory_space<vmem>>, %arg10: memref<1x17x128xf32, #tpu.memory_space<vmem>>) attributes {dimension_semantics = [#tpu.dimension_semantics<parallel>], iteration_bounds = array<i64: 2>, scalar_prefetch = 0 : i64, scratch_operands = 0 : i64, tpu.core_type = #tpu.core_type<tc>, window_params = [{transform_indices = @transform_0, window_bounds = array<i64: 1, 64, 4>}, {pipeline_mode = #tpu.pipeline_mode<synchronous>, transform_indices = @transform_1, window_bounds = array<i64: 34, 64>}, {pipeline_mode = #tpu.pipeline_mode<synchronous>, transform_indices = @transform_2, window_bounds = array<i64: 34, 64>}, {pipeline_mode = #tpu.pipeline_mode<synchronous>, transform_indices = @transform_3, window_bounds = array<i64: 4, 16>}, {pipeline_mode = #tpu.pipeline_mode<synchronous>, transform_indices = @transform_4, window_bounds = array<i64: 4, 16>}, {pipeline_mode = #tpu.pipeline_mode<synchronous>, transform_indices = @transform_5, window_bounds = array<i64: 1, 16>}, {pipeline_mode = #tpu.pipeline_mode<synchronous>, transform_indices = @transform_6, window_bounds = array<i64: 17, 34>}, {pipeline_mode = #tpu.pipeline_mode<synchronous>, transform_indices = @transform_7, window_bounds = array<i64: 16, 128>}, {pipeline_mode = #tpu.pipeline_mode<synchronous>, transform_indices = @transform_8, window_bounds = array<i64: 1, 128>}, {transform_indices = @transform_9, window_bounds = array<i64: 1, 17, 128>}]} {
    %c0 = arith.constant 0 : index
    %c0_0 = arith.constant 0 : index
    %c0_1 = arith.constant 0 : index
    %0 = vector.load %arg1[%c0, %c0_0, %c0_1] : memref<1x64x4xf32, #tpu.memory_space<vmem>>, vector<1x64x4xf32>
    %1 = vector.shape_cast %0 : vector<1x64x4xf32> to vector<64x4xf32>
    %c0_2 = arith.constant 0 : index
    %c0_3 = arith.constant 0 : index
    %2 = vector.load %arg2[%c0_2, %c0_3] : memref<34x64xf32, #tpu.memory_space<vmem>>, vector<34x64xf32>
    %cst = arith.constant dense<0.000000e+00> : vector<34x4xf32>
    %3 = tpu.matmul %2, %1, %cst {dimension_numbers = #tpu.dot_dimension_numbers<[1], [0], [0], [1], [0, 0, 1, 1], [], []>} : vector<34x64xf32>, vector<64x4xf32>, vector<34x4xf32> -> vector<34x4xf32>
    %c0_4 = arith.constant 0 : index
    %c0_5 = arith.constant 0 : index
    %4 = vector.load %arg3[%c0_4, %c0_5] : memref<34x64xf32, #tpu.memory_space<vmem>>, vector<34x64xf32>
    %cst_6 = arith.constant dense<0.000000e+00> : vector<34x4xf32>
    %5 = tpu.matmul %4, %1, %cst_6 {dimension_numbers = #tpu.dot_dimension_numbers<[1], [0], [0], [1], [0, 0, 1, 1], [], []>} : vector<34x64xf32>, vector<64x4xf32>, vector<34x4xf32> -> vector<34x4xf32>
    %6 = arith.truncf %3 : vector<34x4xf32> to vector<34x4xbf16>
    %c0_7 = arith.constant 0 : index
    %c0_8 = arith.constant 0 : index
    %7 = vector.load %arg4[%c0_7, %c0_8] : memref<4x16xbf16, #tpu.memory_space<vmem>>, vector<4x16xbf16>
    %cst_9 = arith.constant dense<0.000000e+00> : vector<34x16xf32>
    %8 = tpu.matmul %6, %7, %cst_9 {dimension_numbers = #tpu.dot_dimension_numbers<[1], [0], [0], [1], [0, 0, 1, 1], [], []>} : vector<34x4xbf16>, vector<4x16xbf16>, vector<34x16xf32> -> vector<34x16xf32>
    %9 = arith.truncf %5 : vector<34x4xf32> to vector<34x4xbf16>
    %c0_10 = arith.constant 0 : index
    %c0_11 = arith.constant 0 : index
    %10 = vector.load %arg5[%c0_10, %c0_11] : memref<4x16xbf16, #tpu.memory_space<vmem>>, vector<4x16xbf16>
    %cst_12 = arith.constant dense<0.000000e+00> : vector<34x16xf32>
    %11 = tpu.matmul %9, %10, %cst_12 {dimension_numbers = #tpu.dot_dimension_numbers<[1], [0], [0], [1], [0, 0, 1, 1], [], []>} : vector<34x4xbf16>, vector<4x16xbf16>, vector<34x16xf32> -> vector<34x16xf32>
    %12 = arith.addf %8, %11 : vector<34x16xf32>
    %c0_13 = arith.constant 0 : index
    %c0_14 = arith.constant 0 : index
    %13 = vector.load %arg6[%c0_13, %c0_14] : memref<1x16xf32, #tpu.memory_space<vmem>>, vector<1x16xf32>
    %14 = vector.broadcast %13 : vector<1x16xf32> to vector<34x16xf32>
    %15 = arith.addf %12, %14 : vector<34x16xf32>
    %16 = arith.mulf %15, %15 : vector<34x16xf32>
    %17 = arith.mulf %15, %16 : vector<34x16xf32>
    %cst_15 = arith.constant 4.471500e-02 : f32
    %18 = vector.broadcast %cst_15 : f32 to vector<34x16xf32>
    %19 = arith.mulf %18, %17 : vector<34x16xf32>
    %20 = arith.addf %15, %19 : vector<34x16xf32>
    %cst_16 = arith.constant 0.797884583 : f32
    %21 = vector.broadcast %cst_16 : f32 to vector<34x16xf32>
    %22 = arith.mulf %21, %20 : vector<34x16xf32>
    %23 = math.tanh %22 : vector<34x16xf32>
    %cst_17 = arith.constant 1.000000e+00 : f32
    %24 = vector.broadcast %cst_17 : f32 to vector<34x16xf32>
    %25 = arith.addf %24, %23 : vector<34x16xf32>
    %cst_18 = arith.constant 5.000000e-01 : f32
    %26 = vector.broadcast %cst_18 : f32 to vector<34x16xf32>
    %27 = arith.mulf %26, %25 : vector<34x16xf32>
    %28 = arith.mulf %15, %27 : vector<34x16xf32>
    %29 = arith.truncf %28 : vector<34x16xf32> to vector<34x16xbf16>
    %c0_19 = arith.constant 0 : index
    %c0_20 = arith.constant 0 : index
    %30 = vector.load %arg7[%c0_19, %c0_20] : memref<17x34xbf16, #tpu.memory_space<vmem>>, vector<17x34xbf16>
    %cst_21 = arith.constant dense<0.000000e+00> : vector<17x16xf32>
    %31 = tpu.matmul %30, %29, %cst_21 {dimension_numbers = #tpu.dot_dimension_numbers<[1], [0], [0], [1], [0, 0, 1, 1], [], []>} : vector<17x34xbf16>, vector<34x16xbf16>, vector<17x16xf32> -> vector<17x16xf32>
    %32 = arith.truncf %31 : vector<17x16xf32> to vector<17x16xbf16>
    %c0_22 = arith.constant 0 : index
    %c0_23 = arith.constant 0 : index
    %33 = vector.load %arg8[%c0_22, %c0_23] : memref<16x128xbf16, #tpu.memory_space<vmem>>, vector<16x128xbf16>
    %cst_24 = arith.constant dense<0.000000e+00> : vector<17x128xf32>
    %34 = tpu.matmul %32, %33, %cst_24 {dimension_numbers = #tpu.dot_dimension_numbers<[1], [0], [0], [1], [0, 0, 1, 1], [], []>} : vector<17x16xbf16>, vector<16x128xbf16>, vector<17x128xf32> -> vector<17x128xf32>
    %c0_25 = arith.constant 0 : index
    %c0_26 = arith.constant 0 : index
    %35 = vector.load %arg9[%c0_25, %c0_26] : memref<1x128xf32, #tpu.memory_space<vmem>>, vector<1x128xf32>
    %36 = vector.broadcast %35 : vector<1x128xf32> to vector<17x128xf32>
    %37 = arith.addf %34, %36 : vector<17x128xf32>
    %c0_27 = arith.constant 0 : index
    %c0_28 = arith.constant 0 : index
    %c0_29 = arith.constant 0 : index
    %38 = vector.load %arg10[%c0_27, %c0_28, %c0_29] : memref<1x17x128xf32, #tpu.memory_space<vmem>>, vector<1x17x128xf32>
    %39 = vector.shape_cast %38 : vector<1x17x128xf32> to vector<17x128xf32>
    %40 = vector.shape_cast %37 : vector<17x128xf32> to vector<1x17x128xf32>
    tpu.vector_store %arg10[%c0_27, %c0_28, %c0_29], %40 {strides = array<i32>} : memref<1x17x128xf32, #tpu.memory_space<vmem>>, vector<1x17x128xf32>,
    return
  }
  func.func @transform_0(%arg0: i32) -> (i32, i32, i32) {
    %c0_i32 = arith.constant 0 : i32
    %c0_i32_0 = arith.constant 0 : i32
    %c0_i32_1 = arith.constant 0 : i32
    return %arg0, %c0_i32, %c0_i32_0 : i32, i32, i32
  }
  func.func @transform_1(%arg0: i32) -> (i32, i32) {
    %c0_i32 = arith.constant 0 : i32
    %c0_i32_0 = arith.constant 0 : i32
    %c0_i32_1 = arith.constant 0 : i32
    return %c0_i32, %c0_i32_0 : i32, i32
  }
  func.func @transform_2(%arg0: i32) -> (i32, i32) {
    %c0_i32 = arith.constant 0 : i32
    %c0_i32_0 = arith.constant 0 : i32
    %c0_i32_1 = arith.constant 0 : i32
    return %c0_i32, %c0_i32_0 : i32, i32
  }
  func.func @transform_3(%arg0: i32) -> (i32, i32) {
    %c0_i32 = arith.constant 0 : i32
    %c0_i32_0 = arith.constant 0 : i32
    %c0_i32_1 = arith.constant 0 : i32
    return %c0_i32, %c0_i32_0 : i32, i32
  }
  func.func @transform_4(%arg0: i32) -> (i32, i32) {
    %c0_i32 = arith.constant 0 : i32
    %c0_i32_0 = arith.constant 0 : i32
    %c0_i32_1 = arith.constant 0 : i32
    return %c0_i32, %c0_i32_0 : i32, i32
  }
  func.func @transform_5(%arg0: i32) -> (i32, i32) {
    %c0_i32 = arith.constant 0 : i32
    %c0_i32_0 = arith.constant 0 : i32
    %c0_i32_1 = arith.constant 0 : i32
    return %c0_i32, %c0_i32_0 : i32, i32
  }
  func.func @transform_6(%arg0: i32) -> (i32, i32) {
    %c0_i32 = arith.constant 0 : i32
    %c0_i32_0 = arith.constant 0 : i32
    %c0_i32_1 = arith.constant 0 : i32
    return %c0_i32, %c0_i32_0 : i32, i32
  }
  func.func @transform_7(%arg0: i32) -> (i32, i32) {
    %c0_i32 = arith.constant 0 : i32
    %c0_i32_0 = arith.constant 0 : i32
    %c0_i32_1 = arith.constant 0 : i32
    return %c0_i32, %c0_i32_0 : i32, i32
  }
  func.func @transform_8(%arg0: i32) -> (i32, i32) {
    %c0_i32 = arith.constant 0 : i32
    %c0_i32_0 = arith.constant 0 : i32
    %c0_i32_1 = arith.constant 0 : i32
    return %c0_i32, %c0_i32_0 : i32, i32
  }
  func.func @transform_9(%arg0: i32) -> (i32, i32, i32) {
    %c0_i32 = arith.constant 0 : i32
    %c0_i32_0 = arith.constant 0 : i32
    %c0_i32_1 = arith.constant 0 : i32
    return %arg0, %c0_i32, %c0_i32_0 : i32, i32, i32
  }
}

module attributes {stable_mosaic.version = 11 : i64} {
  func.func @_vq_kernel(%arg0: i32, %arg1: memref<1x17x128xf32, #tpu.memory_space<vmem>>, %arg2: memref<128x128xf32, #tpu.memory_space<vmem>>, %arg3: memref<1x17x128xf32, #tpu.memory_space<vmem>>, %arg4: memref<1x1x128xf32, #tpu.memory_space<vmem>>, %arg5: memref<1x1x1xf32, #tpu.memory_space<vmem>>) attributes {dimension_semantics = [#tpu.dimension_semantics<parallel>], iteration_bounds = array<i64: 2>, scalar_prefetch = 0 : i64, scratch_operands = 0 : i64, tpu.core_type = #tpu.core_type<tc>, window_params = [{transform_indices = @transform_0, window_bounds = array<i64: 1, 17, 128>}, {pipeline_mode = #tpu.pipeline_mode<synchronous>, transform_indices = @transform_1, window_bounds = array<i64: 128, 128>}, {transform_indices = @transform_2, window_bounds = array<i64: 1, 17, 128>}, {transform_indices = @transform_3, window_bounds = array<i64: 1, 1, 128>}, {transform_indices = @transform_4, window_bounds = array<i64: 1, 1, 1>}]} {
    %c0 = arith.constant 0 : index
    %c0_0 = arith.constant 0 : index
    %c0_1 = arith.constant 0 : index
    %0 = vector.load %arg1[%c0, %c0_0, %c0_1] : memref<1x17x128xf32, #tpu.memory_space<vmem>>, vector<1x17x128xf32>
    %1 = vector.shape_cast %0 : vector<1x17x128xf32> to vector<17x128xf32>
    %c0_2 = arith.constant 0 : index
    %c0_3 = arith.constant 0 : index
    %2 = vector.load %arg2[%c0_2, %c0_3] : memref<128x128xf32, #tpu.memory_space<vmem>>, vector<128x128xf32>
    %cst = arith.constant dense<0.000000e+00> : vector<17x128xf32>
    %3 = tpu.matmul %1, %2, %cst {dimension_numbers = #tpu.dot_dimension_numbers<[1], [1], [0], [0], [0, 0, 1, 0], [], []>} : vector<17x128xf32>, vector<128x128xf32>, vector<17x128xf32> -> vector<17x128xf32>
    %4 = arith.mulf %2, %2 : vector<128x128xf32>
    %cst_4 = arith.constant dense<0.000000e+00> : vector<128xf32>
    %5 = vector.multi_reduction <add>, %4, %cst_4 [1] : vector<128x128xf32> to vector<128xf32>
    %6 = vector.shape_cast %5 : vector<128xf32> to vector<1x128xf32>
    %cst_5 = arith.constant 2.000000e+00 : f32
    %7 = vector.broadcast %cst_5 : f32 to vector<17x128xf32>
    %8 = arith.mulf %7, %3 : vector<17x128xf32>
    %9 = vector.broadcast %6 : vector<1x128xf32> to vector<17x128xf32>
    %10 = arith.subf %9, %8 : vector<17x128xf32>
    %11 = tpu.iota {dimensions = array<i32: 1>} : vector<17x128xi32>
    %c64_i32 = arith.constant 64 : i32
    %12 = vector.broadcast %c64_i32 : i32 to vector<17x128xi32>
    %13 = arith.cmpi slt, %11, %12 : vector<17x128xi32>
    %cst_6 = arith.constant 1.000000e+30 : f32
    %14 = vector.broadcast %cst_6 : f32 to vector<17x128xf32>
    %15 = arith.select %13, %10, %14 : vector<17x128xi1>, vector<17x128xf32>
    %cst_7 = arith.constant dense<0x7F800000> : vector<17xf32>
    %16 = vector.multi_reduction <minimumf>, %15, %cst_7 [1] : vector<17x128xf32> to vector<17xf32>
    %17 = vector.shape_cast %16 : vector<17xf32> to vector<17x1xf32>
    %18 = vector.broadcast %17 : vector<17x1xf32> to vector<17x128xf32>
    %19 = arith.cmpf oeq, %15, %18 : vector<17x128xf32>
    %c128_i32 = arith.constant 128 : i32
    %20 = vector.broadcast %c128_i32 : i32 to vector<17x128xi32>
    %21 = arith.select %19, %11, %20 : vector<17x128xi1>, vector<17x128xi32>
    %cst_8 = arith.constant dense<2147483647> : vector<17xi32>
    %22 = vector.multi_reduction <minsi>, %21, %cst_8 [1] : vector<17x128xi32> to vector<17xi32>
    %23 = vector.shape_cast %22 : vector<17xi32> to vector<17x1xi32>
    %24 = vector.broadcast %23 : vector<17x1xi32> to vector<17x128xi32>
    %25 = arith.cmpi eq, %11, %24 : vector<17x128xi32>
    %26 = arith.extui %25 : vector<17x128xi1> to vector<17x128xi32>
    %27 = arith.sitofp %26 : vector<17x128xi32> to vector<17x128xf32>
    %cst_9 = arith.constant dense<0.000000e+00> : vector<17x128xf32>
    %28 = tpu.matmul %27, %2, %cst_9 {dimension_numbers = #tpu.dot_dimension_numbers<[1], [0], [0], [1], [0, 0, 1, 1], [], []>} : vector<17x128xf32>, vector<128x128xf32>, vector<17x128xf32> -> vector<17x128xf32>
    %c0_10 = arith.constant 0 : index
    %c0_11 = arith.constant 0 : index
    %c0_12 = arith.constant 0 : index
    %29 = vector.load %arg3[%c0_10, %c0_11, %c0_12] : memref<1x17x128xf32, #tpu.memory_space<vmem>>, vector<1x17x128xf32>
    %30 = vector.shape_cast %29 : vector<1x17x128xf32> to vector<17x128xf32>
    %31 = vector.shape_cast %28 : vector<17x128xf32> to vector<1x17x128xf32>
    tpu.vector_store %arg3[%c0_10, %c0_11, %c0_12], %31 {strides = array<i32>} : memref<1x17x128xf32, #tpu.memory_space<vmem>>, vector<1x17x128xf32>,
    %cst_13 = arith.constant dense<0.000000e+00> : vector<128xf32>
    %32 = vector.multi_reduction <add>, %27, %cst_13 [0] : vector<17x128xf32> to vector<128xf32>
    %33 = vector.shape_cast %32 : vector<128xf32> to vector<1x128xf32>
    %c0_14 = arith.constant 0 : index
    %c0_15 = arith.constant 0 : index
    %c0_16 = arith.constant 0 : index
    %34 = vector.load %arg4[%c0_14, %c0_15, %c0_16] : memref<1x1x128xf32, #tpu.memory_space<vmem>>, vector<1x1x128xf32>
    %35 = vector.shape_cast %34 : vector<1x1x128xf32> to vector<1x128xf32>
    %36 = vector.shape_cast %33 : vector<1x128xf32> to vector<1x1x128xf32>
    tpu.vector_store %arg4[%c0_14, %c0_15, %c0_16], %36 {strides = array<i32>} : memref<1x1x128xf32, #tpu.memory_space<vmem>>, vector<1x1x128xf32>,
    %37 = arith.subf %28, %1 : vector<17x128xf32>
    %38 = arith.mulf %37, %37 : vector<17x128xf32>
    %cst_17 = arith.constant dense<0.000000e+00> : vector<17xf32>
    %39 = vector.multi_reduction <add>, %38, %cst_17 [1] : vector<17x128xf32> to vector<17xf32>
    %40 = vector.shape_cast %39 : vector<17xf32> to vector<17x1xf32>
    %cst_18 = arith.constant dense<0.000000e+00> : vector<1xf32>
    %41 = vector.multi_reduction <add>, %40, %cst_18 [0] : vector<17x1xf32> to vector<1xf32>
    %42 = vector.shape_cast %41 : vector<1xf32> to vector<1x1xf32>
    %c0_19 = arith.constant 0 : index
    %c0_20 = arith.constant 0 : index
    %c0_21 = arith.constant 0 : index
    %43 = vector.load %arg5[%c0_19, %c0_20, %c0_21] : memref<1x1x1xf32, #tpu.memory_space<vmem>>, vector<1x1x1xf32>
    %44 = vector.shape_cast %43 : vector<1x1x1xf32> to vector<1x1xf32>
    %45 = vector.shape_cast %42 : vector<1x1xf32> to vector<1x1x1xf32>
    tpu.vector_store %arg5[%c0_19, %c0_20, %c0_21], %45 {strides = array<i32>} : memref<1x1x1xf32, #tpu.memory_space<vmem>>, vector<1x1x1xf32>,
    return
  }
  func.func @transform_0(%arg0: i32) -> (i32, i32, i32) {
    %c0_i32 = arith.constant 0 : i32
    %c0_i32_0 = arith.constant 0 : i32
    %c0_i32_1 = arith.constant 0 : i32
    return %arg0, %c0_i32, %c0_i32_0 : i32, i32, i32
  }
  func.func @transform_1(%arg0: i32) -> (i32, i32) {
    %c0_i32 = arith.constant 0 : i32
    %c0_i32_0 = arith.constant 0 : i32
    %c0_i32_1 = arith.constant 0 : i32
    return %c0_i32, %c0_i32_0 : i32, i32
  }
  func.func @transform_2(%arg0: i32) -> (i32, i32, i32) {
    %c0_i32 = arith.constant 0 : i32
    %c0_i32_0 = arith.constant 0 : i32
    %c0_i32_1 = arith.constant 0 : i32
    return %arg0, %c0_i32, %c0_i32_0 : i32, i32, i32
  }
  func.func @transform_3(%arg0: i32) -> (i32, i32, i32) {
    %c0_i32 = arith.constant 0 : i32
    %c0_i32_0 = arith.constant 0 : i32
    %c0_i32_1 = arith.constant 0 : i32
    return %arg0, %c0_i32, %c0_i32_0 : i32, i32, i32
  }
  func.func @transform_4(%arg0: i32) -> (i32, i32, i32) {
    %c0_i32 = arith.constant 0 : i32
    %c0_i32_0 = arith.constant 0 : i32
    %c0_i32_1 = arith.constant 0 : i32
    return %arg0, %c0_i32, %c0_i32_0 : i32, i32, i32
  }
}

module attributes {stable_mosaic.version = 11 : i64} {
  func.func @_decoder_kernel(%arg0: i32, %arg1: memref<1x17x128xf32, #tpu.memory_space<vmem>>, %arg2: memref<128x16xbf16, #tpu.memory_space<vmem>>, %arg3: memref<1x16xf32, #tpu.memory_space<vmem>>, %arg4: memref<34x17xbf16, #tpu.memory_space<vmem>>, %arg5: memref<16x4xbf16, #tpu.memory_space<vmem>>, %arg6: memref<16x4xbf16, #tpu.memory_space<vmem>>, %arg7: memref<1x4xf32, #tpu.memory_space<vmem>>, %arg8: memref<1x4xf32, #tpu.memory_space<vmem>>, %arg9: memref<64x34xf32, #tpu.memory_space<vmem>>, %arg10: memref<64x34xf32, #tpu.memory_space<vmem>>, %arg11: memref<1x64x4xf32, #tpu.memory_space<vmem>>) attributes {dimension_semantics = [#tpu.dimension_semantics<parallel>], iteration_bounds = array<i64: 2>, scalar_prefetch = 0 : i64, scratch_operands = 0 : i64, tpu.core_type = #tpu.core_type<tc>, window_params = [{transform_indices = @transform_0, window_bounds = array<i64: 1, 17, 128>}, {pipeline_mode = #tpu.pipeline_mode<synchronous>, transform_indices = @transform_1, window_bounds = array<i64: 128, 16>}, {pipeline_mode = #tpu.pipeline_mode<synchronous>, transform_indices = @transform_2, window_bounds = array<i64: 1, 16>}, {pipeline_mode = #tpu.pipeline_mode<synchronous>, transform_indices = @transform_3, window_bounds = array<i64: 34, 17>}, {pipeline_mode = #tpu.pipeline_mode<synchronous>, transform_indices = @transform_4, window_bounds = array<i64: 16, 4>}, {pipeline_mode = #tpu.pipeline_mode<synchronous>, transform_indices = @transform_5, window_bounds = array<i64: 16, 4>}, {pipeline_mode = #tpu.pipeline_mode<synchronous>, transform_indices = @transform_6, window_bounds = array<i64: 1, 4>}, {pipeline_mode = #tpu.pipeline_mode<synchronous>, transform_indices = @transform_7, window_bounds = array<i64: 1, 4>}, {pipeline_mode = #tpu.pipeline_mode<synchronous>, transform_indices = @transform_8, window_bounds = array<i64: 64, 34>}, {pipeline_mode = #tpu.pipeline_mode<synchronous>, transform_indices = @transform_9, window_bounds = array<i64: 64, 34>}, {transform_indices = @transform_10, window_bounds = array<i64: 1, 64, 4>}]} {
    %c0 = arith.constant 0 : index
    %c0_0 = arith.constant 0 : index
    %c0_1 = arith.constant 0 : index
    %0 = vector.load %arg1[%c0, %c0_0, %c0_1] : memref<1x17x128xf32, #tpu.memory_space<vmem>>, vector<1x17x128xf32>
    %1 = vector.shape_cast %0 : vector<1x17x128xf32> to vector<17x128xf32>
    %2 = arith.truncf %1 : vector<17x128xf32> to vector<17x128xbf16>
    %c0_2 = arith.constant 0 : index
    %c0_3 = arith.constant 0 : index
    %3 = vector.load %arg2[%c0_2, %c0_3] : memref<128x16xbf16, #tpu.memory_space<vmem>>, vector<128x16xbf16>
    %cst = arith.constant dense<0.000000e+00> : vector<17x16xf32>
    %4 = tpu.matmul %2, %3, %cst {dimension_numbers = #tpu.dot_dimension_numbers<[1], [0], [0], [1], [0, 0, 1, 1], [], []>} : vector<17x128xbf16>, vector<128x16xbf16>, vector<17x16xf32> -> vector<17x16xf32>
    %c0_4 = arith.constant 0 : index
    %c0_5 = arith.constant 0 : index
    %5 = vector.load %arg3[%c0_4, %c0_5] : memref<1x16xf32, #tpu.memory_space<vmem>>, vector<1x16xf32>
    %6 = vector.broadcast %5 : vector<1x16xf32> to vector<17x16xf32>
    %7 = arith.addf %4, %6 : vector<17x16xf32>
    %8 = arith.mulf %7, %7 : vector<17x16xf32>
    %9 = arith.mulf %7, %8 : vector<17x16xf32>
    %cst_6 = arith.constant 4.471500e-02 : f32
    %10 = vector.broadcast %cst_6 : f32 to vector<17x16xf32>
    %11 = arith.mulf %10, %9 : vector<17x16xf32>
    %12 = arith.addf %7, %11 : vector<17x16xf32>
    %cst_7 = arith.constant 0.797884583 : f32
    %13 = vector.broadcast %cst_7 : f32 to vector<17x16xf32>
    %14 = arith.mulf %13, %12 : vector<17x16xf32>
    %15 = math.tanh %14 : vector<17x16xf32>
    %cst_8 = arith.constant 1.000000e+00 : f32
    %16 = vector.broadcast %cst_8 : f32 to vector<17x16xf32>
    %17 = arith.addf %16, %15 : vector<17x16xf32>
    %cst_9 = arith.constant 5.000000e-01 : f32
    %18 = vector.broadcast %cst_9 : f32 to vector<17x16xf32>
    %19 = arith.mulf %18, %17 : vector<17x16xf32>
    %20 = arith.mulf %7, %19 : vector<17x16xf32>
    %21 = arith.truncf %20 : vector<17x16xf32> to vector<17x16xbf16>
    %c0_10 = arith.constant 0 : index
    %c0_11 = arith.constant 0 : index
    %22 = vector.load %arg4[%c0_10, %c0_11] : memref<34x17xbf16, #tpu.memory_space<vmem>>, vector<34x17xbf16>
    %cst_12 = arith.constant dense<0.000000e+00> : vector<34x16xf32>
    %23 = tpu.matmul %22, %21, %cst_12 {dimension_numbers = #tpu.dot_dimension_numbers<[1], [0], [0], [1], [0, 0, 1, 1], [], []>} : vector<34x17xbf16>, vector<17x16xbf16>, vector<34x16xf32> -> vector<34x16xf32>
    %24 = arith.truncf %23 : vector<34x16xf32> to vector<34x16xbf16>
    %c0_13 = arith.constant 0 : index
    %c0_14 = arith.constant 0 : index
    %25 = vector.load %arg5[%c0_13, %c0_14] : memref<16x4xbf16, #tpu.memory_space<vmem>>, vector<16x4xbf16>
    %cst_15 = arith.constant dense<0.000000e+00> : vector<34x4xf32>
    %26 = tpu.matmul %24, %25, %cst_15 {dimension_numbers = #tpu.dot_dimension_numbers<[1], [0], [0], [1], [0, 0, 1, 1], [], []>} : vector<34x16xbf16>, vector<16x4xbf16>, vector<34x4xf32> -> vector<34x4xf32>
    %c0_16 = arith.constant 0 : index
    %c0_17 = arith.constant 0 : index
    %27 = vector.load %arg7[%c0_16, %c0_17] : memref<1x4xf32, #tpu.memory_space<vmem>>, vector<1x4xf32>
    %28 = vector.broadcast %27 : vector<1x4xf32> to vector<34x4xf32>
    %29 = arith.addf %26, %28 : vector<34x4xf32>
    %c0_18 = arith.constant 0 : index
    %c0_19 = arith.constant 0 : index
    %30 = vector.load %arg6[%c0_18, %c0_19] : memref<16x4xbf16, #tpu.memory_space<vmem>>, vector<16x4xbf16>
    %cst_20 = arith.constant dense<0.000000e+00> : vector<34x4xf32>
    %31 = tpu.matmul %24, %30, %cst_20 {dimension_numbers = #tpu.dot_dimension_numbers<[1], [0], [0], [1], [0, 0, 1, 1], [], []>} : vector<34x16xbf16>, vector<16x4xbf16>, vector<34x4xf32> -> vector<34x4xf32>
    %c0_21 = arith.constant 0 : index
    %c0_22 = arith.constant 0 : index
    %32 = vector.load %arg8[%c0_21, %c0_22] : memref<1x4xf32, #tpu.memory_space<vmem>>, vector<1x4xf32>
    %33 = vector.broadcast %32 : vector<1x4xf32> to vector<34x4xf32>
    %34 = arith.addf %31, %33 : vector<34x4xf32>
    %c0_23 = arith.constant 0 : index
    %c0_24 = arith.constant 0 : index
    %35 = vector.load %arg9[%c0_23, %c0_24] : memref<64x34xf32, #tpu.memory_space<vmem>>, vector<64x34xf32>
    %cst_25 = arith.constant dense<0.000000e+00> : vector<64x4xf32>
    %36 = tpu.matmul %35, %29, %cst_25 {dimension_numbers = #tpu.dot_dimension_numbers<[1], [0], [0], [1], [0, 0, 1, 1], [], []>} : vector<64x34xf32>, vector<34x4xf32>, vector<64x4xf32> -> vector<64x4xf32>
    %c0_26 = arith.constant 0 : index
    %c0_27 = arith.constant 0 : index
    %37 = vector.load %arg10[%c0_26, %c0_27] : memref<64x34xf32, #tpu.memory_space<vmem>>, vector<64x34xf32>
    %cst_28 = arith.constant dense<0.000000e+00> : vector<64x4xf32>
    %38 = tpu.matmul %37, %34, %cst_28 {dimension_numbers = #tpu.dot_dimension_numbers<[1], [0], [0], [1], [0, 0, 1, 1], [], []>} : vector<64x34xf32>, vector<34x4xf32>, vector<64x4xf32> -> vector<64x4xf32>
    %39 = arith.addf %36, %38 : vector<64x4xf32>
    %c0_29 = arith.constant 0 : index
    %c0_30 = arith.constant 0 : index
    %c0_31 = arith.constant 0 : index
    %40 = vector.load %arg11[%c0_29, %c0_30, %c0_31] : memref<1x64x4xf32, #tpu.memory_space<vmem>>, vector<1x64x4xf32>
    %41 = vector.shape_cast %40 : vector<1x64x4xf32> to vector<64x4xf32>
    %42 = vector.shape_cast %39 : vector<64x4xf32> to vector<1x64x4xf32>
    tpu.vector_store %arg11[%c0_29, %c0_30, %c0_31], %42 {strides = array<i32>} : memref<1x64x4xf32, #tpu.memory_space<vmem>>, vector<1x64x4xf32>,
    return
  }
  func.func @transform_0(%arg0: i32) -> (i32, i32, i32) {
    %c0_i32 = arith.constant 0 : i32
    %c0_i32_0 = arith.constant 0 : i32
    %c0_i32_1 = arith.constant 0 : i32
    return %arg0, %c0_i32, %c0_i32_0 : i32, i32, i32
  }
  func.func @transform_1(%arg0: i32) -> (i32, i32) {
    %c0_i32 = arith.constant 0 : i32
    %c0_i32_0 = arith.constant 0 : i32
    %c0_i32_1 = arith.constant 0 : i32
    return %c0_i32, %c0_i32_0 : i32, i32
  }
  func.func @transform_2(%arg0: i32) -> (i32, i32) {
    %c0_i32 = arith.constant 0 : i32
    %c0_i32_0 = arith.constant 0 : i32
    %c0_i32_1 = arith.constant 0 : i32
    return %c0_i32, %c0_i32_0 : i32, i32
  }
  func.func @transform_3(%arg0: i32) -> (i32, i32) {
    %c0_i32 = arith.constant 0 : i32
    %c0_i32_0 = arith.constant 0 : i32
    %c0_i32_1 = arith.constant 0 : i32
    return %c0_i32, %c0_i32_0 : i32, i32
  }
  func.func @transform_4(%arg0: i32) -> (i32, i32) {
    %c0_i32 = arith.constant 0 : i32
    %c0_i32_0 = arith.constant 0 : i32
    %c0_i32_1 = arith.constant 0 : i32
    return %c0_i32, %c0_i32_0 : i32, i32
  }
  func.func @transform_5(%arg0: i32) -> (i32, i32) {
    %c0_i32 = arith.constant 0 : i32
    %c0_i32_0 = arith.constant 0 : i32
    %c0_i32_1 = arith.constant 0 : i32
    return %c0_i32, %c0_i32_0 : i32, i32
  }
  func.func @transform_6(%arg0: i32) -> (i32, i32) {
    %c0_i32 = arith.constant 0 : i32
    %c0_i32_0 = arith.constant 0 : i32
    %c0_i32_1 = arith.constant 0 : i32
    return %c0_i32, %c0_i32_0 : i32, i32
  }
  func.func @transform_7(%arg0: i32) -> (i32, i32) {
    %c0_i32 = arith.constant 0 : i32
    %c0_i32_0 = arith.constant 0 : i32
    %c0_i32_1 = arith.constant 0 : i32
    return %c0_i32, %c0_i32_0 : i32, i32
  }
  func.func @transform_8(%arg0: i32) -> (i32, i32) {
    %c0_i32 = arith.constant 0 : i32
    %c0_i32_0 = arith.constant 0 : i32
    %c0_i32_1 = arith.constant 0 : i32
    return %c0_i32, %c0_i32_0 : i32, i32
  }
  func.func @transform_9(%arg0: i32) -> (i32, i32) {
    %c0_i32 = arith.constant 0 : i32
    %c0_i32_0 = arith.constant 0 : i32
    %c0_i32_1 = arith.constant 0 : i32
    return %c0_i32, %c0_i32_0 : i32, i32
  }
  func.func @transform_10(%arg0: i32) -> (i32, i32, i32) {
    %c0_i32 = arith.constant 0 : i32
    %c0_i32_0 = arith.constant 0 : i32
    %c0_i32_1 = arith.constant 0 : i32
    return %arg0, %c0_i32, %c0_i32_0 : i32, i32, i32
  }
}

module attributes {stable_mosaic.version = 11 : i64} {
  func.func @_encoder_lf_kernel(%arg0: i32, %arg1: memref<1x64x4xf32, #tpu.memory_space<vmem>>, %arg2: memref<36x64xf32, #tpu.memory_space<vmem>>, %arg3: memref<36x64xf32, #tpu.memory_space<vmem>>, %arg4: memref<4x16xbf16, #tpu.memory_space<vmem>>, %arg5: memref<4x16xbf16, #tpu.memory_space<vmem>>, %arg6: memref<1x16xf32, #tpu.memory_space<vmem>>, %arg7: memref<9x36xbf16, #tpu.memory_space<vmem>>, %arg8: memref<16x128xbf16, #tpu.memory_space<vmem>>, %arg9: memref<1x128xf32, #tpu.memory_space<vmem>>, %arg10: memref<64x36xf32, #tpu.memory_space<vmem>>, %arg11: memref<64x36xf32, #tpu.memory_space<vmem>>, %arg12: memref<1x9x128xf32, #tpu.memory_space<vmem>>, %arg13: memref<1x64x4xf32, #tpu.memory_space<vmem>>) attributes {dimension_semantics = [#tpu.dimension_semantics<parallel>], iteration_bounds = array<i64: 2>, scalar_prefetch = 0 : i64, scratch_operands = 0 : i64, tpu.core_type = #tpu.core_type<tc>, window_params = [{transform_indices = @transform_0, window_bounds = array<i64: 1, 64, 4>}, {pipeline_mode = #tpu.pipeline_mode<synchronous>, transform_indices = @transform_1, window_bounds = array<i64: 36, 64>}, {pipeline_mode = #tpu.pipeline_mode<synchronous>, transform_indices = @transform_2, window_bounds = array<i64: 36, 64>}, {pipeline_mode = #tpu.pipeline_mode<synchronous>, transform_indices = @transform_3, window_bounds = array<i64: 4, 16>}, {pipeline_mode = #tpu.pipeline_mode<synchronous>, transform_indices = @transform_4, window_bounds = array<i64: 4, 16>}, {pipeline_mode = #tpu.pipeline_mode<synchronous>, transform_indices = @transform_5, window_bounds = array<i64: 1, 16>}, {pipeline_mode = #tpu.pipeline_mode<synchronous>, transform_indices = @transform_6, window_bounds = array<i64: 9, 36>}, {pipeline_mode = #tpu.pipeline_mode<synchronous>, transform_indices = @transform_7, window_bounds = array<i64: 16, 128>}, {pipeline_mode = #tpu.pipeline_mode<synchronous>, transform_indices = @transform_8, window_bounds = array<i64: 1, 128>}, {pipeline_mode = #tpu.pipeline_mode<synchronous>, transform_indices = @transform_9, window_bounds = array<i64: 64, 36>}, {pipeline_mode = #tpu.pipeline_mode<synchronous>, transform_indices = @transform_10, window_bounds = array<i64: 64, 36>}, {transform_indices = @transform_11, window_bounds = array<i64: 1, 9, 128>}, {transform_indices = @transform_12, window_bounds = array<i64: 1, 64, 4>}]} {
    %c0 = arith.constant 0 : index
    %c0_0 = arith.constant 0 : index
    %c0_1 = arith.constant 0 : index
    %0 = vector.load %arg1[%c0, %c0_0, %c0_1] : memref<1x64x4xf32, #tpu.memory_space<vmem>>, vector<1x64x4xf32>
    %1 = vector.shape_cast %0 : vector<1x64x4xf32> to vector<64x4xf32>
    %c0_2 = arith.constant 0 : index
    %c0_3 = arith.constant 0 : index
    %2 = vector.load %arg2[%c0_2, %c0_3] : memref<36x64xf32, #tpu.memory_space<vmem>>, vector<36x64xf32>
    %cst = arith.constant dense<0.000000e+00> : vector<36x4xf32>
    %3 = tpu.matmul %2, %1, %cst {dimension_numbers = #tpu.dot_dimension_numbers<[1], [0], [0], [1], [0, 0, 1, 1], [], []>} : vector<36x64xf32>, vector<64x4xf32>, vector<36x4xf32> -> vector<36x4xf32>
    %c0_4 = arith.constant 0 : index
    %c0_5 = arith.constant 0 : index
    %4 = vector.load %arg3[%c0_4, %c0_5] : memref<36x64xf32, #tpu.memory_space<vmem>>, vector<36x64xf32>
    %cst_6 = arith.constant dense<0.000000e+00> : vector<36x4xf32>
    %5 = tpu.matmul %4, %1, %cst_6 {dimension_numbers = #tpu.dot_dimension_numbers<[1], [0], [0], [1], [0, 0, 1, 1], [], []>} : vector<36x64xf32>, vector<64x4xf32>, vector<36x4xf32> -> vector<36x4xf32>
    %6 = arith.truncf %3 : vector<36x4xf32> to vector<36x4xbf16>
    %c0_7 = arith.constant 0 : index
    %c0_8 = arith.constant 0 : index
    %7 = vector.load %arg4[%c0_7, %c0_8] : memref<4x16xbf16, #tpu.memory_space<vmem>>, vector<4x16xbf16>
    %cst_9 = arith.constant dense<0.000000e+00> : vector<36x16xf32>
    %8 = tpu.matmul %6, %7, %cst_9 {dimension_numbers = #tpu.dot_dimension_numbers<[1], [0], [0], [1], [0, 0, 1, 1], [], []>} : vector<36x4xbf16>, vector<4x16xbf16>, vector<36x16xf32> -> vector<36x16xf32>
    %9 = arith.truncf %5 : vector<36x4xf32> to vector<36x4xbf16>
    %c0_10 = arith.constant 0 : index
    %c0_11 = arith.constant 0 : index
    %10 = vector.load %arg5[%c0_10, %c0_11] : memref<4x16xbf16, #tpu.memory_space<vmem>>, vector<4x16xbf16>
    %cst_12 = arith.constant dense<0.000000e+00> : vector<36x16xf32>
    %11 = tpu.matmul %9, %10, %cst_12 {dimension_numbers = #tpu.dot_dimension_numbers<[1], [0], [0], [1], [0, 0, 1, 1], [], []>} : vector<36x4xbf16>, vector<4x16xbf16>, vector<36x16xf32> -> vector<36x16xf32>
    %12 = arith.addf %8, %11 : vector<36x16xf32>
    %c0_13 = arith.constant 0 : index
    %c0_14 = arith.constant 0 : index
    %13 = vector.load %arg6[%c0_13, %c0_14] : memref<1x16xf32, #tpu.memory_space<vmem>>, vector<1x16xf32>
    %14 = vector.broadcast %13 : vector<1x16xf32> to vector<36x16xf32>
    %15 = arith.addf %12, %14 : vector<36x16xf32>
    %16 = arith.mulf %15, %15 : vector<36x16xf32>
    %17 = arith.mulf %15, %16 : vector<36x16xf32>
    %cst_15 = arith.constant 4.471500e-02 : f32
    %18 = vector.broadcast %cst_15 : f32 to vector<36x16xf32>
    %19 = arith.mulf %18, %17 : vector<36x16xf32>
    %20 = arith.addf %15, %19 : vector<36x16xf32>
    %cst_16 = arith.constant 0.797884583 : f32
    %21 = vector.broadcast %cst_16 : f32 to vector<36x16xf32>
    %22 = arith.mulf %21, %20 : vector<36x16xf32>
    %23 = math.tanh %22 : vector<36x16xf32>
    %cst_17 = arith.constant 1.000000e+00 : f32
    %24 = vector.broadcast %cst_17 : f32 to vector<36x16xf32>
    %25 = arith.addf %24, %23 : vector<36x16xf32>
    %cst_18 = arith.constant 5.000000e-01 : f32
    %26 = vector.broadcast %cst_18 : f32 to vector<36x16xf32>
    %27 = arith.mulf %26, %25 : vector<36x16xf32>
    %28 = arith.mulf %15, %27 : vector<36x16xf32>
    %29 = arith.truncf %28 : vector<36x16xf32> to vector<36x16xbf16>
    %c0_19 = arith.constant 0 : index
    %c0_20 = arith.constant 0 : index
    %30 = vector.load %arg7[%c0_19, %c0_20] : memref<9x36xbf16, #tpu.memory_space<vmem>>, vector<9x36xbf16>
    %cst_21 = arith.constant dense<0.000000e+00> : vector<9x16xf32>
    %31 = tpu.matmul %30, %29, %cst_21 {dimension_numbers = #tpu.dot_dimension_numbers<[1], [0], [0], [1], [0, 0, 1, 1], [], []>} : vector<9x36xbf16>, vector<36x16xbf16>, vector<9x16xf32> -> vector<9x16xf32>
    %32 = arith.truncf %31 : vector<9x16xf32> to vector<9x16xbf16>
    %c0_22 = arith.constant 0 : index
    %c0_23 = arith.constant 0 : index
    %33 = vector.load %arg8[%c0_22, %c0_23] : memref<16x128xbf16, #tpu.memory_space<vmem>>, vector<16x128xbf16>
    %cst_24 = arith.constant dense<0.000000e+00> : vector<9x128xf32>
    %34 = tpu.matmul %32, %33, %cst_24 {dimension_numbers = #tpu.dot_dimension_numbers<[1], [0], [0], [1], [0, 0, 1, 1], [], []>} : vector<9x16xbf16>, vector<16x128xbf16>, vector<9x128xf32> -> vector<9x128xf32>
    %c0_25 = arith.constant 0 : index
    %c0_26 = arith.constant 0 : index
    %35 = vector.load %arg9[%c0_25, %c0_26] : memref<1x128xf32, #tpu.memory_space<vmem>>, vector<1x128xf32>
    %36 = vector.broadcast %35 : vector<1x128xf32> to vector<9x128xf32>
    %37 = arith.addf %34, %36 : vector<9x128xf32>
    %c0_27 = arith.constant 0 : index
    %c0_28 = arith.constant 0 : index
    %c0_29 = arith.constant 0 : index
    %38 = vector.load %arg12[%c0_27, %c0_28, %c0_29] : memref<1x9x128xf32, #tpu.memory_space<vmem>>, vector<1x9x128xf32>
    %39 = vector.shape_cast %38 : vector<1x9x128xf32> to vector<9x128xf32>
    %40 = vector.shape_cast %37 : vector<9x128xf32> to vector<1x9x128xf32>
    tpu.vector_store %arg12[%c0_27, %c0_28, %c0_29], %40 {strides = array<i32>} : memref<1x9x128xf32, #tpu.memory_space<vmem>>, vector<1x9x128xf32>,
    %c0_30 = arith.constant 0 : index
    %c0_31 = arith.constant 0 : index
    %41 = vector.load %arg10[%c0_30, %c0_31] : memref<64x36xf32, #tpu.memory_space<vmem>>, vector<64x36xf32>
    %cst_32 = arith.constant dense<0.000000e+00> : vector<64x4xf32>
    %42 = tpu.matmul %41, %3, %cst_32 {dimension_numbers = #tpu.dot_dimension_numbers<[1], [0], [0], [1], [0, 0, 1, 1], [], []>} : vector<64x36xf32>, vector<36x4xf32>, vector<64x4xf32> -> vector<64x4xf32>
    %c0_33 = arith.constant 0 : index
    %c0_34 = arith.constant 0 : index
    %43 = vector.load %arg11[%c0_33, %c0_34] : memref<64x36xf32, #tpu.memory_space<vmem>>, vector<64x36xf32>
    %cst_35 = arith.constant dense<0.000000e+00> : vector<64x4xf32>
    %44 = tpu.matmul %43, %5, %cst_35 {dimension_numbers = #tpu.dot_dimension_numbers<[1], [0], [0], [1], [0, 0, 1, 1], [], []>} : vector<64x36xf32>, vector<36x4xf32>, vector<64x4xf32> -> vector<64x4xf32>
    %45 = arith.addf %42, %44 : vector<64x4xf32>
    %c0_36 = arith.constant 0 : index
    %c0_37 = arith.constant 0 : index
    %c0_38 = arith.constant 0 : index
    %46 = vector.load %arg13[%c0_36, %c0_37, %c0_38] : memref<1x64x4xf32, #tpu.memory_space<vmem>>, vector<1x64x4xf32>
    %47 = vector.shape_cast %46 : vector<1x64x4xf32> to vector<64x4xf32>
    %48 = vector.shape_cast %45 : vector<64x4xf32> to vector<1x64x4xf32>
    tpu.vector_store %arg13[%c0_36, %c0_37, %c0_38], %48 {strides = array<i32>} : memref<1x64x4xf32, #tpu.memory_space<vmem>>, vector<1x64x4xf32>,
    return
  }
  func.func @transform_0(%arg0: i32) -> (i32, i32, i32) {
    %c0_i32 = arith.constant 0 : i32
    %c0_i32_0 = arith.constant 0 : i32
    %c0_i32_1 = arith.constant 0 : i32
    return %arg0, %c0_i32, %c0_i32_0 : i32, i32, i32
  }
  func.func @transform_1(%arg0: i32) -> (i32, i32) {
    %c0_i32 = arith.constant 0 : i32
    %c0_i32_0 = arith.constant 0 : i32
    %c0_i32_1 = arith.constant 0 : i32
    return %c0_i32, %c0_i32_0 : i32, i32
  }
  func.func @transform_2(%arg0: i32) -> (i32, i32) {
    %c0_i32 = arith.constant 0 : i32
    %c0_i32_0 = arith.constant 0 : i32
    %c0_i32_1 = arith.constant 0 : i32
    return %c0_i32, %c0_i32_0 : i32, i32
  }
  func.func @transform_3(%arg0: i32) -> (i32, i32) {
    %c0_i32 = arith.constant 0 : i32
    %c0_i32_0 = arith.constant 0 : i32
    %c0_i32_1 = arith.constant 0 : i32
    return %c0_i32, %c0_i32_0 : i32, i32
  }
  func.func @transform_4(%arg0: i32) -> (i32, i32) {
    %c0_i32 = arith.constant 0 : i32
    %c0_i32_0 = arith.constant 0 : i32
    %c0_i32_1 = arith.constant 0 : i32
    return %c0_i32, %c0_i32_0 : i32, i32
  }
  func.func @transform_5(%arg0: i32) -> (i32, i32) {
    %c0_i32 = arith.constant 0 : i32
    %c0_i32_0 = arith.constant 0 : i32
    %c0_i32_1 = arith.constant 0 : i32
    return %c0_i32, %c0_i32_0 : i32, i32
  }
  func.func @transform_6(%arg0: i32) -> (i32, i32) {
    %c0_i32 = arith.constant 0 : i32
    %c0_i32_0 = arith.constant 0 : i32
    %c0_i32_1 = arith.constant 0 : i32
    return %c0_i32, %c0_i32_0 : i32, i32
  }
  func.func @transform_7(%arg0: i32) -> (i32, i32) {
    %c0_i32 = arith.constant 0 : i32
    %c0_i32_0 = arith.constant 0 : i32
    %c0_i32_1 = arith.constant 0 : i32
    return %c0_i32, %c0_i32_0 : i32, i32
  }
  func.func @transform_8(%arg0: i32) -> (i32, i32) {
    %c0_i32 = arith.constant 0 : i32
    %c0_i32_0 = arith.constant 0 : i32
    %c0_i32_1 = arith.constant 0 : i32
    return %c0_i32, %c0_i32_0 : i32, i32
  }
  func.func @transform_9(%arg0: i32) -> (i32, i32) {
    %c0_i32 = arith.constant 0 : i32
    %c0_i32_0 = arith.constant 0 : i32
    %c0_i32_1 = arith.constant 0 : i32
    return %c0_i32, %c0_i32_0 : i32, i32
  }
  func.func @transform_10(%arg0: i32) -> (i32, i32) {
    %c0_i32 = arith.constant 0 : i32
    %c0_i32_0 = arith.constant 0 : i32
    %c0_i32_1 = arith.constant 0 : i32
    return %c0_i32, %c0_i32_0 : i32, i32
  }
  func.func @transform_11(%arg0: i32) -> (i32, i32, i32) {
    %c0_i32 = arith.constant 0 : i32
    %c0_i32_0 = arith.constant 0 : i32
    %c0_i32_1 = arith.constant 0 : i32
    return %arg0, %c0_i32, %c0_i32_0 : i32, i32, i32
  }
  func.func @transform_12(%arg0: i32) -> (i32, i32, i32) {
    %c0_i32 = arith.constant 0 : i32
    %c0_i32_0 = arith.constant 0 : i32
    %c0_i32_1 = arith.constant 0 : i32
    return %arg0, %c0_i32, %c0_i32_0 : i32, i32, i32
  }
}

module attributes {stable_mosaic.version = 11 : i64} {
  func.func @_vq_kernel(%arg0: i32, %arg1: memref<1x9x128xf32, #tpu.memory_space<vmem>>, %arg2: memref<128x128xf32, #tpu.memory_space<vmem>>, %arg3: memref<1x9x128xf32, #tpu.memory_space<vmem>>, %arg4: memref<1x1x128xf32, #tpu.memory_space<vmem>>, %arg5: memref<1x1x1xf32, #tpu.memory_space<vmem>>) attributes {dimension_semantics = [#tpu.dimension_semantics<parallel>], iteration_bounds = array<i64: 2>, scalar_prefetch = 0 : i64, scratch_operands = 0 : i64, tpu.core_type = #tpu.core_type<tc>, window_params = [{transform_indices = @transform_0, window_bounds = array<i64: 1, 9, 128>}, {pipeline_mode = #tpu.pipeline_mode<synchronous>, transform_indices = @transform_1, window_bounds = array<i64: 128, 128>}, {transform_indices = @transform_2, window_bounds = array<i64: 1, 9, 128>}, {transform_indices = @transform_3, window_bounds = array<i64: 1, 1, 128>}, {transform_indices = @transform_4, window_bounds = array<i64: 1, 1, 1>}]} {
    %c0 = arith.constant 0 : index
    %c0_0 = arith.constant 0 : index
    %c0_1 = arith.constant 0 : index
    %0 = vector.load %arg1[%c0, %c0_0, %c0_1] : memref<1x9x128xf32, #tpu.memory_space<vmem>>, vector<1x9x128xf32>
    %1 = vector.shape_cast %0 : vector<1x9x128xf32> to vector<9x128xf32>
    %c0_2 = arith.constant 0 : index
    %c0_3 = arith.constant 0 : index
    %2 = vector.load %arg2[%c0_2, %c0_3] : memref<128x128xf32, #tpu.memory_space<vmem>>, vector<128x128xf32>
    %cst = arith.constant dense<0.000000e+00> : vector<9x128xf32>
    %3 = tpu.matmul %1, %2, %cst {dimension_numbers = #tpu.dot_dimension_numbers<[1], [1], [0], [0], [0, 0, 1, 0], [], []>} : vector<9x128xf32>, vector<128x128xf32>, vector<9x128xf32> -> vector<9x128xf32>
    %4 = arith.mulf %2, %2 : vector<128x128xf32>
    %cst_4 = arith.constant dense<0.000000e+00> : vector<128xf32>
    %5 = vector.multi_reduction <add>, %4, %cst_4 [1] : vector<128x128xf32> to vector<128xf32>
    %6 = vector.shape_cast %5 : vector<128xf32> to vector<1x128xf32>
    %cst_5 = arith.constant 2.000000e+00 : f32
    %7 = vector.broadcast %cst_5 : f32 to vector<9x128xf32>
    %8 = arith.mulf %7, %3 : vector<9x128xf32>
    %9 = vector.broadcast %6 : vector<1x128xf32> to vector<9x128xf32>
    %10 = arith.subf %9, %8 : vector<9x128xf32>
    %11 = tpu.iota {dimensions = array<i32: 1>} : vector<9x128xi32>
    %c32_i32 = arith.constant 32 : i32
    %12 = vector.broadcast %c32_i32 : i32 to vector<9x128xi32>
    %13 = arith.cmpi slt, %11, %12 : vector<9x128xi32>
    %cst_6 = arith.constant 1.000000e+30 : f32
    %14 = vector.broadcast %cst_6 : f32 to vector<9x128xf32>
    %15 = arith.select %13, %10, %14 : vector<9x128xi1>, vector<9x128xf32>
    %cst_7 = arith.constant dense<0x7F800000> : vector<9xf32>
    %16 = vector.multi_reduction <minimumf>, %15, %cst_7 [1] : vector<9x128xf32> to vector<9xf32>
    %17 = vector.shape_cast %16 : vector<9xf32> to vector<9x1xf32>
    %18 = vector.broadcast %17 : vector<9x1xf32> to vector<9x128xf32>
    %19 = arith.cmpf oeq, %15, %18 : vector<9x128xf32>
    %c128_i32 = arith.constant 128 : i32
    %20 = vector.broadcast %c128_i32 : i32 to vector<9x128xi32>
    %21 = arith.select %19, %11, %20 : vector<9x128xi1>, vector<9x128xi32>
    %cst_8 = arith.constant dense<2147483647> : vector<9xi32>
    %22 = vector.multi_reduction <minsi>, %21, %cst_8 [1] : vector<9x128xi32> to vector<9xi32>
    %23 = vector.shape_cast %22 : vector<9xi32> to vector<9x1xi32>
    %24 = vector.broadcast %23 : vector<9x1xi32> to vector<9x128xi32>
    %25 = arith.cmpi eq, %11, %24 : vector<9x128xi32>
    %26 = arith.extui %25 : vector<9x128xi1> to vector<9x128xi32>
    %27 = arith.sitofp %26 : vector<9x128xi32> to vector<9x128xf32>
    %cst_9 = arith.constant dense<0.000000e+00> : vector<9x128xf32>
    %28 = tpu.matmul %27, %2, %cst_9 {dimension_numbers = #tpu.dot_dimension_numbers<[1], [0], [0], [1], [0, 0, 1, 1], [], []>} : vector<9x128xf32>, vector<128x128xf32>, vector<9x128xf32> -> vector<9x128xf32>
    %c0_10 = arith.constant 0 : index
    %c0_11 = arith.constant 0 : index
    %c0_12 = arith.constant 0 : index
    %29 = vector.load %arg3[%c0_10, %c0_11, %c0_12] : memref<1x9x128xf32, #tpu.memory_space<vmem>>, vector<1x9x128xf32>
    %30 = vector.shape_cast %29 : vector<1x9x128xf32> to vector<9x128xf32>
    %31 = vector.shape_cast %28 : vector<9x128xf32> to vector<1x9x128xf32>
    tpu.vector_store %arg3[%c0_10, %c0_11, %c0_12], %31 {strides = array<i32>} : memref<1x9x128xf32, #tpu.memory_space<vmem>>, vector<1x9x128xf32>,
    %cst_13 = arith.constant dense<0.000000e+00> : vector<128xf32>
    %32 = vector.multi_reduction <add>, %27, %cst_13 [0] : vector<9x128xf32> to vector<128xf32>
    %33 = vector.shape_cast %32 : vector<128xf32> to vector<1x128xf32>
    %c0_14 = arith.constant 0 : index
    %c0_15 = arith.constant 0 : index
    %c0_16 = arith.constant 0 : index
    %34 = vector.load %arg4[%c0_14, %c0_15, %c0_16] : memref<1x1x128xf32, #tpu.memory_space<vmem>>, vector<1x1x128xf32>
    %35 = vector.shape_cast %34 : vector<1x1x128xf32> to vector<1x128xf32>
    %36 = vector.shape_cast %33 : vector<1x128xf32> to vector<1x1x128xf32>
    tpu.vector_store %arg4[%c0_14, %c0_15, %c0_16], %36 {strides = array<i32>} : memref<1x1x128xf32, #tpu.memory_space<vmem>>, vector<1x1x128xf32>,
    %37 = arith.subf %28, %1 : vector<9x128xf32>
    %38 = arith.mulf %37, %37 : vector<9x128xf32>
    %cst_17 = arith.constant dense<0.000000e+00> : vector<9xf32>
    %39 = vector.multi_reduction <add>, %38, %cst_17 [1] : vector<9x128xf32> to vector<9xf32>
    %40 = vector.shape_cast %39 : vector<9xf32> to vector<9x1xf32>
    %cst_18 = arith.constant dense<0.000000e+00> : vector<1xf32>
    %41 = vector.multi_reduction <add>, %40, %cst_18 [0] : vector<9x1xf32> to vector<1xf32>
    %42 = vector.shape_cast %41 : vector<1xf32> to vector<1x1xf32>
    %c0_19 = arith.constant 0 : index
    %c0_20 = arith.constant 0 : index
    %c0_21 = arith.constant 0 : index
    %43 = vector.load %arg5[%c0_19, %c0_20, %c0_21] : memref<1x1x1xf32, #tpu.memory_space<vmem>>, vector<1x1x1xf32>
    %44 = vector.shape_cast %43 : vector<1x1x1xf32> to vector<1x1xf32>
    %45 = vector.shape_cast %42 : vector<1x1xf32> to vector<1x1x1xf32>
    tpu.vector_store %arg5[%c0_19, %c0_20, %c0_21], %45 {strides = array<i32>} : memref<1x1x1xf32, #tpu.memory_space<vmem>>, vector<1x1x1xf32>,
    return
  }
  func.func @transform_0(%arg0: i32) -> (i32, i32, i32) {
    %c0_i32 = arith.constant 0 : i32
    %c0_i32_0 = arith.constant 0 : i32
    %c0_i32_1 = arith.constant 0 : i32
    return %arg0, %c0_i32, %c0_i32_0 : i32, i32, i32
  }
  func.func @transform_1(%arg0: i32) -> (i32, i32) {
    %c0_i32 = arith.constant 0 : i32
    %c0_i32_0 = arith.constant 0 : i32
    %c0_i32_1 = arith.constant 0 : i32
    return %c0_i32, %c0_i32_0 : i32, i32
  }
  func.func @transform_2(%arg0: i32) -> (i32, i32, i32) {
    %c0_i32 = arith.constant 0 : i32
    %c0_i32_0 = arith.constant 0 : i32
    %c0_i32_1 = arith.constant 0 : i32
    return %arg0, %c0_i32, %c0_i32_0 : i32, i32, i32
  }
  func.func @transform_3(%arg0: i32) -> (i32, i32, i32) {
    %c0_i32 = arith.constant 0 : i32
    %c0_i32_0 = arith.constant 0 : i32
    %c0_i32_1 = arith.constant 0 : i32
    return %arg0, %c0_i32, %c0_i32_0 : i32, i32, i32
  }
  func.func @transform_4(%arg0: i32) -> (i32, i32, i32) {
    %c0_i32 = arith.constant 0 : i32
    %c0_i32_0 = arith.constant 0 : i32
    %c0_i32_1 = arith.constant 0 : i32
    return %arg0, %c0_i32, %c0_i32_0 : i32, i32, i32
  }
}

module attributes {stable_mosaic.version = 11 : i64} {
  func.func @_decoder_kernel(%arg0: i32, %arg1: memref<1x9x128xf32, #tpu.memory_space<vmem>>, %arg2: memref<128x16xbf16, #tpu.memory_space<vmem>>, %arg3: memref<1x16xf32, #tpu.memory_space<vmem>>, %arg4: memref<36x9xbf16, #tpu.memory_space<vmem>>, %arg5: memref<16x4xbf16, #tpu.memory_space<vmem>>, %arg6: memref<16x4xbf16, #tpu.memory_space<vmem>>, %arg7: memref<1x4xf32, #tpu.memory_space<vmem>>, %arg8: memref<1x4xf32, #tpu.memory_space<vmem>>, %arg9: memref<64x36xf32, #tpu.memory_space<vmem>>, %arg10: memref<64x36xf32, #tpu.memory_space<vmem>>, %arg11: memref<1x64x4xf32, #tpu.memory_space<vmem>>) attributes {dimension_semantics = [#tpu.dimension_semantics<parallel>], iteration_bounds = array<i64: 2>, scalar_prefetch = 0 : i64, scratch_operands = 0 : i64, tpu.core_type = #tpu.core_type<tc>, window_params = [{transform_indices = @transform_0, window_bounds = array<i64: 1, 9, 128>}, {pipeline_mode = #tpu.pipeline_mode<synchronous>, transform_indices = @transform_1, window_bounds = array<i64: 128, 16>}, {pipeline_mode = #tpu.pipeline_mode<synchronous>, transform_indices = @transform_2, window_bounds = array<i64: 1, 16>}, {pipeline_mode = #tpu.pipeline_mode<synchronous>, transform_indices = @transform_3, window_bounds = array<i64: 36, 9>}, {pipeline_mode = #tpu.pipeline_mode<synchronous>, transform_indices = @transform_4, window_bounds = array<i64: 16, 4>}, {pipeline_mode = #tpu.pipeline_mode<synchronous>, transform_indices = @transform_5, window_bounds = array<i64: 16, 4>}, {pipeline_mode = #tpu.pipeline_mode<synchronous>, transform_indices = @transform_6, window_bounds = array<i64: 1, 4>}, {pipeline_mode = #tpu.pipeline_mode<synchronous>, transform_indices = @transform_7, window_bounds = array<i64: 1, 4>}, {pipeline_mode = #tpu.pipeline_mode<synchronous>, transform_indices = @transform_8, window_bounds = array<i64: 64, 36>}, {pipeline_mode = #tpu.pipeline_mode<synchronous>, transform_indices = @transform_9, window_bounds = array<i64: 64, 36>}, {transform_indices = @transform_10, window_bounds = array<i64: 1, 64, 4>}]} {
    %c0 = arith.constant 0 : index
    %c0_0 = arith.constant 0 : index
    %c0_1 = arith.constant 0 : index
    %0 = vector.load %arg1[%c0, %c0_0, %c0_1] : memref<1x9x128xf32, #tpu.memory_space<vmem>>, vector<1x9x128xf32>
    %1 = vector.shape_cast %0 : vector<1x9x128xf32> to vector<9x128xf32>
    %2 = arith.truncf %1 : vector<9x128xf32> to vector<9x128xbf16>
    %c0_2 = arith.constant 0 : index
    %c0_3 = arith.constant 0 : index
    %3 = vector.load %arg2[%c0_2, %c0_3] : memref<128x16xbf16, #tpu.memory_space<vmem>>, vector<128x16xbf16>
    %cst = arith.constant dense<0.000000e+00> : vector<9x16xf32>
    %4 = tpu.matmul %2, %3, %cst {dimension_numbers = #tpu.dot_dimension_numbers<[1], [0], [0], [1], [0, 0, 1, 1], [], []>} : vector<9x128xbf16>, vector<128x16xbf16>, vector<9x16xf32> -> vector<9x16xf32>
    %c0_4 = arith.constant 0 : index
    %c0_5 = arith.constant 0 : index
    %5 = vector.load %arg3[%c0_4, %c0_5] : memref<1x16xf32, #tpu.memory_space<vmem>>, vector<1x16xf32>
    %6 = vector.broadcast %5 : vector<1x16xf32> to vector<9x16xf32>
    %7 = arith.addf %4, %6 : vector<9x16xf32>
    %8 = arith.mulf %7, %7 : vector<9x16xf32>
    %9 = arith.mulf %7, %8 : vector<9x16xf32>
    %cst_6 = arith.constant 4.471500e-02 : f32
    %10 = vector.broadcast %cst_6 : f32 to vector<9x16xf32>
    %11 = arith.mulf %10, %9 : vector<9x16xf32>
    %12 = arith.addf %7, %11 : vector<9x16xf32>
    %cst_7 = arith.constant 0.797884583 : f32
    %13 = vector.broadcast %cst_7 : f32 to vector<9x16xf32>
    %14 = arith.mulf %13, %12 : vector<9x16xf32>
    %15 = math.tanh %14 : vector<9x16xf32>
    %cst_8 = arith.constant 1.000000e+00 : f32
    %16 = vector.broadcast %cst_8 : f32 to vector<9x16xf32>
    %17 = arith.addf %16, %15 : vector<9x16xf32>
    %cst_9 = arith.constant 5.000000e-01 : f32
    %18 = vector.broadcast %cst_9 : f32 to vector<9x16xf32>
    %19 = arith.mulf %18, %17 : vector<9x16xf32>
    %20 = arith.mulf %7, %19 : vector<9x16xf32>
    %21 = arith.truncf %20 : vector<9x16xf32> to vector<9x16xbf16>
    %c0_10 = arith.constant 0 : index
    %c0_11 = arith.constant 0 : index
    %22 = vector.load %arg4[%c0_10, %c0_11] : memref<36x9xbf16, #tpu.memory_space<vmem>>, vector<36x9xbf16>
    %cst_12 = arith.constant dense<0.000000e+00> : vector<36x16xf32>
    %23 = tpu.matmul %22, %21, %cst_12 {dimension_numbers = #tpu.dot_dimension_numbers<[1], [0], [0], [1], [0, 0, 1, 1], [], []>} : vector<36x9xbf16>, vector<9x16xbf16>, vector<36x16xf32> -> vector<36x16xf32>
    %24 = arith.truncf %23 : vector<36x16xf32> to vector<36x16xbf16>
    %c0_13 = arith.constant 0 : index
    %c0_14 = arith.constant 0 : index
    %25 = vector.load %arg5[%c0_13, %c0_14] : memref<16x4xbf16, #tpu.memory_space<vmem>>, vector<16x4xbf16>
    %cst_15 = arith.constant dense<0.000000e+00> : vector<36x4xf32>
    %26 = tpu.matmul %24, %25, %cst_15 {dimension_numbers = #tpu.dot_dimension_numbers<[1], [0], [0], [1], [0, 0, 1, 1], [], []>} : vector<36x16xbf16>, vector<16x4xbf16>, vector<36x4xf32> -> vector<36x4xf32>
    %c0_16 = arith.constant 0 : index
    %c0_17 = arith.constant 0 : index
    %27 = vector.load %arg7[%c0_16, %c0_17] : memref<1x4xf32, #tpu.memory_space<vmem>>, vector<1x4xf32>
    %28 = vector.broadcast %27 : vector<1x4xf32> to vector<36x4xf32>
    %29 = arith.addf %26, %28 : vector<36x4xf32>
    %c0_18 = arith.constant 0 : index
    %c0_19 = arith.constant 0 : index
    %30 = vector.load %arg6[%c0_18, %c0_19] : memref<16x4xbf16, #tpu.memory_space<vmem>>, vector<16x4xbf16>
    %cst_20 = arith.constant dense<0.000000e+00> : vector<36x4xf32>
    %31 = tpu.matmul %24, %30, %cst_20 {dimension_numbers = #tpu.dot_dimension_numbers<[1], [0], [0], [1], [0, 0, 1, 1], [], []>} : vector<36x16xbf16>, vector<16x4xbf16>, vector<36x4xf32> -> vector<36x4xf32>
    %c0_21 = arith.constant 0 : index
    %c0_22 = arith.constant 0 : index
    %32 = vector.load %arg8[%c0_21, %c0_22] : memref<1x4xf32, #tpu.memory_space<vmem>>, vector<1x4xf32>
    %33 = vector.broadcast %32 : vector<1x4xf32> to vector<36x4xf32>
    %34 = arith.addf %31, %33 : vector<36x4xf32>
    %c0_23 = arith.constant 0 : index
    %c0_24 = arith.constant 0 : index
    %35 = vector.load %arg9[%c0_23, %c0_24] : memref<64x36xf32, #tpu.memory_space<vmem>>, vector<64x36xf32>
    %cst_25 = arith.constant dense<0.000000e+00> : vector<64x4xf32>
    %36 = tpu.matmul %35, %29, %cst_25 {dimension_numbers = #tpu.dot_dimension_numbers<[1], [0], [0], [1], [0, 0, 1, 1], [], []>} : vector<64x36xf32>, vector<36x4xf32>, vector<64x4xf32> -> vector<64x4xf32>
    %c0_26 = arith.constant 0 : index
    %c0_27 = arith.constant 0 : index
    %37 = vector.load %arg10[%c0_26, %c0_27] : memref<64x36xf32, #tpu.memory_space<vmem>>, vector<64x36xf32>
    %cst_28 = arith.constant dense<0.000000e+00> : vector<64x4xf32>
    %38 = tpu.matmul %37, %34, %cst_28 {dimension_numbers = #tpu.dot_dimension_numbers<[1], [0], [0], [1], [0, 0, 1, 1], [], []>} : vector<64x36xf32>, vector<36x4xf32>, vector<64x4xf32> -> vector<64x4xf32>
    %39 = arith.addf %36, %38 : vector<64x4xf32>
    %c0_29 = arith.constant 0 : index
    %c0_30 = arith.constant 0 : index
    %c0_31 = arith.constant 0 : index
    %40 = vector.load %arg11[%c0_29, %c0_30, %c0_31] : memref<1x64x4xf32, #tpu.memory_space<vmem>>, vector<1x64x4xf32>
    %41 = vector.shape_cast %40 : vector<1x64x4xf32> to vector<64x4xf32>
    %42 = vector.shape_cast %39 : vector<64x4xf32> to vector<1x64x4xf32>
    tpu.vector_store %arg11[%c0_29, %c0_30, %c0_31], %42 {strides = array<i32>} : memref<1x64x4xf32, #tpu.memory_space<vmem>>, vector<1x64x4xf32>,
    return
  }
  func.func @transform_0(%arg0: i32) -> (i32, i32, i32) {
    %c0_i32 = arith.constant 0 : i32
    %c0_i32_0 = arith.constant 0 : i32
    %c0_i32_1 = arith.constant 0 : i32
    return %arg0, %c0_i32, %c0_i32_0 : i32, i32, i32
  }
  func.func @transform_1(%arg0: i32) -> (i32, i32) {
    %c0_i32 = arith.constant 0 : i32
    %c0_i32_0 = arith.constant 0 : i32
    %c0_i32_1 = arith.constant 0 : i32
    return %c0_i32, %c0_i32_0 : i32, i32
  }
  func.func @transform_2(%arg0: i32) -> (i32, i32) {
    %c0_i32 = arith.constant 0 : i32
    %c0_i32_0 = arith.constant 0 : i32
    %c0_i32_1 = arith.constant 0 : i32
    return %c0_i32, %c0_i32_0 : i32, i32
  }
  func.func @transform_3(%arg0: i32) -> (i32, i32) {
    %c0_i32 = arith.constant 0 : i32
    %c0_i32_0 = arith.constant 0 : i32
    %c0_i32_1 = arith.constant 0 : i32
    return %c0_i32, %c0_i32_0 : i32, i32
  }
  func.func @transform_4(%arg0: i32) -> (i32, i32) {
    %c0_i32 = arith.constant 0 : i32
    %c0_i32_0 = arith.constant 0 : i32
    %c0_i32_1 = arith.constant 0 : i32
    return %c0_i32, %c0_i32_0 : i32, i32
  }
  func.func @transform_5(%arg0: i32) -> (i32, i32) {
    %c0_i32 = arith.constant 0 : i32
    %c0_i32_0 = arith.constant 0 : i32
    %c0_i32_1 = arith.constant 0 : i32
    return %c0_i32, %c0_i32_0 : i32, i32
  }
  func.func @transform_6(%arg0: i32) -> (i32, i32) {
    %c0_i32 = arith.constant 0 : i32
    %c0_i32_0 = arith.constant 0 : i32
    %c0_i32_1 = arith.constant 0 : i32
    return %c0_i32, %c0_i32_0 : i32, i32
  }
  func.func @transform_7(%arg0: i32) -> (i32, i32) {
    %c0_i32 = arith.constant 0 : i32
    %c0_i32_0 = arith.constant 0 : i32
    %c0_i32_1 = arith.constant 0 : i32
    return %c0_i32, %c0_i32_0 : i32, i32
  }
  func.func @transform_8(%arg0: i32) -> (i32, i32) {
    %c0_i32 = arith.constant 0 : i32
    %c0_i32_0 = arith.constant 0 : i32
    %c0_i32_1 = arith.constant 0 : i32
    return %c0_i32, %c0_i32_0 : i32, i32
  }
  func.func @transform_9(%arg0: i32) -> (i32, i32) {
    %c0_i32 = arith.constant 0 : i32
    %c0_i32_0 = arith.constant 0 : i32
    %c0_i32_1 = arith.constant 0 : i32
    return %c0_i32, %c0_i32_0 : i32, i32
  }
  func.func @transform_10(%arg0: i32) -> (i32, i32, i32) {
    %c0_i32 = arith.constant 0 : i32
    %c0_i32_0 = arith.constant 0 : i32
    %c0_i32_1 = arith.constant 0 : i32
    return %arg0, %c0_i32, %c0_i32_0 : i32, i32, i32
  }
}

</mosaic_0001>

<bundles_post_ra>
// kernel: _lambda_.11
= control target key start
LH: loop header
LB: loop body
LE: loop exit
PB: predicated region body
PF: predicated region fallthrough
CT: control target
= control target key end

     0   :  { %s1423_s13 = smov 0   ;;  %s1608_s0 = inlined_call_operand.vmem [shape: f32[2,17,128], index: 0, kind: input, shape index: {}]   ;;  %s1609_s1 = inlined_call_operand.vmem [shape: bf16[128,16], index: 1, kind: input, shape index: {}]   ;;  %s1610_s2 = inlined_call_operand.vmem [shape: f32[1,16], index: 2, kind: input, shape index: {}]   ;;  %s1611_s3 = inlined_call_operand.vmem [shape: bf16[34,17], index: 3, kind: input, shape index: {}]   ;;  %s1612_s4 = inlined_call_operand.vmem [shape: bf16[16,4], index: 4, kind: input, shape index: {}]   ;;  %s1613_s5 = inlined_call_operand.vmem [shape: bf16[16,4], index: 5, kind: input, shape index: {}]   ;;  %s1614_s6 = inlined_call_operand.vmem [shape: f32[1,4], index: 6, kind: input, shape index: {}]   ;;  %s1615_s7 = inlined_call_operand.vmem [shape: f32[1,4], index: 7, kind: input, shape index: {}]   ;;  %s1616_s8 = inlined_call_operand.vmem [shape: f32[64,34], index: 8, kind: input, shape index: {}]   ;;  %s1617_s9 = inlined_call_operand.vmem [shape: f32[64,34], index: 9, kind: input, shape index: {}]   ;;  %s1618_s10 = inlined_call_operand.vmem [shape: f32[2,64,4], index: 10, kind: output, shape index: {}]  }
   0x1 LB: > { %s1105_s14 = sadd.s32 4294967295, %s1363_s13   ;;  %p1109_p0 = scmp.ge.s32.totalorder %s1363_s13, 1  ;;  %s1363_s13 = sphi %s1423_s13, %s20_s13  }
   0x2   : > { %p312_p1 = scmp.lt.s32.totalorder %s1363_s13, 3 }
   0x4   : > { %p313_p2 = pnand %p1109_p0, %p312_p1 }
   0x5   : > { %p350_p3 = scmp.lt.s32.totalorder (!%p313_p2), %s1105_s14, 1 }
   0x6   : > { %316 = sbr.rel (%p313_p2) target bundleno = 914 (0x392), region = 60 }
   0xb   : > { %v1338_v0 = vld [vmem:[%s1609_s1 + $0x38] sm:$0xff]   ;;  %v1339_v1 = vld [vmem:[%s1609_s1 + $0x30] sm:$0xff]   ;;  %s1620_s14 = smov (!%p350_p3, %s1105_s14), 1  ;;  %v1340_v2 = vld [vmem:[%s1609_s1 + $0x28] sm:$0xff]   ;;  %v1365_v13 = vmov 0.0   ;;  %vm1366_vm0 = vmmov 0  }
   0xc   : > { %1208 = vmatprep.subr.bf16.mxu0 %v1338_v0  ;;  %s1326_s21 = smul.u32 24, %s1620_s14  ;;  %v1341_v3 = vld [vmem:[%s1609_s1 + $0x20] sm:$0xff]   ;;  %v1342_v7 = vld [vmem:[%s1609_s1 + $0x18] sm:$0xff]   ;;  %v1343_v8 = vld [vmem:[%s1609_s1 + $0x10] sm:$0xff]   ;;  %1228 = vmatprep.subr.bf16.mxu1 %v1365_v13  ;;  %vm542_vm1 = vcmask 1040384   ;;  %v1367_v44 = vmov 0  }
   0xd   : > { %1209 = vmatpush3.bf16.msra.mxu0 %v1338_v0  ;;  %v1344_v9 = vld [vmem:[%s1609_s1 + $0x8] sm:$0xff]   ;;  %v1345_v10 = vld [vmem:[%s1609_s1] sm:$0xff]   ;;  %1232 = vmatprep.mubr.msk.bf16.mxu1 %vm1366_vm0, %v1365_v13  ;;  %v544_v45 = vsel %vm542_vm1, 65535, %v1367_v44  ;;  %vm532_vm2 = vcmask 138240   ;;  %vm622_vm3 = vcmask 130048   ;;  %vm775_vm4 = vcmask 277504  }
   0xe   : > { %1210 = vmatprep.subr.bf16.mxu0 %v1339_v1  ;;  %s354_s24 = scalar_lea.vmem %s1608_s0, %s1326_s21  ;;  %v1113_v14 = vld [vmem:[%s1610_s2] ss:$0 sm:$0xff]  ;;  %v1347_v55 = vld [vmem:[%s1611_s3 + $0x8] sm:$0xff]   ;;  %v1348_v56 = vld [vmem:[%s1611_s3 + $0x10] ss:$0 sps:$4 sm:$0x11]  }
   0xf   : > { %v361_v4 = vld [vmem:[%s354_s24] sm:$0xff]  ;;  %v362_v5 = vld [vmem:[%s354_s24 + $0x8] sm:$0xff]  ;;  %v363_v11 = vld [vmem:[%s354_s24 + $0x10] sm:$0x1]  ;;  %vm800_vm5 = vcmask 1041408   ;;  %s1158_s29 = sshll.u32 %s1620_s14, 6 }
  0x10   : > { %v364_v6 = vpack.c.bf16 %v362_v5, %v361_v4  ;;  %v365_v12 = vpack.c.bf16 %v363_v11, %v363_v11  ;;  %v1346_v54 = vld [vmem:[%s1611_s3] sm:$0xff]   ;;  %s1587_s12 = scalar_lea.vmem %s1618_s10, %s1158_s29  ;;  %vm1041_vm6 = vcmask 31744  }
  0x11   : > { %1211 = vmatpush3.bf16.msra.mxu0 %v1339_v1  ;;  %v1349_v57 = vld [vmem:[%s1612_s4] sm:$0xff]  }
  0x12   : > { %1212 = vmatprep.subr.bf16.mxu0 %v1340_v2  ;;  %1224 = vmatprep.mubr.bf16.mxu0 %v364_v6  ;;  %v1350_v58 = vld [vmem:[%s1613_s5] sm:$0xff]  }
  0x13   : > { %v759_v11 = vld [vmem:[%s1616_s8] sm:$0xff] }
  0x15   : > { %1213 = vmatpush3.bf16.msra.mxu0 %v1340_v2 }
  0x16   : > { %1214 = vmatprep.subr.bf16.mxu0 %v1341_v3 }
  0x19   : > { %1215 = vmatpush3.bf16.msra.mxu0 %v1341_v3 }
  0x1a   : > { %1216 = vmatprep.subr.bf16.mxu0 %v1342_v7 }
  0x1d   : > { %1217 = vmatpush3.bf16.msra.mxu0 %v1342_v7 }
  0x1e   : > { %1218 = vmatprep.subr.bf16.mxu0 %v1343_v8 }
  0x21   : > { %1219 = vmatpush3.bf16.msra.mxu0 %v1343_v8 }
  0x22   : > { %1220 = vmatprep.subr.bf16.mxu0 %v1344_v9 }
  0x25   : > { %1221 = vmatpush3.bf16.msra.mxu0 %v1344_v9 }
  0x26   : > { %1222 = vmatprep.subr.bf16.mxu0 %v1345_v10 }
  0x29   : > { %1223 = vmatpush3.bf16.msra.mxu0 %v1345_v10  ;;  %v767_v10 = vld [vmem:[%s1617_s9] sm:$0xff] }
  0x2a   : > { %1258 = vmatprep.subr.bf16.mxu0 %v1365_v13 }
  0x2c   : > { %1225 = vmatmul.mubr.bf16.vlgmr.msra.gmra.mxu0 %v365_v12 }
  0x2d   : > { %1260 = vmatprep.mubr.msk.bf16.mxu0 %vm1366_vm0, %v1365_v13  ;;  %1259 = vmatpush3.bf16.msra.mxu0 %v1350_v58  ;;  %v764_v58 = vld [vmem:[%s1616_s8 + $0x28] sm:$0xff] }
  0xec   : > { %v1226_v15 = vpop.f32.mrf.mxu0 }
  0xed   : > { %v480_v16 = vadd.f32 %v1226_v15, %v1113_v14 }
  0xee   : > { %v471_v17 = vpop.f32.mrf.mxu0 }
  0xef   : > { %v487_v18 = vmul.f32 %v480_v16, %v480_v16  ;;  %v472_v19 = vadd.f32 %v1113_v14, %v471_v17 }
  0xf0   : > { %v1227_v20 = vpop.f32.mrf.mxu0 }
  0xf1   : > { %v490_v21 = vmul.f32 %v487_v18, %v480_v16  ;;  %v485_v22 = vmul.f32 %v472_v19, %v472_v19 }
  0xf2   : > { %v474_v23 = vpop.f32.mrf.mxu0 }
  0xf3   : > { %v493_v24 = vmul.f32 0.044715, %v490_v21  ;;  %v488_v25 = vmul.f32 %v485_v22, %v472_v19  ;;  %v475_v26 = vadd.f32 %v1113_v14, %v474_v23 }
  0xf5   : > { %v496_v27 = vadd.f32 %v493_v24, %v480_v16  ;;  %v491_v28 = vmul.f32 0.044715, %v488_v25  ;;  %v486_v29 = vmul.f32 %v475_v26, %v475_v26 }
  0xf7   : > { %v499_v30 = vmul.f32 0.7978846, %v496_v27  ;;  %v494_v31 = vadd.f32 %v491_v28, %v472_v19  ;;  %v489_v32 = vmul.f32 %v486_v29, %v475_v26  ;;  %v1128_v28 = vld [vmem:[%s1614_s6] ss:$0 sm:$0xff] }
  0xf8   : > { %v1133_v29 = vld [vmem:[%s1615_s7] ss:$0 sm:$0xff] }
  0xf9   : > { %1351 = vtanh.f32 %v499_v30  ;;  %v497_v33 = vmul.f32 0.7978846, %v494_v31  ;;  %v492_v34 = vmul.f32 0.044715, %v489_v32 }
  0xfb   : > { %1353 = vtanh.f32 %v497_v33  ;;  %v495_v35 = vadd.f32 %v492_v34, %v475_v26 }
  0xfd   : > { %v498_v36 = vmul.f32 0.7978846, %v495_v35 }
  0xff   : > { %1355 = vtanh.f32 %v498_v36 }
 0x106   : > { %v1352_v37 = vpop.eup %1351 }
 0x107   : > { %v505_v38 = vadd.f32 1.0, %v1352_v37 }
 0x108   : > { %v1354_v39 = vpop.eup %1353 }
 0x109   : > { %v508_v40 = vmul.f32 0.5, %v505_v38  ;;  %v503_v41 = vadd.f32 1.0, %v1354_v39 }
 0x10b   : > { %v511_v42 = vmul.f32 %v508_v40, %v480_v16  ;;  %v506_v48 = vmul.f32 0.5, %v503_v41 }
 0x10c   : > { %v1356_v43 = vpop.eup %1355 }
 0x10d   : > { %v513_v46 = vpack.c.bf16 %v511_v42, %v511_v42  ;;  %v504_v47 = vadd.f32 1.0, %v1356_v43  ;;  %v509_v51 = vmul.f32 %v506_v48, %v472_v19  ;;  %v768_v48 = vld [vmem:[%s1617_s9 + $0x8] sm:$0xff] }
 0x10f   : > { %v546_v49 = vand.u32 %v544_v45, %v513_v46  ;;  %v507_v50 = vmul.f32 0.5, %v504_v47 }
 0x111   : > { %1229 = vmatpush3.bf16.msra.mxu1 %v546_v49  ;;  %v510_v52 = vmul.f32 %v507_v50, %v475_v26  ;;  %v769_v49 = vld [vmem:[%s1617_s9 + $0x10] sm:$0xff]  ;;  %v760_v50 = vld [vmem:[%s1616_s8 + $0x8] sm:$0xff] }
 0x112   : > { %1230 = vmatprep.subr.bf16.mxu1 %v1365_v13 }
 0x113   : > { %v512_v53 = vpack.c.bf16 %v510_v52, %v509_v51  ;;  %v761_v51 = vld [vmem:[%s1616_s8 + $0x10] sm:$0xff]  ;;  %v770_v52 = vld [vmem:[%s1617_s9 + $0x18] sm:$0xff] }
 0x115   : > { %1231 = vmatpush3.bf16.msra.mxu1 %v512_v53  ;;  %v771_v53 = vld [vmem:[%s1617_s9 + $0x20] sm:$0xff] }
 0x116   : > { %1244 = vmatprep.subr.bf16.mxu1 %v1365_v13 }
 0x118   : > { %1233 = vmatmul.mubr.msk.bf16.vlgmr.msra.gmra.mxu1 %vm532_vm2, %v1346_v54  ;;  %v762_v54 = vld [vmem:[%s1616_s8 + $0x18] sm:$0xff] }
 0x119   : > { %1236 = vmatprep.mubr.msk.bf16.mxu1 %vm1366_vm0, %v1365_v13  ;;  %1245 = vmatpush3.bf16.msra.mxu1 %v1349_v57  ;;  %v773_v57 = vld [vmem:[%s1617_s9 + $0x30] sm:$0xff] }
 0x120   : > { %1237 = vmatmul.mubr.msk.bf16.gmra.mxu1 %vm532_vm2, %v1347_v55  ;;  %v763_v55 = vld [vmem:[%s1616_s8 + $0x20] sm:$0xff] }
 0x121   : > { %1240 = vmatprep.mubr.msk.bf16.mxu1 %vm1366_vm0, %v1365_v13 }
 0x128   : > { %1241 = vmatmul.mubr.msk.bf16.gmra.mxu1 %vm532_vm2, %v1348_v56  ;;  %v772_v56 = vld [vmem:[%s1617_s9 + $0x28] sm:$0xff] }
 0x129   : > { %1246 = vmatprep.mubr.msk.bf16.mxu1 %vm1366_vm0, %v1365_v13 }
 0x1d8   : > { %v582_v59 = vpop.f32.mrf.mxu1 }
 0x1da   : > { %v1234_v60 = vpop.f32.mrf.mxu1 }
 0x1db   : > { %v765_v60 = vld [vmem:[%s1616_s8 + $0x30] sm:$0xff] }
 0x1dc   : > { %v585_v61 = vpop.f32.mrf.mxu1 }
 0x1dd   : > { %v604_v62 = vpack.c.bf16 %v585_v61, %v582_v59  ;;  %v774_v59 = vld [vmem:[%s1617_s9 + $0x38] sm:$0xff] }
 0x1de   : > { %v1235_v63 = vpop.f32.mrf.mxu1  ;;  %v766_v61 = vld [vmem:[%s1616_s8 + $0x38] sm:$0xff] }
 0x1df   : > { %1247 = vmatmul.mubr.msk.bf16.vlgmr.msra.gmra.mxu1 %vm622_vm3, %v604_v62  ;;  %1261 = vmatmul.mubr.msk.bf16.vlgmr.msra.gmra.mxu0 %vm622_vm3, %v604_v62 }
 0x1e0   : > { %v590_v0 = vpop.f32.mrf.mxu1  ;;  %1250 = vmatprep.mubr.msk.bf16.mxu1 %vm1366_vm0, %v1365_v13  ;;  %1264 = vmatprep.mubr.msk.bf16.mxu0 %vm1366_vm0, %v1365_v13 }
 0x1e2   : > { %v1238_v1 = vpop.f32.mrf.mxu1 }
 0x1e4   : > { %v593_v2 = vpop.f32.mrf.mxu1 }
 0x1e5   : > { %v605_v3 = vpack.c.bf16 %v593_v2, %v590_v0 }
 0x1e6   : > { %v1239_v4 = vpop.f32.mrf.mxu1 }
 0x1e7   : > { %1251 = vmatmul.mubr.msk.bf16.gmra.mxu1 %vm622_vm3, %v605_v3  ;;  %1265 = vmatmul.mubr.msk.bf16.gmra.mxu0 %vm622_vm3, %v605_v3 }
 0x1e8   : > { %v598_v5 = vpop.f32.mrf.mxu1  ;;  %1254 = vmatprep.mubr.msk.bf16.mxu1 %vm1366_vm0, %v1365_v13  ;;  %1268 = vmatprep.mubr.msk.bf16.mxu0 %vm1366_vm0, %v1365_v13 }
 0x1e9   : > { %v606_v7 = vpack.c.bf16 %v598_v5, %v598_v5 }
 0x1ea   : > { %v1242_v6 = vpop.f32.mrf.mxu1 }
 0x1ec   : > { %v601_v8 = vpop.f32.mrf.mxu1 }
 0x1ee   : > { %v1243_v9 = vpop.f32.mrf.mxu1 }
 0x1ef   : > { %1255 = vmatmul.mubr.msk.bf16.gmra.mxu1 %vm622_vm3, %v606_v7  ;;  %1269 = vmatmul.mubr.msk.bf16.gmra.mxu0 %vm622_vm3, %v606_v7 }
 0x1f0   : > { %1282 = vmatprep.mubr.msk.f32.mxu1 %vm775_vm4, %v767_v10  ;;  %1304 = vmatprep.mubr.msk.f32.mxu0 %vm775_vm4, %v759_v11 }
 0x29f   : > { %v666_v12 = vpop.f32.mrf.mxu1  ;;  %v737_v13 = vpop.f32.mrf.mxu0 }
 0x2a0   : > { %v667_v46 = vadd.f32 %v1128_v28, %v666_v12  ;;  %v738_v47 = vadd.f32 %v1133_v29, %v737_v13 }
 0x2a1   : > { %v1248_v14 = vpop.f32.mrf.mxu1  ;;  %v1262_v15 = vpop.f32.mrf.mxu0 }
 0x2a3   : > { %v669_v16 = vpop.f32.mrf.mxu1  ;;  %v740_v17 = vpop.f32.mrf.mxu0 }
 0x2a4   : > { %v670_v44 = vadd.f32 %v1128_v28, %v669_v16  ;;  %v741_v45 = vadd.f32 %v1133_v29, %v740_v17 }
 0x2a5   : > { %v1249_v18 = vpop.f32.mrf.mxu1  ;;  %v1263_v19 = vpop.f32.mrf.mxu0 }
 0x2a7   : > { %v674_v20 = vpop.f32.mrf.mxu1  ;;  %v745_v21 = vpop.f32.mrf.mxu0 }
 0x2a8   : > { %v675_v40 = vadd.f32 %v1128_v28, %v674_v20  ;;  %v746_v41 = vadd.f32 %v1133_v29, %v745_v21 }
 0x2a9   : > { %v1252_v22 = vpop.f32.mrf.mxu1  ;;  %v1266_v23 = vpop.f32.mrf.mxu0 }
 0x2ab   : > { %v677_v24 = vpop.f32.mrf.mxu1  ;;  %v748_v25 = vpop.f32.mrf.mxu0 }
 0x2ac   : > { %v678_v36 = vadd.f32 %v1128_v28, %v677_v24  ;;  %v749_v37 = vadd.f32 %v1133_v29, %v748_v25 }
 0x2ad   : > { %v1253_v26 = vpop.f32.mrf.mxu1  ;;  %v1267_v27 = vpop.f32.mrf.mxu0 }
 0x2af   : > { %v682_v30 = vpop.f32.mrf.mxu1  ;;  %v753_v31 = vpop.f32.mrf.mxu0 }
 0x2b0   : > { %v683_v32 = vadd.f32 %v1128_v28, %v682_v30  ;;  %v754_v33 = vadd.f32 %v1133_v29, %v753_v31 }
 0x2b1   : > { %v1256_v34 = vpop.f32.mrf.mxu1  ;;  %v1270_v35 = vpop.f32.mrf.mxu0 }
 0x2b2   : > { %1272 = vmatprep.subr.msk.mxu1 %vm800_vm5, %v754_v33  ;;  %1294 = vmatprep.subr.msk.mxu0 %vm800_vm5, %v683_v32 }
 0x2b3   : > { %v685_v38 = vpop.f32.mrf.mxu1  ;;  %v756_v39 = vpop.f32.mrf.mxu0  ;;  %1273 = vmatpush3.msk.msra.mxu1 %vm800_vm5, %v754_v33  ;;  %1295 = vmatpush3.msk.msra.mxu0 %vm800_vm5, %v683_v32 }
 0x2b4   : > { %1274 = vmatprep.subr.mxu1 %v749_v37  ;;  %1296 = vmatprep.subr.mxu0 %v678_v36 }
 0x2b5   : > { %v1257_v42 = vpop.f32.mrf.mxu1  ;;  %v1271_v43 = vpop.f32.mrf.mxu0  ;;  %1275 = vmatpush3.msra.mxu1 %v749_v37  ;;  %1297 = vmatpush3.msra.mxu0 %v678_v36 }
 0x2b6   : > { %1276 = vmatprep.subr.mxu1 %v746_v41  ;;  %1298 = vmatprep.subr.mxu0 %v675_v40 }
 0x2b7   : > { %1277 = vmatpush3.msra.mxu1 %v746_v41  ;;  %1299 = vmatpush3.msra.mxu0 %v675_v40 }
 0x2b8   : > { %1278 = vmatprep.subr.mxu1 %v741_v45  ;;  %1300 = vmatprep.subr.mxu0 %v670_v44 }
 0x2b9   : > { %1279 = vmatpush3.msra.mxu1 %v741_v45  ;;  %1301 = vmatpush3.msra.mxu0 %v670_v44 }
 0x2ba   : > { %1280 = vmatprep.subr.mxu1 %v738_v47  ;;  %1302 = vmatprep.subr.mxu0 %v667_v46 }
 0x2bb   : > { %1281 = vmatpush3.msra.mxu1 %v738_v47  ;;  %1303 = vmatpush3.msra.mxu0 %v667_v46 }
 0x2bc   : > { %1316 = vmatprep.subr.msk.mxu1 %vm800_vm5, %v683_v32  ;;  %1283 = vmatmul.mubr.msk.f32.vlgmr.msra.gmra.mxu1 %vm775_vm4, %v768_v48 }
 0x2bd   : > { %1321 = vmatpush3.msk.msra.mxu1 %vm800_vm5, %v683_v32  ;;  %1285 = vmatprep.mubr.msk.f32.mxu1 %vm775_vm4, %v769_v49 }
 0x2be   : > { %1317 = vmatprep.subr.mxu1 %v678_v36  ;;  %1305 = vmatmul.mubr.msk.f32.vlgmr.msra.gmra.mxu0 %vm775_vm4, %v760_v50 }
 0x2bf   : > { %1322 = vmatpush3.msra.mxu1 %v678_v36  ;;  %1307 = vmatprep.mubr.msk.f32.mxu0 %vm775_vm4, %v761_v51 }
 0x2c0   : > { %1318 = vmatprep.subr.mxu1 %v675_v40  ;;  %1286 = vmatmul.mubr.msk.f32.gmra.mxu1 %vm775_vm4, %v770_v52 }
 0x2c1   : > { %1323 = vmatpush3.msra.mxu1 %v675_v40  ;;  %1288 = vmatprep.mubr.msk.f32.mxu1 %vm775_vm4, %v771_v53 }
 0x2c2   : > { %1319 = vmatprep.subr.mxu1 %v670_v44  ;;  %1308 = vmatmul.mubr.msk.f32.gmra.mxu0 %vm775_vm4, %v762_v54 }
 0x2c3   : > { %1324 = vmatpush3.msra.mxu1 %v670_v44  ;;  %1310 = vmatprep.mubr.msk.f32.mxu0 %vm775_vm4, %v763_v55 }
 0x2c4   : > { %1320 = vmatprep.subr.mxu1 %v667_v46  ;;  %1289 = vmatmul.mubr.msk.f32.gmra.mxu1 %vm775_vm4, %v772_v56 }
 0x2c5   : > { %1325 = vmatpush3.msra.mxu1 %v667_v46  ;;  %1291 = vmatprep.mubr.msk.f32.mxu1 %vm775_vm4, %v773_v57 }
 0x2c6   : > { %1311 = vmatmul.mubr.msk.f32.gmra.mxu0 %vm775_vm4, %v764_v58 }
 0x2c8   : > { %1292 = vmatmul.mubr.msk.f32.gmra.mxu1 %vm775_vm4, %v774_v59 }
 0x2c9   : > { %1313 = vmatprep.mubr.msk.f32.mxu1 %vm775_vm4, %v765_v60 }
 0x2cc   : > { %1314 = vmatmul.mubr.msk.f32.vlgmr.msra.gmra.mxu1 %vm775_vm4, %v766_v61 }
 0x37c   : > { %v1284_v62 = vpop.f32.mrf.mxu1 }
 0x37e   : > { %v870_v63 = vpop.f32.mrf.mxu1  ;;  %v1306_v0 = vpop.f32.mrf.mxu0 }
 0x37f   : > { %v1008_v1 = vadd.f32 %v1306_v0, %v1284_v62 }
 0x380   : > { %v1287_v2 = vpop.f32.mrf.mxu1  ;;  %v1002_v3 = vpop.f32.mrf.mxu0 }
 0x381   : > { %1043 = vst.msk [vmem:[%s1587_s12 + $0x8] sm:$0xff] %vm1041_vm6, %v1008_v1  ;;  %v1003_v4 = vadd.f32 %v1002_v3, %v870_v63 }
 0x382   : > { %v880_v5 = vpop.f32.mrf.mxu1  ;;  %v1309_v6 = vpop.f32.mrf.mxu0 }
 0x383   : > { %1042 = vst.msk [vmem:[%s1587_s12] sm:$0xff] %vm1041_vm6, %v1003_v4  ;;  %v1018_v7 = vadd.f32 %v1309_v6, %v1287_v2 }
 0x384   : > { %v1290_v8 = vpop.f32.mrf.mxu1  ;;  %v1012_v9 = vpop.f32.mrf.mxu0 }
 0x385   : > { %1045 = vst.msk [vmem:[%s1587_s12 + $0x18] sm:$0xff] %vm1041_vm6, %v1018_v7  ;;  %v1013_v10 = vadd.f32 %v1012_v9, %v880_v5 }
 0x386   : > { %v890_v11 = vpop.f32.mrf.mxu1  ;;  %v1312_v12 = vpop.f32.mrf.mxu0 }
 0x387   : > { %1044 = vst.msk [vmem:[%s1587_s12 + $0x10] sm:$0xff] %vm1041_vm6, %v1013_v10  ;;  %v1028_v13 = vadd.f32 %v1312_v12, %v1290_v8 }
 0x388   : > { %v1293_v14 = vpop.f32.mrf.mxu1  ;;  %v1022_v15 = vpop.f32.mrf.mxu0 }
 0x389   : > { %1047 = vst.msk [vmem:[%s1587_s12 + $0x28] sm:$0xff] %vm1041_vm6, %v1028_v13  ;;  %v1023_v16 = vadd.f32 %v1022_v15, %v890_v11 }
 0x38a   : > { %v900_v17 = vpop.f32.mrf.mxu1 }
 0x38b   : > { %1046 = vst.msk [vmem:[%s1587_s12 + $0x20] sm:$0xff] %vm1041_vm6, %v1023_v16 }
 0x38c   : > { %v1315_v18 = vpop.f32.mrf.mxu1 }
 0x38d   : > { %v1038_v19 = vadd.f32 %v1315_v18, %v1293_v14 }
 0x38e   : > { %v1032_v20 = vpop.f32.mrf.mxu1 }
 0x38f   : > { %1049 = vst.msk [vmem:[%s1587_s12 + $0x38] sm:$0xff] %vm1041_vm6, %v1038_v19  ;;  %v1033_v21 = vadd.f32 %v1032_v20, %v900_v17 }
 0x391   : > { %1048 = vst.msk [vmem:[%s1587_s12 + $0x30] sm:$0xff] %vm1041_vm6, %v1033_v21 }
 0x392 PF: > { %s20_s13 = sadd.s32 1, %s1363_s13  }
 0x393   : > { %p17_p4 = scmp.ge.s32.totalorder %s20_s13, 4  }
 0x395   :  { %19 = sbr.rel (!%p17_p4) target bundleno = 1 (0x1), region = 90 }

// kernel: _lambda_.9
= control target key start
LH: loop header
LB: loop body
LE: loop exit
PB: predicated region body
PF: predicated region fallthrough
CT: control target
= control target key end

     0   :  { %s1238_s30 = smov 0   ;;  %s1409_s0 = inlined_call_operand.vmem [shape: f32[2,64,4], index: 0, kind: input, shape index: {}]   ;;  %s1410_s1 = inlined_call_operand.vmem [shape: f32[34,64], index: 1, kind: input, shape index: {}]   ;;  %s1411_s2 = inlined_call_operand.vmem [shape: f32[34,64], index: 2, kind: input, shape index: {}]   ;;  %s1412_s3 = inlined_call_operand.vmem [shape: bf16[4,16], index: 3, kind: input, shape index: {}]   ;;  %s1413_s4 = inlined_call_operand.vmem [shape: bf16[4,16], index: 4, kind: input, shape index: {}]   ;;  %s1414_s5 = inlined_call_operand.vmem [shape: f32[1,16], index: 5, kind: input, shape index: {}]   ;;  %s1415_s6 = inlined_call_operand.vmem [shape: bf16[17,34], index: 6, kind: input, shape index: {}]   ;;  %s1416_s7 = inlined_call_operand.vmem [shape: bf16[16,128], index: 7, kind: input, shape index: {}]   ;;  %s1417_s8 = inlined_call_operand.vmem [shape: f32[1,128], index: 8, kind: input, shape index: {}]   ;;  %s1418_s9 = inlined_call_operand.vmem [shape: f32[2,17,128], index: 9, kind: output, shape index: {}]  }
   0x1 LB: > { %s969_s10 = sadd.s32 4294967295, %s1184_s30   ;;  %p973_p0 = scmp.ge.s32.totalorder %s1184_s30, 1  ;;  %s1184_s30 = sphi %s1238_s30, %s19_s30  }
   0x2   : > { %p287_p1 = scmp.lt.s32.totalorder %s1184_s30, 3 }
   0x4   : > { %p288_p2 = pnand %p973_p0, %p287_p1 }
   0x5   : > { %p323_p3 = scmp.lt.s32.totalorder (!%p288_p2), %s969_s10, 1 }
   0x6   : > { %291 = sbr.rel (%p288_p2) target bundleno = 890 (0x37a), region = 56 }
   0xb   : > { %v1186_v0 = vmov 0.0   ;;  %s1420_s10 = smov (!%p323_p3, %s969_s10), 1  ;;  %vm1187_vm0 = vmmov 0   ;;  %v342_v9 = vld [vmem:[%s1410_s1] sm:$0xff]  ;;  %vm347_vm1 = vcmask 523264   ;;  %v343_v11 = vld [vmem:[%s1410_s1 + $0x8] sm:$0xff] }
   0xc   : > { %1047 = vmatprep.subr.mxu0 %v1186_v0  ;;  %1078 = vmatprep.subr.mxu1 %v1186_v0  ;;  %s1004_s11 = sshll.u32 %s1420_s10, 6  ;;  %v453_v10 = vld [vmem:[%s1411_s2] sm:$0xff]  ;;  %v454_v12 = vld [vmem:[%s1411_s2 + $0x8] sm:$0xff]  ;;  %v344_v13 = vld [vmem:[%s1410_s1 + $0x10] sm:$0xff]  ;;  %vm581_vm2 = vcmask 1041408   ;;  %vm571_vm3 = vcmask 31744  }
   0xd   : > { %1063 = vmatprep.mubr.msk.f32.mxu0 %vm1187_vm0, %v1186_v0  ;;  %1094 = vmatprep.mubr.msk.f32.mxu1 %vm1187_vm0, %v1186_v0  ;;  %s1258_s14 = scalar_lea.vmem %s1409_s0, %s1004_s11  ;;  %v455_v14 = vld [vmem:[%s1411_s2 + $0x10] sm:$0xff]  ;;  %v345_v15 = vld [vmem:[%s1410_s1 + $0x18] sm:$0xff]  ;;  %v346_v17 = vld [vmem:[%s1410_s1 + $0x20] sm:$0x3]  ;;  %vm780_vm4 = vcmask 277504   ;;  %vm787_vm5 = vcmask 1040384  }
   0xe   : > { %v341_v1 = vld [vmem:[%s1258_s14 + $0x38] sm:$0xff]  ;;  %v340_v2 = vld [vmem:[%s1258_s14 + $0x30] sm:$0xff]  ;;  %v339_v3 = vld [vmem:[%s1258_s14 + $0x28] sm:$0xff]  ;;  %vm856_vm6 = vcmask 130048   ;;  %s1154_s28 = smul.u32 24, %s1420_s10 }
   0xf   : > { %1048 = vmatpush3.msra.mxu0 %v341_v1  ;;  %1079 = vmatpush3.msra.mxu1 %v341_v1  ;;  %v338_v4 = vld [vmem:[%s1258_s14 + $0x20] sm:$0xff]  ;;  %v337_v5 = vld [vmem:[%s1258_s14 + $0x18] sm:$0xff]  ;;  %v336_v6 = vld [vmem:[%s1258_s14 + $0x10] sm:$0xff] }
  0x10   : > { %1049 = vmatprep.subr.mxu0 %v1186_v0  ;;  %1080 = vmatprep.subr.mxu1 %v1186_v0  ;;  %v335_v7 = vld [vmem:[%s1258_s14 + $0x8] sm:$0xff]  ;;  %v334_v8 = vld [vmem:[%s1258_s14] sm:$0xff]  ;;  %v456_v16 = vld [vmem:[%s1411_s2 + $0x18] sm:$0xff]  ;;  %s332_s14 = scalar_lea.vmem %s1418_s9, %s1154_s28 }
  0x11   : > { %1050 = vmatpush3.msra.mxu0 %v340_v2  ;;  %1081 = vmatpush3.msra.mxu1 %v340_v2  ;;  %v457_v18 = vld [vmem:[%s1411_s2 + $0x20] sm:$0x3] }
  0x12   : > { %1051 = vmatprep.subr.mxu0 %v1186_v0  ;;  %1082 = vmatprep.subr.mxu1 %v1186_v0  ;;  %v570_v19 = vld [vmem:[%s1413_s4] sm:$0x3] }
  0x13   : > { %1052 = vmatpush3.msra.mxu0 %v339_v3  ;;  %1083 = vmatpush3.msra.mxu1 %v339_v3  ;;  %v566_v20 = vld [vmem:[%s1412_s3] sm:$0x3]  ;;  %v583_v21 = vsel %vm581_vm2, %v570_v19, 0 }
  0x14   : > { %1053 = vmatprep.subr.mxu0 %v1186_v0  ;;  %1084 = vmatprep.subr.mxu1 %v1186_v0  ;;  %v651_v22 = vsel %vm581_vm2, %v566_v20, 0  ;;  %v1165_v49 = vld [vmem:[%s1415_s6] sm:$0xff]  }
  0x15   : > { %1054 = vmatpush3.msra.mxu0 %v338_v4  ;;  %1085 = vmatpush3.msra.mxu1 %v338_v4  ;;  %v1167_v50 = vld [vmem:[%s1416_s7] sm:$0xff]  }
  0x16   : > { %1055 = vmatprep.subr.mxu0 %v1186_v0  ;;  %1086 = vmatprep.subr.mxu1 %v1186_v0  ;;  %v993_v56 = vld [vmem:[%s1414_s5] ss:$0 sm:$0xff] }
  0x17   : > { %1056 = vmatpush3.msra.mxu0 %v337_v5  ;;  %1087 = vmatpush3.msra.mxu1 %v337_v5 }
  0x18   : > { %1057 = vmatprep.subr.mxu0 %v1186_v0  ;;  %1088 = vmatprep.subr.mxu1 %v1186_v0 }
  0x19   : > { %1058 = vmatpush3.msra.mxu0 %v336_v6  ;;  %1089 = vmatpush3.msra.mxu1 %v336_v6 }
  0x1a   : > { %1059 = vmatprep.subr.mxu0 %v1186_v0  ;;  %1090 = vmatprep.subr.mxu1 %v1186_v0 }
  0x1b   : > { %1060 = vmatpush3.msra.mxu0 %v335_v7  ;;  %1091 = vmatpush3.msra.mxu1 %v335_v7 }
  0x1c   : > { %1061 = vmatprep.subr.mxu0 %v1186_v0  ;;  %1092 = vmatprep.subr.mxu1 %v1186_v0 }
  0x1d   : > { %1062 = vmatpush3.msra.mxu0 %v334_v8  ;;  %1093 = vmatpush3.msra.mxu1 %v334_v8 }
  0x1e   : > { %1064 = vmatmul.mubr.msk.f32.vlgmr.msra.gmra.mxu0 %vm347_vm1, %v342_v9  ;;  %1095 = vmatmul.mubr.msk.f32.vlgmr.msra.gmra.mxu1 %vm347_vm1, %v453_v10 }
  0x1f   : > { %1066 = vmatprep.mubr.msk.f32.mxu0 %vm1187_vm0, %v1186_v0  ;;  %1097 = vmatprep.mubr.msk.f32.mxu1 %vm1187_vm0, %v1186_v0 }
  0x20   : > { %1109 = vmatprep.subr.bf16.mxu0 %v1186_v0  ;;  %1123 = vmatprep.subr.bf16.mxu1 %v1186_v0 }
  0x21   : > { %1110 = vmatpush3.bf16.msra.mxu0 %v583_v21  ;;  %1124 = vmatpush3.bf16.msra.mxu1 %v651_v22 }
  0x22   : > { %1067 = vmatmul.mubr.msk.f32.gmra.mxu0 %vm347_vm1, %v343_v11  ;;  %1098 = vmatmul.mubr.msk.f32.gmra.mxu1 %vm347_vm1, %v454_v12 }
  0x23   : > { %1069 = vmatprep.mubr.msk.f32.mxu0 %vm1187_vm0, %v1186_v0  ;;  %1100 = vmatprep.mubr.msk.f32.mxu1 %vm1187_vm0, %v1186_v0 }
  0x24   : > { %1147 = vmatprep.subr.bf16.mxu1 %v1167_v50 }
  0x26   : > { %1070 = vmatmul.mubr.msk.f32.gmra.mxu0 %vm347_vm1, %v344_v13  ;;  %1101 = vmatmul.mubr.msk.f32.gmra.mxu1 %vm347_vm1, %v455_v14 }
  0x27   : > { %1072 = vmatprep.mubr.msk.f32.mxu0 %vm1187_vm0, %v1186_v0  ;;  %1103 = vmatprep.mubr.msk.f32.mxu1 %vm1187_vm0, %v1186_v0 }
  0x2a   : > { %1073 = vmatmul.mubr.msk.f32.gmra.mxu0 %vm347_vm1, %v345_v15  ;;  %1104 = vmatmul.mubr.msk.f32.gmra.mxu1 %vm347_vm1, %v456_v16 }
  0x2b   : > { %1075 = vmatprep.mubr.msk.f32.mxu0 %vm1187_vm0, %v1186_v0  ;;  %1106 = vmatprep.mubr.msk.f32.mxu1 %vm1187_vm0, %v1186_v0 }
  0x2e   : > { %1076 = vmatmul.mubr.msk.f32.gmra.mxu0 %vm347_vm1, %v346_v17  ;;  %1107 = vmatmul.mubr.msk.f32.gmra.mxu1 %vm347_vm1, %v457_v18 }
  0x2f   : > { %1111 = vmatprep.mubr.msk.bf16.mxu0 %vm1187_vm0, %v1186_v0  ;;  %1125 = vmatprep.mubr.msk.bf16.mxu1 %vm1187_vm0, %v1186_v0 }
  0xde   : > { %v429_v23 = vpop.f32.mrf.mxu0  ;;  %v539_v24 = vpop.f32.mrf.mxu1 }
  0xe0   : > { %v1065_v25 = vpop.f32.mrf.mxu0  ;;  %v1096_v26 = vpop.f32.mrf.mxu1 }
  0xe2   : > { %v434_v27 = vpop.f32.mrf.mxu0  ;;  %v544_v28 = vpop.f32.mrf.mxu1 }
  0xe3   : > { %v563_v29 = vpack.c.bf16 %v434_v27, %v429_v23  ;;  %v567_v30 = vpack.c.bf16 %v544_v28, %v539_v24 }
  0xe4   : > { %v1068_v31 = vpop.f32.mrf.mxu0  ;;  %v1099_v32 = vpop.f32.mrf.mxu1 }
  0xe5   : > { %1112 = vmatmul.mubr.msk.bf16.vlgmr.msra.gmra.mxu0 %vm571_vm3, %v567_v30  ;;  %1126 = vmatmul.mubr.msk.bf16.vlgmr.msra.gmra.mxu1 %vm571_vm3, %v563_v29 }
  0xe6   : > { %v439_v33 = vpop.f32.mrf.mxu0  ;;  %v549_v34 = vpop.f32.mrf.mxu1  ;;  %1115 = vmatprep.mubr.msk.bf16.mxu0 %vm1187_vm0, %v1186_v0  ;;  %1129 = vmatprep.mubr.msk.bf16.mxu1 %vm1187_vm0, %v1186_v0 }
  0xe7   : > { %1148 = vmatpush3.bf16.msra.mxu1 %v1167_v50 }
  0xe8   : > { %v1071_v35 = vpop.f32.mrf.mxu0  ;;  %v1102_v36 = vpop.f32.mrf.mxu1 }
  0xea   : > { %v444_v37 = vpop.f32.mrf.mxu0  ;;  %v554_v38 = vpop.f32.mrf.mxu1 }
  0xeb   : > { %v564_v39 = vpack.c.bf16 %v444_v37, %v439_v33  ;;  %v568_v40 = vpack.c.bf16 %v554_v38, %v549_v34 }
  0xec   : > { %v1074_v41 = vpop.f32.mrf.mxu0  ;;  %v1105_v42 = vpop.f32.mrf.mxu1 }
  0xed   : > { %1116 = vmatmul.mubr.msk.bf16.gmra.mxu0 %vm571_vm3, %v568_v40  ;;  %1130 = vmatmul.mubr.msk.bf16.gmra.mxu1 %vm571_vm3, %v564_v39 }
  0xee   : > { %v449_v43 = vpop.f32.mrf.mxu0  ;;  %v559_v44 = vpop.f32.mrf.mxu1  ;;  %1119 = vmatprep.mubr.msk.bf16.mxu0 %vm1187_vm0, %v1186_v0  ;;  %1133 = vmatprep.mubr.msk.bf16.mxu1 %vm1187_vm0, %v1186_v0 }
  0xef   : > { %v565_v47 = vpack.c.bf16 %v449_v43, %v449_v43  ;;  %v569_v48 = vpack.c.bf16 %v559_v44, %v559_v44 }
  0xf0   : > { %v1077_v45 = vpop.f32.mrf.mxu0  ;;  %v1108_v46 = vpop.f32.mrf.mxu1 }
  0xf5   : > { %1120 = vmatmul.mubr.msk.bf16.gmra.mxu0 %vm571_vm3, %v569_v48  ;;  %1134 = vmatmul.mubr.msk.bf16.gmra.mxu1 %vm571_vm3, %v565_v47 }
  0xf6   : > { %1143 = vmatprep.mubr.msk.bf16.mxu0 %vm780_vm4, %v1165_v49 }
 0x1a5   : > { %v619_v51 = vpop.f32.mrf.mxu0  ;;  %v687_v52 = vpop.f32.mrf.mxu1 }
 0x1a6   : > { %v688_v53 = vadd.f32 %v687_v52, %v619_v51 }
 0x1a7   : > { %v1113_v54 = vpop.f32.mrf.mxu0  ;;  %v1127_v55 = vpop.f32.mrf.mxu1 }
 0x1a8   : > { %v1374_v60 = vadd.f32 %v993_v56, %v688_v53 }
 0x1a9   : > { %v622_v57 = vpop.f32.mrf.mxu0  ;;  %v690_v58 = vpop.f32.mrf.mxu1 }
 0x1aa   : > { %v691_v59 = vadd.f32 %v690_v58, %v622_v57  ;;  %v721_v4 = vmul.f32 %v1374_v60, %v1374_v60 }
 0x1ab   : > { %v1114_v61 = vpop.f32.mrf.mxu0  ;;  %v1128_v62 = vpop.f32.mrf.mxu1 }
 0x1ac   : > { %v1376_v63 = vadd.f32 %v993_v56, %v691_v59  ;;  %v726_v13 = vmul.f32 %v721_v4, %v1374_v60 }
 0x1ad   : > { %v627_v0 = vpop.f32.mrf.mxu0  ;;  %v695_v1 = vpop.f32.mrf.mxu1 }
 0x1ae   : > { %v722_v2 = vmul.f32 %v1376_v63, %v1376_v63  ;;  %v696_v3 = vadd.f32 %v695_v1, %v627_v0  ;;  %v731_v24 = vmul.f32 0.044715, %v726_v13 }
 0x1af   : > { %v1117_v5 = vpop.f32.mrf.mxu0  ;;  %v1131_v6 = vpop.f32.mrf.mxu1 }
 0x1b0   : > { %v1382_v7 = vadd.f32 %v993_v56, %v696_v3  ;;  %v727_v10 = vmul.f32 %v722_v2, %v1376_v63  ;;  %v736_v35 = vadd.f32 %v731_v24, %v1374_v60 }
 0x1b1   : > { %v630_v8 = vpop.f32.mrf.mxu0  ;;  %v698_v9 = vpop.f32.mrf.mxu1 }
 0x1b2   : > { %v723_v11 = vmul.f32 %v1382_v7, %v1382_v7  ;;  %v699_v12 = vadd.f32 %v698_v9, %v630_v8  ;;  %v732_v20 = vmul.f32 0.044715, %v727_v10  ;;  %v741_v44 = vmul.f32 0.7978846, %v736_v35 }
 0x1b3   : > { %v1118_v14 = vpop.f32.mrf.mxu0  ;;  %v1132_v15 = vpop.f32.mrf.mxu1  ;;  %v1166_v10 = vld [vmem:[%s1415_s6 + $0x8] ss:$0 sps:$4 sm:$0x11]  }
 0x1b4   : > { %v728_v16 = vmul.f32 %v723_v11, %v1382_v7  ;;  %v719_v17 = vadd.f32 %v993_v56, %v699_v12  ;;  %v737_v32 = vadd.f32 %v732_v20, %v1376_v63 }
 0x1b5   : > { %v635_v18 = vpop.f32.mrf.mxu0  ;;  %v703_v19 = vpop.f32.mrf.mxu1 }
 0x1b6   : > { %v733_v21 = vmul.f32 0.044715, %v728_v16  ;;  %v724_v22 = vmul.f32 %v719_v17, %v719_v17  ;;  %v704_v23 = vadd.f32 %v703_v19, %v635_v18  ;;  %v742_v41 = vmul.f32 0.7978846, %v737_v32 }
 0x1b7   : > { %v1121_v25 = vpop.f32.mrf.mxu0  ;;  %v1135_v26 = vpop.f32.mrf.mxu1 }
 0x1b8   : > { %v738_v27 = vadd.f32 %v733_v21, %v1382_v7  ;;  %v729_v28 = vmul.f32 %v724_v22, %v719_v17  ;;  %v720_v29 = vadd.f32 %v993_v56, %v704_v23 }
 0x1b9   : > { %v638_v30 = vpop.f32.mrf.mxu0  ;;  %v706_v31 = vpop.f32.mrf.mxu1 }
 0x1ba   : > { %v734_v33 = vmul.f32 0.044715, %v729_v28  ;;  %v725_v34 = vmul.f32 %v720_v29, %v720_v29  ;;  %v743_v36 = vmul.f32 0.7978846, %v738_v27 }
 0x1bb   : > { %v1122_v37 = vpop.f32.mrf.mxu0  ;;  %v1136_v38 = vpop.f32.mrf.mxu1 }
 0x1bc   : > { %v739_v39 = vadd.f32 %v734_v33, %v719_v17  ;;  %v730_v40 = vmul.f32 %v725_v34, %v720_v29  ;;  %1168 = vtanh.f32 %v743_v36 }
 0x1be   : > { %v744_v42 = vmul.f32 0.7978846, %v739_v39  ;;  %v735_v43 = vmul.f32 0.044715, %v730_v40 }
 0x1c0   : > { %1170 = vtanh.f32 %v744_v42  ;;  %v740_v45 = vadd.f32 %v735_v43, %v720_v29 }
 0x1c1   : > { %1172 = vtanh.f32 %v742_v41 }
 0x1c2   : > { %v745_v46 = vmul.f32 0.7978846, %v740_v45  ;;  %1174 = vtanh.f32 %v741_v44 }
 0x1c4   : > { %1176 = vtanh.f32 %v745_v46 }
 0x1c9   : > { %v1169_v47 = vpop.eup %1168 }
 0x1ca   : > { %v753_v52 = vadd.f32 1.0, %v1169_v47 }
 0x1cc   : > { %v758_v58 = vmul.f32 0.5, %v753_v52 }
 0x1cd   : > { %v1171_v48 = vpop.eup %1170 }
 0x1ce   : > { %v754_v49 = vadd.f32 1.0, %v1171_v48  ;;  %v1173_v50 = vpop.eup %1172  ;;  %v763_v2 = vmul.f32 %v758_v58, %v1382_v7 }
 0x1cf   : > { %v1175_v51 = vpop.eup %1174  ;;  %v752_v56 = vadd.f32 1.0, %v1173_v50 }
 0x1d0   : > { %v759_v55 = vmul.f32 0.5, %v754_v49  ;;  %v751_v59 = vadd.f32 1.0, %v1175_v51 }
 0x1d1   : > { %v1177_v53 = vpop.eup %1176  ;;  %v757_v0 = vmul.f32 0.5, %v752_v56 }
 0x1d2   : > { %v755_v54 = vadd.f32 1.0, %v1177_v53  ;;  %v764_v62 = vmul.f32 %v759_v55, %v719_v17  ;;  %v756_v3 = vmul.f32 0.5, %v751_v59 }
 0x1d3   : > { %v762_v6 = vmul.f32 %v757_v0, %v1376_v63 }
 0x1d4   : > { %v760_v57 = vmul.f32 0.5, %v755_v54  ;;  %v767_v5 = vpack.c.bf16 %v764_v62, %v763_v2  ;;  %v761_v8 = vmul.f32 %v756_v3, %v1374_v60  ;;  %v998_v60 = vld [vmem:[%s1417_s8] ss:$0 sm:$0xff] }
 0x1d6   : > { %v765_v61 = vmul.f32 %v760_v57, %v720_v29  ;;  %v766_v9 = vpack.c.bf16 %v762_v6, %v761_v8 }
 0x1d8   : > { %v768_v1 = vpack.c.bf16 %v765_v61, %v765_v61 }
 0x1da   : > { %1153 = vmatprep.subr.msk.bf16.mxu0 %vm787_vm5, %v768_v1  ;;  %v789_v4 = vsel %vm787_vm5, %v768_v1, 0 }
 0x1db   : > { %1138 = vmatpush3.bf16.msra.mxu0 %v789_v4 }
 0x1dc   : > { %1139 = vmatprep.subr.bf16.mxu0 %v767_v5 }
 0x1df   : > { %1140 = vmatpush3.bf16.msra.mxu0 %v767_v5 }
 0x1e0   : > { %1141 = vmatprep.subr.bf16.mxu0 %v766_v9 }
 0x1e3   : > { %1142 = vmatpush3.bf16.msra.mxu0 %v766_v9 }
 0x1e6   : > { %1144 = vmatmul.mubr.msk.bf16.vlgmr.msra.gmra.mxu0 %vm780_vm4, %v1166_v10 }
 0x2a6   : > { %v1145_v7 = vpop.f32.mrf.mxu0 }
 0x2a7   : > { %v840_v14 = vpack.c.bf16 %v1145_v7, %v1145_v7 }
 0x2a8   : > { %v825_v11 = vpop.f32.mrf.mxu0 }
 0x2aa   : > { %v1146_v12 = vpop.f32.mrf.mxu0 }
 0x2ac   : > { %v828_v13 = vpop.f32.mrf.mxu0 }
 0x2ad   : > { %v839_v63 = vpack.c.bf16 %v828_v13, %v825_v11 }
 0x2af   : > { %1149 = vmatprep.mubr.msk.bf16.mxu1 %vm856_vm6, %v839_v63 }
 0x2b0   : > { %1150 = vmatmul.mubr.msk.bf16.vlgmr.msra.gmra.mxu1 %vm856_vm6, %v840_v14 }
 0x370   : > { %v1151_v15 = vpop.f32.mrf.mxu1 }
 0x371   : > { %v906_v16 = vadd.f32 %v1151_v15, %v998_v60 }
 0x372   : > { %v897_v17 = vpop.f32.mrf.mxu1 }
 0x373   : > { %913 = vst [vmem:[%s332_s14 + $0x10] sm:$0x1] %v906_v16  ;;  %v898_v18 = vadd.f32 %v998_v60, %v897_v17 }
 0x374   : > { %v1152_v19 = vpop.f32.mrf.mxu1 }
 0x375   : > { %911 = vst [vmem:[%s332_s14] sm:$0xff] %v898_v18 }
 0x376   : > { %v900_v20 = vpop.f32.mrf.mxu1 }
 0x377   : > { %v901_v21 = vadd.f32 %v998_v60, %v900_v20 }
 0x379   : > { %912 = vst [vmem:[%s332_s14 + $0x8] sm:$0xff] %v901_v21 }
 0x37a PF: > { %s19_s30 = sadd.s32 1, %s1184_s30  }
 0x37b   : > { %p16_p4 = scmp.ge.s32.totalorder %s19_s30, 4  }
 0x37d   :  { %18 = sbr.rel (!%p16_p4) target bundleno = 1 (0x1), region = 86 }

// kernel: _lambda_.6
= control target key start
LH: loop header
LB: loop body
LE: loop exit
PB: predicated region body
PF: predicated region fallthrough
CT: control target
= control target key end

     0   :  { %s1727_s21 = smov 0   ;;  %s2040_s0 = inlined_call_operand.vmem [shape: f32[2,64,4], index: 0, kind: input, shape index: {}]   ;;  %s2041_s1 = inlined_call_operand.vmem [shape: f32[36,64], index: 1, kind: input, shape index: {}]   ;;  %s2042_s2 = inlined_call_operand.vmem [shape: f32[36,64], index: 2, kind: input, shape index: {}]   ;;  %s2043_s3 = inlined_call_operand.vmem [shape: bf16[4,16], index: 3, kind: input, shape index: {}]   ;;  %s2044_s4 = inlined_call_operand.vmem [shape: bf16[4,16], index: 4, kind: input, shape index: {}]   ;;  %s2045_s5 = inlined_call_operand.vmem [shape: f32[1,16], index: 5, kind: input, shape index: {}]   ;;  %s2046_s6 = inlined_call_operand.vmem [shape: bf16[9,36], index: 6, kind: input, shape index: {}]   ;;  %s2047_s7 = inlined_call_operand.vmem [shape: bf16[16,128], index: 7, kind: input, shape index: {}]   ;;  %s2048_s8 = inlined_call_operand.vmem [shape: f32[1,128], index: 8, kind: input, shape index: {}]   ;;  %s2049_s9 = inlined_call_operand.vmem [shape: f32[64,36], index: 9, kind: input, shape index: {}]   ;;  %s2050_s10 = inlined_call_operand.vmem [shape: f32[64,36], index: 10, kind: input, shape index: {}]   ;;  %s2051_s11 = inlined_call_operand.vmem [shape: f32[2,9,128], index: 11, kind: output, shape index: {0}]   ;;  %s2052_s12 = inlined_call_operand.vmem [shape: f32[2,64,4], index: 12, kind: output, shape index: {1}]  }
   0x1 LB: > { %s1358_s22 = sadd.s32 4294967295, %s1658_s21   ;;  %p1362_p0 = scmp.ge.s32.totalorder %s1658_s21, 1  ;;  %s1658_s21 = sphi %s1727_s21, %s23_s21  }
   0x2   : > { %p365_p1 = scmp.lt.s32.totalorder %s1658_s21, 3 }
   0x4   : > { %p366_p2 = pnand %p1362_p0, %p365_p1 }
   0x5   : > { %p412_p3 = scmp.lt.s32.totalorder (!%p366_p2), %s1358_s22, 1 }
   0x6   : > { %369 = sbr.rel (%p366_p2) target bundleno = 905 (0x389), region = 64 }
   0xb   : > { %v1660_v0 = vmov 0.0   ;;  %s2054_s22 = smov (!%p412_p3, %s1358_s22), 1  ;;  %vm1661_vm0 = vmmov 0   ;;  %v436_v9 = vld [vmem:[%s2041_s1] sm:$0xff]  ;;  %vm441_vm1 = vcmask 523264   ;;  %v437_v11 = vld [vmem:[%s2041_s1 + $0x8] sm:$0xff] }
   0xc   : > { %1480 = vmatprep.subr.mxu0 %v1660_v0  ;;  %1511 = vmatprep.subr.mxu1 %v1660_v0  ;;  %s1411_s23 = sshll.u32 %s2054_s22, 6  ;;  %v547_v10 = vld [vmem:[%s2042_s2] sm:$0xff]  ;;  %v548_v12 = vld [vmem:[%s2042_s2 + $0x8] sm:$0xff]  ;;  %v438_v13 = vld [vmem:[%s2041_s1 + $0x10] sm:$0xff]  ;;  %vm675_vm2 = vcmask 1041408   ;;  %vm665_vm3 = vcmask 31744  }
   0xd   : > { %1496 = vmatprep.mubr.msk.f32.mxu0 %vm1661_vm0, %v1660_v0  ;;  %1527 = vmatprep.mubr.msk.f32.mxu1 %vm1661_vm0, %v1660_v0  ;;  %s1749_s26 = scalar_lea.vmem %s2040_s0, %s1411_s23  ;;  %v549_v14 = vld [vmem:[%s2042_s2 + $0x10] sm:$0xff]  ;;  %v439_v15 = vld [vmem:[%s2041_s1 + $0x18] sm:$0xff]  ;;  %v440_v17 = vld [vmem:[%s2041_s1 + $0x20] sm:$0xf]  ;;  %vm1021_vm4 = vcmask 1043456   ;;  %vm870_vm5 = vcmask 293888   ;;  %s426_s19 = scalar_lea.vmem %s2052_s12, %s1411_s23 }
   0xe   : > { %v435_v1 = vld [vmem:[%s1749_s26 + $0x38] sm:$0xff]  ;;  %v434_v2 = vld [vmem:[%s1749_s26 + $0x30] sm:$0xff]  ;;  %v433_v3 = vld [vmem:[%s1749_s26 + $0x28] sm:$0xff]  ;;  %vm934_vm6 = vcmask 130048   ;;  %s1412_s29 = sshll.u32 %s2054_s22, 4 }
   0xf   : > { %1481 = vmatpush3.msra.mxu0 %v435_v1  ;;  %1512 = vmatpush3.msra.mxu1 %v435_v1  ;;  %v432_v4 = vld [vmem:[%s1749_s26 + $0x20] sm:$0xff]  ;;  %v431_v5 = vld [vmem:[%s1749_s26 + $0x18] sm:$0xff]  ;;  %v430_v6 = vld [vmem:[%s1749_s26 + $0x10] sm:$0xff]  ;;  %s421_s16 = scalar_lea.vmem %s2051_s11, %s1412_s29 }
  0x10   : > { %1482 = vmatprep.subr.mxu0 %v1660_v0  ;;  %1513 = vmatprep.subr.mxu1 %v1660_v0  ;;  %v429_v7 = vld [vmem:[%s1749_s26 + $0x8] sm:$0xff]  ;;  %v428_v8 = vld [vmem:[%s1749_s26] sm:$0xff]  ;;  %v550_v16 = vld [vmem:[%s2042_s2 + $0x18] sm:$0xff] }
  0x11   : > { %1483 = vmatpush3.msra.mxu0 %v434_v2  ;;  %1514 = vmatpush3.msra.mxu1 %v434_v2  ;;  %v551_v18 = vld [vmem:[%s2042_s2 + $0x20] sm:$0xf] }
  0x12   : > { %1484 = vmatprep.subr.mxu0 %v1660_v0  ;;  %1515 = vmatprep.subr.mxu1 %v1660_v0  ;;  %v664_v19 = vld [vmem:[%s2044_s4] sm:$0x3] }
  0x13   : > { %1485 = vmatpush3.msra.mxu0 %v433_v3  ;;  %1516 = vmatpush3.msra.mxu1 %v433_v3  ;;  %v660_v20 = vld [vmem:[%s2043_s3] sm:$0x3]  ;;  %v677_v21 = vsel %vm675_vm2, %v664_v19, 0 }
  0x14   : > { %1486 = vmatprep.subr.mxu0 %v1660_v0  ;;  %1517 = vmatprep.subr.mxu1 %v1660_v0  ;;  %v745_v22 = vsel %vm675_vm2, %v660_v20, 0  ;;  %v1640_v31 = vld [vmem:[%s2047_s7] sm:$0xff]  }
  0x15   : > { %1487 = vmatpush3.msra.mxu0 %v432_v4  ;;  %1518 = vmatpush3.msra.mxu1 %v432_v4  ;;  %v1385_v60 = vld [vmem:[%s2045_s5] ss:$0 sm:$0xff] }
  0x16   : > { %1488 = vmatprep.subr.mxu0 %v1660_v0  ;;  %1519 = vmatprep.subr.mxu1 %v1660_v0 }
  0x17   : > { %1489 = vmatpush3.msra.mxu0 %v431_v5  ;;  %1520 = vmatpush3.msra.mxu1 %v431_v5 }
  0x18   : > { %1490 = vmatprep.subr.mxu0 %v1660_v0  ;;  %1521 = vmatprep.subr.mxu1 %v1660_v0 }
  0x19   : > { %1491 = vmatpush3.msra.mxu0 %v430_v6  ;;  %1522 = vmatpush3.msra.mxu1 %v430_v6 }
  0x1a   : > { %1492 = vmatprep.subr.mxu0 %v1660_v0  ;;  %1523 = vmatprep.subr.mxu1 %v1660_v0 }
  0x1b   : > { %1493 = vmatpush3.msra.mxu0 %v429_v7  ;;  %1524 = vmatpush3.msra.mxu1 %v429_v7 }
  0x1c   : > { %1494 = vmatprep.subr.mxu0 %v1660_v0  ;;  %1525 = vmatprep.subr.mxu1 %v1660_v0 }
  0x1d   : > { %1495 = vmatpush3.msra.mxu0 %v428_v8  ;;  %1526 = vmatpush3.msra.mxu1 %v428_v8 }
  0x1e   : > { %1497 = vmatmul.mubr.msk.f32.vlgmr.msra.gmra.mxu0 %vm441_vm1, %v436_v9  ;;  %1528 = vmatmul.mubr.msk.f32.vlgmr.msra.gmra.mxu1 %vm441_vm1, %v547_v10 }
  0x1f   : > { %1499 = vmatprep.mubr.msk.f32.mxu0 %vm1661_vm0, %v1660_v0  ;;  %1530 = vmatprep.mubr.msk.f32.mxu1 %vm1661_vm0, %v1660_v0 }
  0x20   : > { %1542 = vmatprep.subr.bf16.mxu0 %v1660_v0  ;;  %1556 = vmatprep.subr.bf16.mxu1 %v1660_v0 }
  0x21   : > { %1543 = vmatpush3.bf16.msra.mxu0 %v677_v21  ;;  %1557 = vmatpush3.bf16.msra.mxu1 %v745_v22 }
  0x22   : > { %1500 = vmatmul.mubr.msk.f32.gmra.mxu0 %vm441_vm1, %v437_v11  ;;  %1531 = vmatmul.mubr.msk.f32.gmra.mxu1 %vm441_vm1, %v548_v12 }
  0x23   : > { %1502 = vmatprep.mubr.msk.f32.mxu0 %vm1661_vm0, %v1660_v0  ;;  %1533 = vmatprep.mubr.msk.f32.mxu1 %vm1661_vm0, %v1660_v0 }
  0x24   : > { %1580 = vmatprep.subr.bf16.mxu1 %v1660_v0  ;;  %1570 = vmatprep.subr.bf16.mxu0 %v1660_v0 }
  0x26   : > { %1503 = vmatmul.mubr.msk.f32.gmra.mxu0 %vm441_vm1, %v438_v13  ;;  %1534 = vmatmul.mubr.msk.f32.gmra.mxu1 %vm441_vm1, %v549_v14 }
  0x27   : > { %1505 = vmatprep.mubr.msk.f32.mxu0 %vm1661_vm0, %v1660_v0  ;;  %1536 = vmatprep.mubr.msk.f32.mxu1 %vm1661_vm0, %v1660_v0 }
  0x2a   : > { %1506 = vmatmul.mubr.msk.f32.gmra.mxu0 %vm441_vm1, %v439_v15  ;;  %1537 = vmatmul.mubr.msk.f32.gmra.mxu1 %vm441_vm1, %v550_v16 }
  0x2b   : > { %1508 = vmatprep.mubr.msk.f32.mxu0 %vm1661_vm0, %v1660_v0  ;;  %1539 = vmatprep.mubr.msk.f32.mxu1 %vm1661_vm0, %v1660_v0 }
  0x2e   : > { %1509 = vmatmul.mubr.msk.f32.gmra.mxu0 %vm441_vm1, %v440_v17  ;;  %1540 = vmatmul.mubr.msk.f32.gmra.mxu1 %vm441_vm1, %v551_v18 }
  0x2f   : > { %1544 = vmatprep.mubr.msk.bf16.mxu0 %vm1661_vm0, %v1660_v0  ;;  %1558 = vmatprep.mubr.msk.bf16.mxu1 %vm1661_vm0, %v1660_v0 }
  0xde   : > { %v1845_v23 = vpop.f32.mrf.mxu0  ;;  %v1847_v24 = vpop.f32.mrf.mxu1 }
  0xe0   : > { %v1498_v25 = vpop.f32.mrf.mxu0  ;;  %v1529_v26 = vpop.f32.mrf.mxu1 }
  0xe2   : > { %v1849_v27 = vpop.f32.mrf.mxu0  ;;  %v1851_v28 = vpop.f32.mrf.mxu1 }
  0xe3   : > { %v657_v29 = vpack.c.bf16 %v1849_v27, %v1845_v23  ;;  %v661_v30 = vpack.c.bf16 %v1851_v28, %v1847_v24 }
  0xe4   : > { %v1501_v32 = vpop.f32.mrf.mxu0  ;;  %v1532_v33 = vpop.f32.mrf.mxu1 }
  0xe5   : > { %1545 = vmatmul.mubr.msk.bf16.vlgmr.msra.gmra.mxu0 %vm665_vm3, %v661_v30  ;;  %1559 = vmatmul.mubr.msk.bf16.vlgmr.msra.gmra.mxu1 %vm665_vm3, %v657_v29 }
  0xe6   : > { %v1862_v34 = vpop.f32.mrf.mxu0  ;;  %v1864_v35 = vpop.f32.mrf.mxu1  ;;  %1548 = vmatprep.mubr.msk.bf16.mxu0 %vm1661_vm0, %v1660_v0  ;;  %1562 = vmatprep.mubr.msk.bf16.mxu1 %vm1661_vm0, %v1660_v0 }
  0xe7   : > { %1581 = vmatpush3.bf16.msra.mxu1 %v1640_v31 }
  0xe8   : > { %v1504_v36 = vpop.f32.mrf.mxu0  ;;  %v1535_v37 = vpop.f32.mrf.mxu1 }
  0xea   : > { %v1870_v38 = vpop.f32.mrf.mxu0  ;;  %v1872_v39 = vpop.f32.mrf.mxu1 }
  0xeb   : > { %v658_v40 = vpack.c.bf16 %v1870_v38, %v1862_v34  ;;  %v662_v41 = vpack.c.bf16 %v1872_v39, %v1864_v35 }
  0xec   : > { %v1507_v42 = vpop.f32.mrf.mxu0  ;;  %v1538_v43 = vpop.f32.mrf.mxu1 }
  0xed   : > { %1549 = vmatmul.mubr.msk.bf16.gmra.mxu0 %vm665_vm3, %v662_v41  ;;  %1563 = vmatmul.mubr.msk.bf16.gmra.mxu1 %vm665_vm3, %v658_v40 }
  0xee   : > { %v1880_v44 = vpop.f32.mrf.mxu0  ;;  %v1882_v45 = vpop.f32.mrf.mxu1  ;;  %1552 = vmatprep.mubr.msk.bf16.mxu0 %vm1661_vm0, %v1660_v0  ;;  %1566 = vmatprep.mubr.msk.bf16.mxu1 %vm1661_vm0, %v1660_v0 }
  0xef   : > { %1608 = vmatprep.subr.msk.mxu1 %vm1021_vm4, %v1880_v44  ;;  %v659_v48 = vpack.c.bf16 %v1880_v44, %v1880_v44  ;;  %v663_v49 = vpack.c.bf16 %v1882_v45, %v1882_v45 }
  0xf0   : > { %v1510_v46 = vpop.f32.mrf.mxu0  ;;  %v1541_v47 = vpop.f32.mrf.mxu1 }
  0xf5   : > { %1553 = vmatmul.mubr.msk.bf16.gmra.mxu0 %vm665_vm3, %v663_v49  ;;  %1567 = vmatmul.mubr.msk.bf16.gmra.mxu1 %vm665_vm3, %v659_v48 }
  0xf6   : > { %1576 = vmatprep.mubr.msk.bf16.mxu0 %vm1661_vm0, %v1660_v0  ;;  %1582 = vmatprep.mubr.msk.bf16.mxu1 %vm1661_vm0, %v1660_v0 }
 0x1a5   : > { %v713_v50 = vpop.f32.mrf.mxu0  ;;  %v781_v51 = vpop.f32.mrf.mxu1 }
 0x1a6   : > { %v782_v57 = vadd.f32 %v781_v51, %v713_v50 }
 0x1a7   : > { %v1546_v52 = vpop.f32.mrf.mxu0  ;;  %v1560_v53 = vpop.f32.mrf.mxu1 }
 0x1a8   : > { %v1905_v2 = vadd.f32 %v1385_v60, %v782_v57 }
 0x1a9   : > { %v716_v54 = vpop.f32.mrf.mxu0  ;;  %v784_v55 = vpop.f32.mrf.mxu1 }
 0x1aa   : > { %v785_v56 = vadd.f32 %v784_v55, %v716_v54  ;;  %v815_v11 = vmul.f32 %v1905_v2, %v1905_v2 }
 0x1ab   : > { %v1547_v58 = vpop.f32.mrf.mxu0  ;;  %v1561_v59 = vpop.f32.mrf.mxu1 }
 0x1ac   : > { %v1903_v61 = vadd.f32 %v1385_v60, %v785_v56  ;;  %v820_v21 = vmul.f32 %v815_v11, %v1905_v2 }
 0x1ad   : > { %v721_v62 = vpop.f32.mrf.mxu0  ;;  %v789_v63 = vpop.f32.mrf.mxu1 }
 0x1ae   : > { %v790_v1 = vadd.f32 %v789_v63, %v721_v62  ;;  %v816_v6 = vmul.f32 %v1903_v61, %v1903_v61  ;;  %v825_v40 = vmul.f32 0.044715, %v820_v21 }
 0x1af   : > { %v1550_v3 = vpop.f32.mrf.mxu0  ;;  %v1564_v4 = vpop.f32.mrf.mxu1 }
 0x1b0   : > { %v1907_v5 = vadd.f32 %v1385_v60, %v790_v1  ;;  %v821_v16 = vmul.f32 %v816_v6, %v1903_v61  ;;  %v830_v51 = vadd.f32 %v825_v40, %v1905_v2 }
 0x1b1   : > { %v724_v7 = vpop.f32.mrf.mxu0  ;;  %v792_v8 = vpop.f32.mrf.mxu1 }
 0x1b2   : > { %v817_v9 = vmul.f32 %v1907_v5, %v1907_v5  ;;  %v793_v10 = vadd.f32 %v792_v8, %v724_v7  ;;  %v826_v31 = vmul.f32 0.044715, %v821_v16  ;;  %v835_v56 = vmul.f32 0.7978846, %v830_v51 }
 0x1b3   : > { %v1551_v12 = vpop.f32.mrf.mxu0  ;;  %v1565_v13 = vpop.f32.mrf.mxu1 }
 0x1b4   : > { %v822_v14 = vmul.f32 %v817_v9, %v1907_v5  ;;  %v813_v15 = vadd.f32 %v1385_v60, %v793_v10  ;;  %v831_v48 = vadd.f32 %v826_v31, %v1903_v61  ;;  %v982_v31 = vld [vmem:[%s2049_s9 + $0x8] sm:$0xff] }
 0x1b5   : > { %v729_v17 = vpop.f32.mrf.mxu0  ;;  %v797_v18 = vpop.f32.mrf.mxu1 }
 0x1b6   : > { %v818_v19 = vmul.f32 %v813_v15, %v813_v15  ;;  %v798_v20 = vadd.f32 %v797_v18, %v729_v17  ;;  %v827_v22 = vmul.f32 0.044715, %v822_v14  ;;  %v836_v54 = vmul.f32 0.7978846, %v831_v48 }
 0x1b7   : > { %v1554_v25 = vpop.f32.mrf.mxu0  ;;  %v1568_v26 = vpop.f32.mrf.mxu1 }
 0x1b8   : > { %v823_v29 = vmul.f32 %v818_v19, %v813_v15  ;;  %v814_v30 = vadd.f32 %v1385_v60, %v798_v20  ;;  %v832_v41 = vadd.f32 %v827_v22, %v1907_v5 }
 0x1b9   : > { %v732_v32 = vpop.f32.mrf.mxu0  ;;  %v800_v33 = vpop.f32.mrf.mxu1 }
 0x1ba   : > { %v828_v36 = vmul.f32 0.044715, %v823_v29  ;;  %v819_v37 = vmul.f32 %v814_v30, %v814_v30  ;;  %v837_v52 = vmul.f32 0.7978846, %v832_v41  ;;  %v981_v29 = vld [vmem:[%s2049_s9] sm:$0xff]  ;;  %v988_v32 = vld [vmem:[%s2049_s9 + $0x38] sm:$0xff] }
 0x1bb   : > { %v1555_v42 = vpop.f32.mrf.mxu0  ;;  %v1569_v43 = vpop.f32.mrf.mxu1 }
 0x1bc   : > { %v833_v46 = vadd.f32 %v828_v36, %v813_v15  ;;  %v824_v47 = vmul.f32 %v819_v37, %v814_v30  ;;  %v1388_v36 = vld [vmem:[%s2048_s8] ss:$0 sm:$0xff] }
 0x1be   : > { %v838_v49 = vmul.f32 0.7978846, %v833_v46  ;;  %v829_v50 = vmul.f32 0.044715, %v824_v47 }
 0x1c0   : > { %v834_v53 = vadd.f32 %v829_v50, %v814_v30  ;;  %1642 = vtanh.f32 %v838_v49 }
 0x1c1   : > { %1644 = vtanh.f32 %v837_v52 }
 0x1c2   : > { %v839_v55 = vmul.f32 0.7978846, %v834_v53 }
 0x1c4   : > { %1646 = vtanh.f32 %v839_v55 }
 0x1c5   : > { %1648 = vtanh.f32 %v836_v54 }
 0x1c6   : > { %1650 = vtanh.f32 %v835_v56 }
 0x1cd   : > { %v1643_v57 = vpop.eup %1642 }
 0x1ce   : > { %v1645_v58 = vpop.eup %1644  ;;  %v848_v60 = vadd.f32 1.0, %v1643_v57 }
 0x1cf   : > { %v847_v1 = vadd.f32 1.0, %v1645_v58 }
 0x1d0   : > { %v853_v6 = vmul.f32 0.5, %v848_v60 }
 0x1d1   : > { %v1647_v59 = vpop.eup %1646  ;;  %v852_v9 = vmul.f32 0.5, %v847_v1 }
 0x1d2   : > { %v1649_v62 = vpop.eup %1648  ;;  %v849_v63 = vadd.f32 1.0, %v1647_v59  ;;  %v858_v12 = vmul.f32 %v853_v6, %v813_v15  ;;  %v1641_v15 = vld [vmem:[%s2046_s6] sm:$0x1f]  }
 0x1d3   : > { %v1651_v3 = vpop.eup %1650  ;;  %v846_v7 = vadd.f32 1.0, %v1649_v62  ;;  %v857_v16 = vmul.f32 %v852_v9, %v1907_v5 }
 0x1d4   : > { %v854_v4 = vmul.f32 0.5, %v849_v63  ;;  %v845_v10 = vadd.f32 1.0, %v1651_v3 }
 0x1d5   : > { %v851_v13 = vmul.f32 0.5, %v846_v7  ;;  %v861_v18 = vpack.c.bf16 %v858_v12, %v857_v16 }
 0x1d6   : > { %v859_v8 = vmul.f32 %v854_v4, %v814_v30  ;;  %v850_v17 = vmul.f32 0.5, %v845_v10 }
 0x1d7   : > { %v856_v19 = vmul.f32 %v851_v13, %v1903_v61  ;;  %v995_v61 = vld [vmem:[%s2050_s10 + $0x30] sm:$0xff] }
 0x1d8   : > { %v862_v11 = vpack.c.bf16 %v859_v8, %v859_v8  ;;  %v855_v20 = vmul.f32 %v850_v17, %v1905_v2  ;;  %v996_v2 = vld [vmem:[%s2050_s10 + $0x38] sm:$0xff] }
 0x1da   : > { %v875_v14 = vsel %vm675_vm2, %v862_v11, 0  ;;  %v860_v21 = vpack.c.bf16 %v856_v19, %v855_v20 }
 0x1db   : > { %1571 = vmatpush3.bf16.msra.mxu0 %v875_v14 }
 0x1dc   : > { %1572 = vmatprep.subr.bf16.mxu0 %v1660_v0 }
 0x1df   : > { %1573 = vmatpush3.bf16.msra.mxu0 %v861_v18 }
 0x1e0   : > { %1574 = vmatprep.subr.bf16.mxu0 %v1660_v0  ;;  %v989_v0 = vld [vmem:[%s2050_s10] sm:$0xff] }
 0x1e3   : > { %1575 = vmatpush3.bf16.msra.mxu0 %v860_v21 }
 0x1e4   : > { %1586 = vmatprep.subr.msk.mxu0 %vm1021_vm4, %v1882_v45 }
 0x1e6   : > { %1577 = vmatmul.mubr.msk.bf16.vlgmr.msra.gmra.mxu0 %vm870_vm5, %v1641_v15 }
 0x1e7   : > { %1587 = vmatpush3.msk.msra.mxu0 %vm1021_vm4, %v1882_v45  ;;  %1596 = vmatprep.mubr.msk.f32.mxu0 %vm870_vm5, %v989_v0  ;;  %v994_v45 = vld [vmem:[%s2050_s10 + $0x28] sm:$0xff] }
 0x1e8   : > { %1588 = vmatprep.subr.mxu0 %v1872_v39 }
 0x1e9   : > { %1589 = vmatpush3.msra.mxu0 %v1872_v39  ;;  %v990_v39 = vld [vmem:[%s2050_s10 + $0x8] sm:$0xff] }
 0x1ea   : > { %1590 = vmatprep.subr.mxu0 %v1864_v35 }
 0x1eb   : > { %1591 = vmatpush3.msra.mxu0 %v1864_v35  ;;  %v993_v35 = vld [vmem:[%s2050_s10 + $0x20] sm:$0xff] }
 0x1ec   : > { %1592 = vmatprep.subr.mxu0 %v1851_v28 }
 0x1ed   : > { %1593 = vmatpush3.msra.mxu0 %v1851_v28  ;;  %v991_v28 = vld [vmem:[%s2050_s10 + $0x10] sm:$0xff] }
 0x1ee   : > { %1594 = vmatprep.subr.mxu0 %v1847_v24 }
 0x1ef   : > { %1595 = vmatpush3.msra.mxu0 %v1847_v24  ;;  %v992_v24 = vld [vmem:[%s2050_s10 + $0x18] sm:$0xff] }
 0x1f0   : > { %1597 = vmatmul.mubr.msk.f32.vlgmr.msra.gmra.mxu0 %vm870_vm5, %v990_v39 }
 0x1f1   : > { %1599 = vmatprep.mubr.msk.f32.mxu0 %vm870_vm5, %v991_v28 }
 0x1f4   : > { %1600 = vmatmul.mubr.msk.f32.gmra.mxu0 %vm870_vm5, %v992_v24 }
 0x1f5   : > { %1602 = vmatprep.mubr.msk.f32.mxu0 %vm870_vm5, %v993_v35 }
 0x1f8   : > { %1603 = vmatmul.mubr.msk.f32.gmra.mxu0 %vm870_vm5, %v994_v45 }
 0x1f9   : > { %1605 = vmatprep.mubr.msk.f32.mxu0 %vm870_vm5, %v995_v61 }
 0x1fc   : > { %1606 = vmatmul.mubr.msk.f32.gmra.mxu0 %vm870_vm5, %v996_v2 }
 0x2a6   : > { %v911_v5 = vpop.f32.mrf.mxu0 }
 0x2a8   : > { %v1578_v22 = vpop.f32.mrf.mxu0 }
 0x2aa   : > { %v914_v25 = vpop.f32.mrf.mxu0 }
 0x2ab   : > { %v918_v26 = vpack.c.bf16 %v914_v25, %v911_v5 }
 0x2ac   : > { %v1579_v30 = vpop.f32.mrf.mxu0 }
 0x2ad   : > { %1583 = vmatmul.mubr.msk.bf16.vlgmr.msra.gmra.mxu1 %vm934_vm6, %v918_v26 }
 0x2ae   : > { %1609 = vmatpush3.msk.msra.mxu1 %vm1021_vm4, %v1880_v44  ;;  %1618 = vmatprep.mubr.msk.f32.mxu1 %vm870_vm5, %v981_v29  ;;  %v983_v44 = vld [vmem:[%s2049_s9 + $0x10] sm:$0xff] }
 0x2af   : > { %1610 = vmatprep.subr.mxu1 %v1870_v38 }
 0x2b0   : > { %1611 = vmatpush3.msra.mxu1 %v1870_v38  ;;  %v987_v38 = vld [vmem:[%s2049_s9 + $0x30] sm:$0xff]  ;;  %v1598_v33 = vpop.f32.mrf.mxu0 }
 0x2b1   : > { %1612 = vmatprep.subr.mxu1 %v1862_v34 }
 0x2b2   : > { %1613 = vmatpush3.msra.mxu1 %v1862_v34  ;;  %v985_v34 = vld [vmem:[%s2049_s9 + $0x20] sm:$0xff]  ;;  %v1091_v40 = vpop.f32.mrf.mxu0 }
 0x2b3   : > { %1614 = vmatprep.subr.mxu1 %v1849_v27 }
 0x2b4   : > { %1615 = vmatpush3.msra.mxu1 %v1849_v27  ;;  %v984_v27 = vld [vmem:[%s2049_s9 + $0x18] sm:$0xff]  ;;  %v1601_v46 = vpop.f32.mrf.mxu0 }
 0x2b5   : > { %1616 = vmatprep.subr.mxu1 %v1845_v23 }
 0x2b6   : > { %1617 = vmatpush3.msra.mxu1 %v1845_v23  ;;  %v986_v23 = vld [vmem:[%s2049_s9 + $0x28] sm:$0xff]  ;;  %v1101_v49 = vpop.f32.mrf.mxu0 }
 0x2b7   : > { %1619 = vmatmul.mubr.msk.f32.vlgmr.msra.gmra.mxu1 %vm870_vm5, %v982_v31 }
 0x2b8   : > { %1621 = vmatprep.mubr.msk.f32.mxu1 %vm870_vm5, %v983_v44  ;;  %v1604_v53 = vpop.f32.mrf.mxu0 }
 0x2ba   : > { %v1111_v58 = vpop.f32.mrf.mxu0 }
 0x2bb   : > { %1622 = vmatmul.mubr.msk.f32.gmra.mxu1 %vm870_vm5, %v984_v27 }
 0x2bc   : > { %1624 = vmatprep.mubr.msk.f32.mxu1 %vm870_vm5, %v985_v34  ;;  %v1607_v1 = vpop.f32.mrf.mxu0 }
 0x2be   : > { %v1121_v7 = vpop.f32.mrf.mxu0 }
 0x2bf   : > { %1625 = vmatmul.mubr.msk.f32.gmra.mxu1 %vm870_vm5, %v986_v23 }
 0x2c0   : > { %1627 = vmatprep.mubr.msk.f32.mxu1 %vm870_vm5, %v987_v38 }
 0x2c3   : > { %1628 = vmatmul.mubr.msk.f32.gmra.mxu1 %vm870_vm5, %v988_v32 }
 0x36d   : > { %v972_v37 = vpop.f32.mrf.mxu1 }
 0x36e   : > { %v973_v41 = vadd.f32 %v1388_v36, %v972_v37 }
 0x36f   : > { %v1584_v42 = vpop.f32.mrf.mxu1 }
 0x370   : > { %979 = vst [vmem:[%s421_s16] sm:$0xff] %v973_v41 }
 0x371   : > { %v975_v43 = vpop.f32.mrf.mxu1 }
 0x372   : > { %v976_v47 = vadd.f32 %v1388_v36, %v975_v43 }
 0x373   : > { %v1585_v48 = vpop.f32.mrf.mxu1 }
 0x374   : > { %980 = vst [vmem:[%s421_s16 + $0x8] sm:$0x1] %v976_v47 }
 0x377   : > { %v1620_v50 = vpop.f32.mrf.mxu1 }
 0x378   : > { %v1229_v51 = vadd.f32 %v1620_v50, %v1598_v33 }
 0x379   : > { %v1223_v52 = vpop.f32.mrf.mxu1 }
 0x37a   : > { %1263 = vst.msk [vmem:[%s426_s19 + $0x8] sm:$0xff] %vm665_vm3, %v1229_v51  ;;  %v1224_v54 = vadd.f32 %v1223_v52, %v1091_v40 }
 0x37b   : > { %v1623_v55 = vpop.f32.mrf.mxu1 }
 0x37c   : > { %1262 = vst.msk [vmem:[%s426_s19] sm:$0xff] %vm665_vm3, %v1224_v54  ;;  %v1239_v56 = vadd.f32 %v1623_v55, %v1601_v46 }
 0x37d   : > { %v1233_v57 = vpop.f32.mrf.mxu1 }
 0x37e   : > { %1265 = vst.msk [vmem:[%s426_s19 + $0x18] sm:$0xff] %vm665_vm3, %v1239_v56  ;;  %v1234_v59 = vadd.f32 %v1233_v57, %v1101_v49 }
 0x37f   : > { %v1626_v60 = vpop.f32.mrf.mxu1 }
 0x380   : > { %1264 = vst.msk [vmem:[%s426_s19 + $0x10] sm:$0xff] %vm665_vm3, %v1234_v59  ;;  %v1249_v62 = vadd.f32 %v1626_v60, %v1604_v53 }
 0x381   : > { %v1243_v63 = vpop.f32.mrf.mxu1 }
 0x382   : > { %1267 = vst.msk [vmem:[%s426_s19 + $0x28] sm:$0xff] %vm665_vm3, %v1249_v62  ;;  %v1244_v3 = vadd.f32 %v1243_v63, %v1111_v58 }
 0x383   : > { %v1629_v4 = vpop.f32.mrf.mxu1 }
 0x384   : > { %1266 = vst.msk [vmem:[%s426_s19 + $0x20] sm:$0xff] %vm665_vm3, %v1244_v3  ;;  %v1259_v6 = vadd.f32 %v1629_v4, %v1607_v1 }
 0x385   : > { %v1253_v8 = vpop.f32.mrf.mxu1 }
 0x386   : > { %1269 = vst.msk [vmem:[%s426_s19 + $0x38] sm:$0xff] %vm665_vm3, %v1259_v6  ;;  %v1254_v9 = vadd.f32 %v1253_v8, %v1121_v7 }
 0x388   : > { %1268 = vst.msk [vmem:[%s426_s19 + $0x30] sm:$0xff] %vm665_vm3, %v1254_v9 }
 0x389 PF: > { %s23_s21 = sadd.s32 1, %s1658_s21  }
 0x38a   : > { %p20_p4 = scmp.ge.s32.totalorder %s23_s21, 4  }
 0x38c   :  { %22 = sbr.rel (!%p20_p4) target bundleno = 1 (0x1), region = 106 }

// kernel: _lambda_.7
= control target key start
LH: loop header
LB: loop body
LE: loop exit
PB: predicated region body
PF: predicated region fallthrough
CT: control target
= control target key end

     0   :  { %s3018_s15 = smov 0   ;;  %s4450_s0 = inlined_call_operand.vmem [shape: f32[2,9,128], index: 0, kind: input, shape index: {}]   ;;  %s4451_s1 = inlined_call_operand.vmem [shape: f32[128,128], index: 1, kind: input, shape index: {}]   ;;  %s4452_s2 = inlined_call_operand.vmem [shape: f32[2,9,128], index: 2, kind: output, shape index: {0}]   ;;  %s4453_s3 = inlined_call_operand.vmem [shape: f32[2,1,128], index: 3, kind: output, shape index: {1}]   ;;  %s4454_s4 = inlined_call_operand.vmem [shape: f32[2,1,1], index: 4, kind: output, shape index: {2}]  }
   0x1 LB: > { %s2844_s16 = sadd.s32 4294967295, %s2988_s15   ;;  %p2848_p0 = scmp.ge.s32.totalorder %s2988_s15, 1  ;;  %s2988_s15 = sphi %s3018_s15, %s15_s15  }
   0x2   : > { %p167_p1 = scmp.lt.s32.totalorder %s2988_s15, 3 }
   0x4   : > { %p168_p2 = pnand %p2848_p0, %p167_p1 }
   0x6   : > { %171 = sbr.rel (%p168_p2) target bundleno = 1764 (0x6e4), region = 28 }
   0xb   : > { %v3029_v0 = vld [vmem:[%s4451_s1 + $0x78] sm:$0xff]  ;;  %v3034_v1 = vld [vmem:[%s4451_s1 + $0x70] sm:$0xff]  ;;  %p199_p3 = scmp.lt.s32.totalorder %s2844_s16, 1  ;;  %v3047_v2 = vld [vmem:[%s4451_s1 + $0x68] sm:$0xff]  ;;  %v4455_v34 = vlaneseq  ;;  %vm1839_vm0 = vcmask 130112   ;;  %vm1846_vm1 = vcmask 195712  }
   0xc   : > { %2897 = vmatprep.subr.mxu0 %v3029_v0  ;;  %2932 = vmatprep.subr.mxu1 %v3029_v0  ;;  %v3052_v3 = vld [vmem:[%s4451_s1 + $0x10] sm:$0xff]  ;;  %v3059_v4 = vld [vmem:[%s4451_s1] sm:$0xff]  ;;  %v3080_v8 = vld [vmem:[%s4451_s1 + $0x18] sm:$0xff]  ;;  %v321_v29 = vmul.f32 %v3047_v2, %v3047_v2  ;;  %v323_v31 = vmul.f32 %v3029_v0, %v3029_v0  ;;  %v322_v32 = vmul.f32 %v3034_v1, %v3034_v1  ;;  %vm1853_vm2 = vcmask 261312  }
   0xd   : > { %2898 = vmatpush3.xpose.msra.mxu0 %v3029_v0  ;;  %s4672_s16 = smov (!%p199_p3, %s2844_s16), 1  ;;  %2933 = vmatpush3.msra.mxu1 %v3029_v0  ;;  %v310_v5 = vmul.f32 %v3052_v3, %v3052_v3  ;;  %v308_v7 = vmul.f32 %v3059_v4, %v3059_v4  ;;  %v3085_v9 = vld [vmem:[%s4451_s1 + $0x8] sm:$0xff]  ;;  %v229_v10 = vld [vmem:[%s4451_s1 + $0x60] sm:$0xff]  ;;  %v311_v11 = vmul.f32 %v3080_v8, %v3080_v8  ;;  %v228_v13 = vld [vmem:[%s4451_s1 + $0x58] sm:$0xff]  ;;  %v3159_v35 = vshrl.u32 %v4455_v34, 7 }
   0xe   : > { %2899 = vmatprep.subr.mxu0 %v3034_v1  ;;  %2934 = vmatprep.subr.mxu1 %v3034_v1  ;;  %s2859_s25 = sshll.u32 %s4672_s16, 4  ;;  %v309_v12 = vmul.f32 %v3085_v9, %v3085_v9  ;;  %v3101_v14 = vld [vmem:[%s4451_s1 + $0x28] sm:$0xff]  ;;  %v3106_v15 = vld [vmem:[%s4451_s1 + $0x20] sm:$0xff]  ;;  %v227_v18 = vld [vmem:[%s4451_s1 + $0x50] sm:$0xff]  ;;  %v319_v27 = vmul.f32 %v228_v13, %v228_v13  ;;  %v320_v30 = vmul.f32 %v229_v10, %v229_v10  ;;  %vm1860_vm3 = vcmask 326912   ;;  %s211_s7 = scalar_lea.vmem %s4453_s3, %s4672_s16 }
   0xf   : > { %2935 = vmatpush3.msra.mxu1 %v3034_v1  ;;  %s3066_s30 = scalar_lea.vmem %s4450_s0, %s2859_s25  ;;  %328 = vadd.xlane.f32.xlu1 %v310_v5  ;;  %v313_v16 = vmul.f32 %v3101_v14, %v3101_v14  ;;  %v312_v17 = vmul.f32 %v3106_v15, %v3106_v15  ;;  %v224_v19 = vld [vmem:[%s4451_s1 + $0x38] sm:$0xff]  ;;  %v223_v20 = vld [vmem:[%s4451_s1 + $0x30] sm:$0xff]  ;;  %v226_v21 = vld [vmem:[%s4451_s1 + $0x48] sm:$0xff]  ;;  %v318_v28 = vmul.f32 %v227_v18, %v227_v18  ;;  %v362_v36 = vsub.s32 0, %v3159_v35  ;;  %s208_s10 = scalar_lea.vmem %s4452_s2, %s2859_s25 }
  0x10   : > { %2936 = vmatprep.subr.mxu1 %v3047_v2  ;;  %v215_v6 = vld [vmem:[%s3066_s30] sm:$0xff]  ;;  %324 = vadd.xlane.f32.xlu0 %v308_v7  ;;  %v315_v22 = vmul.f32 %v224_v19, %v224_v19  ;;  %v314_v23 = vmul.f32 %v223_v20, %v223_v20  ;;  %v317_v25 = vmul.f32 %v226_v21, %v226_v21  ;;  %v216_v33 = vld [vmem:[%s3066_s30 + $0x8] sm:$0x1]  ;;  %v429_v43 = vsub.s32 1, %v3159_v35 }
  0x11   : > { %2900 = vmatpush3.xpose.msra.mxu0 %v3034_v1  ;;  %2937 = vmatpush3.msra.mxu1 %v3047_v2  ;;  %v225_v24 = vld [vmem:[%s4451_s1 + $0x40] sm:$0xff]  ;;  %4473 = vst [vmem:[#allocation2_spill] sm:$0xff] %v3159_v35  ;;  %v496_v45 = vsub.s32 2, %v3159_v35  ;;  %v563_v55 = vsub.s32 3, %v3159_v35  ;;  %vm1867_vm4 = vcmask 392512   ;;  %vm1874_vm5 = vcmask 458112  }
  0x12   : > { %2901 = vmatprep.subr.mxu0 %v3047_v2  ;;  %2929 = vmatprep.mubr.f32.mxu0 %v215_v6  ;;  %v316_v26 = vmul.f32 %v225_v24, %v225_v24  ;;  %vm1881_vm6 = vcmask 523712   ;;  %vm1888_vm7 = vcmask 589312   ;;  %vm1902_vm8 = vcmask 720512  }
  0x13   : > { %2938 = vmatprep.subr.mxu1 %v229_v10  ;;  %330 = vadd.xlane.f32.xlu1 %v311_v11  ;;  %vm1895_vm9 = vcmask 654912   ;;  %vm1909_vm10 = vcmask 786112   ;;  %vm1916_vm11 = vcmask 851712   ;;  %vm1923_vm12 = vcmask 917312  }
  0x14   : > { %2939 = vmatpush3.msra.mxu1 %v229_v10  ;;  %326 = vadd.xlane.f32.xlu0 %v309_v12  ;;  %vm1930_vm13 = vcmask 982912   ;;  %vm1937_vm14 = vcmask 1048512   ;;  %vm2571_vm15 = vcmask 1041409  }
  0x15   : > { %2902 = vmatpush3.xpose.msra.mxu0 %v3047_v2  ;;  %2940 = vmatprep.subr.mxu1 %v228_v13 }
  0x16   : > { %2903 = vmatprep.subr.mxu0 %v229_v10  ;;  %2941 = vmatpush3.msra.mxu1 %v228_v13 }
  0x17   : > { %2942 = vmatprep.subr.mxu1 %v227_v18  ;;  %334 = vadd.xlane.f32.xlu1 %v313_v16 }
  0x18   : > { %2943 = vmatpush3.msra.mxu1 %v227_v18  ;;  %332 = vadd.xlane.f32.xlu0 %v312_v17 }
  0x19   : > { %2904 = vmatpush3.xpose.msra.mxu0 %v229_v10  ;;  %2944 = vmatprep.subr.mxu1 %v226_v21 }
  0x1a   : > { %2905 = vmatprep.subr.mxu0 %v228_v13  ;;  %2945 = vmatpush3.msra.mxu1 %v226_v21 }
  0x1b   : > { %2946 = vmatprep.subr.mxu1 %v225_v24  ;;  %338 = vadd.xlane.f32.xlu1 %v315_v22 }
  0x1c   : > { %336 = vadd.xlane.f32.xlu0 %v314_v23  ;;  %2947 = vmatpush3.msra.mxu1 %v225_v24 }
  0x1d   : > { %2906 = vmatpush3.xpose.msra.mxu0 %v228_v13  ;;  %2948 = vmatprep.subr.mxu1 %v224_v19 }
  0x1e   : > { %2907 = vmatprep.subr.mxu0 %v227_v18  ;;  %2949 = vmatpush3.msra.mxu1 %v224_v19 }
  0x1f   : > { %342 = vadd.xlane.f32.xlu1 %v317_v25  ;;  %2950 = vmatprep.subr.mxu1 %v223_v20 }
  0x20   : > { %340 = vadd.xlane.f32.xlu0 %v316_v26  ;;  %2951 = vmatpush3.msra.mxu1 %v223_v20 }
  0x21   : > { %2908 = vmatpush3.xpose.msra.mxu0 %v227_v18  ;;  %2952 = vmatprep.subr.mxu1 %v3101_v14 }
  0x22   : > { %2909 = vmatprep.subr.mxu0 %v226_v21  ;;  %2953 = vmatpush3.msra.mxu1 %v3101_v14 }
  0x23   : > { %346 = vadd.xlane.f32.xlu1 %v319_v27  ;;  %2954 = vmatprep.subr.mxu1 %v3106_v15  ;;  %v2990_v27 = vmov 0  }
  0x24   : > { %344 = vadd.xlane.f32.xlu0 %v318_v28  ;;  %2955 = vmatpush3.msra.mxu1 %v3106_v15 }
  0x25   : > { %2910 = vmatpush3.xpose.msra.mxu0 %v226_v21  ;;  %2956 = vmatprep.subr.mxu1 %v3080_v8  ;;  %v697_v21 = vsub.s32 5, %v3159_v35 }
  0x26   : > { %2911 = vmatprep.subr.mxu0 %v225_v24  ;;  %2957 = vmatpush3.msra.mxu1 %v3080_v8 }
  0x27   : > { %350 = vadd.xlane.f32.xlu1 %v321_v29  ;;  %2958 = vmatprep.subr.mxu1 %v3052_v3 }
  0x28   : > { %348 = vadd.xlane.f32.xlu0 %v320_v30  ;;  %2959 = vmatpush3.msra.mxu1 %v3052_v3 }
  0x29   : > { %2912 = vmatpush3.xpose.msra.mxu0 %v225_v24  ;;  %2960 = vmatprep.subr.mxu1 %v3085_v9 }
  0x2a   : > { %2913 = vmatprep.subr.mxu0 %v224_v19  ;;  %2961 = vmatpush3.msra.mxu1 %v3085_v9 }
  0x2b   : > { %354 = vadd.xlane.f32.xlu1 %v323_v31  ;;  %2962 = vmatprep.subr.mxu1 %v3059_v4 }
  0x2c   : > { %352 = vadd.xlane.f32.xlu0 %v322_v32  ;;  %2963 = vmatpush3.msra.mxu1 %v3059_v4 }
  0x2d   : > { %2914 = vmatpush3.xpose.msra.mxu0 %v224_v19  ;;  %2978 = vset.pattern.permute.xlu0 %v2990_v27 }
  0x2e   : > { %2915 = vmatprep.subr.mxu0 %v223_v20  ;;  %2979 = vset.pattern.permute.xlu1 %v2990_v27 }
  0x31   : > { %2916 = vmatpush3.xpose.msra.mxu0 %v223_v20 }
  0x32   : > { %2917 = vmatprep.subr.mxu0 %v3101_v14 }
  0x35   : > { %2918 = vmatpush3.xpose.msra.mxu0 %v3101_v14 }
  0x36   : > { %2919 = vmatprep.subr.mxu0 %v3106_v15 }
  0x39   : > { %2920 = vmatpush3.xpose.msra.mxu0 %v3106_v15 }
  0x3a   : > { %2921 = vmatprep.subr.mxu0 %v3080_v8 }
  0x3d   : > { %2922 = vmatpush3.xpose.msra.mxu0 %v3080_v8 }
  0x3e   : > { %2923 = vmatprep.subr.mxu0 %v3052_v3 }
  0x41   : > { %2924 = vmatpush3.xpose.msra.mxu0 %v3052_v3  ;;  %v630_v3 = vsub.s32 4, %v3159_v35 }
  0x42   : > { %2925 = vmatprep.subr.mxu0 %v3085_v9 }
  0x45   : > { %2926 = vmatpush3.xpose.msra.mxu0 %v3085_v9 }
  0x46   : > { %2927 = vmatprep.subr.mxu0 %v3059_v4 }
  0x49   : > { %2928 = vmatpush3.xpose.msra.mxu0 %v3059_v4 }
  0x4c   : > { %2930 = vmatmul.mubr.f32.vlgmr.msra.gmra.mxu0 %v216_v33 }
  0x98   : > { %v3171_v47 = vpop.xlane.xlu1 %328 }
  0x99   : > { %v3173_v48 = vpop.xlane.xlu0 %324 }
  0x9c   : > { %v3175_v49 = vpop.xlane.xlu1 %330 }
  0x9d   : > { %v3177_v50 = vpop.xlane.xlu0 %326 }
  0xa0   : > { %v3179_v51 = vpop.xlane.xlu1 %334 }
  0xa1   : > { %v3181_v52 = vpop.xlane.xlu0 %332 }
  0xa4   : > { %v3183_v53 = vpop.xlane.xlu1 %338 }
  0xa5   : > { %v3185_v54 = vpop.xlane.xlu0 %336 }
  0xa8   : > { %v3189_v57 = vpop.xlane.xlu1 %342 }
  0xa9   : > { %v3191_v58 = vpop.xlane.xlu0 %340 }
  0xac   : > { %v3193_v59 = vpop.xlane.xlu1 %346 }
  0xad   : > { %4474 = vst [vmem:[#allocation3_spill] sm:$0xff] %v3193_v59  ;;  %v3195_v60 = vpop.xlane.xlu0 %344 }
  0xae   : > { %4475 = vst [vmem:[#allocation4_spill] sm:$0xff] %v3195_v60 }
  0xb0   : > { %v3197_v61 = vpop.xlane.xlu1 %350 }
  0xb1   : > { %4476 = vst [vmem:[#allocation5_spill] sm:$0xff] %v3197_v61  ;;  %v3199_v62 = vpop.xlane.xlu0 %348 }
  0xb2   : > { %4477 = vst [vmem:[#allocation6_spill] sm:$0xff] %v3199_v62 }
  0xb4   : > { %v3201_v63 = vpop.xlane.xlu1 %354 }
  0xb5   : > { %4478 = vst [vmem:[#allocation7_spill] sm:$0xff] %v3201_v63  ;;  %v3203_v0 = vpop.xlane.xlu0 %352 }
  0xb6   : > { %4479 = vst [vmem:[#allocation8_spill] sm:$0xff] %v3203_v0 }
 0x10c   : > { %v2931_v37 = vpop.f32.mrf.mxu0 }
 0x10d   : > { %v357_v38 = vmul.f32 2.0, %v2931_v37 }
 0x10e   : > { %v299_v39 = vpop.f32.mrf.mxu0 }
 0x10f   : > { %v3162_v40 = vrot.slane %v357_v38, %v362_v36  ;;  %v3164_v41 = vmul.f32 2.0, %v299_v39 }
 0x111   : > { %v363_v42 = vrot.slane %v3164_v41, %v362_v36  ;;  %v430_v44 = vrot.slane %v3164_v41, %v429_v43  ;;  %v497_v46 = vrot.slane %v3164_v41, %v496_v45  ;;  %v564_v56 = vrot.slane %v3164_v41, %v563_v55 }
 0x112   : > { %v631_v6 = vrot.slane %v3164_v41, %v630_v3  ;;  %v698_v24 = vrot.slane %v3164_v41, %v697_v21 }
 0x113   : > { %369 = vbcast.lane.b32.xlu1 %v363_v42, 264  ;;  %365 = vbcast.lane.b32.xlu0 %v363_v42, 256 }
 0x117   : > { %373 = vbcast.lane.b32.xlu1 %v363_v42, 272  ;;  %381 = vbcast.lane.b32.xlu0 %v363_v42, 288 }
 0x11b   : > { %377 = vbcast.lane.b32.xlu1 %v363_v42, 280  ;;  %389 = vbcast.lane.b32.xlu0 %v363_v42, 304 }
 0x11f   : > { %385 = vbcast.lane.b32.xlu1 %v363_v42, 296  ;;  %397 = vbcast.lane.b32.xlu0 %v363_v42, 320 }
 0x123   : > { %393 = vbcast.lane.b32.xlu1 %v363_v42, 312  ;;  %405 = vbcast.lane.b32.xlu0 %v363_v42, 336 }
 0x127   : > { %401 = vbcast.lane.b32.xlu1 %v363_v42, 328  ;;  %413 = vbcast.lane.b32.xlu0 %v363_v42, 352 }
 0x12b   : > { %409 = vbcast.lane.b32.xlu1 %v363_v42, 344  ;;  %421 = vbcast.lane.b32.xlu0 %v363_v42, 368 }
 0x12f   : > { %417 = vbcast.lane.b32.xlu1 %v363_v42, 360  ;;  %432 = vbcast.lane.b32.xlu0 %v430_v44, 256 }
 0x133   : > { %425 = vbcast.lane.b32.xlu1 %v363_v42, 376  ;;  %440 = vbcast.lane.b32.xlu0 %v430_v44, 272 }
 0x137   : > { %436 = vbcast.lane.b32.xlu1 %v430_v44, 264  ;;  %448 = vbcast.lane.b32.xlu0 %v430_v44, 288 }
 0x13b   : > { %444 = vbcast.lane.b32.xlu1 %v430_v44, 280  ;;  %456 = vbcast.lane.b32.xlu0 %v430_v44, 304 }
 0x13f   : > { %452 = vbcast.lane.b32.xlu1 %v430_v44, 296  ;;  %464 = vbcast.lane.b32.xlu0 %v430_v44, 320 }
 0x143   : > { %460 = vbcast.lane.b32.xlu1 %v430_v44, 312  ;;  %472 = vbcast.lane.b32.xlu0 %v430_v44, 336 }
 0x147   : > { %468 = vbcast.lane.b32.xlu1 %v430_v44, 328  ;;  %480 = vbcast.lane.b32.xlu0 %v430_v44, 352 }
 0x14b   : > { %476 = vbcast.lane.b32.xlu1 %v430_v44, 344  ;;  %488 = vbcast.lane.b32.xlu0 %v430_v44, 368 }
 0x14f   : > { %484 = vbcast.lane.b32.xlu1 %v430_v44, 360  ;;  %499 = vbcast.lane.b32.xlu0 %v497_v46, 256 }
 0x153   : > { %492 = vbcast.lane.b32.xlu1 %v430_v44, 376  ;;  %507 = vbcast.lane.b32.xlu0 %v497_v46, 272  ;;  %v764_v44 = vsub.s32 6, %v3159_v35 }
 0x155   : > { %v765_v55 = vrot.slane %v3164_v41, %v764_v44 }
 0x157   : > { %503 = vbcast.lane.b32.xlu1 %v497_v46, 264  ;;  %515 = vbcast.lane.b32.xlu0 %v497_v46, 288 }
 0x15b   : > { %511 = vbcast.lane.b32.xlu1 %v497_v46, 280  ;;  %523 = vbcast.lane.b32.xlu0 %v497_v46, 304 }
 0x15f   : > { %519 = vbcast.lane.b32.xlu1 %v497_v46, 296  ;;  %531 = vbcast.lane.b32.xlu0 %v497_v46, 320 }
 0x163   : > { %527 = vbcast.lane.b32.xlu1 %v497_v46, 312  ;;  %539 = vbcast.lane.b32.xlu0 %v497_v46, 336 }
 0x167   : > { %535 = vbcast.lane.b32.xlu1 %v497_v46, 328  ;;  %547 = vbcast.lane.b32.xlu0 %v497_v46, 352 }
 0x16b   : > { %543 = vbcast.lane.b32.xlu1 %v497_v46, 344  ;;  %555 = vbcast.lane.b32.xlu0 %v497_v46, 368 }
 0x16f   : > { %551 = vbcast.lane.b32.xlu1 %v497_v46, 360  ;;  %566 = vbcast.lane.b32.xlu0 %v564_v56, 256 }
 0x173   : > { %559 = vbcast.lane.b32.xlu1 %v497_v46, 376  ;;  %574 = vbcast.lane.b32.xlu0 %v564_v56, 272 }
 0x177   : > { %570 = vbcast.lane.b32.xlu1 %v564_v56, 264  ;;  %582 = vbcast.lane.b32.xlu0 %v564_v56, 288 }
 0x17b   : > { %578 = vbcast.lane.b32.xlu1 %v564_v56, 280  ;;  %590 = vbcast.lane.b32.xlu0 %v564_v56, 304 }
 0x17f   : > { %586 = vbcast.lane.b32.xlu1 %v564_v56, 296  ;;  %598 = vbcast.lane.b32.xlu0 %v564_v56, 320 }
 0x183   : > { %594 = vbcast.lane.b32.xlu1 %v564_v56, 312  ;;  %606 = vbcast.lane.b32.xlu0 %v564_v56, 336 }
 0x185   : > { %v3205_v1 = vpop.permute.xlu1 %369  ;;  %v3207_v2 = vpop.permute.xlu0 %365 }
 0x187   : > { %602 = vbcast.lane.b32.xlu1 %v564_v56, 328  ;;  %614 = vbcast.lane.b32.xlu0 %v564_v56, 352 }
 0x189   : > { %v3210_v4 = vpop.permute.xlu1 %373  ;;  %v3212_v5 = vpop.permute.xlu0 %381 }
 0x18b   : > { %610 = vbcast.lane.b32.xlu1 %v564_v56, 344  ;;  %622 = vbcast.lane.b32.xlu0 %v564_v56, 368 }
 0x18d   : > { %v3215_v7 = vpop.permute.xlu1 %377  ;;  %v3217_v8 = vpop.permute.xlu0 %389 }
 0x18f   : > { %618 = vbcast.lane.b32.xlu1 %v564_v56, 360  ;;  %633 = vbcast.lane.b32.xlu0 %v631_v6, 256 }
 0x191   : > { %v3219_v9 = vpop.permute.xlu1 %385  ;;  %v3221_v10 = vpop.permute.xlu0 %397 }
 0x193   : > { %626 = vbcast.lane.b32.xlu1 %v564_v56, 376  ;;  %641 = vbcast.lane.b32.xlu0 %v631_v6, 272 }
 0x195   : > { %v3223_v11 = vpop.permute.xlu1 %393  ;;  %v3225_v12 = vpop.permute.xlu0 %405 }
 0x196   : > { %4480 = vst [vmem:[#allocation9_spill] sm:$0xff] %v3225_v12 }
 0x197   : > { %637 = vbcast.lane.b32.xlu1 %v631_v6, 264  ;;  %649 = vbcast.lane.b32.xlu0 %v631_v6, 288 }
 0x199   : > { %v3227_v13 = vpop.permute.xlu1 %401  ;;  %v3229_v14 = vpop.permute.xlu0 %413 }
 0x19a   : > { %4481 = vst [vmem:[#allocation10_spill] sm:$0xff] %v3227_v13  ;;  %4482 = vst [vmem:[#allocation11_spill] sm:$0xff] %v3229_v14 }
 0x19b   : > { %645 = vbcast.lane.b32.xlu1 %v631_v6, 280  ;;  %657 = vbcast.lane.b32.xlu0 %v631_v6, 304 }
 0x19d   : > { %v3231_v15 = vpop.permute.xlu1 %409  ;;  %v3233_v16 = vpop.permute.xlu0 %421 }
 0x19e   : > { %4483 = vst [vmem:[#allocation12_spill] sm:$0xff] %v3231_v15  ;;  %4484 = vst [vmem:[#allocation13_spill] sm:$0xff] %v3233_v16 }
 0x19f   : > { %653 = vbcast.lane.b32.xlu1 %v631_v6, 296  ;;  %665 = vbcast.lane.b32.xlu0 %v631_v6, 320 }
 0x1a1   : > { %v3235_v17 = vpop.permute.xlu1 %417  ;;  %v3237_v18 = vpop.permute.xlu0 %432 }
 0x1a2   : > { %4485 = vst [vmem:[#allocation14_spill] sm:$0xff] %v3235_v17  ;;  %v1123_v60 = vsub.f32 %v3173_v48, %v3237_v18  ;;  %v1109_v18 = vsub.f32 %v3171_v47, %v3210_v4 }
 0x1a3   : > { %661 = vbcast.lane.b32.xlu1 %v631_v6, 312  ;;  %673 = vbcast.lane.b32.xlu0 %v631_v6, 336 }
 0x1a5   : > { %v3239_v19 = vpop.permute.xlu1 %425  ;;  %v3241_v20 = vpop.permute.xlu0 %440 }
 0x1a6   : > { %4486 = vst [vmem:[#allocation15_spill] sm:$0xff] %v3239_v19 }
 0x1a7   : > { %669 = vbcast.lane.b32.xlu1 %v631_v6, 328  ;;  %681 = vbcast.lane.b32.xlu0 %v631_v6, 352 }
 0x1a9   : > { %v3244_v22 = vpop.permute.xlu1 %436  ;;  %v3246_v23 = vpop.permute.xlu0 %448 }
 0x1ab   : > { %677 = vbcast.lane.b32.xlu1 %v631_v6, 344  ;;  %689 = vbcast.lane.b32.xlu0 %v631_v6, 368 }
 0x1ad   : > { %v3249_v25 = vpop.permute.xlu1 %444  ;;  %v3251_v26 = vpop.permute.xlu0 %456 }
 0x1af   : > { %685 = vbcast.lane.b32.xlu1 %v631_v6, 360  ;;  %700 = vbcast.lane.b32.xlu0 %v698_v24, 256 }
 0x1b1   : > { %v3253_v28 = vpop.permute.xlu1 %452  ;;  %v3255_v29 = vpop.permute.xlu0 %464 }
 0x1b3   : > { %693 = vbcast.lane.b32.xlu1 %v631_v6, 376  ;;  %708 = vbcast.lane.b32.xlu0 %v698_v24, 272 }
 0x1b5   : > { %v3257_v30 = vpop.permute.xlu1 %460  ;;  %v3259_v31 = vpop.permute.xlu0 %472 }
 0x1b6   : > { %4487 = vst [vmem:[#allocation16_spill] sm:$0xff] %v3259_v31 }
 0x1b7   : > { %704 = vbcast.lane.b32.xlu1 %v698_v24, 264  ;;  %716 = vbcast.lane.b32.xlu0 %v698_v24, 288 }
 0x1b9   : > { %v3261_v32 = vpop.permute.xlu1 %468  ;;  %v3263_v33 = vpop.permute.xlu0 %480 }
 0x1ba   : > { %4488 = vst [vmem:[#allocation17_spill] sm:$0xff] %v3263_v33 }
 0x1bb   : > { %712 = vbcast.lane.b32.xlu1 %v698_v24, 280  ;;  %724 = vbcast.lane.b32.xlu0 %v698_v24, 304 }
 0x1bd   : > { %v3265_v36 = vpop.permute.xlu1 %476  ;;  %v3267_v37 = vpop.permute.xlu0 %488 }
 0x1be   : > { %4489 = vst [vmem:[#allocation18_spill] sm:$0xff] %v3265_v36  ;;  %4490 = vst [vmem:[#allocation19_spill] sm:$0xff] %v3267_v37 }
 0x1bf   : > { %720 = vbcast.lane.b32.xlu1 %v698_v24, 296  ;;  %732 = vbcast.lane.b32.xlu0 %v698_v24, 320 }
 0x1c1   : > { %v3269_v38 = vpop.permute.xlu1 %484  ;;  %v3271_v39 = vpop.permute.xlu0 %499 }
 0x1c2   : > { %4491 = vst [vmem:[#allocation20_spill] sm:$0xff] %v3269_v38  ;;  %v1139_v4 = vsub.f32 %v3173_v48, %v3271_v39 }
 0x1c3   : > { %728 = vbcast.lane.b32.xlu1 %v698_v24, 312  ;;  %740 = vbcast.lane.b32.xlu0 %v698_v24, 336 }
 0x1c5   : > { %v3273_v42 = vpop.permute.xlu1 %492  ;;  %v3275_v43 = vpop.permute.xlu0 %507 }
 0x1c6   : > { %4492 = vst [vmem:[#allocation21_spill] sm:$0xff] %v3273_v42 }
 0x1c7   : > { %736 = vbcast.lane.b32.xlu1 %v698_v24, 328  ;;  %748 = vbcast.lane.b32.xlu0 %v698_v24, 352 }
 0x1c9   : > { %v3278_v45 = vpop.permute.xlu1 %503  ;;  %v3280_v46 = vpop.permute.xlu0 %515 }
 0x1cb   : > { %744 = vbcast.lane.b32.xlu1 %v698_v24, 344  ;;  %756 = vbcast.lane.b32.xlu0 %v698_v24, 368 }
 0x1cd   : > { %v3283_v56 = vpop.permute.xlu1 %511  ;;  %v3285_v3 = vpop.permute.xlu0 %523 }
 0x1ce   : > { %v1142_v39 = vsub.f32 %v3175_v49, %v3283_v56  ;;  %v1127_v56 = vsub.f32 %v3181_v52, %v3246_v23 }
 0x1cf   : > { %752 = vbcast.lane.b32.xlu1 %v698_v24, 360  ;;  %767 = vbcast.lane.b32.xlu0 %v765_v55, 256 }
 0x1d1   : > { %v3287_v6 = vpop.permute.xlu1 %519  ;;  %v3289_v21 = vpop.permute.xlu0 %531 }
 0x1d2   : > { %4493 = vst [vmem:[#allocation22_spill] sm:$0xff] %v3289_v21 }
 0x1d3   : > { %760 = vbcast.lane.b32.xlu1 %v698_v24, 376  ;;  %775 = vbcast.lane.b32.xlu0 %v765_v55, 272 }
 0x1d5   : > { %v3291_v27 = vpop.permute.xlu1 %527  ;;  %v3293_v34 = vpop.permute.xlu0 %539 }
 0x1d6   : > { %4494 = vst [vmem:[#allocation23_spill] sm:$0xff] %v3293_v34 }
 0x1d7   : > { %771 = vbcast.lane.b32.xlu1 %v765_v55, 264  ;;  %783 = vbcast.lane.b32.xlu0 %v765_v55, 288 }
 0x1d9   : > { %v3295_v19 = vpop.permute.xlu1 %535  ;;  %v3297_v44 = vpop.permute.xlu0 %547 }
 0x1da   : > { %4495 = vst [vmem:[#allocation24_spill] sm:$0xff] %v3295_v19  ;;  %4496 = vst [vmem:[#allocation25_spill] sm:$0xff] %v3297_v44  ;;  %v831_v44 = vsub.s32 7, %v3159_v35 }
 0x1db   : > { %779 = vbcast.lane.b32.xlu1 %v765_v55, 280  ;;  %791 = vbcast.lane.b32.xlu0 %v765_v55, 304 }
 0x1dd   : > { %v3299_v63 = vpop.permute.xlu1 %543  ;;  %v3301_v42 = vpop.permute.xlu0 %555 }
 0x1de   : > { %4497 = vst [vmem:[#allocation26_spill] sm:$0xff] %v3299_v63  ;;  %4498 = vst [vmem:[#allocation27_spill] sm:$0xff] %v3301_v42  ;;  %v3317_v42 = vrot.slane %v3164_v41, %v831_v44 }
 0x1df   : > { %787 = vbcast.lane.b32.xlu1 %v765_v55, 296  ;;  %799 = vbcast.lane.b32.xlu0 %v765_v55, 320 }
 0x1e1   : > { %v3303_v24 = vpop.permute.xlu1 %551  ;;  %v3305_v37 = vpop.permute.xlu0 %566 }
 0x1e2   : > { %4499 = vst [vmem:[#allocation28_spill] sm:$0xff] %v3303_v24 }
 0x1e3   : > { %795 = vbcast.lane.b32.xlu1 %v765_v55, 312  ;;  %807 = vbcast.lane.b32.xlu0 %v765_v55, 336 }
 0x1e5   : > { %v3307_v0 = vpop.permute.xlu1 %559  ;;  %v3309_v16 = vpop.permute.xlu0 %574 }
 0x1e6   : > { %4500 = vst [vmem:[#allocation29_spill] sm:$0xff] %v3307_v0 }
 0x1e7   : > { %803 = vbcast.lane.b32.xlu1 %v765_v55, 328  ;;  %815 = vbcast.lane.b32.xlu0 %v765_v55, 352 }
 0x1e9   : > { %v3312_v17 = vpop.permute.xlu1 %570  ;;  %v3314_v61 = vpop.permute.xlu0 %582 }
 0x1eb   : > { %811 = vbcast.lane.b32.xlu1 %v765_v55, 344  ;;  %823 = vbcast.lane.b32.xlu0 %v765_v55, 368 }
 0x1ed   : > { %v3319_v24 = vpop.permute.xlu1 %578  ;;  %v3321_v38 = vpop.permute.xlu0 %590 }
 0x1ef   : > { %819 = vbcast.lane.b32.xlu1 %v765_v55, 360  ;;  %834 = vbcast.lane.b32.xlu0 %v3317_v42, 256 }
 0x1f1   : > { %v3324_v0 = vpop.permute.xlu1 %586  ;;  %v3326_v33 = vpop.permute.xlu0 %598 }
 0x1f2   : > { %4501 = vst [vmem:[#allocation30_spill] sm:$0xff] %v3326_v33 }
 0x1f3   : > { %827 = vbcast.lane.b32.xlu1 %v765_v55, 376  ;;  %842 = vbcast.lane.b32.xlu0 %v3317_v42, 272 }
 0x1f5   : > { %v3329_v35 = vpop.permute.xlu1 %594  ;;  %v3331_v63 = vpop.permute.xlu0 %606 }
 0x1f6   : > { %4502 = vst [vmem:[#allocation31_spill] sm:$0xff] %v3331_v63 }
 0x1f7   : > { %838 = vbcast.lane.b32.xlu1 %v3317_v42, 264  ;;  %850 = vbcast.lane.b32.xlu0 %v3317_v42, 288 }
 0x1f9   : > { %v3335_v41 = vpop.permute.xlu1 %602  ;;  %v3337_v44 = vpop.permute.xlu0 %614 }
 0x1fa   : > { %4503 = vst [vmem:[#allocation32_spill] sm:$0xff] %v3335_v41  ;;  %4504 = vst [vmem:[#allocation33_spill] sm:$0xff] %v3337_v44 }
 0x1fb   : > { %846 = vbcast.lane.b32.xlu1 %v3317_v42, 280  ;;  %858 = vbcast.lane.b32.xlu0 %v3317_v42, 304 }
 0x1fd   : > { %v3341_v62 = vpop.permute.xlu1 %610  ;;  %v3343_v55 = vpop.permute.xlu0 %622 }
 0x1fe   : > { %4505 = vst [vmem:[#allocation34_spill] sm:$0xff] %v3341_v62  ;;  %4506 = vst [vmem:[#allocation35_spill] sm:$0xff] %v3343_v55 }
 0x1ff   : > { %854 = vbcast.lane.b32.xlu1 %v3317_v42, 296  ;;  %866 = vbcast.lane.b32.xlu0 %v3317_v42, 320 }
 0x201   : > { %v3347_v63 = vpop.permute.xlu1 %618  ;;  %v3349_v14 = vpop.permute.xlu0 %633 }
 0x202   : > { %4507 = vst [vmem:[#allocation36_spill] sm:$0xff] %v3347_v63 }
 0x203   : > { %862 = vbcast.lane.b32.xlu1 %v3317_v42, 312  ;;  %874 = vbcast.lane.b32.xlu0 %v3317_v42, 336 }
 0x205   : > { %v3353_v44 = vpop.permute.xlu1 %626  ;;  %v3355_v34 = vpop.permute.xlu0 %641 }
 0x206   : > { %4508 = vst [vmem:[#allocation37_spill] sm:$0xff] %v3353_v44 }
 0x207   : > { %870 = vbcast.lane.b32.xlu1 %v3317_v42, 328  ;;  %905 = vbcast.lane.b32.xlu0 %v3162_v40, 264 }
 0x209   : > { %v3359_v55 = vpop.permute.xlu1 %637  ;;  %v3361_v62 = vpop.permute.xlu0 %649 }
 0x20a   : > { %v1172_v23 = vsub.f32 %v3177_v50, %v3359_v55  ;;  %v1158_v55 = vsub.f32 %v3175_v49, %v3319_v24 }
 0x20b   : > { %901 = vbcast.lane.b32.xlu1 %v3162_v40, 256  ;;  %913 = vbcast.lane.b32.xlu0 %v3162_v40, 280 }
 0x20d   : > { %v3365_v63 = vpop.permute.xlu1 %645  ;;  %v3367_v15 = vpop.permute.xlu0 %657 }
 0x20e   : > { %4509 = vst [vmem:[#allocation38_spill] sm:$0xff] %v3367_v15 }
 0x20f   : > { %909 = vbcast.lane.b32.xlu1 %v3162_v40, 272  ;;  %921 = vbcast.lane.b32.xlu0 %v3162_v40, 296 }
 0x211   : > { %v3371_v44 = vpop.permute.xlu1 %653  ;;  %v3373_v41 = vpop.permute.xlu0 %665 }
 0x212   : > { %4510 = vst [vmem:[#allocation39_spill] sm:$0xff] %v3373_v41 }
 0x213   : > { %917 = vbcast.lane.b32.xlu1 %v3162_v40, 288  ;;  %929 = vbcast.lane.b32.xlu0 %v3162_v40, 312 }
 0x215   : > { %v3377_v59 = vpop.permute.xlu1 %661  ;;  %v3379_v36 = vpop.permute.xlu0 %673 }
 0x216   : > { %4511 = vst [vmem:[#allocation40_spill] sm:$0xff] %v3377_v59  ;;  %4512 = vst [vmem:[#allocation41_spill] sm:$0xff] %v3379_v36 }
 0x217   : > { %925 = vbcast.lane.b32.xlu1 %v3162_v40, 304  ;;  %937 = vbcast.lane.b32.xlu0 %v3162_v40, 328 }
 0x219   : > { %v3383_v33 = vpop.permute.xlu1 %669  ;;  %v3385_v31 = vpop.permute.xlu0 %681 }
 0x21a   : > { %4513 = vst [vmem:[#allocation42_spill] sm:$0xff] %v3383_v33  ;;  %4514 = vst [vmem:[#allocation43_spill] sm:$0xff] %v3385_v31 }
 0x21b   : > { %933 = vbcast.lane.b32.xlu1 %v3162_v40, 320  ;;  %878 = vbcast.lane.b32.xlu0 %v3317_v42, 344 }
 0x21d   : > { %v3389_v41 = vpop.permute.xlu1 %677  ;;  %v3391_v19 = vpop.permute.xlu0 %689 }
 0x21e   : > { %4515 = vst [vmem:[#allocation44_spill] sm:$0xff] %v3389_v41  ;;  %4516 = vst [vmem:[#allocation45_spill] sm:$0xff] %v3391_v19 }
 0x21f   : > { %941 = vbcast.lane.b32.xlu1 %v3162_v40, 336  ;;  %882 = vbcast.lane.b32.xlu0 %v3317_v42, 352 }
 0x221   : > { %v3395_v36 = vpop.permute.xlu1 %685  ;;  %v3397_v59 = vpop.permute.xlu0 %700 }
 0x222   : > { %4517 = vst [vmem:[#allocation46_spill] sm:$0xff] %v3395_v36  ;;  %v1107_v36 = vsub.f32 %v3173_v48, %v3207_v2  ;;  %v1108_v2 = vsub.f32 %v3177_v50, %v3205_v1  ;;  %v1124_v1 = vsub.f32 %v3177_v50, %v3244_v22  ;;  %v1111_v22 = vsub.f32 %v3181_v52, %v3212_v5 }
 0x223   : > { %945 = vbcast.lane.b32.xlu1 %v3162_v40, 344  ;;  %886 = vbcast.lane.b32.xlu0 %v3317_v42, 360  ;;  %v1156_v5 = vsub.f32 %v3177_v50, %v3312_v17  ;;  %v1157_v17 = vsub.f32 %v3171_v47, %v3309_v16  ;;  %v1128_v16 = vsub.f32 %v3179_v51, %v3253_v28 }
 0x224   : > { %v1187_v28 = vsub.f32 %v3173_v48, %v3397_v59  ;;  %v1144_v59 = vsub.f32 %v3179_v51, %v3287_v6  ;;  %v1160_v6 = vsub.f32 %v3179_v51, %v3324_v0  ;;  %v1145_v0 = vsub.f32 %v3185_v54, %v3285_v3 }
 0x225   : > { %v3401_v31 = vpop.permute.xlu1 %693  ;;  %v3403_v33 = vpop.permute.xlu0 %708  ;;  %v1115_v3 = vsub.f32 %v3191_v58, %v3221_v10  ;;  %v1176_v10 = vsub.f32 %v3179_v51, %v3371_v44 }
 0x226   : > { %4518 = vst [vmem:[#allocation47_spill] sm:$0xff] %v3401_v31  ;;  %v1189_v24 = vsub.f32 %v3171_v47, %v3403_v33  ;;  %v1174_v33 = vsub.f32 %v3175_v49, %v3365_v63  ;;  %v1114_v63 = vsub.f32 %v3183_v53, %v3223_v11  ;;  %v1175_v11 = vsub.f32 %v3181_v52, %v3361_v62 }
 0x227   : > { %949 = vbcast.lane.b32.xlu1 %v3162_v40, 352  ;;  %890 = vbcast.lane.b32.xlu0 %v3317_v42, 368 }
 0x229   : > { %v3407_v19 = vpop.permute.xlu1 %704  ;;  %v3409_v41 = vpop.permute.xlu0 %716 }
 0x22b   : > { %953 = vbcast.lane.b32.xlu1 %v3162_v40, 360  ;;  %894 = vbcast.lane.b32.xlu0 %v3317_v42, 376  ;;  %v1125_v42 = vsub.f32 %v3171_v47, %v3241_v20  ;;  %v1126_v20 = vsub.f32 %v3175_v49, %v3249_v25  ;;  %v1110_v25 = vsub.f32 %v3175_v49, %v3215_v7 }
 0x22c   : > { %v1171_v7 = vsub.f32 %v3173_v48, %v3349_v14  ;;  %v1143_v14 = vsub.f32 %v3181_v52, %v3280_v46  ;;  %v1188_v46 = vsub.f32 %v3177_v50, %v3407_v19  ;;  %v1159_v19 = vsub.f32 %v3181_v52, %v3314_v61 }
 0x22d   : > { %v3415_v15 = vpop.permute.xlu1 %712  ;;  %v3417_v31 = vpop.permute.xlu0 %724 }
 0x22e   : > { %4519 = vst [vmem:[#allocation48_spill] sm:$0xff] %v3417_v31 }
 0x22f   : > { %957 = vbcast.lane.b32.xlu1 %v3162_v40, 368  ;;  %1399 = vperm.xlu0 %2978, %v1107_v36   ;;  %v1140_v36 = vsub.f32 %v3177_v50, %v3278_v45  ;;  %v1155_v45 = vsub.f32 %v3173_v48, %v3305_v37  ;;  %v1141_v37 = vsub.f32 %v3171_v47, %v3275_v43 }
 0x230   : > { %v1112_v43 = vsub.f32 %v3179_v51, %v3219_v9  ;;  %v1173_v9 = vsub.f32 %v3171_v47, %v3355_v34  ;;  %v1129_v34 = vsub.f32 %v3185_v54, %v3251_v26  ;;  %v1113_v26 = vsub.f32 %v3185_v54, %v3217_v8 }
 0x231   : > { %v3422_v12 = vpop.permute.xlu1 %720  ;;  %v3424_v21 = vpop.permute.xlu0 %732  ;;  %v1130_v8 = vsub.f32 %v3183_v53, %v3257_v30  ;;  %v1190_v30 = vsub.f32 %v3175_v49, %v3415_v15 }
 0x233   : > { %961 = vbcast.lane.b32.xlu1 %v3162_v40, 376  ;;  %1447 = vperm.xlu0 %2978, %v1123_v60  }
 0x235   : > { %v3431_v31 = vpop.permute.xlu1 %728  ;;  %v3433_v13 = vpop.permute.xlu0 %740 }
 0x237   : > { %1402 = vperm.xlu1 %2979, %v1108_v2   ;;  %1453 = vperm.xlu0 %2978, %v1125_v42  }
 0x239   : > { %v3439_v40 = vpop.permute.xlu1 %736  ;;  %v3441_v60 = vpop.permute.xlu0 %748 }
 0x23a   : > { %4520 = vst [vmem:[#allocation49_spill] sm:$0xff] %v3441_v60 }
 0x23b   : > { %1405 = vperm.xlu1 %2979, %v1109_v18   ;;  %1498 = vperm.xlu0 %2978, %v1140_v36  }
 0x23d   : > { %v3447_v2 = vpop.permute.xlu1 %744  ;;  %v3449_v42 = vpop.permute.xlu0 %756 }
 0x23f   : > { %1450 = vperm.xlu1 %2979, %v1124_v1   ;;  %1456 = vperm.xlu0 %2978, %v1126_v20  }
 0x241   : > { %v3455_v18 = vpop.permute.xlu1 %752  ;;  %v3457_v36 = vpop.permute.xlu0 %767 }
 0x243   : > { %1495 = vperm.xlu1 %2979, %v1139_v4   ;;  %1543 = vperm.xlu0 %2978, %v1155_v45  }
 0x245   : > { %v3463_v1 = vpop.permute.xlu1 %760  ;;  %v3465_v20 = vpop.permute.xlu0 %775 }
 0x246   : > { %4521 = vst [vmem:[#allocation50_spill] sm:$0xff] %v3463_v1 }
 0x247   : > { %1408 = vperm.xlu1 %2979, %v1110_v25   ;;  %1411 = vperm.xlu0 %2978, %v1111_v22  }
 0x249   : > { %v772_v4 = vpop.permute.xlu1 %771  ;;  %v3471_v45 = vpop.permute.xlu0 %783 }
 0x24a   : > { %v1204_v61 = vsub.f32 %v3177_v50, %v772_v4  ;;  %v1203_v4 = vsub.f32 %v3173_v48, %v3457_v36 }
 0x24b   : > { %1501 = vperm.xlu1 %2979, %v1141_v37   ;;  %1504 = vperm.xlu0 %2978, %v1142_v39  }
 0x24d   : > { %v3477_v1 = vpop.permute.xlu1 %779  ;;  %v3479_v22 = vpop.permute.xlu0 %791 }
 0x24f   : > { %1546 = vperm.xlu1 %2979, %v1156_v5   ;;  %1591 = vperm.xlu0 %2978, %v1171_v7  }
 0x251   : > { %v3485_v25 = vpop.permute.xlu1 %787  ;;  %v3487_v37 = vpop.permute.xlu0 %799 }
 0x253   : > { %1459 = vperm.xlu1 %2979, %v1127_v56   ;;  %1414 = vperm.xlu0 %2978, %v1112_v43  }
 0x255   : > { %v3493_v39 = vpop.permute.xlu1 %795  ;;  %v3495_v5 = vpop.permute.xlu0 %807 }
 0x257   : > { %1549 = vperm.xlu1 %2979, %v1157_v17   ;;  %1507 = vperm.xlu0 %2978, %v1143_v14  }
 0x259   : > { %v3501_v7 = vpop.permute.xlu1 %803  ;;  %v3503_v43 = vpop.permute.xlu0 %815 }
 0x25b   : > { %1594 = vperm.xlu1 %2979, %v1172_v23   ;;  %1597 = vperm.xlu0 %2978, %v1173_v9  }
 0x25d   : > { %v3509_v56 = vpop.permute.xlu1 %811  ;;  %v3511_v14 = vpop.permute.xlu0 %823 }
 0x25e   : > { %4522 = vst [vmem:[#allocation51_spill] sm:$0xff] %v3511_v14 }
 0x25f   : > { %1462 = vperm.xlu1 %2979, %v1128_v16   ;;  %1642 = vperm.xlu0 %2978, %v1188_v46  }
 0x261   : > { %v3517_v17 = vpop.permute.xlu1 %819  ;;  %v835_v9 = vpop.permute.xlu0 %834 }
 0x262   : > { %4523 = vst [vmem:[#allocation52_spill] sm:$0xff] %v3517_v17  ;;  %v1219_v36 = vsub.f32 %v3173_v48, %v835_v9  ;;  %v1205_v9 = vsub.f32 %v3171_v47, %v3465_v20 }
 0x263   : > { %1552 = vperm.xlu1 %2979, %v1158_v55   ;;  %1465 = vperm.xlu0 %2978, %v1129_v34  }
 0x265   : > { %v3523_v23 = vpop.permute.xlu1 %827  ;;  %v3525_v16 = vpop.permute.xlu0 %842 }
 0x266   : > { %4524 = vst [vmem:[#allocation53_spill] sm:$0xff] %v3523_v23 }
 0x267   : > { %1555 = vperm.xlu0 %2978, %v1159_v19   ;;  %1639 = vperm.xlu1 %2979, %v1187_v28  }
 0x269   : > { %v839_v46 = vpop.permute.xlu1 %838  ;;  %v3531_v34 = vpop.permute.xlu0 %850 }
 0x26a   : > { %v1220_v62 = vsub.f32 %v3177_v50, %v839_v46  ;;  %v1206_v46 = vsub.f32 %v3175_v49, %v3477_v1  ;;  %v1191_v1 = vsub.f32 %v3181_v52, %v3409_v41  ;;  %v1192_v41 = vsub.f32 %v3179_v51, %v3422_v12  ;;  %v4535_v12 = vld [vmem:[#allocation38_spill] sm:$0xff] }
 0x26b   : > { %1417 = vperm.xlu1 %2979, %v1113_v26   ;;  %1645 = vperm.xlu0 %2978, %v1189_v24  }
 0x26d   : > { %v3536_v55 = vpop.permute.xlu1 %846  ;;  %v3538_v19 = vpop.permute.xlu0 %858 }
 0x26f   : > { %1510 = vperm.xlu1 %2979, %v1144_v59   ;;  %1690 = vperm.xlu0 %2978, %v1204_v61  }
 0x271   : > { %v3544_v28 = vpop.permute.xlu1 %854  ;;  %v3546_v26 = vpop.permute.xlu0 %866 }
 0x273   : > { %1600 = vperm.xlu1 %2979, %v1174_v33   ;;  %1468 = vperm.xlu0 %2978, %v1130_v8  }
 0x275   : > { %v3552_v24 = vpop.permute.xlu1 %862  ;;  %v3554_v59 = vpop.permute.xlu0 %874 }
 0x277   : > { %1558 = vperm.xlu0 %2978, %v1160_v6   ;;  %1687 = vperm.xlu1 %2979, %v1203_v4  }
 0x279   : > { %v3560_v61 = vpop.permute.xlu1 %870  ;;  %v906_v8 = vpop.permute.xlu0 %905 }
 0x27a   : > { %v1236_v20 = vsub.f32 %v3177_v50, %v906_v8  ;;  %v1161_v50 = vsub.f32 %v3185_v54, %v3321_v38  ;;  %v1162_v38 = vsub.f32 %v3183_v53, %v3329_v35 }
 0x27b   : > { %1648 = vperm.xlu0 %2978, %v1190_v30   ;;  %1420 = vperm.xlu1 %2979, %v1114_v63  }
 0x27d   : > { %v902_v33 = vpop.permute.xlu1 %901  ;;  %v3565_v14 = vpop.permute.xlu0 %913 }
 0x27e   : > { %v1235_v15 = vsub.f32 %v3173_v48, %v902_v33  ;;  %v1146_v48 = vsub.f32 %v3183_v53, %v3291_v27  ;;  %v1131_v27 = vsub.f32 %v3191_v58, %v3255_v29  ;;  %v1132_v29 = vsub.f32 %v3189_v57, %v3261_v32  ;;  %v4528_v32 = vld [vmem:[#allocation10_spill] sm:$0xff] }
 0x27f   : > { %1513 = vperm.xlu1 %2979, %v1145_v0   ;;  %1735 = vperm.xlu0 %2978, %v1219_v36  }
 0x281   : > { %v910_v6 = vpop.permute.xlu1 %909  ;;  %v3570_v4 = vpop.permute.xlu0 %921 }
 0x282   : > { %v1237_v44 = vsub.f32 %v3171_v47, %v910_v6  ;;  %v1221_v6 = vsub.f32 %v3171_v47, %v3525_v16  ;;  %v1222_v47 = vsub.f32 %v3175_v49, %v3536_v55  ;;  %v1207_v55 = vsub.f32 %v3181_v52, %v3471_v45 }
 0x283   : > { %1603 = vperm.xlu1 %2979, %v1175_v11   ;;  %1783 = vperm.xlu0 %2978, %v1235_v15   ;;  %v1240_v17 = vsub.f32 %v3179_v51, %v3570_v4 }
 0x285   : > { %v3576_v63 = vpop.permute.xlu1 %917  ;;  %v3578_v30 = vpop.permute.xlu0 %929 }
 0x287   : > { %1693 = vperm.xlu1 %2979, %v1205_v9   ;;  %1423 = vperm.xlu0 %2978, %v1115_v3  }
 0x289   : > { %v3583_v0 = vpop.permute.xlu1 %925  ;;  %v3585_v36 = vpop.permute.xlu0 %937 }
 0x28a   : > { %v1241_v4 = vsub.f32 %v3185_v54, %v3583_v0 }
 0x28b   : > { %1738 = vperm.xlu1 %2979, %v1220_v62   ;;  %1516 = vperm.xlu0 %2978, %v1146_v48  }
 0x28d   : > { %v3590_v33 = vpop.permute.xlu1 %933  ;;  %v3592_v11 = vpop.permute.xlu0 %878 }
 0x28f   : > { %1606 = vperm.xlu0 %2978, %v1176_v10   ;;  %1786 = vperm.xlu1 %2979, %v1236_v20   ;;  %v1116_v10 = vsub.f32 %v3189_v57, %v4528_v32 }
 0x291   : > { %v3598_v15 = vpop.permute.xlu1 %941  ;;  %v3600_v3 = vpop.permute.xlu0 %882 }
 0x293   : > { %1696 = vperm.xlu0 %2978, %v1206_v46   ;;  %1471 = vperm.xlu1 %2979, %v1131_v27   ;;  %v4530_v27 = vld [vmem:[#allocation22_spill] sm:$0xff] }
 0x294   : > { %v1147_v35 = vsub.f32 %v3191_v58, %v4530_v27  ;;  %v4538_v27 = vld [vmem:[#allocation40_spill] sm:$0xff] }
 0x295   : > { %v3605_v8 = vpop.permute.xlu1 %945  ;;  %v3611_v9 = vpop.permute.xlu0 %886 }
 0x296   : > { %4525 = vst [vmem:[#allocation54_spill] sm:$0xff] %v3611_v9  ;;  %v1209_v9 = vsub.f32 %v3185_v54, %v3479_v22 }
 0x297   : > { %1789 = vperm.xlu0 %2978, %v1237_v44   ;;  %1561 = vperm.xlu1 %2979, %v1161_v50   ;;  %v4533_v50 = vld [vmem:[#allocation9_spill] sm:$0xff]  ;;  %v4534_v44 = vld [vmem:[#allocation4_spill] sm:$0xff] }
 0x299   : > { %v3613_v48 = vpop.permute.xlu1 %949  ;;  %v3619_v62 = vpop.permute.xlu0 %890 }
 0x29a   : > { %4526 = vst [vmem:[#allocation55_spill] sm:$0xff] %v3613_v48  ;;  %4527 = vst [vmem:[#allocation56_spill] sm:$0xff] %v3619_v62  ;;  %v4549_v48 = vld [vmem:[#allocation39_spill] sm:$0xff] }
 0x29b   : > { %1474 = vperm.xlu0 %2978, %v1132_v29   ;;  %1651 = vperm.xlu1 %2979, %v1191_v1   ;;  %v1117_v29 = vsub.f32 %v4534_v44, %v4533_v50  ;;  %v1177_v1 = vsub.f32 %v3185_v54, %v4535_v12  ;;  %v4539_v12 = vld [vmem:[#allocation16_spill] sm:$0xff]  ;;  %v1179_v23 = vsub.f32 %v3191_v58, %v4549_v48 }
 0x29c   : > { %v1133_v45 = vsub.f32 %v4534_v44, %v4539_v12 }
 0x29d   : > { %v3625_v20 = vpop.permute.xlu1 %953  ;;  %v3631_v16 = vpop.permute.xlu0 %894 }
 0x29e   : > { %4529 = vst [vmem:[#allocation10_spill] sm:$0xff] %v3625_v20  ;;  %4531 = vst [vmem:[#allocation22_spill] sm:$0xff] %v3631_v16  ;;  %v4543_v16 = vld [vmem:[#allocation48_spill] sm:$0xff]  ;;  %v1194_v20 = vsub.f32 %v3183_v53, %v3431_v31  ;;  %v4548_v31 = vld [vmem:[#allocation6_spill] sm:$0xff] }
 0x29f   : > { %1564 = vperm.xlu0 %2978, %v1162_v38   ;;  %1741 = vperm.xlu1 %2979, %v1221_v6   ;;  %v4536_v6 = vld [vmem:[#allocation24_spill] sm:$0xff]  ;;  %v1193_v62 = vsub.f32 %v3185_v54, %v4543_v16 }
 0x2a0   : > { %v1148_v32 = vsub.f32 %v3189_v57, %v4536_v6 }
 0x2a1   : > { %v3633_v46 = vpop.permute.xlu1 %957 }
 0x2a2   : > { %4532 = vst [vmem:[#allocation57_spill] sm:$0xff] %v3633_v46 }
 0x2a3   : > { %1654 = vperm.xlu0 %2978, %v1192_v41   ;;  %1426 = vperm.xlu1 %2979, %v1116_v10  }
 0x2a5   : > { %v3645_v10 = vpop.permute.xlu1 %961 }
 0x2a6   : > { %4537 = vst [vmem:[#allocation9_spill] sm:$0xff] %v3645_v10  ;;  %v1223_v10 = vsub.f32 %v3181_v52, %v3531_v34  ;;  %v1224_v34 = vsub.f32 %v3179_v51, %v3544_v28 }
 0x2a7   : > { %1744 = vperm.xlu0 %2978, %v1222_v47   ;;  %1519 = vperm.xlu1 %2979, %v1147_v35   ;;  %v1178_v35 = vsub.f32 %v3183_v53, %v4538_v27  ;;  %v1238_v47 = vsub.f32 %v3175_v49, %v3565_v14  ;;  %v1239_v14 = vsub.f32 %v3181_v52, %v3576_v63 }
 0x2aa   : > { %v3639_v38 = vpop.permute.xlu0 %1399 }
 0x2ab   : > { %1429 = vperm.xlu0 %2978, %v1117_v29   ;;  %1609 = vperm.xlu1 %2979, %v1177_v1   ;;  %v1208_v1 = vsub.f32 %v3179_v51, %v3485_v25  ;;  %v4542_v25 = vld [vmem:[#allocation3_spill] sm:$0xff] }
 0x2ae   : > { %v3647_v41 = vpop.permute.xlu0 %1447 }
 0x2af   : > { %1522 = vperm.xlu0 %2978, %v1148_v32   ;;  %1699 = vperm.xlu1 %2979, %v1207_v55   ;;  %v4540_v55 = vld [vmem:[#allocation30_spill] sm:$0xff] }
 0x2b0   : > { %v1163_v49 = vsub.f32 %v3191_v58, %v4540_v55  ;;  %v4544_v55 = vld [vmem:[#allocation32_spill] sm:$0xff] }
 0x2b1   : > { %v1164_v63 = vsub.f32 %v3189_v57, %v4544_v55  ;;  %v4546_v55 = vld [vmem:[#allocation23_spill] sm:$0xff] }
 0x2b2   : > { %v3653_v50 = vpop.permute.xlu1 %1402  ;;  %v3655_v29 = vpop.permute.xlu0 %1453  ;;  %v1149_v52 = vsub.f32 %v4534_v44, %v4546_v55  ;;  %v4550_v55 = vld [vmem:[#allocation26_spill] sm:$0xff] }
 0x2b3   : > { %1612 = vperm.xlu0 %2978, %v1178_v35   ;;  %1792 = vperm.xlu1 %2979, %v1238_v47   ;;  %v4541_v47 = vld [vmem:[#allocation18_spill] sm:$0xff]  ;;  %v1150_v28 = vsub.f32 %v4542_v25, %v4550_v55  ;;  %v4554_v55 = vld [vmem:[#allocation17_spill] sm:$0xff] }
 0x2b4   : > { %v1134_v12 = vsub.f32 %v4542_v25, %v4541_v47  ;;  %v4545_v47 = vld [vmem:[#allocation12_spill] sm:$0xff]  ;;  %v1135_v22 = vsub.f32 %v4548_v31, %v4554_v55 }
 0x2b5   : > { %v1118_v16 = vsub.f32 %v4542_v25, %v4545_v47  ;;  %v4547_v47 = vld [vmem:[#allocation11_spill] sm:$0xff]  ;;  %v4560_v55 = vld [vmem:[#allocation20_spill] sm:$0xff] }
 0x2b6   : > { %v3661_v6 = vpop.permute.xlu1 %1405  ;;  %v3663_v32 = vpop.permute.xlu0 %1498  ;;  %v1119_v46 = vsub.f32 %v4548_v31, %v4547_v47  ;;  %v4552_v47 = vld [vmem:[#allocation42_spill] sm:$0xff] }
 0x2b7   : > { %1702 = vperm.xlu0 %2978, %v1208_v1   ;;  %1477 = vperm.xlu1 %2979, %v1133_v45   ;;  %v1180_v48 = vsub.f32 %v3189_v57, %v4552_v47  ;;  %v4557_v47 = vld [vmem:[#allocation31_spill] sm:$0xff] }
 0x2b8   : > { %v1165_v51 = vsub.f32 %v4534_v44, %v4557_v47  ;;  %v4564_v47 = vld [vmem:[#allocation34_spill] sm:$0xff] }
 0x2b9   : > { %v1166_v0 = vsub.f32 %v4542_v25, %v4564_v47  ;;  %v4570_v47 = vld [vmem:[#allocation25_spill] sm:$0xff] }
 0x2ba   : > { %v3669_v27 = vpop.permute.xlu1 %1450  ;;  %v3671_v35 = vpop.permute.xlu0 %1456 }
 0x2bb   : > { %1795 = vperm.xlu0 %2978, %v1239_v14   ;;  %1567 = vperm.xlu1 %2979, %v1163_v49  }
 0x2be   : > { %v3677_v1 = vpop.permute.xlu1 %1495  ;;  %v3679_v45 = vpop.permute.xlu0 %1543 }
 0x2bf   : > { %1480 = vperm.xlu0 %2978, %v1134_v12   ;;  %1657 = vperm.xlu1 %2979, %v1193_v62  }
 0x2c2   : > { %v3685_v14 = vpop.permute.xlu1 %1408  ;;  %v3687_v49 = vpop.permute.xlu0 %1411 }
 0x2c3   : > { %1570 = vperm.xlu0 %2978, %v1164_v63   ;;  %1747 = vperm.xlu1 %2979, %v1223_v10  }
 0x2c6   : > { %v3693_v12 = vpop.permute.xlu1 %1501  ;;  %v3695_v62 = vpop.permute.xlu0 %1504 }
 0x2c7   : > { %1660 = vperm.xlu0 %2978, %v1194_v20   ;;  %1432 = vperm.xlu1 %2979, %v1118_v16  }
 0x2ca   : > { %v3701_v63 = vpop.permute.xlu1 %1546  ;;  %v3703_v10 = vpop.permute.xlu0 %1591 }
 0x2cb   : > { %1750 = vperm.xlu0 %2978, %v1224_v34   ;;  %1525 = vperm.xlu1 %2979, %v1149_v52  }
 0x2ce   : > { %v3709_v20 = vpop.permute.xlu1 %1459  ;;  %v3711_v16 = vpop.permute.xlu0 %1414 }
 0x2cf   : > { %1615 = vperm.xlu1 %2979, %v1179_v23   ;;  %1435 = vperm.xlu0 %2978, %v1119_v46  }
 0x2d2   : > { %v3717_v34 = vpop.permute.xlu1 %1549  ;;  %v3719_v52 = vpop.permute.xlu0 %1507 }
 0x2d3   : > { %4551 = vst [vmem:[#allocation4_spill] sm:$0xff] %v3719_v52  ;;  %1705 = vperm.xlu1 %2979, %v1209_v9   ;;  %1528 = vperm.xlu0 %2978, %v1150_v28   ;;  %v1210_v52 = vsub.f32 %v3183_v53, %v3493_v39  ;;  %v4561_v39 = vld [vmem:[#allocation5_spill] sm:$0xff] }
 0x2d6   : > { %v3725_v23 = vpop.permute.xlu1 %1594  ;;  %v3727_v46 = vpop.permute.xlu0 %1597 }
 0x2d7   : > { %4553 = vst [vmem:[#allocation38_spill] sm:$0xff] %v3727_v46  ;;  %1798 = vperm.xlu1 %2979, %v1240_v17   ;;  %1618 = vperm.xlu0 %2978, %v1180_v48   ;;  %v1136_v46 = vsub.f32 %v4561_v39, %v4560_v55  ;;  %v4567_v55 = vld [vmem:[#allocation14_spill] sm:$0xff] }
 0x2da   : > { %v3733_v9 = vpop.permute.xlu1 %1462  ;;  %v3735_v28 = vpop.permute.xlu0 %1642 }
 0x2db   : > { %4555 = vst [vmem:[#allocation24_spill] sm:$0xff] %v3733_v9  ;;  %4556 = vst [vmem:[#allocation40_spill] sm:$0xff] %v3735_v28  ;;  %1483 = vperm.xlu1 %2979, %v1135_v22   ;;  %1708 = vperm.xlu0 %2978, %v1210_v52   ;;  %v1195_v28 = vsub.f32 %v3191_v58, %v3424_v21  ;;  %v1120_v21 = vsub.f32 %v4561_v39, %v4567_v55  ;;  %v4573_v55 = vld [vmem:[#allocation13_spill] sm:$0xff] }
 0x2de   : > { %v3741_v17 = vpop.permute.xlu1 %1552  ;;  %v3743_v48 = vpop.permute.xlu0 %1465 }
 0x2df   : > { %4558 = vst [vmem:[#allocation16_spill] sm:$0xff] %v3741_v17  ;;  %4559 = vst [vmem:[#allocation30_spill] sm:$0xff] %v3743_v48  ;;  %1573 = vperm.xlu1 %2979, %v1165_v51   ;;  %1801 = vperm.xlu0 %2978, %v1241_v4   ;;  %v1225_v48 = vsub.f32 %v3185_v54, %v3538_v19  ;;  %v1151_v54 = vsub.f32 %v4548_v31, %v4570_v47  ;;  %v4578_v47 = vld [vmem:[#allocation28_spill] sm:$0xff]  ;;  %v4603_v17 = vld [vmem:[#allocation43_spill] sm:$0xff] }
 0x2e0   : > { %v1226_v19 = vsub.f32 %v3183_v53, %v3552_v24  ;;  %v1152_v24 = vsub.f32 %v4561_v39, %v4578_v47  ;;  %v4584_v47 = vld [vmem:[#allocation19_spill] sm:$0xff] }
 0x2e2   : > { %v3749_v22 = vpop.permute.xlu1 %1639  ;;  %v3751_v52 = vpop.permute.xlu0 %1555 }
 0x2e3   : > { %4562 = vst [vmem:[#allocation18_spill] sm:$0xff] %v3749_v22  ;;  %4563 = vst [vmem:[#allocation3_spill] sm:$0xff] %v3751_v52  ;;  %1663 = vperm.xlu1 %2979, %v1195_v28   ;;  %1486 = vperm.xlu0 %2978, %v1136_v46   ;;  %v1196_v52 = vsub.f32 %v3189_v57, %v3439_v40  ;;  %v4574_v40 = vld [vmem:[#allocation8_spill] sm:$0xff]  ;;  %v4575_v22 = vld [vmem:[#allocation41_spill] sm:$0xff] }
 0x2e6   : > { %v3757_v51 = vpop.permute.xlu1 %1417  ;;  %v3759_v4 = vpop.permute.xlu0 %1645 }
 0x2e7   : > { %4565 = vst [vmem:[#allocation48_spill] sm:$0xff] %v3757_v51  ;;  %4566 = vst [vmem:[#allocation32_spill] sm:$0xff] %v3759_v4  ;;  %1753 = vperm.xlu1 %2979, %v1225_v48   ;;  %1576 = vperm.xlu0 %2978, %v1166_v0   ;;  %v1121_v4 = vsub.f32 %v4574_v40, %v4573_v55  ;;  %v4581_v55 = vld [vmem:[#allocation44_spill] sm:$0xff]  ;;  %v1213_v51 = vsub.f32 %v4534_v44, %v3495_v5 }
 0x2ea   : > { %v3765_v28 = vpop.permute.xlu1 %1510  ;;  %v3767_v46 = vpop.permute.xlu0 %1690 }
 0x2eb   : > { %4568 = vst [vmem:[#allocation12_spill] sm:$0xff] %v3765_v28  ;;  %4569 = vst [vmem:[#allocation23_spill] sm:$0xff] %v3767_v46  ;;  %1438 = vperm.xlu1 %2979, %v1120_v21   ;;  %1666 = vperm.xlu0 %2978, %v1196_v52   ;;  %v1181_v46 = vsub.f32 %v4534_v44, %v4575_v22  ;;  %v1182_v22 = vsub.f32 %v4542_v25, %v4581_v55  ;;  %v4587_v55 = vld [vmem:[#allocation33_spill] sm:$0xff] }
 0x2ee   : > { %v3773_v48 = vpop.permute.xlu1 %1600  ;;  %v3775_v0 = vpop.permute.xlu0 %1468 }
 0x2ef   : > { %4571 = vst [vmem:[#allocation11_spill] sm:$0xff] %v3773_v48  ;;  %4572 = vst [vmem:[#allocation6_spill] sm:$0xff] %v3775_v0  ;;  %1531 = vperm.xlu1 %2979, %v1151_v54   ;;  %1756 = vperm.xlu0 %2978, %v1226_v19   ;;  %v1211_v0 = vsub.f32 %v3191_v58, %v3487_v37  ;;  %v1137_v37 = vsub.f32 %v4574_v40, %v4584_v47  ;;  %v4590_v47 = vld [vmem:[#allocation21_spill] sm:$0xff] }
 0x2f2   : > { %v3781_v21 = vpop.permute.xlu1 %1687  ;;  %v3783_v52 = vpop.permute.xlu0 %1558 }
 0x2f3   : > { %4576 = vst [vmem:[#allocation39_spill] sm:$0xff] %v3781_v21  ;;  %4577 = vst [vmem:[#allocation26_spill] sm:$0xff] %v3783_v52  ;;  %1621 = vperm.xlu1 %2979, %v1181_v46   ;;  %1441 = vperm.xlu0 %2978, %v1121_v4   ;;  %v1242_v52 = vsub.f32 %v3183_v53, %v3578_v30  ;;  %v1167_v53 = vsub.f32 %v4548_v31, %v4587_v55  ;;  %v4593_v55 = vld [vmem:[#allocation36_spill] sm:$0xff] }
 0x2f4   : > { %v1243_v30 = vsub.f32 %v3191_v58, %v3590_v33  ;;  %v1168_v33 = vsub.f32 %v4561_v39, %v4593_v55 }
 0x2f6   : > { %v3789_v54 = vpop.permute.xlu1 %1420  ;;  %v3791_v19 = vpop.permute.xlu0 %1648 }
 0x2f7   : > { %4579 = vst [vmem:[#allocation42_spill] sm:$0xff] %v3789_v54  ;;  %4580 = vst [vmem:[#allocation17_spill] sm:$0xff] %v3791_v19  ;;  %1711 = vperm.xlu1 %2979, %v1211_v0   ;;  %1534 = vperm.xlu0 %2978, %v1152_v24   ;;  %v1212_v19 = vsub.f32 %v3189_v57, %v3501_v7  ;;  %v4591_v7 = vld [vmem:[#allocation7_spill] sm:$0xff] }
 0x2f8   : > { %v1138_v21 = vsub.f32 %v4591_v7, %v4590_v47 }
 0x2fa   : > { %v3797_v46 = vpop.permute.xlu1 %1513  ;;  %v3799_v4 = vpop.permute.xlu0 %1735 }
 0x2fb   : > { %4582 = vst [vmem:[#allocation31_spill] sm:$0xff] %v3797_v46  ;;  %4583 = vst [vmem:[#allocation20_spill] sm:$0xff] %v3799_v4  ;;  %1804 = vperm.xlu1 %2979, %v1242_v52   ;;  %1624 = vperm.xlu0 %2978, %v1182_v22   ;;  %v4609_v46 = vld [vmem:[#allocation2_spill] sm:$0xff] }
 0x2fe   : > { %v3805_v0 = vpop.permute.xlu1 %1603  ;;  %v3807_v24 = vpop.permute.xlu0 %1783 }
 0x2ff   : > { %4585 = vst [vmem:[#allocation5_spill] sm:$0xff] %v3805_v0  ;;  %4586 = vst [vmem:[#allocation34_spill] sm:$0xff] %v3807_v24  ;;  %1489 = vperm.xlu1 %2979, %v1137_v37   ;;  %1714 = vperm.xlu0 %2978, %v1212_v19   ;;  %v1197_v24 = vsub.f32 %v4534_v44, %v3433_v13  ;;  %v4598_v13 = vld [vmem:[#allocation15_spill] sm:$0xff] }
 0x300   : > { %v1122_v48 = vsub.f32 %v4591_v7, %v4598_v13 }
 0x302   : > { %v3813_v52 = vpop.permute.xlu1 %1693  ;;  %v3815_v22 = vpop.permute.xlu0 %1423 }
 0x303   : > { %4588 = vst [vmem:[#allocation14_spill] sm:$0xff] %v3813_v52  ;;  %4589 = vst [vmem:[#allocation25_spill] sm:$0xff] %v3815_v22  ;;  %1579 = vperm.xlu1 %2979, %v1167_v53   ;;  %1807 = vperm.xlu0 %2978, %v1243_v30   ;;  %v1227_v52 = vsub.f32 %v3191_v58, %v3546_v26  ;;  %v4594_v53 = vlaneseq }
 0x305   : > { %v3830_v30 = vand.u32 127, %v4594_v53 }
 0x306   : > { %v3821_v37 = vpop.permute.xlu1 %1738  ;;  %v3823_v19 = vpop.permute.xlu0 %1516 }
 0x307   : > { %4592 = vst [vmem:[#allocation13_spill] sm:$0xff] %v3823_v19  ;;  %1669 = vperm.xlu1 %2979, %v1197_v24   ;;  %1492 = vperm.xlu0 %2978, %v1138_v21   ;;  %4595 = vst [vmem:[#allocation8_spill] sm:$0xff] %v3830_v30  ;;  %v4599_v24 = vld [vmem:[#allocation27_spill] sm:$0xff]  ;;  %v4600_v19 = vld [vmem:[#allocation29_spill] sm:$0xff]  ;;  %v1834_v58 = vadd.s32 4294967288, %v3830_v30  ;;  %v1841_v26 = vadd.s32 4294967280, %v3830_v30 }
 0x308   : > { %v1153_v21 = vsub.f32 %v4574_v40, %v4599_v24  ;;  %v1154_v55 = vsub.f32 %v4591_v7, %v4600_v19  ;;  %v4605_v19 = vld [vmem:[#allocation46_spill] sm:$0xff]  ;;  %v1848_v28 = vadd.s32 4294967272, %v3830_v30  ;;  %v1855_v22 = vadd.s32 4294967264, %v3830_v30 }
 0x309   : > { %v1862_v24 = vadd.s32 4294967256, %v3830_v30  ;;  %v3870_v9 = vsub.s32 %v1834_v58, %v4609_v46  ;;  %v3873_v13 = vsub.s32 %v1841_v26, %v4609_v46  ;;  %v1890_v5 = vadd.s32 4294967224, %v3830_v30 }
 0x30a   : > { %v3832_v0 = vpop.permute.xlu1 %1786  ;;  %v3834_v47 = vpop.permute.xlu0 %1606  ;;  %v3890_v54 = vsub.s32 %v1855_v22, %v4609_v46  ;;  %v1214_v22 = vsub.f32 %v4542_v25, %v3509_v56 }
 0x30b   : > { %4596 = vst [vmem:[#allocation41_spill] sm:$0xff] %v3832_v0  ;;  %4597 = vst [vmem:[#allocation28_spill] sm:$0xff] %v3834_v47  ;;  %1759 = vperm.xlu1 %2979, %v1227_v52   ;;  %1582 = vperm.xlu0 %2978, %v1168_v33   ;;  %v1183_v52 = vsub.f32 %v4548_v31, %v4603_v17  ;;  %v1198_v33 = vsub.f32 %v4542_v25, %v3447_v2 }
 0x30c   : > { %v3866_v2 = vsub.s32 %v3830_v30, %v4609_v46  ;;  %v1228_v47 = vsub.f32 %v3189_v57, %v3560_v61  ;;  %v3901_v58 = vsub.s32 %v1862_v24, %v4609_v46  ;;  %v1946_v26 = vrot.slane %v3669_v27, %v3870_v9 }
 0x30d   : > { %v1244_v24 = vsub.f32 %v3189_v57, %v3585_v36 }
 0x30e   : > { %v3858_v0 = vpop.permute.xlu1 %1471  ;;  %v3860_v53 = vpop.permute.xlu0 %1696  ;;  %v1942_v27 = vrot.slane %v3647_v41, %v3866_v2  ;;  %v1833_v41 = vrot.slane %v3639_v38, %v3866_v2  ;;  %v2021_v56 = vrot.slane %v3677_v1, %v3866_v2  ;;  %v1246_v38 = vsub.f32 %v4542_v25, %v3605_v8 }
 0x30f   : > { %4606 = vst [vmem:[#allocation44_spill] sm:$0xff] %v3858_v0  ;;  %4607 = vst [vmem:[#allocation19_spill] sm:$0xff] %v3860_v53  ;;  %1444 = vperm.xlu1 %2979, %v1122_v48   ;;  %1672 = vperm.xlu0 %2978, %v1198_v33   ;;  %v1869_v0 = vadd.s32 4294967248, %v3830_v30  ;;  %v1876_v53 = vadd.s32 4294967240, %v3830_v30  ;;  %v1883_v48 = vadd.s32 4294967232, %v3830_v30  ;;  %v3887_v33 = vsub.s32 %v1848_v28, %v4609_v46 }
 0x310   : > { %v2025_v1 = vrot.slane %v3663_v32, %v3870_v9 }
 0x311   : > { %v3910_v4 = vsub.s32 %v1869_v0, %v4609_v46  ;;  %v1838_v0 = vrot.slane %v3653_v50, %v3870_v9  ;;  %v1947_v50 = vsel %vm1839_vm0, %v1946_v26, %v1942_v27  ;;  %v1852_v36 = vrot.slane %v3685_v14, %v3887_v33 }
 0x312   : > { %v3892_v17 = vpop.permute.xlu1 %1561  ;;  %v3894_v60 = vpop.permute.xlu0 %1789  ;;  %v3958_v14 = vsub.s32 %v1890_v5, %v4609_v46  ;;  %v1956_v32 = vrot.slane %v3671_v35, %v3887_v33  ;;  %v2026_v5 = vsel %vm1839_vm0, %v2025_v1, %v2021_v56  ;;  %v1961_v56 = vrot.slane %v3709_v20, %v3890_v54  ;;  %v4613_v1 = vld [vmem:[#allocation48_spill] sm:$0xff] }
 0x313   : > { %1537 = vperm.xlu1 %2979, %v1153_v21   ;;  %1762 = vperm.xlu0 %2978, %v1228_v47   ;;  %v3917_v47 = vsub.s32 %v1876_v53, %v4609_v46  ;;  %v3920_v21 = vsub.s32 %v1883_v48, %v4609_v46  ;;  %v1845_v48 = vrot.slane %v3661_v6, %v3873_v13 }
 0x314   : > { %v1951_v53 = vrot.slane %v3655_v29, %v3873_v13  ;;  %v2030_v6 = vrot.slane %v3693_v12, %v3873_v13  ;;  %v1840_v26 = vsel %vm1839_vm0, %v1838_v0, %v1833_v41  ;;  %v4611_v0 = vsub.f32 %v4561_v39, %v4605_v19 }
 0x315   : > { %v1847_v12 = vsel %vm1846_vm1, %v1845_v48, %v1840_v26  ;;  %v2035_v48 = vrot.slane %v3695_v62, %v3887_v33  ;;  %v1866_v62 = vrot.slane %v3711_v16, %v3901_v58  ;;  %v2179_v16 = vrot.slane %v3703_v10, %v3866_v2 }
 0x316   : > { %v3928_v28 = vpop.permute.xlu1 %1651  ;;  %v3931_v57 = vpop.permute.xlu0 %1474  ;;  %v1952_v61 = vsel %vm1846_vm1, %v1951_v53, %v1947_v50  ;;  %v1854_v41 = vsel %vm1853_vm2, %v1852_v36, %v1847_v12  ;;  %v2031_v53 = vsel %vm1846_vm1, %v2030_v6, %v2026_v5  ;;  %v2109_v36 = vrot.slane %v3717_v34, %v3873_v13  ;;  %v4612_v34 = vld [vmem:[#allocation4_spill] sm:$0xff] }
 0x317   : > { %1627 = vperm.xlu1 %2979, %v1183_v52   ;;  %1540 = vperm.xlu0 %2978, %v1154_v55   ;;  %v1897_v52 = vadd.s32 4294967216, %v3830_v30  ;;  %v1904_v55 = vadd.s32 4294967208, %v3830_v30  ;;  %v1859_v30 = vrot.slane %v3687_v49, %v3890_v54  ;;  %v2104_v49 = vrot.slane %v3701_v63, %v3870_v9 }
 0x318   : > { %v1957_v35 = vsel %vm1853_vm2, %v1956_v32, %v1952_v61  ;;  %v2100_v6 = vrot.slane %v3679_v45, %v3866_v2  ;;  %v2420_v61 = vrot.slane %v3821_v37, %v3870_v9  ;;  %v2036_v20 = vsel %vm1853_vm2, %v2035_v48, %v2031_v53  ;;  %v4615_v32 = vld [vmem:[#allocation42_spill] sm:$0xff]  ;;  %v4616_v48 = vld [vmem:[#allocation25_spill] sm:$0xff] }
 0x319   : > { %v3982_v19 = vsub.s32 %v1904_v55, %v4609_v46  ;;  %v2040_v55 = vrot.slane %v4612_v34, %v3890_v54  ;;  %v1873_v37 = vrot.slane %v4613_v1, %v3910_v4  ;;  %v1962_v12 = vsel %vm1860_vm3, %v1961_v56, %v1957_v35 }
 0x31a   : > { %v1742_v27 = vpop.permute.xlu1 %1741  ;;  %v3960_v29 = vpop.permute.xlu0 %1564  ;;  %v2105_v45 = vsel %vm1839_vm0, %v2104_v49, %v2100_v6  ;;  %v4617_v6 = vld [vmem:[#allocation35_spill] sm:$0xff]  ;;  %v4619_v35 = vsub.f32 %v4534_v44, %v3598_v15 }
 0x31b   : > { %1717 = vperm.xlu1 %2979, %v1213_v51   ;;  %1630 = vperm.xlu0 %2978, %v4611_v0   ;;  %v3979_v51 = vsub.s32 %v1897_v52, %v4609_v46  ;;  %v1861_v52 = vsel %vm1860_vm3, %v1859_v30, %v1854_v41  ;;  %v2425_v26 = vrot.slane %v1742_v27, %v3873_v13 }
 0x31c   : > { %v2183_v30 = vrot.slane %v3725_v23, %v3870_v9  ;;  %v1868_v10 = vsel %vm1867_vm4, %v1866_v62, %v1861_v52  ;;  %v2110_v0 = vsel %vm1846_vm1, %v2109_v36, %v2105_v45  ;;  %v1880_v27 = vrot.slane %v4615_v32, %v3917_v47  ;;  %v4620_v62 = vld [vmem:[#allocation38_spill] sm:$0xff]  ;;  %v4622_v32 = vld [vmem:[#allocation24_spill] sm:$0xff] }
 0x31d   : > { %v1887_v23 = vrot.slane %v4616_v48, %v3920_v21  ;;  %v4618_v34 = vsub.f32 %v4574_v40, %v4617_v6  ;;  %v2041_v56 = vsel %vm1860_vm3, %v2040_v55, %v2036_v20  ;;  %v2188_v36 = vrot.slane %v4620_v62, %v3873_v13  ;;  %v4623_v55 = vld [vmem:[#allocation16_spill] sm:$0xff]  ;;  %v4626_v6 = vld [vmem:[#allocation49_spill] sm:$0xff] }
 0x31e   : > { %v1427_v50 = vpop.permute.xlu1 %1426  ;;  %v3991_v63 = vpop.permute.xlu0 %1654  ;;  %v2184_v45 = vsel %vm1839_vm0, %v2183_v30, %v2179_v16  ;;  %v1875_v1 = vsel %vm1874_vm5, %v1873_v37, %v1868_v10  ;;  %v1966_v20 = vrot.slane %v4622_v32, %v3901_v58  ;;  %v4625_v10 = vld [vmem:[#allocation13_spill] sm:$0xff]  ;;  %v4631_v32 = vld [vmem:[#allocation30_spill] sm:$0xff] }
 0x31f   : > { %1810 = vperm.xlu1 %2979, %v1244_v24   ;;  %1720 = vperm.xlu0 %2978, %v1214_v22   ;;  %v4614_v22 = vld [vmem:[#allocation20_spill] sm:$0xff]  ;;  %v2189_v62 = vsel %vm1846_vm1, %v2188_v36, %v2184_v45 }
 0x320   : > { %v2416_v24 = vrot.slane %v4614_v22, %v3866_v2  ;;  %v4621_v22 = vld [vmem:[#allocation12_spill] sm:$0xff]  ;;  %v1967_v36 = vsel %vm1867_vm4, %v1966_v20, %v1962_v12  ;;  %v4636_v12 = vsub.f32 %v4548_v31, %v3503_v43 }
 0x322   : > { %v1520_v5 = vpop.permute.xlu1 %1519  ;;  %v1745_v41 = vpop.permute.xlu0 %1744  ;;  %v2421_v53 = vsel %vm1839_vm0, %v2420_v61, %v2416_v24  ;;  %v1894_v61 = vrot.slane %v1427_v50, %v3958_v14  ;;  %v2045_v24 = vrot.slane %v4621_v22, %v3901_v58  ;;  %v4624_v50 = vld [vmem:[#allocation31_spill] sm:$0xff] }
 0x323   : > { %v2430_v49 = vrot.slane %v1745_v41, %v3887_v33  ;;  %1585 = vperm.xlu1 %2979, %v4618_v34   ;;  %1813 = vperm.xlu0 %2978, %v4619_v35   ;;  %v2426_v52 = vsel %vm1846_vm1, %v2425_v26, %v2421_v53  ;;  %v2114_v41 = vrot.slane %v4623_v55, %v3887_v33  ;;  %v4628_v35 = vld [vmem:[#allocation45_spill] sm:$0xff] }
 0x324   : > { %v1882_v26 = vsel %vm1881_vm6, %v1880_v27, %v1875_v1  ;;  %v2050_v48 = vrot.slane %v4624_v50, %v3910_v4  ;;  %v2055_v53 = vrot.slane %v4625_v10, %v3917_v47  ;;  %v4627_v34 = vsub.f32 %v4548_v31, %v4626_v6  ;;  %v4632_v50 = vld [vmem:[#allocation11_spill] sm:$0xff] }
 0x325   : > { %v4036_v15 = vsel %vm1853_vm2, %v2430_v49, %v2426_v52  ;;  %v1889_v37 = vsel %vm1888_vm7, %v1887_v23, %v1882_v26  ;;  %v4629_v27 = vsub.f32 %v4574_v40, %v4628_v35  ;;  %v4630_v52 = vld [vmem:[#allocation40_spill] sm:$0xff]  ;;  %v2060_v22 = vrot.slane %v1520_v5, %v3920_v21 }
 0x326   : > { %v1610_v16 = vpop.permute.xlu1 %1609  ;;  %v1430_v30 = vpop.permute.xlu0 %1429  ;;  %v2262_v1 = vrot.slane %v4630_v52, %v3870_v9  ;;  %v1896_v23 = vsel %vm1895_vm9, %v1894_v61, %v1889_v37  ;;  %v1971_v55 = vrot.slane %v4631_v32, %v3910_v4  ;;  %v2046_v26 = vsel %vm1867_vm4, %v2045_v24, %v2041_v56  ;;  %v4633_v61 = vld [vmem:[#allocation5_spill] sm:$0xff]  ;;  %v4634_v56 = vld [vmem:[#allocation28_spill] sm:$0xff] }
 0x327   : > { %v1901_v49 = vrot.slane %v1430_v30, %v3979_v51  ;;  %1675 = vperm.xlu1 %2979, %v4627_v34   ;;  %1633 = vperm.xlu0 %2978, %v4629_v27   ;;  %v2193_v30 = vrot.slane %v4632_v50, %v3887_v33  ;;  %v2115_v45 = vsel %vm1853_vm2, %v2114_v41, %v2110_v0  ;;  %v4637_v0 = vld [vmem:[#allocation18_spill] sm:$0xff]  ;;  %v4638_v41 = vld [vmem:[#allocation3_spill] sm:$0xff] }
 0x328   : > { %v2051_v6 = vsel %vm1874_vm5, %v2050_v48, %v2046_v26  ;;  %v2198_v5 = vrot.slane %v4633_v61, %v3890_v54  ;;  %v2203_v24 = vrot.slane %v4634_v56, %v3901_v58  ;;  %v2258_v20 = vrot.slane %v4637_v0, %v3866_v2  ;;  %v4640_v26 = vld [vmem:[#allocation32_spill] sm:$0xff] }
 0x329   : > { %v4066_v10 = vsel %vm1902_vm8, %v1901_v49, %v1896_v23  ;;  %v2056_v35 = vsel %vm1881_vm6, %v2055_v53, %v2051_v6  ;;  %v4635_v49 = vsub.f32 %v4534_v44, %v3554_v59  ;;  %v2119_v48 = vrot.slane %v4638_v41, %v3890_v54  ;;  %v4639_v59 = vld [vmem:[#allocation39_spill] sm:$0xff] }
 0x32a   : > { %v1700_v37 = vpop.permute.xlu1 %1699  ;;  %v1523_v34 = vpop.permute.xlu0 %1522  ;;  %v2061_v53 = vsel %vm1888_vm7, %v2060_v22, %v2056_v35  ;;  %v2208_v52 = vrot.slane %v1610_v16, %v3910_v4  ;;  %v1972_v23 = vsel %vm1874_vm5, %v1971_v55, %v1967_v36  ;;  %v2194_v32 = vsel %vm1853_vm2, %v2193_v30, %v2189_v62  ;;  %v4641_v6 = vld [vmem:[#allocation23_spill] sm:$0xff]  ;;  %v4642_v16 = vld [vmem:[#allocation14_spill] sm:$0xff] }
 0x32b   : > { %v2065_v27 = vrot.slane %v1523_v34, %v3958_v14  ;;  %1765 = vperm.xlu1 %2979, %v4635_v49   ;;  %1723 = vperm.xlu0 %2978, %v4636_v12   ;;  %v2337_v44 = vrot.slane %v4639_v59, %v3866_v2  ;;  %v2267_v50 = vrot.slane %v4640_v26, %v3873_v13  ;;  %v4643_v30 = vld [vmem:[#allocation19_spill] sm:$0xff]  ;;  %v4647_v59 = vld [vmem:[#allocation41_spill] sm:$0xff] }
 0x32c   : > { %v2341_v61 = vrot.slane %v4641_v6, %v3870_v9  ;;  %v2199_v22 = vsel %vm1860_vm3, %v2198_v5, %v2194_v32  ;;  %v2346_v34 = vrot.slane %v4642_v16, %v3873_v13  ;;  %v2351_v35 = vrot.slane %v4643_v30, %v3887_v33 }
 0x32d   : > { %v4094_v43 = vsel %vm1895_vm9, %v2065_v27, %v2061_v53  ;;  %v2204_v62 = vsel %vm1867_vm4, %v2203_v24, %v2199_v22  ;;  %v4644_v27 = vld [vmem:[#allocation37_spill] sm:$0xff]  ;;  %v2263_v5 = vsel %vm1839_vm0, %v2262_v1, %v2258_v20  ;;  %v2120_v12 = vsel %vm1860_vm3, %v2119_v48, %v2115_v45  ;;  %v4646_v53 = vld [vmem:[#allocation26_spill] sm:$0xff] }
 0x32e   : > { %v1793_v55 = vpop.permute.xlu1 %1792  ;;  %v1613_v36 = vpop.permute.xlu0 %1612  ;;  %v4645_v49 = vsub.f32 %v4591_v7, %v4644_v27  ;;  %v2209_v0 = vsel %vm1874_vm5, %v2208_v52, %v2204_v62  ;;  %v2356_v24 = vrot.slane %v1700_v37, %v3890_v54  ;;  %v2342_v41 = vsel %vm1839_vm0, %v2341_v61, %v2337_v44  ;;  %v4648_v48 = vld [vmem:[#allocation34_spill] sm:$0xff]  ;;  %v4653_v62 = vld [vmem:[#allocation44_spill] sm:$0xff] }
 0x32f   : > { %v2213_v56 = vrot.slane %v1613_v36, %v3917_v47  ;;  %1816 = vperm.xlu0 %2978, %v1246_v38   ;;  %v2124_v32 = vrot.slane %v4646_v53, %v3901_v58  ;;  %v2499_v26 = vrot.slane %v4647_v59, %v3870_v9  ;;  %v2268_v8 = vsel %vm1846_vm1, %v2267_v50, %v2263_v5 }
 0x330   : > { %1588 = vperm.xlu1 %2979, %v4645_v49   ;;  %v2347_v38 = vsel %vm1846_vm1, %v2346_v34, %v2342_v41  ;;  %v2129_v1 = vrot.slane %v3892_v17, %v3910_v4  ;;  %v2504_v45 = vrot.slane %v3894_v60, %v3873_v13  ;;  %v2495_v52 = vrot.slane %v4648_v48, %v3866_v2  ;;  %v4651_v17 = vld [vmem:[#allocation6_spill] sm:$0xff]  ;;  %v4652_v34 = vld [vmem:[#allocation17_spill] sm:$0xff] }
 0x331   : > { %v4123_v6 = vsel %vm1881_vm6, %v2213_v56, %v2209_v0  ;;  %v2352_v9 = vsel %vm1853_vm2, %v2351_v35, %v2347_v38  ;;  %v4649_v50 = vsub.f32 %v4561_v39, %v3455_v18  ;;  %v4650_v61 = vsub.f32 %v4574_v40, %v3449_v42 }
 0x332   : > { %v1478_v37 = vpop.permute.xlu1 %1477  ;;  %v1703_v20 = vpop.permute.xlu0 %1702  ;;  %v1976_v60 = vrot.slane %v4651_v17, %v3917_v47  ;;  %v2134_v13 = vrot.slane %v3960_v29, %v3917_v47  ;;  %v2357_v2 = vsel %vm1860_vm3, %v2356_v24, %v2352_v9  ;;  %v2509_v22 = vrot.slane %v1793_v55, %v3887_v33  ;;  %v4660_v9 = vld [vmem:[#allocation52_spill] sm:$0xff] }
 0x333   : > { %v2361_v44 = vrot.slane %v1703_v20, %v3901_v58  ;;  %1681 = vperm.xlu0 %2978, %v4650_v61   ;;  %v2125_v16 = vsel %vm1867_vm4, %v2124_v32, %v2120_v12  ;;  %v2272_v18 = vrot.slane %v4652_v34, %v3887_v33  ;;  %v2500_v36 = vsel %vm1839_vm0, %v2499_v26, %v2495_v52  ;;  %v4662_v34 = vld [vmem:[#allocation53_spill] sm:$0xff] }
 0x334   : > { %1678 = vperm.xlu1 %2979, %v4649_v50   ;;  %v1981_v30 = vrot.slane %v4653_v62, %v3920_v21  ;;  %v2130_v35 = vsel %vm1874_vm5, %v2129_v1, %v2125_v16  ;;  %v2505_v29 = vsel %vm1846_vm1, %v2504_v45, %v2500_v36  ;;  %v2277_v55 = vrot.slane %v3928_v28, %v3890_v54  ;;  %v4661_v50 = vld [vmem:[#allocation54_spill] sm:$0xff]  ;;  %v4663_v36 = vld [vmem:[#allocation55_spill] sm:$0xff] }
 0x335   : > { %v4152_v42 = vsel %vm1867_vm4, %v2361_v44, %v2357_v2  ;;  %v1986_v33 = vrot.slane %v3931_v57, %v3958_v14  ;;  %v4654_v12 = vsub.f32 %v4542_v25, %v3592_v11  ;;  %v4655_v0 = vsub.f32 %v4548_v31, %v3600_v3 }
 0x336   : > { %v1568_v56 = vpop.permute.xlu1 %1567  ;;  %v1796_v27 = vpop.permute.xlu0 %1795  ;;  %v2135_v24 = vsel %vm1881_vm6, %v2134_v13, %v2130_v35  ;;  %v2282_v28 = vrot.slane %v3991_v63, %v3901_v58  ;;  %v2510_v41 = vsel %vm1853_vm2, %v2509_v22, %v2505_v29  ;;  %v1991_v57 = vrot.slane %v1478_v37, %v3979_v51  ;;  %v4658_v37 = vld [vmem:[#allocation50_spill] sm:$0xff] }
 0x337   : > { %v2139_v49 = vrot.slane %v1568_v56, %v3920_v21  ;;  %v2514_v5 = vrot.slane %v1796_v27, %v3890_v54  ;;  %1771 = vperm.xlu0 %2978, %v4655_v0   ;;  %v1977_v53 = vsel %vm1881_vm6, %v1976_v60, %v1972_v23  ;;  %v2273_v32 = vsel %vm1853_vm2, %v2272_v18, %v2268_v8  ;;  %v4656_v8 = vld [vmem:[#allocation47_spill] sm:$0xff]  ;;  %v4664_v27 = vld [vmem:[#allocation8_spill] sm:$0xff] }
 0x338   : > { %1768 = vperm.xlu1 %2979, %v4654_v12   ;;  %v1982_v3 = vsel %vm1888_vm7, %v1981_v30, %v1977_v53  ;;  %v2278_v59 = vsel %vm1860_vm3, %v2277_v55, %v2273_v32  ;;  %v4657_v45 = vsub.f32 %v4591_v7, %v4656_v8  ;;  %v4659_v20 = vsub.f32 %v4591_v7, %v4658_v37  ;;  %v4666_v12 = vld [vmem:[#allocation57_spill] sm:$0xff]  ;;  %v4667_v32 = vld [vmem:[#allocation10_spill] sm:$0xff]  ;;  %v4669_v8 = vld [vmem:[#allocation56_spill] sm:$0xff] }
 0x339   : > { %v2140_v11 = vsel %vm1888_vm7, %v2139_v49, %v2135_v24  ;;  %v4179_v25 = vsel %vm1860_vm3, %v2514_v5, %v2510_v41  ;;  %v1987_v38 = vsel %vm1895_vm9, %v1986_v33, %v1982_v3  ;;  %v2283_v48 = vsel %vm1867_vm4, %v2282_v28, %v2278_v59  ;;  %v4665_v49 = vld [vmem:[#allocation51_spill] sm:$0xff]  ;;  %v4668_v3 = vld [vmem:[#allocation9_spill] sm:$0xff] }
 0x33a   : > { %v1658_v26 = vpop.permute.xlu1 %1657  ;;  %v1481_v63 = vpop.permute.xlu0 %1480  ;;  %v1992_v52 = vsel %vm1902_vm8, %v1991_v57, %v1987_v38  ;;  %v1216_v44 = vsub.f32 %v4561_v39, %v4660_v9  ;;  %v1232_v61 = vsub.f32 %v4561_v39, %v4661_v50  ;;  %v1218_v18 = vsub.f32 %v4591_v7, %v4662_v34  ;;  %v4670_v9 = vld [vmem:[#allocation22_spill] sm:$0xff] }
 0x33b   : > { %v2287_v1 = vrot.slane %v1658_v26, %v3910_v4  ;;  %v1996_v23 = vrot.slane %v1481_v63, %v3982_v19  ;;  %1684 = vperm.xlu0 %2978, %v4659_v20   ;;  %v1247_v62 = vsub.f32 %v4548_v31, %v4663_v36  ;;  %v1911_v33 = vadd.s32 4294967200, %v4664_v27 }
 0x33c   : > { %1636 = vperm.xlu1 %2979, %v4657_v45   ;;  %v1217_v5 = vsub.f32 %v4574_v40, %v4665_v49  ;;  %v1249_v31 = vsub.f32 %v4574_v40, %v4666_v12  ;;  %v1250_v59 = vsub.f32 %v4591_v7, %v4668_v3  ;;  %vm2573_vm0 = vcmask 1042434  }
 0x33d   : > { %v2288_v17 = vsel %vm1874_vm5, %v2287_v1, %v2283_v48  ;;  %v4200_v60 = vsel %vm1909_vm10, %v1996_v23, %v1992_v52  ;;  %v4224_v53 = vsub.s32 %v1911_v33, %v4609_v46  ;;  %vm2575_vm1 = vcmask 1043459  }
 0x33e   : > { %v1748_v13 = vpop.permute.xlu1 %1747  ;;  %v1571_v2 = vpop.permute.xlu0 %1570  ;;  %vm2577_vm2 = vcmask 1044484  }
 0x33f   : > { %v2435_v22 = vrot.slane %v1748_v13, %v3890_v54  ;;  %v2144_v16 = vrot.slane %v1571_v2, %v3958_v14  ;;  %1774 = vperm.xlu0 %2978, %v1232_v61  }
 0x340   : > { %1726 = vperm.xlu1 %2979, %v1216_v44   ;;  %v1234_v44 = vsub.f32 %v4591_v7, %v4670_v9 }
 0x341   : > { %v2436_v30 = vsel %vm1860_vm3, %v2435_v22, %v4036_v15  ;;  %v2145_v35 = vsel %vm1895_vm9, %v2144_v16, %v2140_v11  ;;  %v1248_v11 = vsub.f32 %v4561_v39, %v4667_v32  ;;  %v1233_v39 = vsub.f32 %v4574_v40, %v4669_v8 }
 0x342   : > { %v1433_v29 = vpop.permute.xlu1 %1432  ;;  %v1661_v55 = vpop.permute.xlu0 %1660  ;;  %vm2579_vm3 = vcmask 1045509  }
 0x343   : > { %v1908_v56 = vrot.slane %v1433_v29, %v3982_v19  ;;  %v2292_v54 = vrot.slane %v1661_v55, %v3917_v47  ;;  %1732 = vperm.xlu0 %2978, %v1218_v18   ;;  %v1918_v18 = vadd.s32 4294967192, %v4664_v27 }
 0x344   : > { %1819 = vperm.xlu1 %2979, %v1247_v62  }
 0x345   : > { %v1910_v15 = vsel %vm1909_vm10, %v1908_v56, %v4066_v10  ;;  %v2293_v0 = vsel %vm1881_vm6, %v2292_v54, %v2288_v17  ;;  %v4261_v55 = vsub.s32 %v1918_v18, %v4609_v46 }
 0x346   : > { %v1526_v24 = vpop.permute.xlu1 %1525  ;;  %v1751_v28 = vpop.permute.xlu0 %1750 }
 0x347   : > { %v2070_v41 = vrot.slane %v1526_v24, %v3979_v51  ;;  %v2440_v57 = vrot.slane %v1751_v28, %v3901_v58  ;;  %1825 = vperm.xlu0 %2978, %v1249_v31  }
 0x348   : > { %1729 = vperm.xlu1 %2979, %v1217_v5  }
 0x349   : > { %v2071_v10 = vsel %vm1902_vm8, %v2070_v41, %v4094_v43  ;;  %v2441_v26 = vsel %vm1867_vm4, %v2440_v57, %v2436_v30 }
 0x34a   : > { %v1616_v63 = vpop.permute.xlu1 %1615  ;;  %v1436_v38 = vpop.permute.xlu0 %1435 }
 0x34b   : > { %v2218_v1 = vrot.slane %v1616_v63, %v3920_v21  ;;  %v1915_v23 = vrot.slane %v1436_v38, %v4224_v53  ;;  %1828 = vperm.xlu0 %2978, %v1250_v59  }
 0x34c   : > { %1822 = vperm.xlu1 %2979, %v1248_v11  }
 0x34d   : > { %v2219_v45 = vsel %vm1888_vm7, %v2218_v1, %v4123_v6  ;;  %v1917_v37 = vsel %vm1916_vm11, %v1915_v23, %v1910_v15 }
 0x34e   : > { %v1706_v43 = vpop.permute.xlu1 %1705  ;;  %v1529_v20 = vpop.permute.xlu0 %1528 }
 0x34f   : > { %v2366_v48 = vrot.slane %v1706_v43, %v3910_v4  ;;  %v2075_v52 = vrot.slane %v1529_v20, %v3982_v19 }
 0x350   : > { %1777 = vperm.xlu1 %2979, %v1233_v39  }
 0x351   : > { %v2367_v50 = vsel %vm1874_vm5, %v2366_v48, %v4152_v42  ;;  %v2076_v40 = vsel %vm1909_vm10, %v2075_v52, %v2071_v10 }
 0x352   : > { %v1799_v61 = vpop.permute.xlu1 %1798  ;;  %v1619_v17 = vpop.permute.xlu0 %1618 }
 0x353   : > { %v2519_v6 = vrot.slane %v1799_v61, %v3901_v58  ;;  %v2223_v13 = vrot.slane %v1619_v17, %v3958_v14 }
 0x354   : > { %1780 = vperm.xlu1 %2979, %v1234_v44  }
 0x355   : > { %v2520_v2 = vsel %vm1867_vm4, %v2519_v6, %v4179_v25  ;;  %v2224_v22 = vsel %vm1895_vm9, %v2223_v13, %v2219_v45  ;;  %vm2581_vm4 = vcmask 1046534  }
 0x356   : > { %v1484_v16 = vpop.permute.xlu1 %1483  ;;  %v1709_v34 = vpop.permute.xlu0 %1708 }
 0x357   : > { %v2001_v7 = vrot.slane %v1484_v16, %v4224_v53  ;;  %v2371_v42 = vrot.slane %v1709_v34, %v3917_v47 }
 0x359   : > { %v2002_v36 = vsel %vm1916_vm11, %v2001_v7, %v4200_v60  ;;  %v2372_v58 = vsel %vm1881_vm6, %v2371_v42, %v2367_v50 }
 0x35a   : > { %v1574_v62 = vpop.permute.xlu1 %1573  ;;  %v1802_v30 = vpop.permute.xlu0 %1801 }
 0x35b   : > { %v2149_v29 = vrot.slane %v1574_v62, %v3979_v51  ;;  %v2524_v25 = vrot.slane %v1802_v30, %v3910_v4 }
 0x35d   : > { %v2150_v56 = vsel %vm1902_vm8, %v2149_v29, %v2145_v35  ;;  %v2525_v54 = vsel %vm1874_vm5, %v2524_v25, %v2520_v2 }
 0x35e   : > { %v1664_v33 = vpop.permute.xlu1 %1663  ;;  %v1487_v49 = vpop.permute.xlu0 %1486 }
 0x35f   : > { %v2297_v60 = vrot.slane %v1664_v33, %v3920_v21  ;;  %v2006_v5 = vrot.slane %v1487_v49, %v4261_v55 }
 0x361   : > { %v2298_v12 = vsel %vm1888_vm7, %v2297_v60, %v2293_v0  ;;  %v2007_v31 = vsel %vm1923_vm12, %v2006_v5, %v2002_v36  ;;  %v1925_v0 = vadd.s32 4294967184, %v4664_v27 }
 0x362   : > { %v1754_v15 = vpop.permute.xlu1 %1753  ;;  %v1577_v24 = vpop.permute.xlu0 %1576 }
 0x363   : > { %v2445_v28 = vrot.slane %v1754_v15, %v3910_v4  ;;  %v2154_v41 = vrot.slane %v1577_v24, %v3982_v19  ;;  %v4281_v23 = vsub.s32 %v1925_v0, %v4609_v46 }
 0x365   : > { %v2446_v35 = vsel %vm1874_vm5, %v2445_v28, %v2441_v26  ;;  %v2155_v57 = vsel %vm1909_vm10, %v2154_v41, %v2150_v56  ;;  %vm1253_vm5 = vcmp.lt.s32.totalorder %v4664_v27, 32 }
 0x366   : > { %v1439_v32 = vpop.permute.xlu1 %1438  ;;  %v1667_v11 = vpop.permute.xlu0 %1666 }
 0x367   : > { %v1922_v3 = vrot.slane %v1439_v32, %v4261_v55  ;;  %v2302_v59 = vrot.slane %v1667_v11, %v3958_v14 }
 0x369   : > { %v1924_v10 = vsel %vm1923_vm12, %v1922_v3, %v1917_v37  ;;  %v2303_v63 = vsel %vm1895_vm9, %v2302_v59, %v2298_v12 }
 0x36a   : > { %v1532_v38 = vpop.permute.xlu1 %1531  ;;  %v1757_v4 = vpop.permute.xlu0 %1756 }
 0x36b   : > { %v2080_v1 = vrot.slane %v1532_v38, %v4224_v53  ;;  %v2450_v26 = vrot.slane %v1757_v4, %v3917_v47 }
 0x36d   : > { %v2081_v8 = vsel %vm1916_vm11, %v2080_v1, %v2076_v40  ;;  %v2451_v39 = vsel %vm1881_vm6, %v2450_v26, %v2446_v35 }
 0x36e   : > { %v1622_v45 = vpop.permute.xlu1 %1621  ;;  %v1442_v43 = vpop.permute.xlu0 %1441 }
 0x36f   : > { %v2228_v37 = vrot.slane %v1622_v45, %v3979_v51  ;;  %v1929_v20 = vrot.slane %v1442_v43, %v4281_v23 }
 0x371   : > { %v2229_v48 = vsel %vm1902_vm8, %v2228_v37, %v2224_v22  ;;  %v1931_v52 = vsel %vm1930_vm13, %v1929_v20, %v1924_v10 }
 0x372   : > { %v1712_v9 = vpop.permute.xlu1 %1711  ;;  %v1535_v44 = vpop.permute.xlu0 %1534 }
 0x373   : > { %v2376_v50 = vrot.slane %v1712_v9, %v3920_v21  ;;  %v2085_v61 = vrot.slane %v1535_v44, %v4261_v55 }
 0x375   : > { %v2377_v40 = vsel %vm1888_vm7, %v2376_v50, %v2372_v58  ;;  %v2086_v17 = vsel %vm1923_vm12, %v2085_v61, %v2081_v8  ;;  %v1932_v58 = vadd.s32 4294967176, %v4664_v27 }
 0x376   : > { %v1805_v6 = vpop.permute.xlu1 %1804  ;;  %v1625_v13 = vpop.permute.xlu0 %1624 }
 0x377   : > { %v2529_v2 = vrot.slane %v1805_v6, %v3917_v47  ;;  %v2233_v16 = vrot.slane %v1625_v13, %v3982_v19 }
 0x379   : > { %v2530_v22 = vsel %vm1881_vm6, %v2529_v2, %v2525_v54  ;;  %v4297_v34 = vsel %vm1909_vm10, %v2233_v16, %v2229_v48  ;;  %v4309_v54 = vsub.s32 %v1932_v58, %v4609_v46  ;;  %vm2591_vm6 = vcmask 1040384  }
 0x37a   : > { %v1490_v7 = vpop.permute.xlu1 %1489  ;;  %v1715_v42 = vpop.permute.xlu0 %1714 }
 0x37b   : > { %v2011_v18 = vrot.slane %v1490_v7, %v4281_v23  ;;  %v2381_v36 = vrot.slane %v1715_v42, %v3958_v14 }
 0x37d   : > { %v2012_v62 = vsel %vm1930_vm13, %v2011_v18, %v2007_v31  ;;  %v4304_v30 = vsel %vm1895_vm9, %v2381_v36, %v2377_v40 }
 0x37e   : > { %v1580_v47 = vpop.permute.xlu1 %1579  ;;  %v1808_v29 = vpop.permute.xlu0 %1807 }
 0x37f   : > { %v2159_v25 = vrot.slane %v1580_v47, %v4224_v53  ;;  %v2534_v56 = vrot.slane %v1808_v29, %v3920_v21 }
 0x381   : > { %v2160_v33 = vsel %vm1916_vm11, %v2159_v25, %v2155_v57  ;;  %v4313_v49 = vsel %vm1888_vm7, %v2534_v56, %v2530_v22 }
 0x382   : > { %v1670_v60 = vpop.permute.xlu1 %1669  ;;  %v1493_v5 = vpop.permute.xlu0 %1492 }
 0x383   : > { %v2307_v12 = vrot.slane %v1670_v60, %v3979_v51  ;;  %v2016_v31 = vrot.slane %v1493_v5, %v4309_v54 }
 0x385   : > { %v2308_v15 = vsel %vm1902_vm8, %v2307_v12, %v2303_v63  ;;  %v2017_v24 = vsel %vm1937_vm14, %v2016_v31, %v2012_v62 }
 0x386   : > { %v1760_v28 = vpop.permute.xlu1 %1759  ;;  %v1583_v41 = vpop.permute.xlu0 %1582 }
 0x387   : > { %v2455_v46 = vrot.slane %v1760_v28, %v3920_v21  ;;  %v2164_v35 = vrot.slane %v1583_v41, %v4261_v55 }
 0x389   : > { %v4322_v57 = vsel %vm1888_vm7, %v2455_v46, %v2451_v39  ;;  %v2165_v32 = vsel %vm1923_vm12, %v2164_v35, %v2160_v33  ;;  %vm2583_vm7 = vcmask 1047559  }
 0x38a   : > { %v1445_v11 = vpop.permute.xlu1 %1444  ;;  %v1673_v3 = vpop.permute.xlu0 %1672 }
 0x38b   : > { %v1936_v59 = vrot.slane %v1445_v11, %v4309_v54  ;;  %v2312_v36 = vrot.slane %v1673_v3, %v3982_v19 }
 0x38d   : > { %v1938_v0 = vsel %vm1937_vm14, %v1936_v59, %v1931_v52  ;;  %v2313_v56 = vsel %vm1909_vm10, %v2312_v36, %v2308_v15 }
 0x38e   : > { %v2572_v10 = vsel %vm2571_vm15, %v2017_v24, %v1938_v0  ;;  %v1538_v63 = vpop.permute.xlu1 %1537  ;;  %v4327_v38 = vpop.permute.xlu0 %1762 }
 0x38f   : > { %v2090_v21 = vrot.slane %v1538_v63, %v4281_v23 }
 0x391   : > { %v2091_v8 = vsel %vm1930_vm13, %v2090_v21, %v2086_v17 }
 0x392   : > { %v1628_v4 = vpop.permute.xlu1 %1627  ;;  %v1541_v1 = vpop.permute.xlu0 %1540 }
 0x393   : > { %v2095_v26 = vrot.slane %v1541_v1, %v4309_v54  ;;  %v2238_v47 = vrot.slane %v1628_v4, %v4224_v53 }
 0x395   : > { %v2096_v39 = vsel %vm1937_vm14, %v2095_v26, %v2091_v8  ;;  %v2239_v24 = vsel %vm1916_vm11, %v2238_v47, %v4297_v34 }
 0x396   : > { %v2574_v45 = vsel %vm2573_vm0, %v2096_v39, %v2572_v10  ;;  %v1718_v43 = vpop.permute.xlu1 %1717  ;;  %v1631_v37 = vpop.permute.xlu0 %1630 }
 0x397   : > { %v2243_v33 = vrot.slane %v1631_v37, %v4261_v55  ;;  %v2386_v21 = vrot.slane %v1718_v43, %v3979_v51 }
 0x399   : > { %v2244_v46 = vsel %vm1923_vm12, %v2243_v33, %v2239_v24 }
 0x39a   : > { %v4333_v20 = vpop.permute.xlu1 %1810  ;;  %v1721_v48 = vpop.permute.xlu0 %1720 }
 0x39b   : > { %v2391_v4 = vrot.slane %v1721_v48, %v3982_v19  ;;  %v2539_v37 = vrot.slane %v4333_v20, %v3958_v14 }
 0x39e   : > { %v1586_v52 = vpop.permute.xlu1 %1585  ;;  %v4335_v9 = vpop.permute.xlu0 %1813 }
 0x39f   : > { %v2169_v6 = vrot.slane %v1586_v52, %v4281_v23 }
 0x3a1   : > { %v2170_v16 = vsel %vm1930_vm13, %v2169_v6, %v2165_v32 }
 0x3a2   : > { %v1676_v44 = vpop.permute.xlu1 %1675  ;;  %v1634_v50 = vpop.permute.xlu0 %1633 }
 0x3a3   : > { %v2317_v58 = vrot.slane %v1676_v44, %v4224_v53  ;;  %v2248_v5 = vrot.slane %v1634_v50, %v4281_v23  ;;  %v2544_v44 = vrot.slane %v4335_v9, %v3979_v51  ;;  %v2540_v9 = vsel %vm1895_vm9, %v2539_v37, %v4313_v49 }
 0x3a5   : > { %v2318_v60 = vsel %vm1916_vm11, %v2317_v58, %v2313_v56  ;;  %v2249_v32 = vsel %vm1930_vm13, %v2248_v5, %v2244_v46 }
 0x3a6   : > { %v4337_v61 = vpop.permute.xlu1 %1765  ;;  %v1724_v40 = vpop.permute.xlu0 %1723 }
 0x3a7   : > { %v2396_v8 = vrot.slane %v1724_v40, %v4224_v53 }
 0x3aa   : > { %v4340_v17 = vpop.permute.xlu0 %1816 }
 0x3ab   : > { %v1589_v13 = vpop.permute.xlu1 %1588  ;;  %v2549_v40 = vrot.slane %v4340_v17, %v3982_v19  ;;  %v2465_v17 = vrot.slane %v4337_v61, %v3979_v51 }
 0x3ac   : > { %v2174_v2 = vrot.slane %v1589_v13, %v4309_v54 }
 0x3ae   : > { %v2175_v22 = vsel %vm1937_vm14, %v2174_v2, %v2170_v16  ;;  %v1682_v18 = vpop.permute.xlu0 %1681  ;;  %v2460_v2 = vrot.slane %v4327_v38, %v3958_v14 }
 0x3af   : > { %v2576_v7 = vsel %vm2575_vm1, %v2175_v22, %v2574_v45  ;;  %v1679_v42 = vpop.permute.xlu1 %1678  ;;  %v2327_v12 = vrot.slane %v1682_v18, %v4281_v23  ;;  %v2387_v45 = vsel %vm1902_vm8, %v2386_v21, %v4304_v30  ;;  %v2545_v22 = vsel %vm1902_vm8, %v2544_v44, %v2540_v9 }
 0x3b0   : > { %v2322_v62 = vrot.slane %v1679_v42, %v4261_v55  ;;  %v2392_v52 = vsel %vm1909_vm10, %v2391_v4, %v2387_v45  ;;  %v2550_v36 = vsel %vm1909_vm10, %v2549_v40, %v2545_v22  ;;  %v2461_v47 = vsel %vm1895_vm9, %v2460_v2, %v4322_v57 }
 0x3b1   : > { %v2397_v48 = vsel %vm1916_vm11, %v2396_v8, %v2392_v52  ;;  %v2466_v56 = vsel %vm1902_vm8, %v2465_v17, %v2461_v47  ;;  %v2992_v2 = vmov 0.0  }
 0x3b2   : > { %v4351_v25 = vpop.permute.xlu0 %1771  ;;  %v2323_v31 = vsel %vm1923_vm12, %v2322_v62, %v2318_v60 }
 0x3b3   : > { %v4349_v29 = vpop.permute.xlu1 %1768  ;;  %v2328_v11 = vsel %vm1930_vm13, %v2327_v12, %v2323_v31 }
 0x3b4   : > { %v2470_v58 = vrot.slane %v4349_v29, %v3982_v19  ;;  %v2475_v19 = vrot.slane %v4351_v25, %v4224_v53 }
 0x3b6   : > { %v1685_v41 = vpop.permute.xlu0 %1684  ;;  %v2471_v60 = vsel %vm1909_vm10, %v2470_v58, %v2466_v56 }
 0x3b7   : > { %v1637_v28 = vpop.permute.xlu1 %1636  ;;  %v2332_v35 = vrot.slane %v1685_v41, %v4309_v54 }
 0x3b8   : > { %v2253_v15 = vrot.slane %v1637_v28, %v4309_v54  ;;  %v2476_v28 = vsel %vm1916_vm11, %v2475_v19, %v2471_v60 }
 0x3b9   : > { %v2333_v59 = vsel %vm1937_vm14, %v2332_v35, %v2328_v11 }
 0x3ba   : > { %v2254_v3 = vsel %vm1937_vm14, %v2253_v15, %v2249_v32  ;;  %v1775_v10 = vpop.permute.xlu0 %1774 }
 0x3bb   : > { %v2578_v0 = vsel %vm2577_vm2, %v2254_v3, %v2576_v7  ;;  %v1727_v34 = vpop.permute.xlu1 %1726  ;;  %v2480_v5 = vrot.slane %v1775_v10, %v4261_v55 }
 0x3bc   : > { %v2580_v63 = vsel %vm2579_vm3, %v2333_v59, %v2578_v0  ;;  %v2401_v39 = vrot.slane %v1727_v34, %v4261_v55 }
 0x3bd   : > { %v2481_v25 = vsel %vm1923_vm12, %v2480_v5, %v2476_v28 }
 0x3be   : > { %v1733_v26 = vpop.permute.xlu0 %1732  ;;  %v2402_v13 = vsel %vm1923_vm12, %v2401_v39, %v2397_v48 }
 0x3bf   : > { %v1820_v1 = vpop.permute.xlu1 %1819  ;;  %v2411_v20 = vrot.slane %v1733_v26, %v4309_v54 }
 0x3c0   : > { %v2554_v30 = vrot.slane %v1820_v1, %v4224_v53 }
 0x3c2   : > { %v1826_v50 = vpop.permute.xlu0 %1825  ;;  %v2555_v49 = vsel %vm1916_vm11, %v2554_v30, %v2550_v36  ;;  %v2991_v30 = vmov 1.0  }
 0x3c3   : > { %v1730_v43 = vpop.permute.xlu1 %1729  ;;  %v2564_v62 = vrot.slane %v1826_v50, %v4281_v23 }
 0x3c4   : > { %v2406_v6 = vrot.slane %v1730_v43, %v4281_v23 }
 0x3c6   : > { %v2407_v16 = vsel %vm1930_vm13, %v2406_v6, %v2402_v13  ;;  %v1829_v42 = vpop.permute.xlu0 %1828 }
 0x3c7   : > { %v1823_v7 = vpop.permute.xlu1 %1822  ;;  %v2412_v18 = vsel %vm1937_vm14, %v2411_v20, %v2407_v16  ;;  %v2569_v61 = vrot.slane %v1829_v42, %v4309_v54 }
 0x3c8   : > { %v2559_v14 = vrot.slane %v1823_v7, %v4261_v55  ;;  %v2582_v38 = vsel %vm2581_vm4, %v2412_v18, %v2580_v63 }
 0x3ca   : > { %v2560_v51 = vsel %vm1923_vm12, %v2559_v14, %v2555_v49 }
 0x3cb   : > { %v1778_v29 = vpop.permute.xlu1 %1777  ;;  %v2565_v33 = vsel %vm1930_vm13, %v2564_v62, %v2560_v51  ;;  %v2981_v51 = vld [vmem:[%s3066_s30] sm:$0xff] }
 0x3cc   : > { %v2570_v57 = vsel %vm1937_vm14, %v2569_v61, %v2565_v33  ;;  %v2485_v12 = vrot.slane %v1778_v29, %v4281_v23 }
 0x3cd   : > { %v2588_v31 = vsel %vm1253_vm5, %v2570_v57, 1e+30 }
 0x3ce   : > { %v2592_v24 = vsel %vm2591_vm6, %v2588_v31, inf  ;;  %v2486_v55 = vsel %vm1930_vm13, %v2485_v12, %v2481_v25 }
 0x3cf   : > { %v1781_v53 = vpop.permute.xlu1 %1780  ;;  %2593 = vmin.xlane.f32.xlu0 %v2592_v24 }
 0x3d0   : > { %v2490_v41 = vrot.slane %v1781_v53, %v4309_v54 }
 0x3d2   : > { %v2491_v46 = vsel %vm1937_vm14, %v2490_v41, %v2486_v55  ;;  %vm2737_vm14 = vcmask 0  }
 0x3d3   : > { %v2584_v15 = vsel %vm2583_vm7, %v2491_v46, %v2582_v38  ;;  %v2980_v38 = vld [vmem:[%s3066_s30 + $0x8] sm:$0x1]  ;;  %s214_s30 = scalar_lea.vmem %s4454_s4, %s4672_s16 }
 0x3d4   : > { %v2587_v23 = vsel %vm1253_vm5, %v2584_v15, 1e+30 }
 0x3d5   : > { %2589 = vmin.xlane.f32.xlu1 %v2587_v23 }
 0x458   : > { %v2594_v35 = vpop.xlane.xlu0 %2593 }
 0x459   : > { %vm2596_vm8 = vcmp.eq.f32.partialorder %v2588_v31, %v2594_v35 }
 0x45a   : > { %v2598_v32 = vsel %vm2596_vm8, %v4664_v27, 128 }
 0x45b   : > { %v2613_v3 = vsel %vm2591_vm6, %v2598_v32, 2147483647 }
 0x45c   : > { %v2615_v0 = vshra.s32 %v2613_v3, 16  ;;  %v2614_v21 = vand.u32 65535, %v2613_v3 }
 0x45e   : > { %v2590_v11 = vpop.xlane.xlu1 %2589  ;;  %v2617_v10 = vcvt.s32.f32 %v2615_v0  ;;  %v2616_v39 = vcvt.s32.f32 %v2614_v21 }
 0x45f   : > { %vm2595_vm9 = vcmp.eq.f32.partialorder %v2587_v23, %v2590_v11 }
 0x460   : > { %v2597_v54 = vsel %vm2595_vm9, %v4664_v27, 128 }
 0x461   : > { %v2600_v59 = vshra.s32 %v2597_v54, 16  ;;  %v2599_v63 = vand.u32 65535, %v2597_v54 }
 0x463   : > { %v2602_v34 = vcvt.s32.f32 %v2600_v59  ;;  %v2601_v4 = vcvt.s32.f32 %v2599_v63 }
 0x465   : > { %2603 = vmin.xlane.f32.xlu0 %v2602_v34 }
 0x469   : > { %2618 = vmin.xlane.f32.xlu0 %v2617_v10 }
 0x4ee   : > { %v2604_v1 = vpop.xlane.xlu0 %2603 }
 0x4ef   : > { %vm2605_vm10 = vcmp.eq.f32.partialorder %v2602_v34, %v2604_v1  ;;  %v2610_v37 = vcvt.f32.s32 %v2604_v1 }
 0x4f0   : > { %v2606_v26 = vsel %vm2605_vm10, %v2601_v4, inf }
 0x4f1   : > { %2607 = vmin.xlane.f32.xlu1 %v2606_v26  ;;  %v2611_v44 = vshll.u32 %v2610_v37, 16 }
 0x4f2   : > { %v2619_v8 = vpop.xlane.xlu0 %2618 }
 0x4f3   : > { %vm2620_vm11 = vcmp.eq.f32.partialorder %v2617_v10, %v2619_v8  ;;  %v2625_v43 = vcvt.f32.s32 %v2619_v8 }
 0x4f4   : > { %v2621_v45 = vsel %vm2620_vm11, %v2616_v39, inf }
 0x4f5   : > { %2622 = vmin.xlane.f32.xlu0 %v2621_v45  ;;  %v2626_v6 = vshll.u32 %v2625_v43, 16 }
 0x57a   : > { %v2608_v52 = vpop.xlane.xlu1 %2607 }
 0x57b   : > { %v2609_v50 = vcvt.f32.s32 %v2608_v52 }
 0x57d   : > { %v2612_v48 = vadd.s32 %v2611_v44, %v2609_v50 }
 0x57e   : > { %v2623_v40 = vpop.xlane.xlu0 %2622 }
 0x57f   : > { %v2624_v13 = vcvt.f32.s32 %v2623_v40  ;;  %vm2628_vm12 = vcmp.eq.s32.totalorder %v4664_v27, %v2612_v48 }
 0x580   : > { %2964 = vmatprep.mubr.msk.f32.mxu1 %vm2628_vm12, %v2991_v30  ;;  %v2853_v16 = vsel %vm2628_vm12, 1.0, %v2992_v2 }
 0x581   : > { %v2627_v20 = vadd.s32 %v2626_v6, %v2624_v13 }
 0x583   : > { %vm2629_vm13 = vcmp.eq.s32.totalorder %v4664_v27, %v2627_v20 }
 0x584   : > { %v2854_v9 = vsel %vm2629_vm13, 1.0, %v2992_v2  ;;  %2965 = vmatmul.mubr.msk.f32.vlgmr.msra.gmra.mxu1 %vm2629_vm13, %v2991_v30 }
 0x585   : > { %v2711_v22 = vsel %vm2591_vm6, %v2854_v9, 0.0 }
 0x586   : > { %v2712_v17 = vadd.f32 %v2853_v16, %v2711_v22 }
 0x588   : > { %v2713_v7 = vrot.slane %v2712_v17, 4 }
 0x58a   : > { %v2714_v42 = vadd.f32 %v2713_v7, %v2712_v17 }
 0x58c   : > { %v2715_v18 = vrot.slane %v2714_v42, 2 }
 0x58e   : > { %v2716_v36 = vadd.f32 %v2715_v18, %v2714_v42 }
 0x590   : > { %v2717_v58 = vrot.slane %v2716_v36, 1 }
 0x592   : > { %v2718_v14 = vadd.f32 %v2717_v58, %v2716_v36 }
 0x594   : > { %2719 = vst [vmem:[%s211_s7] sm:$0x1] %v2718_v14 }
 0x644   : > { %v2966_v27 = vpop.f32.mrf.mxu1 }
 0x645   : > { %v2721_v49 = vsub.f32 %v2966_v27, %v2980_v38  ;;  %2710 = vst [vmem:[%s208_s10 + $0x8] sm:$0x1] %v2966_v27 }
 0x646   : > { %v2700_v62 = vpop.f32.mrf.mxu1 }
 0x647   : > { %v2723_v47 = vmul.f32 %v2721_v49, %v2721_v49  ;;  %2709 = vst [vmem:[%s208_s10] sm:$0xff] %v2700_v62  ;;  %v2720_v61 = vsub.f32 %v2700_v62, %v2981_v51 }
 0x649   : > { %v2722_v56 = vmul.f32 %v2720_v61, %v2720_v61  ;;  %v2726_v19 = vsel %vm2591_vm6, %v2723_v47, 0.0 }
 0x64a   : > { %2727 = vadd.xlane.f32.xlu1 %v2726_v19 }
 0x64b   : > { %2724 = vadd.xlane.f32.xlu0 %v2722_v56 }
 0x6d3   : > { %v2728_v29 = vpop.xlane.xlu1 %2727 }
 0x6d4   : > { %v2729_v33 = vsel %vm2591_vm6, %v2728_v29, 0.0  ;;  %v2725_v60 = vpop.xlane.xlu0 %2724 }
 0x6d5   : > { %v2730_v5 = vadd.f32 %v2729_v33, %v2725_v60 }
 0x6d7   : > { %v2731_v57 = vrot.slane %v2730_v5, 4 }
 0x6d9   : > { %v2732_v12 = vadd.f32 %v2731_v57, %v2730_v5 }
 0x6db   : > { %v2733_v31 = vrot.slane %v2732_v12, 2 }
 0x6dd   : > { %v2734_v24 = vadd.f32 %v2733_v31, %v2732_v12 }
 0x6df   : > { %v2735_v28 = vrot.slane %v2734_v24, 1 }
 0x6e1   : > { %v2736_v53 = vadd.f32 %v2735_v28, %v2734_v24 }
 0x6e3   : > { %2738 = vst.msk [vmem:[%s214_s30] sm:$0x1] %vm2737_vm14, %v2736_v53 }
 0x6e4 PF: > { %s15_s15 = sadd.s32 1, %s2988_s15  }
 0x6e5   : > { %p12_p4 = scmp.ge.s32.totalorder %s15_s15, 4  }
 0x6e7   :  { %14 = sbr.rel (!%p12_p4) target bundleno = 1 (0x1), region = 82 }

// kernel: _lambda_.10
= control target key start
LH: loop header
LB: loop body
LE: loop exit
PB: predicated region body
PF: predicated region fallthrough
CT: control target
= control target key end

     0   :  { %s5020_s15 = smov 0   ;;  %s7849_s0 = inlined_call_operand.vmem [shape: f32[2,17,128], index: 0, kind: input, shape index: {}]   ;;  %s7850_s1 = inlined_call_operand.vmem [shape: f32[128,128], index: 1, kind: input, shape index: {}]   ;;  %s7851_s2 = inlined_call_operand.vmem [shape: f32[2,17,128], index: 2, kind: output, shape index: {0}]   ;;  %s7852_s3 = inlined_call_operand.vmem [shape: f32[2,1,128], index: 3, kind: output, shape index: {1}]   ;;  %s7853_s4 = inlined_call_operand.vmem [shape: f32[2,1,1], index: 4, kind: output, shape index: {2}]  }
   0x1 LB: > { %s4830_s16 = sadd.s32 4294967295, %s4989_s15   ;;  %p4834_p0 = scmp.ge.s32.totalorder %s4989_s15, 1  ;;  %s4989_s15 = sphi %s5020_s15, %s15_s15  }
   0x2   : > { %p167_p1 = scmp.lt.s32.totalorder %s4989_s15, 3 }
   0x4   : > { %p168_p2 = pnand %p4834_p0, %p167_p1 }
   0x6   : > { %171 = sbr.rel (%p168_p2) target bundleno = 2279 (0x8e7), region = 28 }
   0xb   : > { %v5031_v0 = vld [vmem:[%s7850_s1 + $0x78] sm:$0xff]  ;;  %v7854_v1 = vmov 0.0   ;;  %vm7917_vm0 = vmmov 0   ;;  %v5042_v2 = vld [vmem:[%s7850_s1 + $0x70] sm:$0xff]  ;;  %v5056_v4 = vld [vmem:[%s7850_s1] sm:$0xff]  ;;  %p199_p3 = scmp.lt.s32.totalorder %s4830_s16, 1  ;;  %v7856_v35 = vlaneseq }
   0xc   : > { %4883 = vmatprep.subr.mxu0 %v7854_v1  ;;  %4915 = vmatprep.mubr.msk.f32.mxu0 %vm7917_vm0, %v7854_v1  ;;  %v5048_v3 = vld [vmem:[%s7850_s1 + $0x10] sm:$0xff]  ;;  %v5065_v6 = vld [vmem:[%s7850_s1 + $0x18] sm:$0xff]  ;;  %v314_v7 = vmul.f32 %v5056_v4, %v5056_v4  ;;  %v231_v8 = vld [vmem:[%s7850_s1 + $0x68] sm:$0xff]  ;;  %v329_v31 = vmul.f32 %v5031_v0, %v5031_v0  ;;  %v328_v32 = vmul.f32 %v5042_v2, %v5042_v2  ;;  %vm3151_vm1 = vcmask 130112  }
   0xd   : > { %4884 = vmatpush3.xpose.msra.mxu0 %v5031_v0  ;;  %4924 = vmatprep.subr.mxu1 %v7854_v1  ;;  %v316_v5 = vmul.f32 %v5048_v3, %v5048_v3  ;;  %v5077_v9 = vld [vmem:[%s7850_s1 + $0x8] sm:$0xff]  ;;  %v317_v10 = vmul.f32 %v5065_v6, %v5065_v6  ;;  %v230_v12 = vld [vmem:[%s7850_s1 + $0x60] sm:$0xff]  ;;  %v229_v16 = vld [vmem:[%s7850_s1 + $0x58] sm:$0xff]  ;;  %v327_v29 = vmul.f32 %v231_v8, %v231_v8  ;;  %s8799_s16 = smov (!%p199_p3, %s4830_s16), 1  ;;  %v5181_v36 = vshrl.u32 %v7856_v35, 7 }
   0xe   : > { %4885 = vmatprep.subr.mxu0 %v7854_v1  ;;  %4925 = vmatpush3.msra.mxu1 %v5031_v0  ;;  %v315_v11 = vmul.f32 %v5077_v9, %v5077_v9  ;;  %v5090_v13 = vld [vmem:[%s7850_s1 + $0x28] sm:$0xff]  ;;  %v5096_v14 = vld [vmem:[%s7850_s1 + $0x20] sm:$0xff]  ;;  %v225_v18 = vld [vmem:[%s7850_s1 + $0x38] sm:$0xff]  ;;  %v325_v27 = vmul.f32 %v229_v16, %v229_v16  ;;  %v326_v30 = vmul.f32 %v230_v12, %v230_v12  ;;  %s4965_s25 = smul.u32 24, %s8799_s16  ;;  %vm3158_vm2 = vcmask 195712   ;;  %s211_s5 = scalar_lea.vmem %s7852_s3, %s8799_s16 }
   0xf   : > { %4926 = vmatprep.subr.mxu1 %v7854_v1  ;;  %4956 = vmatprep.mubr.msk.f32.mxu1 %vm7917_vm0, %v7854_v1  ;;  %v319_v15 = vmul.f32 %v5090_v13, %v5090_v13  ;;  %v318_v17 = vmul.f32 %v5096_v14, %v5096_v14  ;;  %v228_v19 = vld [vmem:[%s7850_s1 + $0x50] sm:$0xff]  ;;  %v321_v21 = vmul.f32 %v225_v18, %v225_v18  ;;  %v227_v23 = vld [vmem:[%s7850_s1 + $0x48] sm:$0xff]  ;;  %v226_v24 = vld [vmem:[%s7850_s1 + $0x40] sm:$0xff]  ;;  %v5184_v37 = vsub.s32 0, %v5181_v36  ;;  %s214_s11 = scalar_lea.vmem %s7853_s4, %s8799_s16 }
  0x10   : > { %4927 = vmatpush3.msra.mxu1 %v5042_v2  ;;  %334 = vadd.xlane.f32.xlu1 %v316_v5  ;;  %v224_v20 = vld [vmem:[%s7850_s1 + $0x30] sm:$0xff]  ;;  %v323_v25 = vmul.f32 %v227_v23, %v227_v23  ;;  %v322_v26 = vmul.f32 %v226_v24, %v226_v24  ;;  %v324_v28 = vmul.f32 %v228_v19, %v228_v19  ;;  %s5171_s28 = scalar_lea.vmem %s7849_s0, %s4965_s25  ;;  %v7861_v42 = vsub.s32 1, %v5181_v36  ;;  %s208_s8 = scalar_lea.vmem %s7851_s2, %s4965_s25 }
  0x11   : > { %4886 = vmatpush3.xpose.msra.mxu0 %v5042_v2  ;;  %4928 = vmatprep.subr.mxu1 %v7854_v1  ;;  %v320_v22 = vmul.f32 %v224_v20, %v224_v20  ;;  %v215_v33 = vld [vmem:[%s5171_s28] sm:$0xff]  ;;  %v216_v34 = vld [vmem:[%s5171_s28 + $0x8] sm:$0xff]  ;;  %7931 = vst [vmem:[#allocation2_spill] sm:$0xff] %v5181_v36  ;;  %v7860_v44 = vsub.s32 2, %v5181_v36  ;;  %v7859_v54 = vsub.s32 3, %v5181_v36  ;;  %vm3165_vm3 = vcmask 261312  }
  0x12   : > { %4887 = vmatprep.subr.mxu0 %v7854_v1  ;;  %330 = vadd.xlane.f32.xlu0 %v314_v7  ;;  %v217_v35 = vld [vmem:[%s5171_s28 + $0x10] sm:$0x1]  ;;  %vm3172_vm4 = vcmask 326912   ;;  %vm3179_vm5 = vcmask 392512   ;;  %vm7928_vm6 = vcmask 458112   ;;  %vm3193_vm7 = vcmask 523712  }
  0x13   : > { %4929 = vmatpush3.msra.mxu1 %v231_v8  ;;  %vm3200_vm8 = vcmask 589312   ;;  %vm7929_vm9 = vcmask 654912   ;;  %vm3214_vm10 = vcmask 720512   ;;  %vm3221_vm11 = vcmask 786112  }
  0x14   : > { %4930 = vmatprep.subr.mxu1 %v7854_v1  ;;  %336 = vadd.xlane.f32.xlu1 %v317_v10  ;;  %vm3228_vm12 = vcmask 851712   ;;  %vm3235_vm13 = vcmask 917312   ;;  %vm3242_vm14 = vcmask 982912   ;;  %vm3249_vm15 = vcmask 1048512  }
  0x15   : > { %4888 = vmatpush3.xpose.msra.mxu0 %v231_v8  ;;  %4931 = vmatpush3.msra.mxu1 %v230_v12 }
  0x16   : > { %4889 = vmatprep.subr.mxu0 %v7854_v1  ;;  %332 = vadd.xlane.f32.xlu0 %v315_v11 }
  0x17   : > { %4932 = vmatprep.subr.mxu1 %v7854_v1 }
  0x18   : > { %4933 = vmatpush3.msra.mxu1 %v229_v16  ;;  %340 = vadd.xlane.f32.xlu1 %v319_v15 }
  0x19   : > { %4890 = vmatpush3.xpose.msra.mxu0 %v230_v12  ;;  %4934 = vmatprep.subr.mxu1 %v7854_v1 }
  0x1a   : > { %4891 = vmatprep.subr.mxu0 %v7854_v1  ;;  %338 = vadd.xlane.f32.xlu0 %v318_v17 }
  0x1b   : > { %4935 = vmatpush3.msra.mxu1 %v228_v19 }
  0x1c   : > { %4936 = vmatprep.subr.mxu1 %v7854_v1  ;;  %344 = vadd.xlane.f32.xlu1 %v321_v21 }
  0x1d   : > { %4892 = vmatpush3.xpose.msra.mxu0 %v229_v16  ;;  %4937 = vmatpush3.msra.mxu1 %v227_v23 }
  0x1e   : > { %4893 = vmatprep.subr.mxu0 %v7854_v1  ;;  %342 = vadd.xlane.f32.xlu0 %v320_v22 }
  0x1f   : > { %4938 = vmatprep.subr.mxu1 %v7854_v1 }
  0x20   : > { %4939 = vmatpush3.msra.mxu1 %v226_v24  ;;  %348 = vadd.xlane.f32.xlu1 %v323_v25 }
  0x21   : > { %4894 = vmatpush3.xpose.msra.mxu0 %v228_v19  ;;  %4940 = vmatprep.subr.mxu1 %v7854_v1 }
  0x22   : > { %4895 = vmatprep.subr.mxu0 %v7854_v1  ;;  %346 = vadd.xlane.f32.xlu0 %v322_v26 }
  0x23   : > { %4941 = vmatpush3.msra.mxu1 %v225_v18 }
  0x24   : > { %4942 = vmatprep.subr.mxu1 %v7854_v1  ;;  %352 = vadd.xlane.f32.xlu1 %v325_v27 }
  0x25   : > { %4896 = vmatpush3.xpose.msra.mxu0 %v227_v23  ;;  %4943 = vmatpush3.msra.mxu1 %v224_v20  ;;  %v7857_v23 = vsub.s32 5, %v5181_v36 }
  0x26   : > { %4897 = vmatprep.subr.mxu0 %v7854_v1  ;;  %350 = vadd.xlane.f32.xlu0 %v324_v28 }
  0x27   : > { %4944 = vmatprep.subr.mxu1 %v7854_v1 }
  0x28   : > { %4945 = vmatpush3.msra.mxu1 %v5090_v13  ;;  %356 = vadd.xlane.f32.xlu1 %v327_v29 }
  0x29   : > { %4898 = vmatpush3.xpose.msra.mxu0 %v226_v24  ;;  %4946 = vmatprep.subr.mxu1 %v7854_v1 }
  0x2a   : > { %4899 = vmatprep.subr.mxu0 %v7854_v1  ;;  %354 = vadd.xlane.f32.xlu0 %v326_v30 }
  0x2b   : > { %4947 = vmatpush3.msra.mxu1 %v5096_v14 }
  0x2c   : > { %4948 = vmatprep.subr.mxu1 %v7854_v1  ;;  %360 = vadd.xlane.f32.xlu1 %v329_v31 }
  0x2d   : > { %4900 = vmatpush3.xpose.msra.mxu0 %v225_v18  ;;  %4949 = vmatpush3.msra.mxu1 %v5065_v6 }
  0x2e   : > { %4901 = vmatprep.subr.mxu0 %v7854_v1  ;;  %358 = vadd.xlane.f32.xlu0 %v328_v32 }
  0x2f   : > { %4950 = vmatprep.subr.mxu1 %v7854_v1 }
  0x30   : > { %4951 = vmatpush3.msra.mxu1 %v5048_v3 }
  0x31   : > { %4902 = vmatpush3.xpose.msra.mxu0 %v224_v20  ;;  %4952 = vmatprep.subr.mxu1 %v7854_v1 }
  0x32   : > { %4903 = vmatprep.subr.mxu0 %v7854_v1  ;;  %4953 = vmatpush3.msra.mxu1 %v5077_v9 }
  0x33   : > { %4954 = vmatprep.subr.mxu1 %v7854_v1 }
  0x34   : > { %4955 = vmatpush3.msra.mxu1 %v5056_v4 }
  0x35   : > { %4904 = vmatpush3.xpose.msra.mxu0 %v5090_v13 }
  0x36   : > { %4905 = vmatprep.subr.mxu0 %v7854_v1 }
  0x39   : > { %4906 = vmatpush3.xpose.msra.mxu0 %v5096_v14 }
  0x3a   : > { %4907 = vmatprep.subr.mxu0 %v7854_v1 }
  0x3d   : > { %4908 = vmatpush3.xpose.msra.mxu0 %v5065_v6 }
  0x3e   : > { %4909 = vmatprep.subr.mxu0 %v7854_v1 }
  0x41   : > { %4910 = vmatpush3.xpose.msra.mxu0 %v5048_v3  ;;  %v7858_v3 = vsub.s32 4, %v5181_v36 }
  0x42   : > { %4911 = vmatprep.subr.mxu0 %v7854_v1 }
  0x45   : > { %4912 = vmatpush3.xpose.msra.mxu0 %v5077_v9 }
  0x46   : > { %4913 = vmatprep.subr.mxu0 %v7854_v1 }
  0x49   : > { %4914 = vmatpush3.xpose.msra.mxu0 %v5056_v4 }
  0x4c   : > { %4916 = vmatmul.mubr.f32.vlgmr.msra.gmra.mxu0 %v215_v33 }
  0x4d   : > { %4918 = vmatprep.mubr.msk.f32.mxu0 %vm7917_vm0, %v7854_v1 }
  0x50   : > { %4919 = vmatmul.mubr.f32.gmra.mxu0 %v216_v34 }
  0x51   : > { %4921 = vmatprep.mubr.msk.f32.mxu0 %vm7917_vm0, %v7854_v1  ;;  %vm4515_vm0 = vcmask 1041409  }
  0x54   : > { %4922 = vmatmul.mubr.f32.gmra.mxu0 %v217_v35 }
  0x99   : > { %v5198_v46 = vpop.xlane.xlu1 %334 }
  0x9b   : > { %v5200_v47 = vpop.xlane.xlu0 %330 }
  0x9d   : > { %v5202_v48 = vpop.xlane.xlu1 %336 }
  0x9f   : > { %v5204_v49 = vpop.xlane.xlu0 %332 }
  0xa1   : > { %v5206_v50 = vpop.xlane.xlu1 %340 }
  0xa3   : > { %v5208_v51 = vpop.xlane.xlu0 %338 }
  0xa5   : > { %v5210_v52 = vpop.xlane.xlu1 %344 }
  0xa7   : > { %v5212_v53 = vpop.xlane.xlu0 %342 }
  0xa9   : > { %v5218_v56 = vpop.xlane.xlu1 %348 }
  0xab   : > { %v5220_v57 = vpop.xlane.xlu0 %346 }
  0xac   : > { %7932 = vst [vmem:[#allocation3_spill] sm:$0xff] %v5220_v57 }
  0xad   : > { %v5222_v58 = vpop.xlane.xlu1 %352 }
  0xae   : > { %7933 = vst [vmem:[#allocation4_spill] sm:$0xff] %v5222_v58 }
  0xaf   : > { %v5224_v59 = vpop.xlane.xlu0 %350 }
  0xb1   : > { %v5226_v60 = vpop.xlane.xlu1 %356 }
  0xb3   : > { %v5228_v61 = vpop.xlane.xlu0 %354 }
  0xb5   : > { %v5230_v62 = vpop.xlane.xlu1 %360 }
  0xb7   : > { %v5232_v63 = vpop.xlane.xlu0 %358 }
 0x10c   : > { %v300_v38 = vpop.f32.mrf.mxu0 }
 0x10d   : > { %v5186_v39 = vmul.f32 2.0, %v300_v38 }
 0x10e   : > { %v4917_v40 = vpop.f32.mrf.mxu0 }
 0x10f   : > { %v371_v41 = vrot.slane %v5186_v39, %v5184_v37  ;;  %v438_v43 = vrot.slane %v5186_v39, %v7861_v42  ;;  %v505_v45 = vrot.slane %v5186_v39, %v7860_v44  ;;  %v572_v55 = vrot.slane %v5186_v39, %v7859_v54 }
 0x110   : > { %v5243_v6 = vpop.f32.mrf.mxu0  ;;  %v639_v8 = vrot.slane %v5186_v39, %v7858_v3  ;;  %v706_v26 = vrot.slane %v5186_v39, %v7857_v23 }
 0x111   : > { %377 = vbcast.lane.b32.xlu1 %v371_v41, 264  ;;  %373 = vbcast.lane.b32.xlu0 %v371_v41, 256 }
 0x112   : > { %v4920_v7 = vpop.f32.mrf.mxu0 }
 0x113   : > { %v7862_v7 = vsub.s32 6, %v5181_v36 }
 0x115   : > { %381 = vbcast.lane.b32.xlu1 %v371_v41, 272  ;;  %389 = vbcast.lane.b32.xlu0 %v371_v41, 288  ;;  %v773_v23 = vrot.slane %v5186_v39, %v7862_v7 }
 0x119   : > { %385 = vbcast.lane.b32.xlu1 %v371_v41, 280  ;;  %397 = vbcast.lane.b32.xlu0 %v371_v41, 304 }
 0x11d   : > { %393 = vbcast.lane.b32.xlu1 %v371_v41, 296  ;;  %405 = vbcast.lane.b32.xlu0 %v371_v41, 320 }
 0x121   : > { %401 = vbcast.lane.b32.xlu1 %v371_v41, 312  ;;  %413 = vbcast.lane.b32.xlu0 %v371_v41, 336 }
 0x125   : > { %409 = vbcast.lane.b32.xlu1 %v371_v41, 328  ;;  %421 = vbcast.lane.b32.xlu0 %v371_v41, 352 }
 0x129   : > { %417 = vbcast.lane.b32.xlu1 %v371_v41, 344  ;;  %429 = vbcast.lane.b32.xlu0 %v371_v41, 368 }
 0x12d   : > { %425 = vbcast.lane.b32.xlu1 %v371_v41, 360  ;;  %440 = vbcast.lane.b32.xlu0 %v438_v43, 256 }
 0x131   : > { %433 = vbcast.lane.b32.xlu1 %v371_v41, 376  ;;  %448 = vbcast.lane.b32.xlu0 %v438_v43, 272 }
 0x135   : > { %444 = vbcast.lane.b32.xlu1 %v438_v43, 264  ;;  %456 = vbcast.lane.b32.xlu0 %v438_v43, 288 }
 0x139   : > { %452 = vbcast.lane.b32.xlu1 %v438_v43, 280  ;;  %464 = vbcast.lane.b32.xlu0 %v438_v43, 304 }
 0x13d   : > { %460 = vbcast.lane.b32.xlu1 %v438_v43, 296  ;;  %472 = vbcast.lane.b32.xlu0 %v438_v43, 320 }
 0x141   : > { %468 = vbcast.lane.b32.xlu1 %v438_v43, 312  ;;  %480 = vbcast.lane.b32.xlu0 %v438_v43, 336 }
 0x145   : > { %476 = vbcast.lane.b32.xlu1 %v438_v43, 328  ;;  %488 = vbcast.lane.b32.xlu0 %v438_v43, 352 }
 0x149   : > { %484 = vbcast.lane.b32.xlu1 %v438_v43, 344  ;;  %496 = vbcast.lane.b32.xlu0 %v438_v43, 368 }
 0x14d   : > { %492 = vbcast.lane.b32.xlu1 %v438_v43, 360  ;;  %507 = vbcast.lane.b32.xlu0 %v505_v45, 256 }
 0x151   : > { %500 = vbcast.lane.b32.xlu1 %v438_v43, 376  ;;  %515 = vbcast.lane.b32.xlu0 %v505_v45, 272 }
 0x155   : > { %511 = vbcast.lane.b32.xlu1 %v505_v45, 264  ;;  %523 = vbcast.lane.b32.xlu0 %v505_v45, 288 }
 0x159   : > { %519 = vbcast.lane.b32.xlu1 %v505_v45, 280  ;;  %531 = vbcast.lane.b32.xlu0 %v505_v45, 304 }
 0x15d   : > { %527 = vbcast.lane.b32.xlu1 %v505_v45, 296  ;;  %539 = vbcast.lane.b32.xlu0 %v505_v45, 320 }
 0x161   : > { %535 = vbcast.lane.b32.xlu1 %v505_v45, 312  ;;  %547 = vbcast.lane.b32.xlu0 %v505_v45, 336 }
 0x165   : > { %543 = vbcast.lane.b32.xlu1 %v505_v45, 328  ;;  %555 = vbcast.lane.b32.xlu0 %v505_v45, 352 }
 0x169   : > { %551 = vbcast.lane.b32.xlu1 %v505_v45, 344  ;;  %563 = vbcast.lane.b32.xlu0 %v505_v45, 368 }
 0x16d   : > { %559 = vbcast.lane.b32.xlu1 %v505_v45, 360  ;;  %574 = vbcast.lane.b32.xlu0 %v572_v55, 256 }
 0x171   : > { %567 = vbcast.lane.b32.xlu1 %v505_v45, 376  ;;  %582 = vbcast.lane.b32.xlu0 %v572_v55, 272 }
 0x175   : > { %578 = vbcast.lane.b32.xlu1 %v572_v55, 264  ;;  %590 = vbcast.lane.b32.xlu0 %v572_v55, 288 }
 0x179   : > { %586 = vbcast.lane.b32.xlu1 %v572_v55, 280  ;;  %598 = vbcast.lane.b32.xlu0 %v572_v55, 304 }
 0x17d   : > { %594 = vbcast.lane.b32.xlu1 %v572_v55, 296  ;;  %606 = vbcast.lane.b32.xlu0 %v572_v55, 320 }
 0x181   : > { %602 = vbcast.lane.b32.xlu1 %v572_v55, 312  ;;  %614 = vbcast.lane.b32.xlu0 %v572_v55, 336 }
 0x183   : > { %v5234_v0 = vpop.permute.xlu1 %377  ;;  %v5236_v2 = vpop.permute.xlu0 %373 }
 0x185   : > { %610 = vbcast.lane.b32.xlu1 %v572_v55, 328  ;;  %622 = vbcast.lane.b32.xlu0 %v572_v55, 352 }
 0x187   : > { %v5239_v4 = vpop.permute.xlu1 %381  ;;  %v5241_v5 = vpop.permute.xlu0 %389 }
 0x189   : > { %618 = vbcast.lane.b32.xlu1 %v572_v55, 344  ;;  %630 = vbcast.lane.b32.xlu0 %v572_v55, 368 }
 0x18b   : > { %v5248_v9 = vpop.permute.xlu1 %385  ;;  %v5250_v10 = vpop.permute.xlu0 %397 }
 0x18d   : > { %626 = vbcast.lane.b32.xlu1 %v572_v55, 360  ;;  %641 = vbcast.lane.b32.xlu0 %v639_v8, 256 }
 0x18f   : > { %v5252_v11 = vpop.permute.xlu1 %393  ;;  %v5254_v12 = vpop.permute.xlu0 %405 }
 0x191   : > { %634 = vbcast.lane.b32.xlu1 %v572_v55, 376  ;;  %649 = vbcast.lane.b32.xlu0 %v639_v8, 272 }
 0x193   : > { %v5256_v13 = vpop.permute.xlu1 %401  ;;  %v5258_v14 = vpop.permute.xlu0 %413 }
 0x195   : > { %645 = vbcast.lane.b32.xlu1 %v639_v8, 264  ;;  %657 = vbcast.lane.b32.xlu0 %v639_v8, 288 }
 0x197   : > { %v5260_v15 = vpop.permute.xlu1 %409  ;;  %v5262_v16 = vpop.permute.xlu0 %421 }
 0x199   : > { %653 = vbcast.lane.b32.xlu1 %v639_v8, 280  ;;  %665 = vbcast.lane.b32.xlu0 %v639_v8, 304 }
 0x19b   : > { %v5264_v17 = vpop.permute.xlu1 %417  ;;  %v5266_v18 = vpop.permute.xlu0 %429 }
 0x19d   : > { %661 = vbcast.lane.b32.xlu1 %v639_v8, 296  ;;  %673 = vbcast.lane.b32.xlu0 %v639_v8, 320 }
 0x19f   : > { %v5268_v19 = vpop.permute.xlu1 %425  ;;  %v5270_v20 = vpop.permute.xlu0 %440 }
 0x1a1   : > { %669 = vbcast.lane.b32.xlu1 %v639_v8, 312  ;;  %681 = vbcast.lane.b32.xlu0 %v639_v8, 336 }
 0x1a3   : > { %v5272_v21 = vpop.permute.xlu1 %433  ;;  %v5274_v22 = vpop.permute.xlu0 %448 }
 0x1a5   : > { %677 = vbcast.lane.b32.xlu1 %v639_v8, 328  ;;  %689 = vbcast.lane.b32.xlu0 %v639_v8, 352 }
 0x1a7   : > { %v5277_v24 = vpop.permute.xlu1 %444  ;;  %v5279_v25 = vpop.permute.xlu0 %456 }
 0x1a9   : > { %685 = vbcast.lane.b32.xlu1 %v639_v8, 344  ;;  %697 = vbcast.lane.b32.xlu0 %v639_v8, 368 }
 0x1ab   : > { %v5284_v27 = vpop.permute.xlu1 %452  ;;  %v5286_v28 = vpop.permute.xlu0 %464 }
 0x1ad   : > { %693 = vbcast.lane.b32.xlu1 %v639_v8, 360  ;;  %708 = vbcast.lane.b32.xlu0 %v706_v26, 256 }
 0x1af   : > { %v5288_v29 = vpop.permute.xlu1 %460  ;;  %v5290_v30 = vpop.permute.xlu0 %472 }
 0x1b1   : > { %701 = vbcast.lane.b32.xlu1 %v639_v8, 376  ;;  %716 = vbcast.lane.b32.xlu0 %v706_v26, 272 }
 0x1b3   : > { %v5292_v31 = vpop.permute.xlu1 %468  ;;  %v5294_v32 = vpop.permute.xlu0 %480 }
 0x1b5   : > { %712 = vbcast.lane.b32.xlu1 %v706_v26, 264  ;;  %724 = vbcast.lane.b32.xlu0 %v706_v26, 288 }
 0x1b7   : > { %v5296_v33 = vpop.permute.xlu1 %476  ;;  %v5298_v34 = vpop.permute.xlu0 %488 }
 0x1b9   : > { %720 = vbcast.lane.b32.xlu1 %v706_v26, 280  ;;  %732 = vbcast.lane.b32.xlu0 %v706_v26, 304 }
 0x1bb   : > { %v5300_v38 = vpop.permute.xlu1 %484  ;;  %v5302_v40 = vpop.permute.xlu0 %496 }
 0x1bd   : > { %728 = vbcast.lane.b32.xlu1 %v706_v26, 296  ;;  %740 = vbcast.lane.b32.xlu0 %v706_v26, 320 }
 0x1bf   : > { %v5304_v41 = vpop.permute.xlu1 %492  ;;  %v5306_v43 = vpop.permute.xlu0 %507 }
 0x1c0   : > { %7934 = vst [vmem:[#allocation5_spill] sm:$0xff] %v5306_v43 }
 0x1c1   : > { %736 = vbcast.lane.b32.xlu1 %v706_v26, 312  ;;  %748 = vbcast.lane.b32.xlu0 %v706_v26, 336 }
 0x1c3   : > { %v5308_v45 = vpop.permute.xlu1 %500  ;;  %v5310_v55 = vpop.permute.xlu0 %515 }
 0x1c4   : > { %7935 = vst [vmem:[#allocation6_spill] sm:$0xff] %v5310_v55 }
 0x1c5   : > { %744 = vbcast.lane.b32.xlu1 %v706_v26, 328  ;;  %756 = vbcast.lane.b32.xlu0 %v706_v26, 352 }
 0x1c7   : > { %v5313_v8 = vpop.permute.xlu1 %511  ;;  %v5315_v1 = vpop.permute.xlu0 %523 }
 0x1c8   : > { %7936 = vst [vmem:[#allocation7_spill] sm:$0xff] %v5315_v1 }
 0x1c9   : > { %752 = vbcast.lane.b32.xlu1 %v706_v26, 344  ;;  %764 = vbcast.lane.b32.xlu0 %v706_v26, 368 }
 0x1cb   : > { %v5321_v3 = vpop.permute.xlu1 %519  ;;  %v5323_v54 = vpop.permute.xlu0 %531 }
 0x1cc   : > { %7937 = vst [vmem:[#allocation8_spill] sm:$0xff] %v5323_v54 }
 0x1cd   : > { %760 = vbcast.lane.b32.xlu1 %v706_v26, 360  ;;  %775 = vbcast.lane.b32.xlu0 %v773_v23, 256 }
 0x1cf   : > { %v5325_v44 = vpop.permute.xlu1 %527  ;;  %v5327_v42 = vpop.permute.xlu0 %539 }
 0x1d0   : > { %7938 = vst [vmem:[#allocation9_spill] sm:$0xff] %v5325_v44  ;;  %7939 = vst [vmem:[#allocation10_spill] sm:$0xff] %v5327_v42 }
 0x1d1   : > { %768 = vbcast.lane.b32.xlu1 %v706_v26, 376  ;;  %783 = vbcast.lane.b32.xlu0 %v773_v23, 272 }
 0x1d3   : > { %v5329_v1 = vpop.permute.xlu1 %535  ;;  %v5331_v55 = vpop.permute.xlu0 %547 }
 0x1d4   : > { %7940 = vst [vmem:[#allocation11_spill] sm:$0xff] %v5329_v1  ;;  %7941 = vst [vmem:[#allocation12_spill] sm:$0xff] %v5331_v55 }
 0x1d5   : > { %779 = vbcast.lane.b32.xlu1 %v773_v23, 264  ;;  %791 = vbcast.lane.b32.xlu0 %v773_v23, 288 }
 0x1d7   : > { %v5333_v35 = vpop.permute.xlu1 %543  ;;  %v5335_v7 = vpop.permute.xlu0 %555 }
 0x1d8   : > { %7942 = vst [vmem:[#allocation13_spill] sm:$0xff] %v5333_v35  ;;  %7943 = vst [vmem:[#allocation14_spill] sm:$0xff] %v5335_v7  ;;  %v7863_v7 = vsub.s32 7, %v5181_v36 }
 0x1d9   : > { %787 = vbcast.lane.b32.xlu1 %v773_v23, 280  ;;  %799 = vbcast.lane.b32.xlu0 %v773_v23, 304 }
 0x1db   : > { %v5337_v54 = vpop.permute.xlu1 %551  ;;  %v5339_v43 = vpop.permute.xlu0 %563 }
 0x1dc   : > { %7944 = vst [vmem:[#allocation15_spill] sm:$0xff] %v5337_v54  ;;  %7945 = vst [vmem:[#allocation16_spill] sm:$0xff] %v5339_v43 }
 0x1dd   : > { %795 = vbcast.lane.b32.xlu1 %v773_v23, 296  ;;  %807 = vbcast.lane.b32.xlu0 %v773_v23, 320 }
 0x1df   : > { %v5341_v26 = vpop.permute.xlu1 %559  ;;  %v5343_v42 = vpop.permute.xlu0 %574 }
 0x1e0   : > { %7946 = vst [vmem:[#allocation17_spill] sm:$0xff] %v5341_v26  ;;  %7947 = vst [vmem:[#allocation18_spill] sm:$0xff] %v5343_v42  ;;  %v840_v42 = vrot.slane %v5186_v39, %v7863_v7 }
 0x1e1   : > { %803 = vbcast.lane.b32.xlu1 %v773_v23, 312  ;;  %815 = vbcast.lane.b32.xlu0 %v773_v23, 336 }
 0x1e3   : > { %v5345_v55 = vpop.permute.xlu1 %567  ;;  %v5347_v1 = vpop.permute.xlu0 %582 }
 0x1e4   : > { %7948 = vst [vmem:[#allocation19_spill] sm:$0xff] %v5345_v55  ;;  %7949 = vst [vmem:[#allocation20_spill] sm:$0xff] %v5347_v1 }
 0x1e5   : > { %811 = vbcast.lane.b32.xlu1 %v773_v23, 328  ;;  %823 = vbcast.lane.b32.xlu0 %v773_v23, 352 }
 0x1e7   : > { %v5350_v35 = vpop.permute.xlu1 %578  ;;  %v5352_v54 = vpop.permute.xlu0 %590 }
 0x1e8   : > { %7950 = vst [vmem:[#allocation21_spill] sm:$0xff] %v5350_v35  ;;  %7951 = vst [vmem:[#allocation22_spill] sm:$0xff] %v5352_v54 }
 0x1e9   : > { %819 = vbcast.lane.b32.xlu1 %v773_v23, 344  ;;  %831 = vbcast.lane.b32.xlu0 %v773_v23, 368 }
 0x1eb   : > { %v5357_v43 = vpop.permute.xlu1 %586  ;;  %v5359_v26 = vpop.permute.xlu0 %598 }
 0x1ec   : > { %7952 = vst [vmem:[#allocation23_spill] sm:$0xff] %v5357_v43  ;;  %7953 = vst [vmem:[#allocation24_spill] sm:$0xff] %v5359_v26 }
 0x1ed   : > { %827 = vbcast.lane.b32.xlu1 %v773_v23, 360  ;;  %842 = vbcast.lane.b32.xlu0 %v840_v42, 256 }
 0x1ef   : > { %v5361_v1 = vpop.permute.xlu1 %594  ;;  %v5363_v55 = vpop.permute.xlu0 %606 }
 0x1f0   : > { %7954 = vst [vmem:[#allocation25_spill] sm:$0xff] %v5361_v1  ;;  %7955 = vst [vmem:[#allocation26_spill] sm:$0xff] %v5363_v55 }
 0x1f1   : > { %835 = vbcast.lane.b32.xlu1 %v773_v23, 376  ;;  %850 = vbcast.lane.b32.xlu0 %v840_v42, 272 }
 0x1f3   : > { %v5365_v35 = vpop.permute.xlu1 %602  ;;  %v5367_v54 = vpop.permute.xlu0 %614 }
 0x1f4   : > { %7956 = vst [vmem:[#allocation27_spill] sm:$0xff] %v5365_v35  ;;  %7957 = vst [vmem:[#allocation28_spill] sm:$0xff] %v5367_v54 }
 0x1f5   : > { %846 = vbcast.lane.b32.xlu1 %v840_v42, 264  ;;  %858 = vbcast.lane.b32.xlu0 %v840_v42, 288 }
 0x1f7   : > { %v5369_v44 = vpop.permute.xlu1 %610  ;;  %v5371_v39 = vpop.permute.xlu0 %622 }
 0x1f8   : > { %7958 = vst [vmem:[#allocation29_spill] sm:$0xff] %v5369_v44  ;;  %7959 = vst [vmem:[#allocation30_spill] sm:$0xff] %v5371_v39  ;;  %v5386_v39 = vmul.f32 2.0, %v5243_v6 }
 0x1f9   : > { %854 = vbcast.lane.b32.xlu1 %v840_v42, 280  ;;  %866 = vbcast.lane.b32.xlu0 %v840_v42, 304 }
 0x1fb   : > { %v5373_v7 = vpop.permute.xlu1 %618  ;;  %v5375_v26 = vpop.permute.xlu0 %630 }
 0x1fc   : > { %7960 = vst [vmem:[#allocation31_spill] sm:$0xff] %v5373_v7  ;;  %7961 = vst [vmem:[#allocation32_spill] sm:$0xff] %v5375_v26 }
 0x1fd   : > { %862 = vbcast.lane.b32.xlu1 %v840_v42, 296  ;;  %874 = vbcast.lane.b32.xlu0 %v840_v42, 320 }
 0x1ff   : > { %v5377_v23 = vpop.permute.xlu1 %626  ;;  %v5379_v55 = vpop.permute.xlu0 %641 }
 0x200   : > { %7962 = vst [vmem:[#allocation33_spill] sm:$0xff] %v5377_v23  ;;  %7963 = vst [vmem:[#allocation34_spill] sm:$0xff] %v5379_v55  ;;  %v907_v23 = vrot.slane %v5386_v39, %v5184_v37 }
 0x201   : > { %870 = vbcast.lane.b32.xlu1 %v840_v42, 312  ;;  %882 = vbcast.lane.b32.xlu0 %v840_v42, 336 }
 0x203   : > { %v5381_v54 = vpop.permute.xlu1 %634  ;;  %v5383_v35 = vpop.permute.xlu0 %649 }
 0x204   : > { %7964 = vst [vmem:[#allocation35_spill] sm:$0xff] %v5381_v54  ;;  %7965 = vst [vmem:[#allocation36_spill] sm:$0xff] %v5383_v35 }
 0x205   : > { %878 = vbcast.lane.b32.xlu1 %v840_v42, 328  ;;  %890 = vbcast.lane.b32.xlu0 %v840_v42, 352 }
 0x207   : > { %v5388_v7 = vpop.permute.xlu1 %645  ;;  %v5390_v26 = vpop.permute.xlu0 %657 }
 0x208   : > { %7966 = vst [vmem:[#allocation37_spill] sm:$0xff] %v5388_v7  ;;  %7967 = vst [vmem:[#allocation38_spill] sm:$0xff] %v5390_v26 }
 0x209   : > { %886 = vbcast.lane.b32.xlu1 %v840_v42, 344  ;;  %898 = vbcast.lane.b32.xlu0 %v840_v42, 368 }
 0x20b   : > { %v5394_v55 = vpop.permute.xlu1 %653  ;;  %v5396_v44 = vpop.permute.xlu0 %665 }
 0x20c   : > { %7968 = vst [vmem:[#allocation39_spill] sm:$0xff] %v5394_v55  ;;  %7969 = vst [vmem:[#allocation40_spill] sm:$0xff] %v5396_v44 }
 0x20d   : > { %894 = vbcast.lane.b32.xlu1 %v840_v42, 360  ;;  %909 = vbcast.lane.b32.xlu0 %v907_v23, 256 }
 0x20f   : > { %v5398_v35 = vpop.permute.xlu1 %661  ;;  %v5400_v54 = vpop.permute.xlu0 %673 }
 0x210   : > { %7970 = vst [vmem:[#allocation41_spill] sm:$0xff] %v5398_v35  ;;  %7971 = vst [vmem:[#allocation42_spill] sm:$0xff] %v5400_v54 }
 0x211   : > { %902 = vbcast.lane.b32.xlu1 %v840_v42, 376  ;;  %917 = vbcast.lane.b32.xlu0 %v907_v23, 272 }
 0x213   : > { %v5402_v6 = vpop.permute.xlu1 %669  ;;  %v5404_v26 = vpop.permute.xlu0 %681 }
 0x214   : > { %7972 = vst [vmem:[#allocation43_spill] sm:$0xff] %v5402_v6  ;;  %7973 = vst [vmem:[#allocation44_spill] sm:$0xff] %v5404_v26 }
 0x215   : > { %913 = vbcast.lane.b32.xlu1 %v907_v23, 264  ;;  %925 = vbcast.lane.b32.xlu0 %v907_v23, 288 }
 0x217   : > { %v5406_v7 = vpop.permute.xlu1 %677  ;;  %v5408_v1 = vpop.permute.xlu0 %689 }
 0x218   : > { %7974 = vst [vmem:[#allocation45_spill] sm:$0xff] %v5406_v7  ;;  %7975 = vst [vmem:[#allocation46_spill] sm:$0xff] %v5408_v1 }
 0x219   : > { %921 = vbcast.lane.b32.xlu1 %v907_v23, 280  ;;  %933 = vbcast.lane.b32.xlu0 %v907_v23, 304 }
 0x21b   : > { %v5410_v44 = vpop.permute.xlu1 %685  ;;  %v5412_v55 = vpop.permute.xlu0 %697 }
 0x21c   : > { %7976 = vst [vmem:[#allocation47_spill] sm:$0xff] %v5410_v44  ;;  %7977 = vst [vmem:[#allocation48_spill] sm:$0xff] %v5412_v55  ;;  %v7984_v55 = vsub.s32 1, %v5181_v36 }
 0x21d   : > { %929 = vbcast.lane.b32.xlu1 %v907_v23, 296  ;;  %941 = vbcast.lane.b32.xlu0 %v907_v23, 320 }
 0x21f   : > { %v5414_v42 = vpop.permute.xlu1 %693  ;;  %v5416_v54 = vpop.permute.xlu0 %708 }
 0x220   : > { %7978 = vst [vmem:[#allocation49_spill] sm:$0xff] %v5414_v42  ;;  %7979 = vst [vmem:[#allocation50_spill] sm:$0xff] %v5416_v54  ;;  %v974_v42 = vrot.slane %v5386_v39, %v7984_v55 }
 0x221   : > { %937 = vbcast.lane.b32.xlu1 %v907_v23, 312  ;;  %949 = vbcast.lane.b32.xlu0 %v907_v23, 336 }
 0x223   : > { %v5418_v26 = vpop.permute.xlu1 %701  ;;  %v5420_v6 = vpop.permute.xlu0 %716 }
 0x224   : > { %7980 = vst [vmem:[#allocation51_spill] sm:$0xff] %v5418_v26  ;;  %7981 = vst [vmem:[#allocation52_spill] sm:$0xff] %v5420_v6 }
 0x225   : > { %945 = vbcast.lane.b32.xlu1 %v907_v23, 328  ;;  %957 = vbcast.lane.b32.xlu0 %v907_v23, 352 }
 0x227   : > { %v5422_v1 = vpop.permute.xlu1 %712  ;;  %v5424_v7 = vpop.permute.xlu0 %724 }
 0x228   : > { %7982 = vst [vmem:[#allocation53_spill] sm:$0xff] %v5422_v1  ;;  %7983 = vst [vmem:[#allocation54_spill] sm:$0xff] %v5424_v7 }
 0x229   : > { %953 = vbcast.lane.b32.xlu1 %v907_v23, 344  ;;  %965 = vbcast.lane.b32.xlu0 %v907_v23, 368 }
 0x22b   : > { %v5429_v44 = vpop.permute.xlu1 %720  ;;  %v5431_v54 = vpop.permute.xlu0 %732 }
 0x22c   : > { %7985 = vst [vmem:[#allocation55_spill] sm:$0xff] %v5429_v44  ;;  %7986 = vst [vmem:[#allocation56_spill] sm:$0xff] %v5431_v54 }
 0x22d   : > { %961 = vbcast.lane.b32.xlu1 %v907_v23, 360  ;;  %976 = vbcast.lane.b32.xlu0 %v974_v42, 256 }
 0x22f   : > { %v5433_v26 = vpop.permute.xlu1 %728  ;;  %v5435_v6 = vpop.permute.xlu0 %740 }
 0x230   : > { %7987 = vst [vmem:[#allocation57_spill] sm:$0xff] %v5433_v26  ;;  %7988 = vst [vmem:[#allocation58_spill] sm:$0xff] %v5435_v6 }
 0x231   : > { %969 = vbcast.lane.b32.xlu1 %v907_v23, 376  ;;  %984 = vbcast.lane.b32.xlu0 %v974_v42, 272 }
 0x233   : > { %v5437_v1 = vpop.permute.xlu1 %736  ;;  %v5439_v7 = vpop.permute.xlu0 %748 }
 0x234   : > { %7989 = vst [vmem:[#allocation59_spill] sm:$0xff] %v5437_v1  ;;  %7990 = vst [vmem:[#allocation60_spill] sm:$0xff] %v5439_v7 }
 0x235   : > { %980 = vbcast.lane.b32.xlu1 %v974_v42, 264  ;;  %992 = vbcast.lane.b32.xlu0 %v974_v42, 288 }
 0x237   : > { %v5441_v35 = vpop.permute.xlu1 %744  ;;  %v5443_v55 = vpop.permute.xlu0 %756 }
 0x238   : > { %7991 = vst [vmem:[#allocation61_spill] sm:$0xff] %v5441_v35  ;;  %7992 = vst [vmem:[#allocation62_spill] sm:$0xff] %v5443_v55 }
 0x239   : > { %988 = vbcast.lane.b32.xlu1 %v974_v42, 280  ;;  %1000 = vbcast.lane.b32.xlu0 %v974_v42, 304 }
 0x23b   : > { %v5445_v54 = vpop.permute.xlu1 %752  ;;  %v5447_v44 = vpop.permute.xlu0 %764 }
 0x23c   : > { %7993 = vst [vmem:[#allocation63_spill] sm:$0xff] %v5445_v54  ;;  %7994 = vst [vmem:[#allocation64_spill] sm:$0xff] %v5447_v44  ;;  %v8001_v44 = vsub.s32 2, %v5181_v36 }
 0x23d   : > { %996 = vbcast.lane.b32.xlu1 %v974_v42, 296  ;;  %1008 = vbcast.lane.b32.xlu0 %v974_v42, 320 }
 0x23f   : > { %v5449_v23 = vpop.permute.xlu1 %760  ;;  %v5451_v6 = vpop.permute.xlu0 %775 }
 0x240   : > { %7995 = vst [vmem:[#allocation65_spill] sm:$0xff] %v5449_v23  ;;  %7996 = vst [vmem:[#allocation66_spill] sm:$0xff] %v5451_v6  ;;  %v1041_v23 = vrot.slane %v5386_v39, %v8001_v44 }
 0x241   : > { %1004 = vbcast.lane.b32.xlu1 %v974_v42, 312  ;;  %1016 = vbcast.lane.b32.xlu0 %v974_v42, 336 }
 0x243   : > { %v5453_v7 = vpop.permute.xlu1 %768  ;;  %v5455_v1 = vpop.permute.xlu0 %783 }
 0x244   : > { %7997 = vst [vmem:[#allocation67_spill] sm:$0xff] %v5453_v7  ;;  %7998 = vst [vmem:[#allocation68_spill] sm:$0xff] %v5455_v1 }
 0x245   : > { %1012 = vbcast.lane.b32.xlu1 %v974_v42, 328  ;;  %1024 = vbcast.lane.b32.xlu0 %v974_v42, 352 }
 0x247   : > { %v5457_v55 = vpop.permute.xlu1 %779  ;;  %v5459_v35 = vpop.permute.xlu0 %791 }
 0x248   : > { %7999 = vst [vmem:[#allocation69_spill] sm:$0xff] %v5457_v55  ;;  %8000 = vst [vmem:[#allocation70_spill] sm:$0xff] %v5459_v35 }
 0x249   : > { %1020 = vbcast.lane.b32.xlu1 %v974_v42, 344  ;;  %1032 = vbcast.lane.b32.xlu0 %v974_v42, 368 }
 0x24b   : > { %v5464_v54 = vpop.permute.xlu1 %787  ;;  %v5466_v6 = vpop.permute.xlu0 %799 }
 0x24c   : > { %8002 = vst [vmem:[#allocation71_spill] sm:$0xff] %v5464_v54  ;;  %8003 = vst [vmem:[#allocation72_spill] sm:$0xff] %v5466_v6 }
 0x24d   : > { %1028 = vbcast.lane.b32.xlu1 %v974_v42, 360  ;;  %1043 = vbcast.lane.b32.xlu0 %v1041_v23, 256 }
 0x24f   : > { %v5468_v7 = vpop.permute.xlu1 %795  ;;  %v5470_v1 = vpop.permute.xlu0 %807 }
 0x250   : > { %8004 = vst [vmem:[#allocation73_spill] sm:$0xff] %v5468_v7  ;;  %8005 = vst [vmem:[#allocation74_spill] sm:$0xff] %v5470_v1 }
 0x251   : > { %1036 = vbcast.lane.b32.xlu1 %v974_v42, 376  ;;  %1051 = vbcast.lane.b32.xlu0 %v1041_v23, 272 }
 0x253   : > { %v5472_v55 = vpop.permute.xlu1 %803  ;;  %v5474_v35 = vpop.permute.xlu0 %815 }
 0x254   : > { %8006 = vst [vmem:[#allocation75_spill] sm:$0xff] %v5472_v55  ;;  %8007 = vst [vmem:[#allocation76_spill] sm:$0xff] %v5474_v35 }
 0x255   : > { %1047 = vbcast.lane.b32.xlu1 %v1041_v23, 264  ;;  %1059 = vbcast.lane.b32.xlu0 %v1041_v23, 288 }
 0x257   : > { %v5476_v26 = vpop.permute.xlu1 %811  ;;  %v5478_v44 = vpop.permute.xlu0 %823 }
 0x258   : > { %8008 = vst [vmem:[#allocation77_spill] sm:$0xff] %v5476_v26  ;;  %8009 = vst [vmem:[#allocation78_spill] sm:$0xff] %v5478_v44 }
 0x259   : > { %1055 = vbcast.lane.b32.xlu1 %v1041_v23, 280  ;;  %1067 = vbcast.lane.b32.xlu0 %v1041_v23, 304 }
 0x25b   : > { %v5480_v6 = vpop.permute.xlu1 %819  ;;  %v5482_v54 = vpop.permute.xlu0 %831 }
 0x25c   : > { %8010 = vst [vmem:[#allocation79_spill] sm:$0xff] %v5480_v6  ;;  %8011 = vst [vmem:[#allocation80_spill] sm:$0xff] %v5482_v54  ;;  %v8018_v54 = vsub.s32 3, %v5181_v36 }
 0x25d   : > { %1063 = vbcast.lane.b32.xlu1 %v1041_v23, 296  ;;  %1075 = vbcast.lane.b32.xlu0 %v1041_v23, 320 }
 0x25f   : > { %v5484_v42 = vpop.permute.xlu1 %827  ;;  %v5486_v1 = vpop.permute.xlu0 %842 }
 0x260   : > { %8012 = vst [vmem:[#allocation81_spill] sm:$0xff] %v5484_v42  ;;  %8013 = vst [vmem:[#allocation82_spill] sm:$0xff] %v5486_v1  ;;  %v1108_v42 = vrot.slane %v5386_v39, %v8018_v54 }
 0x261   : > { %1071 = vbcast.lane.b32.xlu1 %v1041_v23, 312  ;;  %1083 = vbcast.lane.b32.xlu0 %v1041_v23, 336 }
 0x263   : > { %v5488_v35 = vpop.permute.xlu1 %835  ;;  %v5490_v55 = vpop.permute.xlu0 %850 }
 0x264   : > { %8014 = vst [vmem:[#allocation83_spill] sm:$0xff] %v5488_v35  ;;  %8015 = vst [vmem:[#allocation84_spill] sm:$0xff] %v5490_v55 }
 0x265   : > { %1079 = vbcast.lane.b32.xlu1 %v1041_v23, 328  ;;  %1091 = vbcast.lane.b32.xlu0 %v1041_v23, 352 }
 0x267   : > { %v5492_v44 = vpop.permute.xlu1 %846  ;;  %v5494_v26 = vpop.permute.xlu0 %858 }
 0x268   : > { %8016 = vst [vmem:[#allocation85_spill] sm:$0xff] %v5492_v44  ;;  %8017 = vst [vmem:[#allocation86_spill] sm:$0xff] %v5494_v26 }
 0x269   : > { %1087 = vbcast.lane.b32.xlu1 %v1041_v23, 344  ;;  %1099 = vbcast.lane.b32.xlu0 %v1041_v23, 368 }
 0x26b   : > { %v5499_v6 = vpop.permute.xlu1 %854  ;;  %v5501_v1 = vpop.permute.xlu0 %866 }
 0x26c   : > { %8019 = vst [vmem:[#allocation87_spill] sm:$0xff] %v5499_v6  ;;  %8020 = vst [vmem:[#allocation88_spill] sm:$0xff] %v5501_v1 }
 0x26d   : > { %1095 = vbcast.lane.b32.xlu1 %v1041_v23, 360  ;;  %1110 = vbcast.lane.b32.xlu0 %v1108_v42, 256 }
 0x26f   : > { %v5503_v35 = vpop.permute.xlu1 %862  ;;  %v5505_v55 = vpop.permute.xlu0 %874 }
 0x270   : > { %8021 = vst [vmem:[#allocation89_spill] sm:$0xff] %v5503_v35  ;;  %8022 = vst [vmem:[#allocation90_spill] sm:$0xff] %v5505_v55 }
 0x271   : > { %1103 = vbcast.lane.b32.xlu1 %v1041_v23, 376  ;;  %1118 = vbcast.lane.b32.xlu0 %v1108_v42, 272 }
 0x273   : > { %v5507_v44 = vpop.permute.xlu1 %870  ;;  %v5509_v26 = vpop.permute.xlu0 %882 }
 0x274   : > { %8023 = vst [vmem:[#allocation91_spill] sm:$0xff] %v5507_v44  ;;  %8024 = vst [vmem:[#allocation92_spill] sm:$0xff] %v5509_v26 }
 0x275   : > { %1114 = vbcast.lane.b32.xlu1 %v1108_v42, 264  ;;  %1126 = vbcast.lane.b32.xlu0 %v1108_v42, 288 }
 0x277   : > { %v5511_v7 = vpop.permute.xlu1 %878  ;;  %v5513_v54 = vpop.permute.xlu0 %890 }
 0x278   : > { %8025 = vst [vmem:[#allocation93_spill] sm:$0xff] %v5511_v7  ;;  %8026 = vst [vmem:[#allocation94_spill] sm:$0xff] %v5513_v54 }
 0x279   : > { %1122 = vbcast.lane.b32.xlu1 %v1108_v42, 280  ;;  %1134 = vbcast.lane.b32.xlu0 %v1108_v42, 304 }
 0x27b   : > { %v5515_v1 = vpop.permute.xlu1 %886  ;;  %v5517_v6 = vpop.permute.xlu0 %898 }
 0x27c   : > { %8027 = vst [vmem:[#allocation95_spill] sm:$0xff] %v5515_v1  ;;  %8028 = vst [vmem:[#allocation96_spill] sm:$0xff] %v5517_v6  ;;  %v5531_v6 = vpop.f32.mrf.mxu0 }
 0x27d   : > { %1130 = vbcast.lane.b32.xlu1 %v1108_v42, 296  ;;  %1142 = vbcast.lane.b32.xlu0 %v1108_v42, 320 }
 0x27f   : > { %v5519_v23 = vpop.permute.xlu1 %894  ;;  %v5521_v55 = vpop.permute.xlu0 %909 }
 0x280   : > { %8029 = vst [vmem:[#allocation97_spill] sm:$0xff] %v5519_v23  ;;  %8030 = vst [vmem:[#allocation98_spill] sm:$0xff] %v5521_v55  ;;  %v8035_v23 = vsub.s32 4, %v5181_v36 }
 0x281   : > { %1138 = vbcast.lane.b32.xlu1 %v1108_v42, 312  ;;  %1150 = vbcast.lane.b32.xlu0 %v1108_v42, 336 }
 0x282   : > { %v1175_v55 = vrot.slane %v5386_v39, %v8035_v23 }
 0x283   : > { %v5523_v26 = vpop.permute.xlu1 %902  ;;  %v5525_v44 = vpop.permute.xlu0 %917 }
 0x284   : > { %8031 = vst [vmem:[#allocation99_spill] sm:$0xff] %v5523_v26  ;;  %8032 = vst [vmem:[#allocation100_spill] sm:$0xff] %v5525_v44  ;;  %v4923_v26 = vpop.f32.mrf.mxu0 }
 0x285   : > { %1146 = vbcast.lane.b32.xlu1 %v1108_v42, 328  ;;  %1158 = vbcast.lane.b32.xlu0 %v1108_v42, 352 }
 0x287   : > { %v5527_v54 = vpop.permute.xlu1 %913  ;;  %v5529_v7 = vpop.permute.xlu0 %925 }
 0x288   : > { %8033 = vst [vmem:[#allocation101_spill] sm:$0xff] %v5527_v54  ;;  %8034 = vst [vmem:[#allocation102_spill] sm:$0xff] %v5529_v7 }
 0x289   : > { %1154 = vbcast.lane.b32.xlu1 %v1108_v42, 344  ;;  %1166 = vbcast.lane.b32.xlu0 %v1108_v42, 368 }
 0x28b   : > { %v5536_v1 = vpop.permute.xlu1 %921  ;;  %v5538_v35 = vpop.permute.xlu0 %933 }
 0x28c   : > { %8036 = vst [vmem:[#allocation103_spill] sm:$0xff] %v5536_v1  ;;  %8037 = vst [vmem:[#allocation104_spill] sm:$0xff] %v5538_v35 }
 0x28d   : > { %1162 = vbcast.lane.b32.xlu1 %v1108_v42, 360  ;;  %1177 = vbcast.lane.b32.xlu0 %v1175_v55, 256 }
 0x28f   : > { %v5540_v44 = vpop.permute.xlu1 %929  ;;  %v5542_v54 = vpop.permute.xlu0 %941 }
 0x290   : > { %8038 = vst [vmem:[#allocation105_spill] sm:$0xff] %v5540_v44  ;;  %8039 = vst [vmem:[#allocation106_spill] sm:$0xff] %v5542_v54 }
 0x291   : > { %1170 = vbcast.lane.b32.xlu1 %v1108_v42, 376  ;;  %1185 = vbcast.lane.b32.xlu0 %v1175_v55, 272 }
 0x293   : > { %v5544_v7 = vpop.permute.xlu1 %937  ;;  %v5546_v43 = vpop.permute.xlu0 %949 }
 0x294   : > { %8040 = vst [vmem:[#allocation107_spill] sm:$0xff] %v5544_v7  ;;  %8041 = vst [vmem:[#allocation108_spill] sm:$0xff] %v5546_v43 }
 0x295   : > { %1181 = vbcast.lane.b32.xlu1 %v1175_v55, 264  ;;  %1193 = vbcast.lane.b32.xlu0 %v1175_v55, 288 }
 0x297   : > { %v5548_v23 = vpop.permute.xlu1 %945  ;;  %v5550_v1 = vpop.permute.xlu0 %957 }
 0x298   : > { %8042 = vst [vmem:[#allocation109_spill] sm:$0xff] %v5548_v23  ;;  %8043 = vst [vmem:[#allocation110_spill] sm:$0xff] %v5550_v1 }
 0x299   : > { %1189 = vbcast.lane.b32.xlu1 %v1175_v55, 280  ;;  %1201 = vbcast.lane.b32.xlu0 %v1175_v55, 304 }
 0x29b   : > { %v5552_v26 = vpop.permute.xlu1 %953  ;;  %v5554_v35 = vpop.permute.xlu0 %965 }
 0x29c   : > { %8044 = vst [vmem:[#allocation111_spill] sm:$0xff] %v5552_v26  ;;  %8045 = vst [vmem:[#allocation112_spill] sm:$0xff] %v5554_v35  ;;  %v8052_v35 = vsub.s32 5, %v5181_v36 }
 0x29d   : > { %1197 = vbcast.lane.b32.xlu1 %v1175_v55, 296  ;;  %1209 = vbcast.lane.b32.xlu0 %v1175_v55, 320 }
 0x29f   : > { %v5556_v42 = vpop.permute.xlu1 %961  ;;  %v5558_v54 = vpop.permute.xlu0 %976 }
 0x2a0   : > { %8046 = vst [vmem:[#allocation113_spill] sm:$0xff] %v5556_v42  ;;  %8047 = vst [vmem:[#allocation114_spill] sm:$0xff] %v5558_v54  ;;  %v1242_v42 = vrot.slane %v5386_v39, %v8052_v35 }
 0x2a1   : > { %1205 = vbcast.lane.b32.xlu1 %v1175_v55, 312  ;;  %1217 = vbcast.lane.b32.xlu0 %v1175_v55, 336 }
 0x2a3   : > { %v5560_v43 = vpop.permute.xlu1 %969  ;;  %v5562_v7 = vpop.permute.xlu0 %984 }
 0x2a4   : > { %8048 = vst [vmem:[#allocation115_spill] sm:$0xff] %v5560_v43  ;;  %8049 = vst [vmem:[#allocation116_spill] sm:$0xff] %v5562_v7  ;;  %v4993_v43 = vmov 0  }
 0x2a5   : > { %1213 = vbcast.lane.b32.xlu1 %v1175_v55, 328  ;;  %1225 = vbcast.lane.b32.xlu0 %v1175_v55, 352 }
 0x2a6   : > { %4978 = vset.pattern.permute.xlu0 %v4993_v43  ;;  %4979 = vset.pattern.permute.xlu1 %v4993_v43 }
 0x2a7   : > { %v5564_v1 = vpop.permute.xlu1 %980  ;;  %v5566_v23 = vpop.permute.xlu0 %992 }
 0x2a8   : > { %8050 = vst [vmem:[#allocation117_spill] sm:$0xff] %v5564_v1  ;;  %8051 = vst [vmem:[#allocation118_spill] sm:$0xff] %v5566_v23 }
 0x2a9   : > { %1221 = vbcast.lane.b32.xlu1 %v1175_v55, 344  ;;  %1233 = vbcast.lane.b32.xlu0 %v1175_v55, 368 }
 0x2ab   : > { %v5571_v26 = vpop.permute.xlu1 %988  ;;  %v5573_v44 = vpop.permute.xlu0 %1000 }
 0x2ac   : > { %8053 = vst [vmem:[#allocation119_spill] sm:$0xff] %v5571_v26  ;;  %8054 = vst [vmem:[#allocation120_spill] sm:$0xff] %v5573_v44 }
 0x2ad   : > { %1229 = vbcast.lane.b32.xlu1 %v1175_v55, 360  ;;  %1244 = vbcast.lane.b32.xlu0 %v1242_v42, 256 }
 0x2af   : > { %v5575_v7 = vpop.permute.xlu1 %996  ;;  %v5577_v54 = vpop.permute.xlu0 %1008 }
 0x2b0   : > { %8055 = vst [vmem:[#allocation121_spill] sm:$0xff] %v5575_v7  ;;  %8056 = vst [vmem:[#allocation122_spill] sm:$0xff] %v5577_v54 }
 0x2b1   : > { %1237 = vbcast.lane.b32.xlu1 %v1175_v55, 376  ;;  %1252 = vbcast.lane.b32.xlu0 %v1242_v42, 272 }
 0x2b3   : > { %v5579_v23 = vpop.permute.xlu1 %1004  ;;  %v5581_v1 = vpop.permute.xlu0 %1016 }
 0x2b4   : > { %8057 = vst [vmem:[#allocation123_spill] sm:$0xff] %v5579_v23  ;;  %8058 = vst [vmem:[#allocation124_spill] sm:$0xff] %v5581_v1 }
 0x2b5   : > { %1248 = vbcast.lane.b32.xlu1 %v1242_v42, 264  ;;  %1260 = vbcast.lane.b32.xlu0 %v1242_v42, 288 }
 0x2b7   : > { %v5583_v35 = vpop.permute.xlu1 %1012  ;;  %v5585_v44 = vpop.permute.xlu0 %1024 }
 0x2b8   : > { %8059 = vst [vmem:[#allocation125_spill] sm:$0xff] %v5583_v35  ;;  %8060 = vst [vmem:[#allocation126_spill] sm:$0xff] %v5585_v44 }
 0x2b9   : > { %1256 = vbcast.lane.b32.xlu1 %v1242_v42, 280  ;;  %1268 = vbcast.lane.b32.xlu0 %v1242_v42, 304 }
 0x2bb   : > { %v5587_v26 = vpop.permute.xlu1 %1020  ;;  %v5589_v43 = vpop.permute.xlu0 %1032 }
 0x2bc   : > { %8061 = vst [vmem:[#allocation127_spill] sm:$0xff] %v5587_v26  ;;  %8062 = vst [vmem:[#allocation128_spill] sm:$0xff] %v5589_v43  ;;  %v8069_v43 = vsub.s32 6, %v5181_v36 }
 0x2bd   : > { %1264 = vbcast.lane.b32.xlu1 %v1242_v42, 296  ;;  %1276 = vbcast.lane.b32.xlu0 %v1242_v42, 320 }
 0x2bf   : > { %v5591_v55 = vpop.permute.xlu1 %1028  ;;  %v5593_v54 = vpop.permute.xlu0 %1043 }
 0x2c0   : > { %8063 = vst [vmem:[#allocation129_spill] sm:$0xff] %v5591_v55  ;;  %8064 = vst [vmem:[#allocation130_spill] sm:$0xff] %v5593_v54  ;;  %v1309_v55 = vrot.slane %v5386_v39, %v8069_v43 }
 0x2c1   : > { %1272 = vbcast.lane.b32.xlu1 %v1242_v42, 312  ;;  %1284 = vbcast.lane.b32.xlu0 %v1242_v42, 336 }
 0x2c3   : > { %v5595_v1 = vpop.permute.xlu1 %1036  ;;  %v5597_v23 = vpop.permute.xlu0 %1051 }
 0x2c4   : > { %8065 = vst [vmem:[#allocation131_spill] sm:$0xff] %v5595_v1  ;;  %8066 = vst [vmem:[#allocation132_spill] sm:$0xff] %v5597_v23 }
 0x2c5   : > { %1280 = vbcast.lane.b32.xlu1 %v1242_v42, 328  ;;  %1292 = vbcast.lane.b32.xlu0 %v1242_v42, 352 }
 0x2c7   : > { %v5599_v44 = vpop.permute.xlu1 %1047  ;;  %v5601_v35 = vpop.permute.xlu0 %1059 }
 0x2c8   : > { %8067 = vst [vmem:[#allocation133_spill] sm:$0xff] %v5599_v44  ;;  %8068 = vst [vmem:[#allocation134_spill] sm:$0xff] %v5601_v35 }
 0x2c9   : > { %1288 = vbcast.lane.b32.xlu1 %v1242_v42, 344  ;;  %1300 = vbcast.lane.b32.xlu0 %v1242_v42, 368 }
 0x2cb   : > { %v5606_v26 = vpop.permute.xlu1 %1055  ;;  %v5608_v7 = vpop.permute.xlu0 %1067 }
 0x2cc   : > { %8070 = vst [vmem:[#allocation135_spill] sm:$0xff] %v5606_v26  ;;  %8071 = vst [vmem:[#allocation136_spill] sm:$0xff] %v5608_v7 }
 0x2cd   : > { %1296 = vbcast.lane.b32.xlu1 %v1242_v42, 360  ;;  %1311 = vbcast.lane.b32.xlu0 %v1309_v55, 256 }
 0x2cf   : > { %v5610_v1 = vpop.permute.xlu1 %1063  ;;  %v5612_v23 = vpop.permute.xlu0 %1075 }
 0x2d0   : > { %8072 = vst [vmem:[#allocation137_spill] sm:$0xff] %v5610_v1  ;;  %8073 = vst [vmem:[#allocation138_spill] sm:$0xff] %v5612_v23 }
 0x2d1   : > { %1304 = vbcast.lane.b32.xlu1 %v1242_v42, 376  ;;  %1319 = vbcast.lane.b32.xlu0 %v1309_v55, 272 }
 0x2d3   : > { %v5614_v44 = vpop.permute.xlu1 %1071  ;;  %v5616_v35 = vpop.permute.xlu0 %1083 }
 0x2d4   : > { %8074 = vst [vmem:[#allocation139_spill] sm:$0xff] %v5614_v44  ;;  %8075 = vst [vmem:[#allocation140_spill] sm:$0xff] %v5616_v35 }
 0x2d5   : > { %1315 = vbcast.lane.b32.xlu1 %v1309_v55, 264  ;;  %1327 = vbcast.lane.b32.xlu0 %v1309_v55, 288 }
 0x2d7   : > { %v5618_v54 = vpop.permute.xlu1 %1079  ;;  %v5620_v43 = vpop.permute.xlu0 %1091 }
 0x2d8   : > { %8076 = vst [vmem:[#allocation141_spill] sm:$0xff] %v5618_v54  ;;  %8077 = vst [vmem:[#allocation142_spill] sm:$0xff] %v5620_v43 }
 0x2d9   : > { %1323 = vbcast.lane.b32.xlu1 %v1309_v55, 280  ;;  %1335 = vbcast.lane.b32.xlu0 %v1309_v55, 304 }
 0x2db   : > { %v5622_v7 = vpop.permute.xlu1 %1087  ;;  %v5624_v26 = vpop.permute.xlu0 %1099 }
 0x2dc   : > { %8078 = vst [vmem:[#allocation143_spill] sm:$0xff] %v5622_v7  ;;  %8079 = vst [vmem:[#allocation144_spill] sm:$0xff] %v5624_v26  ;;  %v8085_v26 = vsub.s32 7, %v5181_v36 }
 0x2dd   : > { %1331 = vbcast.lane.b32.xlu1 %v1309_v55, 296  ;;  %1343 = vbcast.lane.b32.xlu0 %v1309_v55, 320 }
 0x2df   : > { %v5626_v42 = vpop.permute.xlu1 %1095  ;;  %v5628_v23 = vpop.permute.xlu0 %1110 }
 0x2e0   : > { %8080 = vst [vmem:[#allocation145_spill] sm:$0xff] %v5626_v42  ;;  %v1376_v42 = vrot.slane %v5386_v39, %v8085_v26 }
 0x2e1   : > { %1339 = vbcast.lane.b32.xlu1 %v1309_v55, 312  ;;  %1351 = vbcast.lane.b32.xlu0 %v1309_v55, 336 }
 0x2e3   : > { %v5630_v35 = vpop.permute.xlu1 %1103  ;;  %v5632_v44 = vpop.permute.xlu0 %1118 }
 0x2e4   : > { %8081 = vst [vmem:[#allocation146_spill] sm:$0xff] %v5630_v35  ;;  %8082 = vst [vmem:[#allocation147_spill] sm:$0xff] %v5632_v44 }
 0x2e5   : > { %1347 = vbcast.lane.b32.xlu1 %v1309_v55, 328  ;;  %1359 = vbcast.lane.b32.xlu0 %v1309_v55, 352 }
 0x2e7   : > { %v5634_v43 = vpop.permute.xlu1 %1114  ;;  %v5636_v54 = vpop.permute.xlu0 %1126 }
 0x2e8   : > { %8083 = vst [vmem:[#allocation148_spill] sm:$0xff] %v5634_v43  ;;  %8084 = vst [vmem:[#allocation149_spill] sm:$0xff] %v5636_v54 }
 0x2e9   : > { %1355 = vbcast.lane.b32.xlu1 %v1309_v55, 344  ;;  %1367 = vbcast.lane.b32.xlu0 %v1309_v55, 368 }
 0x2eb   : > { %v5641_v7 = vpop.permute.xlu1 %1122  ;;  %v5643_v1 = vpop.permute.xlu0 %1134 }
 0x2ec   : > { %8086 = vst [vmem:[#allocation150_spill] sm:$0xff] %v5641_v7  ;;  %8087 = vst [vmem:[#allocation151_spill] sm:$0xff] %v5643_v1 }
 0x2ed   : > { %1363 = vbcast.lane.b32.xlu1 %v1309_v55, 360  ;;  %1378 = vbcast.lane.b32.xlu0 %v1376_v42, 256 }
 0x2ef   : > { %v5645_v35 = vpop.permute.xlu1 %1130  ;;  %v5647_v44 = vpop.permute.xlu0 %1142 }
 0x2f0   : > { %8088 = vst [vmem:[#allocation152_spill] sm:$0xff] %v5645_v35  ;;  %8089 = vst [vmem:[#allocation153_spill] sm:$0xff] %v5647_v44 }
 0x2f1   : > { %1371 = vbcast.lane.b32.xlu1 %v1309_v55, 376  ;;  %1386 = vbcast.lane.b32.xlu0 %v1376_v42, 272 }
 0x2f3   : > { %v5649_v43 = vpop.permute.xlu1 %1138  ;;  %v5651_v54 = vpop.permute.xlu0 %1150 }
 0x2f4   : > { %8090 = vst [vmem:[#allocation154_spill] sm:$0xff] %v5649_v43  ;;  %8091 = vst [vmem:[#allocation155_spill] sm:$0xff] %v5651_v54 }
 0x2f5   : > { %1382 = vbcast.lane.b32.xlu1 %v1376_v42, 264  ;;  %1394 = vbcast.lane.b32.xlu0 %v1376_v42, 288 }
 0x2f7   : > { %v5653_v36 = vpop.permute.xlu1 %1146  ;;  %v5655_v39 = vpop.permute.xlu0 %1158 }
 0x2f8   : > { %8092 = vst [vmem:[#allocation156_spill] sm:$0xff] %v5653_v36  ;;  %8093 = vst [vmem:[#allocation157_spill] sm:$0xff] %v5655_v39  ;;  %v364_v39 = vmul.f32 2.0, %v5531_v6 }
 0x2f9   : > { %1390 = vbcast.lane.b32.xlu1 %v1376_v42, 280  ;;  %1402 = vbcast.lane.b32.xlu0 %v1376_v42, 304 }
 0x2fb   : > { %v5657_v26 = vpop.permute.xlu1 %1154  ;;  %v5659_v1 = vpop.permute.xlu0 %1166 }
 0x2fc   : > { %8094 = vst [vmem:[#allocation158_spill] sm:$0xff] %v5657_v26  ;;  %8095 = vst [vmem:[#allocation159_spill] sm:$0xff] %v5659_v1  ;;  %v1443_v1 = vrot.slane %v364_v39, %v5184_v37 }
 0x2fd   : > { %1398 = vbcast.lane.b32.xlu1 %v1376_v42, 296  ;;  %1410 = vbcast.lane.b32.xlu0 %v1376_v42, 320 }
 0x2ff   : > { %v5661_v55 = vpop.permute.xlu1 %1162  ;;  %v5663_v44 = vpop.permute.xlu0 %1177 }
 0x300   : > { %8096 = vst [vmem:[#allocation160_spill] sm:$0xff] %v5661_v55 }
 0x301   : > { %1406 = vbcast.lane.b32.xlu1 %v1376_v42, 312  ;;  %1418 = vbcast.lane.b32.xlu0 %v1376_v42, 336 }
 0x303   : > { %v5665_v54 = vpop.permute.xlu1 %1170  ;;  %v5667_v43 = vpop.permute.xlu0 %1185 }
 0x304   : > { %8097 = vst [vmem:[#allocation161_spill] sm:$0xff] %v5665_v54 }
 0x305   : > { %1414 = vbcast.lane.b32.xlu1 %v1376_v42, 328  ;;  %1426 = vbcast.lane.b32.xlu0 %v1376_v42, 352 }
 0x307   : > { %v5670_v36 = vpop.permute.xlu1 %1181  ;;  %v5672_v26 = vpop.permute.xlu0 %1193 }
 0x308   : > { %8098 = vst [vmem:[#allocation162_spill] sm:$0xff] %v5670_v36  ;;  %8099 = vst [vmem:[#allocation163_spill] sm:$0xff] %v5672_v26 }
 0x309   : > { %1422 = vbcast.lane.b32.xlu1 %v1376_v42, 344  ;;  %1434 = vbcast.lane.b32.xlu0 %v1376_v42, 368 }
 0x30b   : > { %v5675_v55 = vpop.permute.xlu1 %1189  ;;  %v5677_v35 = vpop.permute.xlu0 %1201 }
 0x30c   : > { %8100 = vst [vmem:[#allocation164_spill] sm:$0xff] %v5675_v55  ;;  %8101 = vst [vmem:[#allocation165_spill] sm:$0xff] %v5677_v35 }
 0x30d   : > { %1430 = vbcast.lane.b32.xlu1 %v1376_v42, 360  ;;  %1445 = vbcast.lane.b32.xlu0 %v1443_v1, 256 }
 0x30f   : > { %v5679_v54 = vpop.permute.xlu1 %1197  ;;  %v5681_v7 = vpop.permute.xlu0 %1209 }
 0x310   : > { %8102 = vst [vmem:[#allocation166_spill] sm:$0xff] %v5679_v54  ;;  %8103 = vst [vmem:[#allocation167_spill] sm:$0xff] %v5681_v7 }
 0x311   : > { %1438 = vbcast.lane.b32.xlu1 %v1376_v42, 376  ;;  %1453 = vbcast.lane.b32.xlu0 %v1443_v1, 272 }
 0x313   : > { %v5683_v6 = vpop.permute.xlu1 %1205  ;;  %v5685_v36 = vpop.permute.xlu0 %1217 }
 0x314   : > { %8104 = vst [vmem:[#allocation168_spill] sm:$0xff] %v5683_v6  ;;  %8105 = vst [vmem:[#allocation169_spill] sm:$0xff] %v5685_v36 }
 0x315   : > { %1449 = vbcast.lane.b32.xlu1 %v1443_v1, 264  ;;  %1461 = vbcast.lane.b32.xlu0 %v1443_v1, 288 }
 0x317   : > { %v5687_v37 = vpop.permute.xlu1 %1213  ;;  %v5689_v39 = vpop.permute.xlu0 %1225 }
 0x318   : > { %8106 = vst [vmem:[#allocation170_spill] sm:$0xff] %v5687_v37  ;;  %8107 = vst [vmem:[#allocation171_spill] sm:$0xff] %v5689_v39 }
 0x319   : > { %1457 = vbcast.lane.b32.xlu1 %v1443_v1, 280  ;;  %1469 = vbcast.lane.b32.xlu0 %v1443_v1, 304 }
 0x31b   : > { %v5691_v35 = vpop.permute.xlu1 %1221  ;;  %v5693_v26 = vpop.permute.xlu0 %1233 }
 0x31c   : > { %8108 = vst [vmem:[#allocation172_spill] sm:$0xff] %v5691_v35  ;;  %8109 = vst [vmem:[#allocation173_spill] sm:$0xff] %v5693_v26  ;;  %v1779_v26 = vsub.f32 %v5200_v47, %v5236_v2  ;;  %v1784_v2 = vsub.f32 %v5206_v50, %v5252_v11  ;;  %v1788_v11 = vsub.f32 %v5218_v56, %v5260_v15 }
 0x31d   : > { %1465 = vbcast.lane.b32.xlu1 %v1443_v1, 296  ;;  %1477 = vbcast.lane.b32.xlu0 %v1443_v1, 320  ;;  %v1792_v15 = vsub.f32 %v5226_v60, %v5268_v19  ;;  %v1796_v19 = vsub.f32 %v5204_v49, %v5277_v24  ;;  %v1800_v24 = vsub.f32 %v5206_v50, %v5288_v29 }
 0x31e   : > { %v1804_v29 = vsub.f32 %v5218_v56, %v5296_v33  ;;  %v1808_v33 = vsub.f32 %v5226_v60, %v5304_v41  ;;  %v1812_v41 = vsub.f32 %v5204_v49, %v5313_v8 }
 0x31f   : > { %v5695_v42 = vpop.permute.xlu1 %1229  ;;  %v5697_v7 = vpop.permute.xlu0 %1244 }
 0x320   : > { %8110 = vst [vmem:[#allocation174_spill] sm:$0xff] %v5695_v42 }
 0x321   : > { %1473 = vbcast.lane.b32.xlu1 %v1443_v1, 312  ;;  %1485 = vbcast.lane.b32.xlu0 %v1443_v1, 336 }
 0x323   : > { %v5699_v36 = vpop.permute.xlu1 %1237  ;;  %v5701_v6 = vpop.permute.xlu0 %1252 }
 0x324   : > { %8111 = vst [vmem:[#allocation175_spill] sm:$0xff] %v5699_v36  ;;  %v1782_v36 = vsub.f32 %v5202_v48, %v5248_v9  ;;  %v1781_v9 = vsub.f32 %v5198_v46, %v5239_v4  ;;  %v1785_v4 = vsub.f32 %v5212_v53, %v5250_v10  ;;  %v1789_v10 = vsub.f32 %v5224_v59, %v5258_v14 }
 0x325   : > { %1481 = vbcast.lane.b32.xlu1 %v1443_v1, 328  ;;  %1493 = vbcast.lane.b32.xlu0 %v1443_v1, 352  ;;  %v1793_v14 = vsub.f32 %v5232_v63, %v5266_v18  ;;  %v1797_v18 = vsub.f32 %v5198_v46, %v5274_v22  ;;  %v1801_v22 = vsub.f32 %v5212_v53, %v5286_v28 }
 0x326   : > { %v1805_v28 = vsub.f32 %v5224_v59, %v5294_v32  ;;  %v1809_v32 = vsub.f32 %v5232_v63, %v5302_v40  ;;  %v8129_v40 = vld [vmem:[#allocation6_spill] sm:$0xff] }
 0x327   : > { %v5703_v39 = vpop.permute.xlu1 %1248  ;;  %v5705_v37 = vpop.permute.xlu0 %1260 }
 0x328   : > { %8112 = vst [vmem:[#allocation176_spill] sm:$0xff] %v5705_v37  ;;  %v1780_v37 = vsub.f32 %v5204_v49, %v5234_v0  ;;  %v1783_v0 = vsub.f32 %v5208_v51, %v5241_v5  ;;  %v1787_v5 = vsub.f32 %v5220_v57, %v5254_v12  ;;  %v1791_v12 = vsub.f32 %v5228_v61, %v5262_v16 }
 0x329   : > { %1489 = vbcast.lane.b32.xlu1 %v1443_v1, 344  ;;  %1501 = vbcast.lane.b32.xlu0 %v1443_v1, 368  ;;  %v1795_v16 = vsub.f32 %v5200_v47, %v5270_v20  ;;  %v1799_v20 = vsub.f32 %v5208_v51, %v5279_v25  ;;  %v1803_v25 = vsub.f32 %v5220_v57, %v5290_v30 }
 0x32a   : > { %v1807_v30 = vsub.f32 %v5228_v61, %v5298_v34  ;;  %v8126_v34 = vld [vmem:[#allocation5_spill] sm:$0xff] }
 0x32b   : > { %v5709_v42 = vpop.permute.xlu1 %1256  ;;  %v5711_v35 = vpop.permute.xlu0 %1268  ;;  %v1811_v8 = vsub.f32 %v5200_v47, %v8126_v34  ;;  %v8133_v34 = vld [vmem:[#allocation7_spill] sm:$0xff] }
 0x32c   : > { %8113 = vst [vmem:[#allocation177_spill] sm:$0xff] %v5709_v42  ;;  %8114 = vst [vmem:[#allocation178_spill] sm:$0xff] %v5711_v35 }
 0x32d   : > { %1497 = vbcast.lane.b32.xlu1 %v1443_v1, 360  ;;  %2327 = vperm.xlu0 %4978, %v1779_v26   ;;  %v1786_v26 = vsub.f32 %v5210_v52, %v5256_v13  ;;  %v1790_v13 = vsub.f32 %v5222_v58, %v5264_v17  ;;  %v1794_v17 = vsub.f32 %v5230_v62, %v5272_v21 }
 0x32e   : > { %v1798_v21 = vsub.f32 %v5202_v48, %v5284_v27  ;;  %v1802_v27 = vsub.f32 %v5210_v52, %v5292_v31  ;;  %v1806_v31 = vsub.f32 %v5222_v58, %v5300_v38  ;;  %v1810_v38 = vsub.f32 %v5230_v62, %v5308_v45 }
 0x32f   : > { %v5715_v54 = vpop.permute.xlu1 %1264  ;;  %v5717_v55 = vpop.permute.xlu0 %1276  ;;  %v1814_v45 = vsub.f32 %v5202_v48, %v5321_v3  ;;  %v1813_v3 = vsub.f32 %v5198_v46, %v8129_v40  ;;  %v8137_v40 = vld [vmem:[#allocation8_spill] sm:$0xff] }
 0x331   : > { %1505 = vbcast.lane.b32.xlu1 %v1443_v1, 376  ;;  %2336 = vperm.xlu0 %4978, %v1782_v36  }
 0x333   : > { %v5723_v42 = vpop.permute.xlu1 %1272  ;;  %v5725_v35 = vpop.permute.xlu0 %1284 }
 0x335   : > { %2330 = vperm.xlu1 %4979, %v1780_v37   ;;  %2342 = vperm.xlu0 %4978, %v1784_v2  }
 0x337   : > { %v5731_v1 = vpop.permute.xlu1 %1280  ;;  %v5733_v36 = vpop.permute.xlu0 %1292 }
 0x339   : > { %2333 = vperm.xlu1 %4979, %v1781_v9   ;;  %2348 = vperm.xlu0 %4978, %v1786_v26  }
 0x33b   : > { %v5739_v37 = vpop.permute.xlu1 %1288  ;;  %v5741_v2 = vpop.permute.xlu0 %1300 }
 0x33c   : > { %8115 = vst [vmem:[#allocation179_spill] sm:$0xff] %v5741_v2 }
 0x33d   : > { %2339 = vperm.xlu1 %4979, %v1783_v0   ;;  %2354 = vperm.xlu0 %4978, %v1788_v11  }
 0x33f   : > { %v5747_v9 = vpop.permute.xlu1 %1296  ;;  %v5749_v26 = vpop.permute.xlu0 %1311 }
 0x340   : > { %8116 = vst [vmem:[#allocation180_spill] sm:$0xff] %v5747_v9  ;;  %v8153_v9 = vld [vmem:[#allocation25_spill] sm:$0xff] }
 0x341   : > { %2345 = vperm.xlu1 %4979, %v1785_v4   ;;  %2360 = vperm.xlu0 %4978, %v1790_v13  }
 0x343   : > { %v5755_v0 = vpop.permute.xlu1 %1304  ;;  %v5757_v11 = vpop.permute.xlu0 %1319 }
 0x344   : > { %8117 = vst [vmem:[#allocation181_spill] sm:$0xff] %v5755_v0 }
 0x345   : > { %2351 = vperm.xlu1 %4979, %v1787_v5   ;;  %2366 = vperm.xlu0 %4978, %v1792_v15  }
 0x347   : > { %v5763_v4 = vpop.permute.xlu1 %1315  ;;  %v5765_v13 = vpop.permute.xlu0 %1327 }
 0x349   : > { %2357 = vperm.xlu1 %4979, %v1789_v10   ;;  %2372 = vperm.xlu0 %4978, %v1794_v17  }
 0x34b   : > { %v5771_v5 = vpop.permute.xlu1 %1323  ;;  %v5773_v15 = vpop.permute.xlu0 %1335 }
 0x34d   : > { %2363 = vperm.xlu1 %4979, %v1791_v12   ;;  %2378 = vperm.xlu0 %4978, %v1796_v19  }
 0x34f   : > { %v5779_v10 = vpop.permute.xlu1 %1331  ;;  %v5781_v17 = vpop.permute.xlu0 %1343 }
 0x351   : > { %2369 = vperm.xlu1 %4979, %v1793_v14   ;;  %2384 = vperm.xlu0 %4978, %v1798_v21  }
 0x353   : > { %v5787_v12 = vpop.permute.xlu1 %1339  ;;  %v5789_v19 = vpop.permute.xlu0 %1351 }
 0x354   : > { %8118 = vst [vmem:[#allocation182_spill] sm:$0xff] %v5789_v19  ;;  %v8149_v19 = vld [vmem:[#allocation23_spill] sm:$0xff] }
 0x355   : > { %2375 = vperm.xlu1 %4979, %v1795_v16   ;;  %2390 = vperm.xlu0 %4978, %v1800_v24   ;;  %v1830_v0 = vsub.f32 %v5202_v48, %v8149_v19  ;;  %v8156_v19 = vld [vmem:[#allocation27_spill] sm:$0xff] }
 0x357   : > { %v5795_v14 = vpop.permute.xlu1 %1347  ;;  %v5797_v21 = vpop.permute.xlu0 %1359 }
 0x358   : > { %8119 = vst [vmem:[#allocation183_spill] sm:$0xff] %v5795_v14  ;;  %8120 = vst [vmem:[#allocation184_spill] sm:$0xff] %v5797_v21 }
 0x359   : > { %2381 = vperm.xlu1 %4979, %v1797_v18   ;;  %2396 = vperm.xlu0 %4978, %v1802_v27  }
 0x35b   : > { %v5803_v16 = vpop.permute.xlu1 %1355  ;;  %v5805_v24 = vpop.permute.xlu0 %1367 }
 0x35c   : > { %8121 = vst [vmem:[#allocation185_spill] sm:$0xff] %v5803_v16  ;;  %8122 = vst [vmem:[#allocation186_spill] sm:$0xff] %v5805_v24  ;;  %v8130_v24 = vld [vmem:[#allocation11_spill] sm:$0xff]  ;;  %v8134_v16 = vld [vmem:[#allocation13_spill] sm:$0xff] }
 0x35d   : > { %2387 = vperm.xlu1 %4979, %v1799_v20   ;;  %2402 = vperm.xlu0 %4978, %v1804_v29  }
 0x35f   : > { %v5811_v18 = vpop.permute.xlu1 %1363  ;;  %v5813_v27 = vpop.permute.xlu0 %1378 }
 0x360   : > { %8123 = vst [vmem:[#allocation187_spill] sm:$0xff] %v5811_v18 }
 0x361   : > { %2393 = vperm.xlu1 %4979, %v1801_v22   ;;  %2408 = vperm.xlu0 %4978, %v1806_v31  }
 0x363   : > { %v5819_v20 = vpop.permute.xlu1 %1371  ;;  %v5821_v29 = vpop.permute.xlu0 %1386 }
 0x364   : > { %8124 = vst [vmem:[#allocation188_spill] sm:$0xff] %v5819_v20  ;;  %v8127_v20 = vld [vmem:[#allocation9_spill] sm:$0xff] }
 0x365   : > { %2399 = vperm.xlu1 %4979, %v1803_v25   ;;  %2414 = vperm.xlu0 %4978, %v1808_v33   ;;  %v1816_v18 = vsub.f32 %v5206_v50, %v8127_v20  ;;  %v1815_v20 = vsub.f32 %v5208_v51, %v8133_v34  ;;  %v8140_v34 = vld [vmem:[#allocation10_spill] sm:$0xff] }
 0x367   : > { %v5827_v22 = vpop.permute.xlu1 %1382  ;;  %v5829_v31 = vpop.permute.xlu0 %1394 }
 0x369   : > { %2405 = vperm.xlu1 %4979, %v1805_v28   ;;  %2420 = vperm.xlu0 %4978, %v1810_v38  }
 0x36b   : > { %v5835_v25 = vpop.permute.xlu1 %1390  ;;  %v5837_v33 = vpop.permute.xlu0 %1402 }
 0x36d   : > { %2411 = vperm.xlu1 %4979, %v1807_v30   ;;  %2426 = vperm.xlu0 %4978, %v1812_v41  }
 0x36f   : > { %v5843_v28 = vpop.permute.xlu1 %1398  ;;  %v5845_v38 = vpop.permute.xlu0 %1410 }
 0x370   : > { %8125 = vst [vmem:[#allocation189_spill] sm:$0xff] %v5845_v38  ;;  %v1818_v38 = vsub.f32 %v5210_v52, %v8130_v24  ;;  %v1817_v24 = vsub.f32 %v5212_v53, %v8137_v40  ;;  %v8143_v40 = vld [vmem:[#allocation12_spill] sm:$0xff] }
 0x371   : > { %2417 = vperm.xlu1 %4979, %v1809_v32   ;;  %2432 = vperm.xlu0 %4978, %v1814_v45  }
 0x373   : > { %v5851_v30 = vpop.permute.xlu1 %1406  ;;  %v5853_v41 = vpop.permute.xlu0 %1418 }
 0x374   : > { %8128 = vst [vmem:[#allocation5_spill] sm:$0xff] %v5853_v41  ;;  %v1820_v41 = vsub.f32 %v5218_v56, %v8134_v16  ;;  %v1819_v16 = vsub.f32 %v5220_v57, %v8140_v34  ;;  %v8145_v34 = vld [vmem:[#allocation14_spill] sm:$0xff] }
 0x375   : > { %2423 = vperm.xlu1 %4979, %v1811_v8   ;;  %2438 = vperm.xlu0 %4978, %v1816_v18  }
 0x377   : > { %v5859_v32 = vpop.permute.xlu1 %1414  ;;  %v5861_v45 = vpop.permute.xlu0 %1426 }
 0x378   : > { %8131 = vst [vmem:[#allocation9_spill] sm:$0xff] %v5859_v32  ;;  %8132 = vst [vmem:[#allocation6_spill] sm:$0xff] %v5861_v45  ;;  %v8138_v32 = vld [vmem:[#allocation15_spill] sm:$0xff] }
 0x379   : > { %2429 = vperm.xlu1 %4979, %v1813_v3   ;;  %2444 = vperm.xlu0 %4978, %v1818_v38   ;;  %v1822_v45 = vsub.f32 %v5222_v58, %v8138_v32  ;;  %v1821_v32 = vsub.f32 %v5224_v59, %v8143_v40  ;;  %v8148_v40 = vld [vmem:[#allocation16_spill] sm:$0xff] }
 0x37b   : > { %v5867_v8 = vpop.permute.xlu1 %1422  ;;  %v5869_v18 = vpop.permute.xlu0 %1434 }
 0x37c   : > { %8135 = vst [vmem:[#allocation11_spill] sm:$0xff] %v5867_v8  ;;  %8136 = vst [vmem:[#allocation7_spill] sm:$0xff] %v5869_v18  ;;  %v8141_v8 = vld [vmem:[#allocation17_spill] sm:$0xff] }
 0x37d   : > { %2435 = vperm.xlu1 %4979, %v1815_v20   ;;  %2450 = vperm.xlu0 %4978, %v1820_v41   ;;  %v1824_v18 = vsub.f32 %v5226_v60, %v8141_v8  ;;  %v1823_v8 = vsub.f32 %v5228_v61, %v8145_v34  ;;  %v8152_v34 = vld [vmem:[#allocation18_spill] sm:$0xff] }
 0x37f   : > { %v5875_v3 = vpop.permute.xlu1 %1430  ;;  %v5877_v38 = vpop.permute.xlu0 %1445 }
 0x380   : > { %8139 = vst [vmem:[#allocation13_spill] sm:$0xff] %v5875_v3  ;;  %v8144_v3 = vld [vmem:[#allocation19_spill] sm:$0xff] }
 0x381   : > { %2441 = vperm.xlu1 %4979, %v1817_v24   ;;  %2456 = vperm.xlu0 %4978, %v1822_v45   ;;  %v1826_v21 = vsub.f32 %v5230_v62, %v8144_v3  ;;  %v1825_v3 = vsub.f32 %v5232_v63, %v8148_v40 }
 0x383   : > { %v5883_v20 = vpop.permute.xlu1 %1438  ;;  %v5885_v41 = vpop.permute.xlu0 %1453 }
 0x384   : > { %8142 = vst [vmem:[#allocation8_spill] sm:$0xff] %v5883_v20  ;;  %v8146_v20 = vld [vmem:[#allocation21_spill] sm:$0xff] }
 0x385   : > { %2447 = vperm.xlu1 %4979, %v1819_v16   ;;  %2462 = vperm.xlu0 %4978, %v1824_v18   ;;  %v1828_v14 = vsub.f32 %v5204_v49, %v8146_v20  ;;  %v1827_v20 = vsub.f32 %v5200_v47, %v8152_v34  ;;  %v8159_v34 = vld [vmem:[#allocation22_spill] sm:$0xff] }
 0x387   : > { %v5891_v24 = vpop.permute.xlu1 %1449  ;;  %v5893_v45 = vpop.permute.xlu0 %1461 }
 0x389   : > { %2453 = vperm.xlu1 %4979, %v1821_v32   ;;  %2468 = vperm.xlu0 %4978, %v1826_v21  }
 0x38b   : > { %v5899_v16 = vpop.permute.xlu1 %1457  ;;  %v5901_v18 = vpop.permute.xlu0 %1469 }
 0x38c   : > { %8147 = vst [vmem:[#allocation15_spill] sm:$0xff] %v5901_v18  ;;  %v1832_v18 = vsub.f32 %v5206_v50, %v8153_v9  ;;  %v8160_v9 = vld [vmem:[#allocation29_spill] sm:$0xff] }
 0x38d   : > { %2459 = vperm.xlu1 %4979, %v1823_v8   ;;  %2474 = vperm.xlu0 %4978, %v1828_v14   ;;  %v8155_v14 = vld [vmem:[#allocation20_spill] sm:$0xff] }
 0x38e   : > { %v1829_v40 = vsub.f32 %v5198_v46, %v8155_v14 }
 0x38f   : > { %v5907_v32 = vpop.permute.xlu1 %1465  ;;  %v5909_v21 = vpop.permute.xlu0 %1477 }
 0x390   : > { %8150 = vst [vmem:[#allocation10_spill] sm:$0xff] %v5907_v32  ;;  %8151 = vst [vmem:[#allocation17_spill] sm:$0xff] %v5909_v21  ;;  %v1834_v32 = vsub.f32 %v5210_v52, %v8156_v19  ;;  %v1831_v21 = vsub.f32 %v5208_v51, %v8159_v34  ;;  %v8163_v19 = vld [vmem:[#allocation31_spill] sm:$0xff] }
 0x391   : > { %2465 = vperm.xlu1 %4979, %v1825_v3   ;;  %2480 = vperm.xlu0 %4978, %v1830_v0  }
 0x393   : > { %v5915_v8 = vpop.permute.xlu1 %1473  ;;  %v5921_v3 = vpop.permute.xlu0 %1485 }
 0x394   : > { %8154 = vst [vmem:[#allocation12_spill] sm:$0xff] %v5915_v8  ;;  %8157 = vst [vmem:[#allocation19_spill] sm:$0xff] %v5921_v3  ;;  %v1836_v8 = vsub.f32 %v5218_v56, %v8160_v9  ;;  %v1838_v3 = vsub.f32 %v5222_v58, %v8163_v19  ;;  %v8170_v19 = vld [vmem:[#allocation35_spill] sm:$0xff] }
 0x395   : > { %2471 = vperm.xlu1 %4979, %v1827_v20   ;;  %2486 = vperm.xlu0 %4978, %v1832_v18   ;;  %v8162_v20 = vld [vmem:[#allocation24_spill] sm:$0xff] }
 0x396   : > { %v1833_v14 = vsub.f32 %v5212_v53, %v8162_v20  ;;  %v8169_v20 = vld [vmem:[#allocation28_spill] sm:$0xff] }
 0x397   : > { %v5923_v0 = vpop.permute.xlu1 %1481  ;;  %v5929_v18 = vpop.permute.xlu0 %1493 }
 0x398   : > { %8158 = vst [vmem:[#allocation14_spill] sm:$0xff] %v5923_v0  ;;  %8161 = vst [vmem:[#allocation21_spill] sm:$0xff] %v5929_v18  ;;  %v8166_v0 = vld [vmem:[#allocation33_spill] sm:$0xff]  ;;  %v1837_v18 = vsub.f32 %v5224_v59, %v8169_v20  ;;  %v8176_v20 = vld [vmem:[#allocation32_spill] sm:$0xff] }
 0x399   : > { %2477 = vperm.xlu1 %4979, %v1829_v40   ;;  %2492 = vperm.xlu0 %4978, %v1834_v32   ;;  %v8165_v32 = vld [vmem:[#allocation26_spill] sm:$0xff]  ;;  %v1840_v9 = vsub.f32 %v5226_v60, %v8166_v0  ;;  %v8173_v0 = vld [vmem:[#allocation37_spill] sm:$0xff] }
 0x39a   : > { %v1835_v34 = vsub.f32 %v5220_v57, %v8165_v32 }
 0x39b   : > { %v5935_v40 = vpop.permute.xlu1 %1489 }
 0x39c   : > { %8164 = vst [vmem:[#allocation16_spill] sm:$0xff] %v5935_v40  ;;  %v1842_v40 = vsub.f32 %v5230_v62, %v8170_v19  ;;  %v8177_v19 = vld [vmem:[#allocation39_spill] sm:$0xff] }
 0x39d   : > { %2483 = vperm.xlu1 %4979, %v1831_v21   ;;  %2498 = vperm.xlu0 %4978, %v1836_v8   ;;  %v5941_v21 = vpop.permute.xlu0 %1501 }
 0x39e   : > { %8167 = vst [vmem:[#allocation23_spill] sm:$0xff] %v5941_v21  ;;  %v1844_v21 = vsub.f32 %v5204_v49, %v8173_v0 }
 0x39f   : > { %v5943_v8 = vpop.permute.xlu1 %1497 }
 0x3a0   : > { %8168 = vst [vmem:[#allocation18_spill] sm:$0xff] %v5943_v8  ;;  %v1841_v8 = vsub.f32 %v5232_v63, %v8176_v20  ;;  %v8184_v20 = vld [vmem:[#allocation36_spill] sm:$0xff] }
 0x3a1   : > { %2489 = vperm.xlu1 %4979, %v1833_v14   ;;  %2504 = vperm.xlu0 %4978, %v1838_v3   ;;  %v8172_v3 = vld [vmem:[#allocation30_spill] sm:$0xff] }
 0x3a2   : > { %v1839_v32 = vsub.f32 %v5228_v61, %v8172_v3  ;;  %v8180_v3 = vld [vmem:[#allocation34_spill] sm:$0xff] }
 0x3a3   : > { %v1843_v0 = vsub.f32 %v5200_v47, %v8180_v3  ;;  %v8188_v3 = vld [vmem:[#allocation38_spill] sm:$0xff] }
 0x3a5   : > { %2495 = vperm.xlu1 %4979, %v1835_v34   ;;  %2510 = vperm.xlu0 %4978, %v1840_v9   ;;  %v5955_v34 = vpop.permute.xlu1 %1505 }
 0x3a6   : > { %8174 = vst [vmem:[#allocation20_spill] sm:$0xff] %v5955_v34  ;;  %v8181_v34 = vld [vmem:[#allocation41_spill] sm:$0xff] }
 0x3a8   : > { %v5949_v14 = vpop.permute.xlu0 %2327 }
 0x3a9   : > { %8171 = vst [vmem:[#allocation25_spill] sm:$0xff] %v5949_v14  ;;  %2501 = vperm.xlu1 %4979, %v1837_v18   ;;  %2516 = vperm.xlu0 %4978, %v1842_v40   ;;  %v1846_v14 = vsub.f32 %v5202_v48, %v8177_v19  ;;  %v1845_v19 = vsub.f32 %v5198_v46, %v8184_v20  ;;  %v8192_v20 = vld [vmem:[#allocation40_spill] sm:$0xff] }
 0x3ac   : > { %v5957_v9 = vpop.permute.xlu0 %2336 }
 0x3ad   : > { %8175 = vst [vmem:[#allocation27_spill] sm:$0xff] %v5957_v9  ;;  %2507 = vperm.xlu1 %4979, %v1839_v32   ;;  %2522 = vperm.xlu0 %4978, %v1844_v21   ;;  %v1848_v9 = vsub.f32 %v5206_v50, %v8181_v34  ;;  %v1847_v34 = vsub.f32 %v5208_v51, %v8188_v3  ;;  %v8196_v3 = vld [vmem:[#allocation42_spill] sm:$0xff] }
 0x3b0   : > { %v5963_v18 = vpop.permute.xlu1 %2330  ;;  %v5965_v40 = vpop.permute.xlu0 %2342 }
 0x3b1   : > { %8178 = vst [vmem:[#allocation22_spill] sm:$0xff] %v5963_v18  ;;  %8179 = vst [vmem:[#allocation29_spill] sm:$0xff] %v5965_v40  ;;  %2513 = vperm.xlu1 %4979, %v1841_v8   ;;  %2528 = vperm.xlu0 %4978, %v1846_v14   ;;  %v8185_v18 = vld [vmem:[#allocation43_spill] sm:$0xff] }
 0x3b2   : > { %v1850_v40 = vsub.f32 %v5210_v52, %v8185_v18  ;;  %v1849_v18 = vsub.f32 %v5212_v53, %v8192_v20  ;;  %v8200_v20 = vld [vmem:[#allocation44_spill] sm:$0xff] }
 0x3b4   : > { %v5971_v32 = vpop.permute.xlu1 %2333  ;;  %v5973_v21 = vpop.permute.xlu0 %2348 }
 0x3b5   : > { %8182 = vst [vmem:[#allocation24_spill] sm:$0xff] %v5971_v32  ;;  %8183 = vst [vmem:[#allocation31_spill] sm:$0xff] %v5973_v21  ;;  %2519 = vperm.xlu1 %4979, %v1843_v0   ;;  %2534 = vperm.xlu0 %4978, %v1848_v9   ;;  %v8189_v32 = vld [vmem:[#allocation45_spill] sm:$0xff] }
 0x3b6   : > { %v1852_v21 = vsub.f32 %v5218_v56, %v8189_v32  ;;  %v1851_v32 = vsub.f32 %v5220_v57, %v8196_v3  ;;  %v8204_v3 = vld [vmem:[#allocation46_spill] sm:$0xff] }
 0x3b8   : > { %v5979_v8 = vpop.permute.xlu1 %2339  ;;  %v5981_v14 = vpop.permute.xlu0 %2354 }
 0x3b9   : > { %8186 = vst [vmem:[#allocation26_spill] sm:$0xff] %v5979_v8  ;;  %8187 = vst [vmem:[#allocation33_spill] sm:$0xff] %v5981_v14  ;;  %2525 = vperm.xlu1 %4979, %v1845_v19   ;;  %2540 = vperm.xlu0 %4978, %v1850_v40   ;;  %v8193_v8 = vld [vmem:[#allocation47_spill] sm:$0xff] }
 0x3ba   : > { %v1854_v14 = vsub.f32 %v5222_v58, %v8193_v8  ;;  %v1853_v8 = vsub.f32 %v5224_v59, %v8200_v20  ;;  %v8208_v20 = vld [vmem:[#allocation48_spill] sm:$0xff] }
 0x3bc   : > { %v5987_v0 = vpop.permute.xlu1 %2345  ;;  %v5989_v9 = vpop.permute.xlu0 %2360 }
 0x3bd   : > { %8190 = vst [vmem:[#allocation28_spill] sm:$0xff] %v5987_v0  ;;  %8191 = vst [vmem:[#allocation35_spill] sm:$0xff] %v5989_v9  ;;  %2531 = vperm.xlu1 %4979, %v1847_v34   ;;  %2546 = vperm.xlu0 %4978, %v1852_v21   ;;  %v8197_v0 = vld [vmem:[#allocation49_spill] sm:$0xff] }
 0x3be   : > { %v1856_v9 = vsub.f32 %v5226_v60, %v8197_v0  ;;  %v1855_v0 = vsub.f32 %v5228_v61, %v8204_v3  ;;  %v8212_v3 = vld [vmem:[#allocation50_spill] sm:$0xff] }
 0x3c0   : > { %v5995_v19 = vpop.permute.xlu1 %2351  ;;  %v5997_v40 = vpop.permute.xlu0 %2366 }
 0x3c1   : > { %8194 = vst [vmem:[#allocation30_spill] sm:$0xff] %v5995_v19  ;;  %8195 = vst [vmem:[#allocation37_spill] sm:$0xff] %v5997_v40  ;;  %2537 = vperm.xlu1 %4979, %v1849_v18   ;;  %2552 = vperm.xlu0 %4978, %v1854_v14   ;;  %v8201_v19 = vld [vmem:[#allocation51_spill] sm:$0xff] }
 0x3c2   : > { %v1858_v40 = vsub.f32 %v5230_v62, %v8201_v19  ;;  %v1857_v19 = vsub.f32 %v5232_v63, %v8208_v20  ;;  %v8216_v20 = vld [vmem:[#allocation52_spill] sm:$0xff] }
 0x3c4   : > { %v6003_v34 = vpop.permute.xlu1 %2357  ;;  %v6005_v21 = vpop.permute.xlu0 %2372 }
 0x3c5   : > { %8198 = vst [vmem:[#allocation32_spill] sm:$0xff] %v6003_v34  ;;  %8199 = vst [vmem:[#allocation39_spill] sm:$0xff] %v6005_v21  ;;  %2543 = vperm.xlu1 %4979, %v1851_v32   ;;  %2558 = vperm.xlu0 %4978, %v1856_v9   ;;  %v8205_v34 = vld [vmem:[#allocation53_spill] sm:$0xff] }
 0x3c6   : > { %v1860_v21 = vsub.f32 %v5204_v49, %v8205_v34  ;;  %v1859_v34 = vsub.f32 %v5200_v47, %v8212_v3  ;;  %v8220_v3 = vld [vmem:[#allocation54_spill] sm:$0xff] }
 0x3c8   : > { %v6011_v18 = vpop.permute.xlu1 %2363  ;;  %v6013_v14 = vpop.permute.xlu0 %2378 }
 0x3c9   : > { %8202 = vst [vmem:[#allocation34_spill] sm:$0xff] %v6011_v18  ;;  %8203 = vst [vmem:[#allocation41_spill] sm:$0xff] %v6013_v14  ;;  %2549 = vperm.xlu1 %4979, %v1853_v8   ;;  %2564 = vperm.xlu0 %4978, %v1858_v40   ;;  %v8209_v18 = vld [vmem:[#allocation55_spill] sm:$0xff] }
 0x3ca   : > { %v1862_v14 = vsub.f32 %v5202_v48, %v8209_v18  ;;  %v1861_v18 = vsub.f32 %v5198_v46, %v8216_v20  ;;  %v8224_v20 = vld [vmem:[#allocation56_spill] sm:$0xff] }
 0x3cc   : > { %v6019_v32 = vpop.permute.xlu1 %2369  ;;  %v6021_v9 = vpop.permute.xlu0 %2384 }
 0x3cd   : > { %8206 = vst [vmem:[#allocation36_spill] sm:$0xff] %v6019_v32  ;;  %8207 = vst [vmem:[#allocation43_spill] sm:$0xff] %v6021_v9  ;;  %2555 = vperm.xlu1 %4979, %v1855_v0   ;;  %2570 = vperm.xlu0 %4978, %v1860_v21   ;;  %v8213_v32 = vld [vmem:[#allocation57_spill] sm:$0xff] }
 0x3ce   : > { %v1864_v9 = vsub.f32 %v5206_v50, %v8213_v32  ;;  %v1863_v32 = vsub.f32 %v5208_v51, %v8220_v3  ;;  %v8228_v3 = vld [vmem:[#allocation58_spill] sm:$0xff] }
 0x3d0   : > { %v6027_v8 = vpop.permute.xlu1 %2375  ;;  %v6029_v40 = vpop.permute.xlu0 %2390 }
 0x3d1   : > { %8210 = vst [vmem:[#allocation38_spill] sm:$0xff] %v6027_v8  ;;  %8211 = vst [vmem:[#allocation45_spill] sm:$0xff] %v6029_v40  ;;  %2561 = vperm.xlu1 %4979, %v1857_v19   ;;  %2576 = vperm.xlu0 %4978, %v1862_v14   ;;  %v8217_v8 = vld [vmem:[#allocation59_spill] sm:$0xff] }
 0x3d2   : > { %v1866_v40 = vsub.f32 %v5210_v52, %v8217_v8  ;;  %v1865_v8 = vsub.f32 %v5212_v53, %v8224_v20  ;;  %v8232_v20 = vld [vmem:[#allocation60_spill] sm:$0xff] }
 0x3d4   : > { %v6035_v0 = vpop.permute.xlu1 %2381  ;;  %v6037_v21 = vpop.permute.xlu0 %2396 }
 0x3d5   : > { %8214 = vst [vmem:[#allocation40_spill] sm:$0xff] %v6035_v0  ;;  %8215 = vst [vmem:[#allocation47_spill] sm:$0xff] %v6037_v21  ;;  %2567 = vperm.xlu1 %4979, %v1859_v34   ;;  %2582 = vperm.xlu0 %4978, %v1864_v9   ;;  %v8221_v0 = vld [vmem:[#allocation61_spill] sm:$0xff] }
 0x3d6   : > { %v1868_v21 = vsub.f32 %v5218_v56, %v8221_v0  ;;  %v1867_v0 = vsub.f32 %v5220_v57, %v8228_v3  ;;  %v8236_v3 = vld [vmem:[#allocation62_spill] sm:$0xff] }
 0x3d8   : > { %v6043_v19 = vpop.permute.xlu1 %2387  ;;  %v6045_v14 = vpop.permute.xlu0 %2402 }
 0x3d9   : > { %8218 = vst [vmem:[#allocation42_spill] sm:$0xff] %v6043_v19  ;;  %8219 = vst [vmem:[#allocation49_spill] sm:$0xff] %v6045_v14  ;;  %2573 = vperm.xlu1 %4979, %v1861_v18   ;;  %2588 = vperm.xlu0 %4978, %v1866_v40   ;;  %v8225_v19 = vld [vmem:[#allocation63_spill] sm:$0xff] }
 0x3da   : > { %v1870_v14 = vsub.f32 %v5222_v58, %v8225_v19  ;;  %v1869_v19 = vsub.f32 %v5224_v59, %v8232_v20  ;;  %v8240_v20 = vld [vmem:[#allocation64_spill] sm:$0xff] }
 0x3dc   : > { %v6051_v34 = vpop.permute.xlu1 %2393  ;;  %v6053_v9 = vpop.permute.xlu0 %2408 }
 0x3dd   : > { %8222 = vst [vmem:[#allocation44_spill] sm:$0xff] %v6051_v34  ;;  %8223 = vst [vmem:[#allocation51_spill] sm:$0xff] %v6053_v9  ;;  %2579 = vperm.xlu1 %4979, %v1863_v32   ;;  %2594 = vperm.xlu0 %4978, %v1868_v21   ;;  %v8229_v34 = vld [vmem:[#allocation65_spill] sm:$0xff] }
 0x3de   : > { %v1872_v9 = vsub.f32 %v5226_v60, %v8229_v34  ;;  %v1871_v34 = vsub.f32 %v5228_v61, %v8236_v3  ;;  %v8244_v3 = vld [vmem:[#allocation66_spill] sm:$0xff] }
 0x3e0   : > { %v6059_v18 = vpop.permute.xlu1 %2399  ;;  %v6061_v40 = vpop.permute.xlu0 %2414 }
 0x3e1   : > { %8226 = vst [vmem:[#allocation46_spill] sm:$0xff] %v6059_v18  ;;  %8227 = vst [vmem:[#allocation53_spill] sm:$0xff] %v6061_v40  ;;  %2585 = vperm.xlu1 %4979, %v1865_v8   ;;  %2600 = vperm.xlu0 %4978, %v1870_v14   ;;  %v8233_v18 = vld [vmem:[#allocation67_spill] sm:$0xff] }
 0x3e2   : > { %v1874_v40 = vsub.f32 %v5230_v62, %v8233_v18  ;;  %v1873_v18 = vsub.f32 %v5232_v63, %v8240_v20  ;;  %v8248_v20 = vld [vmem:[#allocation68_spill] sm:$0xff] }
 0x3e4   : > { %v6067_v32 = vpop.permute.xlu1 %2405  ;;  %v6069_v21 = vpop.permute.xlu0 %2420 }
 0x3e5   : > { %8230 = vst [vmem:[#allocation48_spill] sm:$0xff] %v6067_v32  ;;  %8231 = vst [vmem:[#allocation55_spill] sm:$0xff] %v6069_v21  ;;  %2591 = vperm.xlu1 %4979, %v1867_v0   ;;  %2606 = vperm.xlu0 %4978, %v1872_v9   ;;  %v8237_v32 = vld [vmem:[#allocation69_spill] sm:$0xff] }
 0x3e6   : > { %v1876_v21 = vsub.f32 %v5204_v49, %v8237_v32  ;;  %v1875_v32 = vsub.f32 %v5200_v47, %v8244_v3  ;;  %v8252_v3 = vld [vmem:[#allocation70_spill] sm:$0xff] }
 0x3e8   : > { %v6075_v8 = vpop.permute.xlu1 %2411  ;;  %v6077_v14 = vpop.permute.xlu0 %2426 }
 0x3e9   : > { %8234 = vst [vmem:[#allocation50_spill] sm:$0xff] %v6075_v8  ;;  %8235 = vst [vmem:[#allocation57_spill] sm:$0xff] %v6077_v14  ;;  %2597 = vperm.xlu1 %4979, %v1869_v19   ;;  %2612 = vperm.xlu0 %4978, %v1874_v40   ;;  %v8241_v8 = vld [vmem:[#allocation71_spill] sm:$0xff] }
 0x3ea   : > { %v1878_v14 = vsub.f32 %v5202_v48, %v8241_v8  ;;  %v1877_v8 = vsub.f32 %v5198_v46, %v8248_v20  ;;  %v8256_v20 = vld [vmem:[#allocation72_spill] sm:$0xff] }
 0x3ec   : > { %v6083_v0 = vpop.permute.xlu1 %2417  ;;  %v6085_v9 = vpop.permute.xlu0 %2432 }
 0x3ed   : > { %8238 = vst [vmem:[#allocation52_spill] sm:$0xff] %v6083_v0  ;;  %8239 = vst [vmem:[#allocation59_spill] sm:$0xff] %v6085_v9  ;;  %2603 = vperm.xlu1 %4979, %v1871_v34   ;;  %2618 = vperm.xlu0 %4978, %v1876_v21   ;;  %v8245_v0 = vld [vmem:[#allocation73_spill] sm:$0xff] }
 0x3ee   : > { %v1880_v9 = vsub.f32 %v5206_v50, %v8245_v0  ;;  %v1879_v0 = vsub.f32 %v5208_v51, %v8252_v3  ;;  %v8260_v3 = vld [vmem:[#allocation74_spill] sm:$0xff] }
 0x3f0   : > { %v6091_v19 = vpop.permute.xlu1 %2423  ;;  %v6093_v40 = vpop.permute.xlu0 %2438 }
 0x3f1   : > { %8242 = vst [vmem:[#allocation54_spill] sm:$0xff] %v6091_v19  ;;  %8243 = vst [vmem:[#allocation61_spill] sm:$0xff] %v6093_v40  ;;  %2609 = vperm.xlu1 %4979, %v1873_v18   ;;  %2624 = vperm.xlu0 %4978, %v1878_v14   ;;  %v8249_v19 = vld [vmem:[#allocation75_spill] sm:$0xff] }
 0x3f2   : > { %v1882_v40 = vsub.f32 %v5210_v52, %v8249_v19  ;;  %v1881_v19 = vsub.f32 %v5212_v53, %v8256_v20  ;;  %v8264_v20 = vld [vmem:[#allocation76_spill] sm:$0xff] }
 0x3f4   : > { %v6099_v34 = vpop.permute.xlu1 %2429  ;;  %v6101_v21 = vpop.permute.xlu0 %2444 }
 0x3f5   : > { %8246 = vst [vmem:[#allocation56_spill] sm:$0xff] %v6099_v34  ;;  %8247 = vst [vmem:[#allocation63_spill] sm:$0xff] %v6101_v21  ;;  %2615 = vperm.xlu1 %4979, %v1875_v32   ;;  %2630 = vperm.xlu0 %4978, %v1880_v9   ;;  %v8253_v34 = vld [vmem:[#allocation77_spill] sm:$0xff] }
 0x3f6   : > { %v1884_v21 = vsub.f32 %v5218_v56, %v8253_v34  ;;  %v1883_v34 = vsub.f32 %v5220_v57, %v8260_v3  ;;  %v8268_v3 = vld [vmem:[#allocation78_spill] sm:$0xff] }
 0x3f8   : > { %v6107_v18 = vpop.permute.xlu1 %2435  ;;  %v6109_v14 = vpop.permute.xlu0 %2450 }
 0x3f9   : > { %8250 = vst [vmem:[#allocation58_spill] sm:$0xff] %v6107_v18  ;;  %8251 = vst [vmem:[#allocation65_spill] sm:$0xff] %v6109_v14  ;;  %2621 = vperm.xlu1 %4979, %v1877_v8   ;;  %2636 = vperm.xlu0 %4978, %v1882_v40   ;;  %v8257_v18 = vld [vmem:[#allocation79_spill] sm:$0xff] }
 0x3fa   : > { %v1886_v14 = vsub.f32 %v5222_v58, %v8257_v18  ;;  %v1885_v18 = vsub.f32 %v5224_v59, %v8264_v20  ;;  %v8272_v20 = vld [vmem:[#allocation80_spill] sm:$0xff] }
 0x3fc   : > { %v6115_v32 = vpop.permute.xlu1 %2441  ;;  %v6117_v9 = vpop.permute.xlu0 %2456 }
 0x3fd   : > { %8254 = vst [vmem:[#allocation60_spill] sm:$0xff] %v6115_v32  ;;  %8255 = vst [vmem:[#allocation67_spill] sm:$0xff] %v6117_v9  ;;  %2627 = vperm.xlu1 %4979, %v1879_v0   ;;  %2642 = vperm.xlu0 %4978, %v1884_v21   ;;  %v8261_v32 = vld [vmem:[#allocation81_spill] sm:$0xff] }
 0x3fe   : > { %v1888_v9 = vsub.f32 %v5226_v60, %v8261_v32  ;;  %v1887_v32 = vsub.f32 %v5228_v61, %v8268_v3  ;;  %v8276_v3 = vld [vmem:[#allocation82_spill] sm:$0xff] }
 0x400   : > { %v6123_v8 = vpop.permute.xlu1 %2447  ;;  %v6125_v40 = vpop.permute.xlu0 %2462 }
 0x401   : > { %8258 = vst [vmem:[#allocation62_spill] sm:$0xff] %v6123_v8  ;;  %8259 = vst [vmem:[#allocation69_spill] sm:$0xff] %v6125_v40  ;;  %2633 = vperm.xlu1 %4979, %v1881_v19   ;;  %2648 = vperm.xlu0 %4978, %v1886_v14   ;;  %v8265_v8 = vld [vmem:[#allocation83_spill] sm:$0xff] }
 0x402   : > { %v1890_v40 = vsub.f32 %v5230_v62, %v8265_v8  ;;  %v1889_v8 = vsub.f32 %v5232_v63, %v8272_v20  ;;  %v8280_v20 = vld [vmem:[#allocation84_spill] sm:$0xff] }
 0x404   : > { %v6131_v0 = vpop.permute.xlu1 %2453  ;;  %v6133_v21 = vpop.permute.xlu0 %2468 }
 0x405   : > { %8262 = vst [vmem:[#allocation64_spill] sm:$0xff] %v6131_v0  ;;  %8263 = vst [vmem:[#allocation71_spill] sm:$0xff] %v6133_v21  ;;  %2639 = vperm.xlu1 %4979, %v1883_v34   ;;  %2654 = vperm.xlu0 %4978, %v1888_v9   ;;  %v8269_v0 = vld [vmem:[#allocation85_spill] sm:$0xff] }
 0x406   : > { %v1892_v21 = vsub.f32 %v5204_v49, %v8269_v0  ;;  %v1891_v0 = vsub.f32 %v5200_v47, %v8276_v3  ;;  %v8284_v3 = vld [vmem:[#allocation86_spill] sm:$0xff] }
 0x408   : > { %v6139_v19 = vpop.permute.xlu1 %2459  ;;  %v6141_v14 = vpop.permute.xlu0 %2474 }
 0x409   : > { %8266 = vst [vmem:[#allocation66_spill] sm:$0xff] %v6139_v19  ;;  %8267 = vst [vmem:[#allocation73_spill] sm:$0xff] %v6141_v14  ;;  %2645 = vperm.xlu1 %4979, %v1885_v18   ;;  %2660 = vperm.xlu0 %4978, %v1890_v40   ;;  %v8273_v19 = vld [vmem:[#allocation87_spill] sm:$0xff] }
 0x40a   : > { %v1894_v14 = vsub.f32 %v5202_v48, %v8273_v19  ;;  %v1893_v19 = vsub.f32 %v5198_v46, %v8280_v20  ;;  %v8288_v20 = vld [vmem:[#allocation88_spill] sm:$0xff] }
 0x40c   : > { %v6147_v34 = vpop.permute.xlu1 %2465  ;;  %v6149_v9 = vpop.permute.xlu0 %2480 }
 0x40d   : > { %8270 = vst [vmem:[#allocation68_spill] sm:$0xff] %v6147_v34  ;;  %8271 = vst [vmem:[#allocation75_spill] sm:$0xff] %v6149_v9  ;;  %2651 = vperm.xlu1 %4979, %v1887_v32   ;;  %2666 = vperm.xlu0 %4978, %v1892_v21   ;;  %v8277_v34 = vld [vmem:[#allocation89_spill] sm:$0xff] }
 0x40e   : > { %v1896_v9 = vsub.f32 %v5206_v50, %v8277_v34  ;;  %v1895_v34 = vsub.f32 %v5208_v51, %v8284_v3  ;;  %v8292_v3 = vld [vmem:[#allocation90_spill] sm:$0xff] }
 0x410   : > { %v6155_v18 = vpop.permute.xlu1 %2471  ;;  %v6157_v40 = vpop.permute.xlu0 %2486 }
 0x411   : > { %8274 = vst [vmem:[#allocation70_spill] sm:$0xff] %v6155_v18  ;;  %8275 = vst [vmem:[#allocation77_spill] sm:$0xff] %v6157_v40  ;;  %2657 = vperm.xlu1 %4979, %v1889_v8   ;;  %2672 = vperm.xlu0 %4978, %v1894_v14   ;;  %v8281_v18 = vld [vmem:[#allocation91_spill] sm:$0xff] }
 0x412   : > { %v1898_v40 = vsub.f32 %v5210_v52, %v8281_v18  ;;  %v1897_v18 = vsub.f32 %v5212_v53, %v8288_v20  ;;  %v8296_v20 = vld [vmem:[#allocation92_spill] sm:$0xff] }
 0x414   : > { %v6163_v32 = vpop.permute.xlu1 %2477  ;;  %v6165_v21 = vpop.permute.xlu0 %2492 }
 0x415   : > { %8278 = vst [vmem:[#allocation72_spill] sm:$0xff] %v6163_v32  ;;  %8279 = vst [vmem:[#allocation79_spill] sm:$0xff] %v6165_v21  ;;  %2663 = vperm.xlu1 %4979, %v1891_v0   ;;  %2678 = vperm.xlu0 %4978, %v1896_v9   ;;  %v8285_v32 = vld [vmem:[#allocation93_spill] sm:$0xff] }
 0x416   : > { %v1900_v21 = vsub.f32 %v5218_v56, %v8285_v32  ;;  %v1899_v32 = vsub.f32 %v5220_v57, %v8292_v3  ;;  %v8300_v3 = vld [vmem:[#allocation94_spill] sm:$0xff] }
 0x418   : > { %v6171_v8 = vpop.permute.xlu1 %2483  ;;  %v6173_v14 = vpop.permute.xlu0 %2498 }
 0x419   : > { %8282 = vst [vmem:[#allocation74_spill] sm:$0xff] %v6171_v8  ;;  %8283 = vst [vmem:[#allocation81_spill] sm:$0xff] %v6173_v14  ;;  %2669 = vperm.xlu1 %4979, %v1893_v19   ;;  %2684 = vperm.xlu0 %4978, %v1898_v40   ;;  %v8289_v8 = vld [vmem:[#allocation95_spill] sm:$0xff] }
 0x41a   : > { %v1902_v14 = vsub.f32 %v5222_v58, %v8289_v8  ;;  %v1901_v8 = vsub.f32 %v5224_v59, %v8296_v20  ;;  %v8304_v20 = vld [vmem:[#allocation96_spill] sm:$0xff] }
 0x41c   : > { %v6179_v0 = vpop.permute.xlu1 %2489  ;;  %v6181_v9 = vpop.permute.xlu0 %2504 }
 0x41d   : > { %8286 = vst [vmem:[#allocation76_spill] sm:$0xff] %v6179_v0  ;;  %8287 = vst [vmem:[#allocation83_spill] sm:$0xff] %v6181_v9  ;;  %2675 = vperm.xlu1 %4979, %v1895_v34   ;;  %2690 = vperm.xlu0 %4978, %v1900_v21   ;;  %v8293_v0 = vld [vmem:[#allocation97_spill] sm:$0xff] }
 0x41e   : > { %v1904_v9 = vsub.f32 %v5226_v60, %v8293_v0  ;;  %v1903_v0 = vsub.f32 %v5228_v61, %v8300_v3  ;;  %v8308_v3 = vld [vmem:[#allocation98_spill] sm:$0xff] }
 0x420   : > { %v6187_v19 = vpop.permute.xlu1 %2495  ;;  %v6189_v40 = vpop.permute.xlu0 %2510 }
 0x421   : > { %8290 = vst [vmem:[#allocation78_spill] sm:$0xff] %v6187_v19  ;;  %8291 = vst [vmem:[#allocation85_spill] sm:$0xff] %v6189_v40  ;;  %2681 = vperm.xlu1 %4979, %v1897_v18   ;;  %2696 = vperm.xlu0 %4978, %v1902_v14   ;;  %v8297_v19 = vld [vmem:[#allocation99_spill] sm:$0xff] }
 0x422   : > { %v1906_v40 = vsub.f32 %v5230_v62, %v8297_v19  ;;  %v1905_v19 = vsub.f32 %v5232_v63, %v8304_v20  ;;  %v8312_v20 = vld [vmem:[#allocation100_spill] sm:$0xff] }
 0x424   : > { %v6195_v34 = vpop.permute.xlu1 %2501  ;;  %v6197_v21 = vpop.permute.xlu0 %2516 }
 0x425   : > { %8294 = vst [vmem:[#allocation80_spill] sm:$0xff] %v6195_v34  ;;  %8295 = vst [vmem:[#allocation87_spill] sm:$0xff] %v6197_v21  ;;  %2687 = vperm.xlu1 %4979, %v1899_v32   ;;  %2702 = vperm.xlu0 %4978, %v1904_v9   ;;  %v8301_v34 = vld [vmem:[#allocation101_spill] sm:$0xff] }
 0x426   : > { %v1908_v21 = vsub.f32 %v5204_v49, %v8301_v34  ;;  %v1907_v34 = vsub.f32 %v5200_v47, %v8308_v3  ;;  %v8315_v3 = vld [vmem:[#allocation114_spill] sm:$0xff] }
 0x428   : > { %v6203_v18 = vpop.permute.xlu1 %2507  ;;  %v6205_v14 = vpop.permute.xlu0 %2522 }
 0x429   : > { %8298 = vst [vmem:[#allocation82_spill] sm:$0xff] %v6203_v18  ;;  %8299 = vst [vmem:[#allocation89_spill] sm:$0xff] %v6205_v14  ;;  %2693 = vperm.xlu1 %4979, %v1901_v8   ;;  %2708 = vperm.xlu0 %4978, %v1906_v40   ;;  %v8305_v18 = vld [vmem:[#allocation103_spill] sm:$0xff] }
 0x42a   : > { %v1910_v14 = vsub.f32 %v5202_v48, %v8305_v18  ;;  %v1909_v18 = vsub.f32 %v5198_v46, %v8312_v20  ;;  %v8319_v20 = vld [vmem:[#allocation116_spill] sm:$0xff] }
 0x42c   : > { %v6211_v32 = vpop.permute.xlu1 %2513  ;;  %v6213_v9 = vpop.permute.xlu0 %2528 }
 0x42d   : > { %8302 = vst [vmem:[#allocation84_spill] sm:$0xff] %v6211_v32  ;;  %8303 = vst [vmem:[#allocation91_spill] sm:$0xff] %v6213_v9  ;;  %2699 = vperm.xlu1 %4979, %v1903_v0   ;;  %2714 = vperm.xlu0 %4978, %v1908_v21   ;;  %v8309_v32 = vld [vmem:[#allocation117_spill] sm:$0xff] }
 0x42e   : > { %v1924_v9 = vsub.f32 %v5204_v49, %v8309_v32  ;;  %v1923_v32 = vsub.f32 %v5200_v47, %v8315_v3  ;;  %v8322_v3 = vld [vmem:[#allocation102_spill] sm:$0xff] }
 0x430   : > { %v6219_v8 = vpop.permute.xlu1 %2519  ;;  %v6221_v40 = vpop.permute.xlu0 %2534 }
 0x431   : > { %8306 = vst [vmem:[#allocation86_spill] sm:$0xff] %v6219_v8  ;;  %8307 = vst [vmem:[#allocation93_spill] sm:$0xff] %v6221_v40  ;;  %2705 = vperm.xlu1 %4979, %v1905_v19   ;;  %2720 = vperm.xlu0 %4978, %v1910_v14   ;;  %v8313_v8 = vld [vmem:[#allocation130_spill] sm:$0xff] }
 0x432   : > { %v1939_v40 = vsub.f32 %v5200_v47, %v8313_v8  ;;  %v1925_v8 = vsub.f32 %v5198_v46, %v8319_v20  ;;  %v8326_v20 = vld [vmem:[#allocation132_spill] sm:$0xff] }
 0x434   : > { %v6227_v0 = vpop.permute.xlu1 %2525  ;;  %v6229_v21 = vpop.permute.xlu0 %2540 }
 0x435   : > { %8310 = vst [vmem:[#allocation88_spill] sm:$0xff] %v6227_v0  ;;  %8311 = vst [vmem:[#allocation95_spill] sm:$0xff] %v6229_v21  ;;  %2711 = vperm.xlu1 %4979, %v1907_v34   ;;  %2762 = vperm.xlu0 %4978, %v1924_v9   ;;  %v8316_v0 = vld [vmem:[#allocation119_spill] sm:$0xff] }
 0x436   : > { %v1926_v21 = vsub.f32 %v5202_v48, %v8316_v0  ;;  %v1911_v0 = vsub.f32 %v5208_v51, %v8322_v3  ;;  %v8330_v3 = vld [vmem:[#allocation148_spill] sm:$0xff] }
 0x438   : > { %v6235_v19 = vpop.permute.xlu1 %2531  ;;  %v6237_v14 = vpop.permute.xlu0 %2546 }
 0x439   : > { %8314 = vst [vmem:[#allocation90_spill] sm:$0xff] %v6237_v14  ;;  %2717 = vperm.xlu1 %4979, %v1909_v18   ;;  %2807 = vperm.xlu0 %4978, %v1939_v40   ;;  %v1955_v14 = vsub.f32 %v5200_v47, %v5628_v23  ;;  %v1941_v23 = vsub.f32 %v5198_v46, %v8326_v20  ;;  %v8333_v20 = vld [vmem:[#allocation105_spill] sm:$0xff] }
 0x43c   : > { %v6243_v34 = vpop.permute.xlu1 %2537  ;;  %v6245_v9 = vpop.permute.xlu0 %2552 }
 0x43d   : > { %8317 = vst [vmem:[#allocation97_spill] sm:$0xff] %v6243_v34  ;;  %8318 = vst [vmem:[#allocation92_spill] sm:$0xff] %v6245_v9  ;;  %2759 = vperm.xlu1 %4979, %v1923_v32   ;;  %2768 = vperm.xlu0 %4978, %v1926_v21   ;;  %v8323_v34 = vld [vmem:[#allocation133_spill] sm:$0xff] }
 0x43e   : > { %v1940_v9 = vsub.f32 %v5204_v49, %v8323_v34  ;;  %v1956_v34 = vsub.f32 %v5204_v49, %v8330_v3  ;;  %v8337_v3 = vld [vmem:[#allocation134_spill] sm:$0xff] }
 0x440   : > { %v6251_v18 = vpop.permute.xlu1 %2543  ;;  %v6253_v40 = vpop.permute.xlu0 %2558 }
 0x441   : > { %8320 = vst [vmem:[#allocation99_spill] sm:$0xff] %v6251_v18  ;;  %8321 = vst [vmem:[#allocation94_spill] sm:$0xff] %v6253_v40  ;;  %2765 = vperm.xlu1 %4979, %v1925_v8   ;;  %2855 = vperm.xlu0 %4978, %v1955_v14   ;;  %v8327_v18 = vld [vmem:[#allocation135_spill] sm:$0xff] }
 0x442   : > { %v1942_v40 = vsub.f32 %v5202_v48, %v8327_v18  ;;  %v1912_v18 = vsub.f32 %v5206_v50, %v8333_v20  ;;  %v8341_v20 = vld [vmem:[#allocation162_spill] sm:$0xff] }
 0x444   : > { %v6259_v32 = vpop.permute.xlu1 %2549  ;;  %v6261_v21 = vpop.permute.xlu0 %2564 }
 0x445   : > { %8324 = vst [vmem:[#allocation101_spill] sm:$0xff] %v6259_v32  ;;  %8325 = vst [vmem:[#allocation96_spill] sm:$0xff] %v6261_v21  ;;  %2810 = vperm.xlu1 %4979, %v1940_v9   ;;  %2723 = vperm.xlu0 %4978, %v1911_v0   ;;  %v1971_v21 = vsub.f32 %v5200_v47, %v5663_v44  ;;  %v1943_v44 = vsub.f32 %v5208_v51, %v8337_v3  ;;  %v8344_v3 = vld [vmem:[#allocation121_spill] sm:$0xff] }
 0x448   : > { %v6267_v8 = vpop.permute.xlu1 %2555  ;;  %v6269_v14 = vpop.permute.xlu0 %2570 }
 0x449   : > { %8328 = vst [vmem:[#allocation103_spill] sm:$0xff] %v6267_v8  ;;  %8329 = vst [vmem:[#allocation98_spill] sm:$0xff] %v6269_v14  ;;  %2813 = vperm.xlu1 %4979, %v1941_v23   ;;  %2816 = vperm.xlu0 %4978, %v1942_v40   ;;  %v8334_v8 = vld [vmem:[#allocation118_spill] sm:$0xff] }
 0x44a   : > { %v1927_v32 = vsub.f32 %v5208_v51, %v8334_v8  ;;  %v1973_v8 = vsub.f32 %v5198_v46, %v5667_v43  ;;  %v8347_v43 = vld [vmem:[#allocation120_spill] sm:$0xff] }
 0x44c   : > { %v6275_v9 = vpop.permute.xlu1 %2561  ;;  %v6277_v0 = vpop.permute.xlu0 %2576 }
 0x44d   : > { %8331 = vst [vmem:[#allocation117_spill] sm:$0xff] %v6275_v9  ;;  %8332 = vst [vmem:[#allocation100_spill] sm:$0xff] %v6277_v0  ;;  %2858 = vperm.xlu1 %4979, %v1956_v34   ;;  %2903 = vperm.xlu0 %4978, %v1971_v21   ;;  %v8338_v9 = vld [vmem:[#allocation147_spill] sm:$0xff] }
 0x44e   : > { %v1957_v0 = vsub.f32 %v5198_v46, %v8338_v9  ;;  %v1928_v9 = vsub.f32 %v5206_v50, %v8344_v3  ;;  %v8351_v3 = vld [vmem:[#allocation149_spill] sm:$0xff] }
 0x450   : > { %v6283_v23 = vpop.permute.xlu1 %2567  ;;  %v6285_v40 = vpop.permute.xlu0 %2582 }
 0x451   : > { %8335 = vst [vmem:[#allocation130_spill] sm:$0xff] %v6283_v23  ;;  %8336 = vst [vmem:[#allocation114_spill] sm:$0xff] %v6285_v40  ;;  %2771 = vperm.xlu1 %4979, %v1927_v32   ;;  %2726 = vperm.xlu0 %4978, %v1912_v18   ;;  %v1972_v40 = vsub.f32 %v5204_v49, %v8341_v20  ;;  %v1929_v20 = vsub.f32 %v5212_v53, %v8347_v43  ;;  %v8354_v43 = vld [vmem:[#allocation104_spill] sm:$0xff]  ;;  %v8469_v23 = vld [vmem:[#allocation157_spill] sm:$0xff] }
 0x454   : > { %v6291_v34 = vpop.permute.xlu1 %2573  ;;  %v6293_v21 = vpop.permute.xlu0 %2588 }
 0x455   : > { %8339 = vst [vmem:[#allocation119_spill] sm:$0xff] %v6291_v34  ;;  %8340 = vst [vmem:[#allocation116_spill] sm:$0xff] %v6293_v21  ;;  %2861 = vperm.xlu1 %4979, %v1957_v0   ;;  %2819 = vperm.xlu0 %4978, %v1943_v44   ;;  %v1988_v21 = vsub.f32 %v5204_v49, %v5703_v39  ;;  %v1959_v39 = vsub.f32 %v5208_v51, %v8351_v3  ;;  %v8357_v3 = vld [vmem:[#allocation137_spill] sm:$0xff]  ;;  %v8462_v34 = vld [vmem:[#allocation131_spill] sm:$0xff] }
 0x458   : > { %v6299_v32 = vpop.permute.xlu1 %2579  ;;  %v6301_v18 = vpop.permute.xlu0 %2594 }
 0x459   : > { %8342 = vst [vmem:[#allocation102_spill] sm:$0xff] %v6299_v32  ;;  %8343 = vst [vmem:[#allocation133_spill] sm:$0xff] %v6301_v18  ;;  %2906 = vperm.xlu1 %4979, %v1972_v40   ;;  %2909 = vperm.xlu0 %4978, %v1973_v8   ;;  %v8348_v32 = vld [vmem:[#allocation150_spill] sm:$0xff] }
 0x45a   : > { %v1958_v18 = vsub.f32 %v5202_v48, %v8348_v32  ;;  %v1913_v32 = vsub.f32 %v5212_v53, %v8354_v43  ;;  %v8360_v43 = vld [vmem:[#allocation123_spill] sm:$0xff] }
 0x45c   : > { %v6307_v0 = vpop.permute.xlu1 %2585  ;;  %v6309_v44 = vpop.permute.xlu0 %2600 }
 0x45d   : > { %8345 = vst [vmem:[#allocation132_spill] sm:$0xff] %v6307_v0  ;;  %8346 = vst [vmem:[#allocation135_spill] sm:$0xff] %v6309_v44  ;;  %2774 = vperm.xlu1 %4979, %v1928_v9   ;;  %2954 = vperm.xlu0 %4978, %v1988_v21   ;;  %v1987_v44 = vsub.f32 %v5200_v47, %v5697_v7  ;;  %v1944_v7 = vsub.f32 %v5206_v50, %v8357_v3  ;;  %v8364_v3 = vld [vmem:[#allocation152_spill] sm:$0xff] }
 0x45e   : > { %v8461_v0 = vld [vmem:[#allocation128_spill] sm:$0xff] }
 0x460   : > { %v6315_v40 = vpop.permute.xlu1 %2591  ;;  %v6317_v8 = vpop.permute.xlu0 %2606 }
 0x461   : > { %8349 = vst [vmem:[#allocation148_spill] sm:$0xff] %v6315_v40  ;;  %8350 = vst [vmem:[#allocation105_spill] sm:$0xff] %v6317_v8  ;;  %2864 = vperm.xlu1 %4979, %v1958_v18   ;;  %2777 = vperm.xlu0 %4978, %v1929_v20   ;;  %v1989_v8 = vsub.f32 %v5198_v46, %v5701_v6  ;;  %v1930_v6 = vsub.f32 %v5210_v52, %v8360_v43  ;;  %v8367_v43 = vld [vmem:[#allocation107_spill] sm:$0xff]  ;;  %v8368_v40 = vld [vmem:[#allocation177_spill] sm:$0xff] }
 0x464   : > { %v6323_v9 = vpop.permute.xlu1 %2597  ;;  %v6325_v21 = vpop.permute.xlu0 %2612 }
 0x465   : > { %8352 = vst [vmem:[#allocation118_spill] sm:$0xff] %v6323_v9  ;;  %8353 = vst [vmem:[#allocation134_spill] sm:$0xff] %v6325_v21  ;;  %2951 = vperm.xlu1 %4979, %v1987_v44   ;;  %2867 = vperm.xlu0 %4978, %v1959_v39   ;;  %v2004_v21 = vsub.f32 %v5204_v49, %v5763_v4  ;;  %v1960_v4 = vsub.f32 %v5206_v50, %v8364_v3  ;;  %v8371_v3 = vld [vmem:[#allocation136_spill] sm:$0xff] }
 0x468   : > { %v6331_v18 = vpop.permute.xlu1 %2603  ;;  %v6333_v20 = vpop.permute.xlu0 %2618 }
 0x469   : > { %8355 = vst [vmem:[#allocation147_spill] sm:$0xff] %v6331_v18  ;;  %8356 = vst [vmem:[#allocation162_spill] sm:$0xff] %v6333_v20  ;;  %2729 = vperm.xlu1 %4979, %v1913_v32   ;;  %2957 = vperm.xlu0 %4978, %v1989_v8   ;;  %v8361_v18 = vld [vmem:[#allocation164_spill] sm:$0xff]  ;;  %v2010_v20 = vsub.f32 %v5210_v52, %v5787_v12 }
 0x46a   : > { %v1974_v9 = vsub.f32 %v5202_v48, %v8361_v18  ;;  %v1914_v18 = vsub.f32 %v5210_v52, %v8367_v43  ;;  %v8374_v43 = vld [vmem:[#allocation106_spill] sm:$0xff] }
 0x46c   : > { %v6339_v44 = vpop.permute.xlu1 %2609  ;;  %v6341_v39 = vpop.permute.xlu0 %2624 }
 0x46d   : > { %8358 = vst [vmem:[#allocation121_spill] sm:$0xff] %v6339_v44  ;;  %8359 = vst [vmem:[#allocation120_spill] sm:$0xff] %v6341_v39  ;;  %2822 = vperm.xlu1 %4979, %v1944_v7   ;;  %3002 = vperm.xlu0 %4978, %v2004_v21   ;;  %v2003_v44 = vsub.f32 %v5200_v47, %v5749_v26  ;;  %v1945_v26 = vsub.f32 %v5212_v53, %v8371_v3  ;;  %v8378_v3 = vld [vmem:[#allocation139_spill] sm:$0xff] }
 0x46e   : > { %v2025_v39 = vsub.f32 %v5212_v53, %v5837_v33 }
 0x470   : > { %v6347_v32 = vpop.permute.xlu1 %2615  ;;  %v6349_v8 = vpop.permute.xlu0 %2630 }
 0x471   : > { %8362 = vst [vmem:[#allocation150_spill] sm:$0xff] %v6347_v32  ;;  %8363 = vst [vmem:[#allocation149_spill] sm:$0xff] %v6349_v8  ;;  %2912 = vperm.xlu1 %4979, %v1974_v9   ;;  %2780 = vperm.xlu0 %4978, %v1930_v6   ;;  %v1990_v8 = vsub.f32 %v5202_v48, %v8368_v40  ;;  %v1915_v40 = vsub.f32 %v5220_v57, %v8374_v43  ;;  %v8381_v43 = vld [vmem:[#allocation166_spill] sm:$0xff]  ;;  %v8471_v32 = vld [vmem:[#allocation160_spill] sm:$0xff] }
 0x474   : > { %v6355_v7 = vpop.permute.xlu1 %2621  ;;  %v6357_v21 = vpop.permute.xlu0 %2636 }
 0x475   : > { %8365 = vst [vmem:[#allocation104_spill] sm:$0xff] %v6355_v7  ;;  %8366 = vst [vmem:[#allocation137_spill] sm:$0xff] %v6357_v21  ;;  %2999 = vperm.xlu1 %4979, %v2003_v44   ;;  %2870 = vperm.xlu0 %4978, %v1960_v4   ;;  %v2019_v21 = vsub.f32 %v5200_v47, %v5813_v27  ;;  %v1946_v27 = vsub.f32 %v5210_v52, %v8378_v3  ;;  %v8384_v3 = vld [vmem:[#allocation122_spill] sm:$0xff] }
 0x476   : > { %v2011_v7 = vsub.f32 %v5220_v57, %v5781_v17 }
 0x478   : > { %v6363_v9 = vpop.permute.xlu1 %2627  ;;  %v6365_v6 = vpop.permute.xlu0 %2642 }
 0x479   : > { %8369 = vst [vmem:[#allocation123_spill] sm:$0xff] %v6363_v9  ;;  %8370 = vst [vmem:[#allocation164_spill] sm:$0xff] %v6365_v6  ;;  %2732 = vperm.xlu1 %4979, %v1914_v18   ;;  %2960 = vperm.xlu0 %4978, %v1990_v8   ;;  %v8375_v9 = vld [vmem:[#allocation163_spill] sm:$0xff] }
 0x47a   : > { %v1975_v6 = vsub.f32 %v5208_v51, %v8375_v9  ;;  %v1976_v9 = vsub.f32 %v5206_v50, %v8381_v43  ;;  %v8387_v43 = vld [vmem:[#allocation109_spill] sm:$0xff] }
 0x47c   : > { %v6371_v44 = vpop.permute.xlu1 %2633  ;;  %v6373_v4 = vpop.permute.xlu0 %2648 }
 0x47d   : > { %8372 = vst [vmem:[#allocation152_spill] sm:$0xff] %v6371_v44  ;;  %8373 = vst [vmem:[#allocation107_spill] sm:$0xff] %v6373_v4  ;;  %2825 = vperm.xlu1 %4979, %v1945_v26   ;;  %3047 = vperm.xlu0 %4978, %v2019_v21   ;;  %v2005_v4 = vsub.f32 %v5198_v46, %v5757_v11  ;;  %v1931_v11 = vsub.f32 %v5220_v57, %v8384_v3  ;;  %v8391_v3 = vld [vmem:[#allocation138_spill] sm:$0xff] }
 0x47e   : > { %v8402_v44 = vld [vmem:[#allocation154_spill] sm:$0xff] }
 0x480   : > { %v6379_v18 = vpop.permute.xlu1 %2639  ;;  %v6381_v8 = vpop.permute.xlu0 %2654 }
 0x481   : > { %8376 = vst [vmem:[#allocation177_spill] sm:$0xff] %v6379_v18  ;;  %8377 = vst [vmem:[#allocation136_spill] sm:$0xff] %v6381_v8  ;;  %2915 = vperm.xlu1 %4979, %v1975_v6   ;;  %2735 = vperm.xlu0 %4978, %v1915_v40   ;;  %v2020_v8 = vsub.f32 %v5204_v49, %v5827_v22  ;;  %v1916_v22 = vsub.f32 %v5218_v56, %v8387_v43  ;;  %v8395_v43 = vld [vmem:[#allocation165_spill] sm:$0xff] }
 0x484   : > { %v6387_v26 = vpop.permute.xlu1 %2645  ;;  %v6389_v21 = vpop.permute.xlu0 %2660 }
 0x485   : > { %8379 = vst [vmem:[#allocation106_spill] sm:$0xff] %v6387_v26  ;;  %8380 = vst [vmem:[#allocation163_spill] sm:$0xff] %v6389_v21  ;;  %3005 = vperm.xlu1 %4979, %v2005_v4   ;;  %2828 = vperm.xlu0 %4978, %v1946_v27   ;;  %v2006_v21 = vsub.f32 %v5202_v48, %v5771_v5  ;;  %v1947_v5 = vsub.f32 %v5220_v57, %v8391_v3  ;;  %v8398_v3 = vld [vmem:[#allocation125_spill] sm:$0xff] }
 0x488   : > { %v6395_v6 = vpop.permute.xlu1 %2651  ;;  %v6397_v40 = vpop.permute.xlu0 %2666 }
 0x489   : > { %8382 = vst [vmem:[#allocation139_spill] sm:$0xff] %v6395_v6  ;;  %8383 = vst [vmem:[#allocation166_spill] sm:$0xff] %v6397_v40  ;;  %3050 = vperm.xlu1 %4979, %v2020_v8   ;;  %2918 = vperm.xlu0 %4978, %v1976_v9   ;;  %v8388_v6 = vld [vmem:[#allocation151_spill] sm:$0xff]  ;;  %v8445_v40 = vld [vmem:[#allocation170_spill] sm:$0xff] }
 0x48a   : > { %v1961_v26 = vsub.f32 %v5212_v53, %v8388_v6  ;;  %v1977_v6 = vsub.f32 %v5212_v53, %v8395_v43  ;;  %v8401_v43 = vld [vmem:[#allocation108_spill] sm:$0xff] }
 0x48c   : > { %v6403_v4 = vpop.permute.xlu1 %2657  ;;  %v6405_v27 = vpop.permute.xlu0 %2672 }
 0x48d   : > { %8385 = vst [vmem:[#allocation122_spill] sm:$0xff] %v6403_v4  ;;  %8386 = vst [vmem:[#allocation190_spill] sm:$0xff] %v6405_v27  ;;  %2783 = vperm.xlu1 %4979, %v1931_v11   ;;  %3008 = vperm.xlu0 %4978, %v2006_v21   ;;  %v8392_v4 = vld [vmem:[#allocation176_spill] sm:$0xff]  ;;  %v1994_v27 = vsub.f32 %v5210_v52, %v5723_v42 }
 0x48e   : > { %v1991_v18 = vsub.f32 %v5208_v51, %v8392_v4  ;;  %v1932_v4 = vsub.f32 %v5218_v56, %v8398_v3  ;;  %v8405_v3 = vld [vmem:[#allocation141_spill] sm:$0xff] }
 0x490   : > { %v6411_v8 = vpop.permute.xlu1 %2663  ;;  %v6413_v9 = vpop.permute.xlu0 %2678 }
 0x491   : > { %8389 = vst [vmem:[#allocation109_spill] sm:$0xff] %v6411_v8  ;;  %8390 = vst [vmem:[#allocation151_spill] sm:$0xff] %v6413_v9  ;;  %2873 = vperm.xlu1 %4979, %v1961_v26   ;;  %2738 = vperm.xlu0 %4978, %v1916_v22   ;;  %v2021_v9 = vsub.f32 %v5198_v46, %v5821_v29  ;;  %v1917_v29 = vsub.f32 %v5224_v59, %v8401_v43  ;;  %v8408_v43 = vld [vmem:[#allocation168_spill] sm:$0xff] }
 0x492   : > { %v2038_v8 = vsub.f32 %v5202_v48, %v5899_v16  ;;  %v8458_v16 = vld [vmem:[#allocation115_spill] sm:$0xff] }
 0x494   : > { %v6419_v11 = vpop.permute.xlu1 %2669  ;;  %v6421_v21 = vpop.permute.xlu0 %2684 }
 0x495   : > { %8393 = vst [vmem:[#allocation138_spill] sm:$0xff] %v6419_v11  ;;  %8394 = vst [vmem:[#allocation176_spill] sm:$0xff] %v6421_v21  ;;  %2963 = vperm.xlu1 %4979, %v1991_v18   ;;  %2831 = vperm.xlu0 %4978, %v1947_v5   ;;  %v2007_v21 = vsub.f32 %v5208_v51, %v5765_v13  ;;  %v1948_v13 = vsub.f32 %v5218_v56, %v8405_v3  ;;  %v8411_v3 = vld [vmem:[#allocation124_spill] sm:$0xff] }
 0x496   : > { %v1980_v11 = vsub.f32 %v5218_v56, %v8445_v40 }
 0x498   : > { %v6427_v26 = vpop.permute.xlu1 %2675  ;;  %v6429_v22 = vpop.permute.xlu0 %2690 }
 0x499   : > { %8396 = vst [vmem:[#allocation165_spill] sm:$0xff] %v6427_v26  ;;  %8397 = vst [vmem:[#allocation191_spill] sm:$0xff] %v6429_v22  ;;  %3053 = vperm.xlu1 %4979, %v2021_v9   ;;  %2921 = vperm.xlu0 %4978, %v1977_v6   ;;  %v1962_v22 = vsub.f32 %v5210_v52, %v8402_v44  ;;  %v1978_v44 = vsub.f32 %v5210_v52, %v8408_v43  ;;  %v8414_v43 = vld [vmem:[#allocation153_spill] sm:$0xff] }
 0x49a   : > { %v1995_v26 = vsub.f32 %v5220_v57, %v5717_v55 }
 0x49c   : > { %v6435_v18 = vpop.permute.xlu1 %2681  ;;  %v6437_v5 = vpop.permute.xlu0 %2696 }
 0x49d   : > { %8399 = vst [vmem:[#allocation125_spill] sm:$0xff] %v6435_v18  ;;  %8400 = vst [vmem:[#allocation192_spill] sm:$0xff] %v6437_v5  ;;  %2786 = vperm.xlu1 %4979, %v1932_v4   ;;  %3011 = vperm.xlu0 %4978, %v2007_v21   ;;  %v1992_v5 = vsub.f32 %v5206_v50, %v5715_v54  ;;  %v1933_v54 = vsub.f32 %v5224_v59, %v8411_v3  ;;  %v8417_v3 = vld [vmem:[#allocation111_spill] sm:$0xff] }
 0x49e   : > { %v2009_v18 = vsub.f32 %v5212_v53, %v5773_v15 }
 0x4a0   : > { %v6443_v9 = vpop.permute.xlu1 %2687  ;;  %v6445_v6 = vpop.permute.xlu0 %2702 }
 0x4a1   : > { %8403 = vst [vmem:[#allocation108_spill] sm:$0xff] %v6443_v9  ;;  %8404 = vst [vmem:[#allocation154_spill] sm:$0xff] %v6445_v6  ;;  %2876 = vperm.xlu1 %4979, %v1962_v22   ;;  %2741 = vperm.xlu0 %4978, %v1917_v29   ;;  %v2022_v6 = vsub.f32 %v5202_v48, %v5835_v25  ;;  %v1963_v25 = vsub.f32 %v5220_v57, %v8414_v43  ;;  %v8421_v43 = vld [vmem:[#allocation140_spill] sm:$0xff] }
 0x4a2   : > { %v2036_v9 = vsub.f32 %v5204_v49, %v5891_v24  ;;  %v2037_v24 = vsub.f32 %v5198_v46, %v5885_v41  ;;  %v2024_v41 = vsub.f32 %v5206_v50, %v5843_v28 }
 0x4a4   : > { %v6451_v4 = vpop.permute.xlu1 %2693  ;;  %v6453_v21 = vpop.permute.xlu0 %2708 }
 0x4a5   : > { %8406 = vst [vmem:[#allocation141_spill] sm:$0xff] %v6451_v4  ;;  %8407 = vst [vmem:[#allocation193_spill] sm:$0xff] %v6453_v21  ;;  %2966 = vperm.xlu1 %4979, %v1992_v5   ;;  %2834 = vperm.xlu0 %4978, %v1948_v13   ;;  %v2008_v21 = vsub.f32 %v5206_v50, %v5779_v10  ;;  %v1918_v10 = vsub.f32 %v5222_v58, %v8417_v3  ;;  %v8423_v3 = vld [vmem:[#allocation167_spill] sm:$0xff] }
 0x4a8   : > { %v6459_v22 = vpop.permute.xlu1 %2699  ;;  %v6461_v29 = vpop.permute.xlu0 %2714 }
 0x4a9   : > { %8409 = vst [vmem:[#allocation168_spill] sm:$0xff] %v6459_v22  ;;  %8410 = vst [vmem:[#allocation194_spill] sm:$0xff] %v6461_v29  ;;  %3056 = vperm.xlu1 %4979, %v2022_v6   ;;  %2924 = vperm.xlu0 %4978, %v1978_v44   ;;  %v2035_v22 = vsub.f32 %v5200_v47, %v5877_v38  ;;  %v1949_v47 = vsub.f32 %v5224_v59, %v8421_v43  ;;  %v8426_v43 = vld [vmem:[#allocation127_spill] sm:$0xff]  ;;  %v8506_v29 = vld [vmem:[#allocation41_spill] sm:$0xff] }
 0x4aa   : > { %v2023_v38 = vsub.f32 %v5208_v51, %v5829_v31  ;;  %v1934_v31 = vsub.f32 %v5222_v58, %v8426_v43  ;;  %v8432_v43 = vld [vmem:[#allocation126_spill] sm:$0xff] }
 0x4ab   : > { %v1935_v15 = vsub.f32 %v5228_v61, %v8432_v43  ;;  %v8438_v43 = vld [vmem:[#allocation110_spill] sm:$0xff] }
 0x4ac   : > { %v6467_v5 = vpop.permute.xlu1 %2705  ;;  %v6469_v13 = vpop.permute.xlu0 %2720  ;;  %v1919_v42 = vsub.f32 %v5228_v61, %v8438_v43  ;;  %v8444_v43 = vld [vmem:[#allocation113_spill] sm:$0xff] }
 0x4ad   : > { %8412 = vst [vmem:[#allocation124_spill] sm:$0xff] %v6467_v5  ;;  %8413 = vst [vmem:[#allocation195_spill] sm:$0xff] %v6469_v13  ;;  %2789 = vperm.xlu1 %4979, %v1933_v54   ;;  %3014 = vperm.xlu0 %4978, %v2008_v21   ;;  %v8418_v5 = vld [vmem:[#allocation178_spill] sm:$0xff]  ;;  %v1920_v55 = vsub.f32 %v5226_v60, %v8444_v43  ;;  %v8451_v43 = vld [vmem:[#allocation169_spill] sm:$0xff] }
 0x4ae   : > { %v1993_v4 = vsub.f32 %v5212_v53, %v8418_v5  ;;  %v1979_v5 = vsub.f32 %v5220_v57, %v8423_v3  ;;  %v8429_v3 = vld [vmem:[#allocation156_spill] sm:$0xff]  ;;  %v1981_v40 = vsub.f32 %v5224_v59, %v8451_v43  ;;  %v8476_v13 = vld [vmem:[#allocation174_spill] sm:$0xff] }
 0x4af   : > { %v1964_v49 = vsub.f32 %v5218_v56, %v8429_v3  ;;  %v8435_v3 = vld [vmem:[#allocation155_spill] sm:$0xff]  ;;  %v8457_v43 = vld [vmem:[#allocation112_spill] sm:$0xff] }
 0x4b0   : > { %v6475_v6 = vpop.permute.xlu1 %2711  ;;  %v6477_v44 = vpop.permute.xlu0 %2762  ;;  %v1965_v46 = vsub.f32 %v5224_v59, %v8435_v3  ;;  %v8441_v3 = vld [vmem:[#allocation143_spill] sm:$0xff] }
 0x4b1   : > { %8415 = vst [vmem:[#allocation153_spill] sm:$0xff] %v6475_v6  ;;  %8416 = vst [vmem:[#allocation196_spill] sm:$0xff] %v6477_v44  ;;  %2879 = vperm.xlu1 %4979, %v1963_v25   ;;  %3095 = vperm.xlu0 %4978, %v2035_v22   ;;  %v1950_v28 = vsub.f32 %v5222_v58, %v8441_v3  ;;  %v8448_v3 = vld [vmem:[#allocation142_spill] sm:$0xff] }
 0x4b2   : > { %v1951_v33 = vsub.f32 %v5228_v61, %v8448_v3  ;;  %v8454_v3 = vld [vmem:[#allocation129_spill] sm:$0xff] }
 0x4b3   : > { %v1936_v12 = vsub.f32 %v5226_v60, %v8454_v3  ;;  %v1937_v3 = vsub.f32 %v5232_v63, %v8461_v0 }
 0x4b4   : > { %v6483_v54 = vpop.permute.xlu1 %2717  ;;  %v6485_v21 = vpop.permute.xlu0 %2807 }
 0x4b5   : > { %8419 = vst [vmem:[#allocation111_spill] sm:$0xff] %v6483_v54  ;;  %8420 = vst [vmem:[#allocation178_spill] sm:$0xff] %v6485_v21  ;;  %2969 = vperm.xlu1 %4979, %v1993_v4   ;;  %2744 = vperm.xlu0 %4978, %v1918_v10  }
 0x4b8   : > { %v6491_v25 = vpop.permute.xlu1 %2759  ;;  %v6493_v22 = vpop.permute.xlu0 %2768 }
 0x4b9   : > { %8422 = vst [vmem:[#allocation140_spill] sm:$0xff] %v6493_v22  ;;  %3059 = vperm.xlu1 %4979, %v2023_v38   ;;  %2837 = vperm.xlu0 %4978, %v1949_v47   ;;  %v8493_v22 = vld [vmem:[#allocation22_spill] sm:$0xff] }
 0x4bc   : > { %v6499_v4 = vpop.permute.xlu1 %2765  ;;  %v6501_v10 = vpop.permute.xlu0 %2855 }
 0x4bd   : > { %8424 = vst [vmem:[#allocation167_spill] sm:$0xff] %v6499_v4  ;;  %8425 = vst [vmem:[#allocation197_spill] sm:$0xff] %v6501_v10  ;;  %3098 = vperm.xlu1 %4979, %v2036_v9   ;;  %2927 = vperm.xlu0 %4978, %v1979_v5  }
 0x4c0   : > { %v6507_v38 = vpop.permute.xlu1 %2810  ;;  %v6509_v47 = vpop.permute.xlu0 %2723 }
 0x4c1   : > { %8427 = vst [vmem:[#allocation127_spill] sm:$0xff] %v6507_v38  ;;  %8428 = vst [vmem:[#allocation198_spill] sm:$0xff] %v6509_v47  ;;  %2792 = vperm.xlu1 %4979, %v1934_v31   ;;  %3017 = vperm.xlu0 %4978, %v2009_v18  }
 0x4c4   : > { %v6515_v9 = vpop.permute.xlu1 %2813  ;;  %v6517_v5 = vpop.permute.xlu0 %2816 }
 0x4c5   : > { %8430 = vst [vmem:[#allocation156_spill] sm:$0xff] %v6515_v9  ;;  %8431 = vst [vmem:[#allocation199_spill] sm:$0xff] %v6517_v5  ;;  %2882 = vperm.xlu1 %4979, %v1964_v49   ;;  %3101 = vperm.xlu0 %4978, %v2037_v24   ;;  %v8505_v9 = vld [vmem:[#allocation5_spill] sm:$0xff] }
 0x4c8   : > { %v6523_v31 = vpop.permute.xlu1 %2858  ;;  %v6525_v18 = vpop.permute.xlu0 %2903 }
 0x4c9   : > { %8433 = vst [vmem:[#allocation126_spill] sm:$0xff] %v6523_v31  ;;  %8434 = vst [vmem:[#allocation200_spill] sm:$0xff] %v6525_v18  ;;  %2972 = vperm.xlu1 %4979, %v1994_v27   ;;  %2795 = vperm.xlu0 %4978, %v1935_v15  }
 0x4cc   : > { %v6531_v49 = vpop.permute.xlu1 %2771  ;;  %v6533_v24 = vpop.permute.xlu0 %2726 }
 0x4cd   : > { %8436 = vst [vmem:[#allocation155_spill] sm:$0xff] %v6531_v49  ;;  %8437 = vst [vmem:[#allocation201_spill] sm:$0xff] %v6533_v24  ;;  %3062 = vperm.xlu1 %4979, %v2024_v41   ;;  %2885 = vperm.xlu0 %4978, %v1965_v46   ;;  %v8465_v24 = vld [vmem:[#allocation145_spill] sm:$0xff] }
 0x4ce   : > { %v8511_v21 = vsub.f32 %v5226_v60, %v8465_v24  ;;  %v8516_v24 = vld [vmem:[#allocation42_spill] sm:$0xff] }
 0x4d0   : > { %v6539_v27 = vpop.permute.xlu1 %2861  ;;  %v6541_v15 = vpop.permute.xlu0 %2819 }
 0x4d1   : > { %8439 = vst [vmem:[#allocation110_spill] sm:$0xff] %v6539_v27  ;;  %8440 = vst [vmem:[#allocation202_spill] sm:$0xff] %v6541_v15  ;;  %2747 = vperm.xlu1 %4979, %v1919_v42   ;;  %2975 = vperm.xlu0 %4978, %v1995_v26  }
 0x4d4   : > { %v6547_v41 = vpop.permute.xlu1 %2906  ;;  %v6549_v46 = vpop.permute.xlu0 %2909 }
 0x4d5   : > { %8442 = vst [vmem:[#allocation143_spill] sm:$0xff] %v6547_v41  ;;  %8443 = vst [vmem:[#allocation203_spill] sm:$0xff] %v6549_v46  ;;  %2840 = vperm.xlu1 %4979, %v1950_v28   ;;  %3065 = vperm.xlu0 %4978, %v2025_v39  }
 0x4d8   : > { %v6555_v42 = vpop.permute.xlu1 %2774  ;;  %v6557_v26 = vpop.permute.xlu0 %2954 }
 0x4d9   : > { %8446 = vst [vmem:[#allocation113_spill] sm:$0xff] %v6555_v42  ;;  %8447 = vst [vmem:[#allocation170_spill] sm:$0xff] %v6557_v26  ;;  %2930 = vperm.xlu1 %4979, %v1980_v11   ;;  %2750 = vperm.xlu0 %4978, %v1920_v55   ;;  %v8473_v26 = vld [vmem:[#allocation171_spill] sm:$0xff] }
 0x4dc   : > { %v6563_v28 = vpop.permute.xlu1 %2864  ;;  %v6565_v39 = vpop.permute.xlu0 %2777 }
 0x4dd   : > { %8449 = vst [vmem:[#allocation142_spill] sm:$0xff] %v6563_v28  ;;  %8450 = vst [vmem:[#allocation204_spill] sm:$0xff] %v6565_v39  ;;  %3020 = vperm.xlu1 %4979, %v2010_v20   ;;  %2843 = vperm.xlu0 %4978, %v1951_v33   ;;  %v8472_v28 = vld [vmem:[#allocation161_spill] sm:$0xff] }
 0x4e0   : > { %v6571_v11 = vpop.permute.xlu1 %2951  ;;  %v6573_v55 = vpop.permute.xlu0 %2867 }
 0x4e1   : > { %8452 = vst [vmem:[#allocation169_spill] sm:$0xff] %v6571_v11  ;;  %8453 = vst [vmem:[#allocation205_spill] sm:$0xff] %v6573_v55  ;;  %3104 = vperm.xlu1 %4979, %v2038_v8   ;;  %2933 = vperm.xlu0 %4978, %v1981_v40   ;;  %v8459_v8 = vlaneseq  ;;  %v8470_v55 = vld [vmem:[#allocation159_spill] sm:$0xff] }
 0x4e3   : > { %v6588_v40 = vand.u32 127, %v8459_v8  ;;  %v8466_v8 = vld [vmem:[#allocation146_spill] sm:$0xff] }
 0x4e4   : > { %v6579_v20 = vpop.permute.xlu1 %2729  ;;  %v6581_v33 = vpop.permute.xlu0 %2957 }
 0x4e5   : > { %8455 = vst [vmem:[#allocation129_spill] sm:$0xff] %v6579_v20  ;;  %8456 = vst [vmem:[#allocation206_spill] sm:$0xff] %v6581_v33  ;;  %2798 = vperm.xlu1 %4979, %v1936_v12   ;;  %3023 = vperm.xlu0 %4978, %v2011_v7   ;;  %v8463_v20 = vld [vmem:[#allocation158_spill] sm:$0xff]  ;;  %v2039_v7 = vsub.f32 %v5208_v51, %v5893_v45  ;;  %v8464_v12 = vld [vmem:[#allocation144_spill] sm:$0xff]  ;;  %v3160_v0 = vadd.s32 4294967272, %v6588_v40  ;;  %v3146_v45 = vadd.s32 4294967288, %v6588_v40 }
 0x4e6   : > { %8460 = vst [vmem:[#allocation112_spill] sm:$0xff] %v6588_v40  ;;  %v1966_v14 = vsub.f32 %v5222_v58, %v8463_v20  ;;  %v1967_v20 = vsub.f32 %v5228_v61, %v8469_v23  ;;  %v3174_v48 = vadd.s32 4294967256, %v6588_v40  ;;  %v3153_v23 = vadd.s32 4294967280, %v6588_v40  ;;  %v8474_v33 = vld [vmem:[#allocation172_spill] sm:$0xff] }
 0x4e7   : > { %v3167_v42 = vadd.s32 4294967264, %v6588_v40  ;;  %v3202_v46 = vadd.s32 4294967224, %v6588_v40  ;;  %v3244_v6 = vadd.s32 4294967176, %v6588_v40  ;;  %v3237_v15 = vadd.s32 4294967184, %v6588_v40 }
 0x4e8   : > { %v6605_v47 = vpop.permute.xlu1 %2822  ;;  %v6607_v17 = vpop.permute.xlu0 %3002 }
 0x4e9   : > { %8467 = vst [vmem:[#allocation115_spill] sm:$0xff] %v6605_v47  ;;  %8468 = vst [vmem:[#allocation128_spill] sm:$0xff] %v6607_v17  ;;  %2888 = vperm.xlu1 %4979, %v1966_v14   ;;  %3107 = vperm.xlu0 %4978, %v2039_v7   ;;  %v1996_v14 = vsub.f32 %v5218_v56, %v5731_v1  ;;  %v3188_v7 = vadd.s32 4294967240, %v6588_v40  ;;  %v8478_v17 = vld [vmem:[#allocation2_spill] sm:$0xff] }
 0x4ea   : > { %v6635_v18 = vsub.s32 %v6588_v40, %v8478_v17  ;;  %v6638_v51 = vsub.s32 %v3160_v0, %v8478_v17  ;;  %v6645_v1 = vsub.s32 %v3146_v45, %v8478_v17  ;;  %v6648_v11 = vsub.s32 %v3174_v48, %v8478_v17 }
 0x4eb   : > { %v1997_v0 = vsub.f32 %v5224_v59, %v5725_v35  ;;  %v3216_v45 = vadd.s32 4294967208, %v6588_v40  ;;  %v2026_v48 = vsub.f32 %v5210_v52, %v5851_v30  ;;  %v6662_v47 = vsub.s32 %v3188_v7, %v8478_v17 }
 0x4ec   : > { %v6640_v54 = vpop.permute.xlu1 %2912  ;;  %v6642_v39 = vpop.permute.xlu0 %2780  ;;  %v3209_v35 = vadd.s32 4294967216, %v6588_v40  ;;  %v6677_v7 = vsub.s32 %v3167_v42, %v8478_v17  ;;  %v6680_v41 = vsub.s32 %v3202_v46, %v8478_v17  ;;  %v8492_v46 = vld [vmem:[#allocation183_spill] sm:$0xff]  ;;  %v8500_v42 = vld [vmem:[#allocation189_spill] sm:$0xff] }
 0x4ed   : > { %8479 = vst [vmem:[#allocation131_spill] sm:$0xff] %v6640_v54  ;;  %8480 = vst [vmem:[#allocation158_spill] sm:$0xff] %v6642_v39  ;;  %2978 = vperm.xlu1 %4979, %v1996_v14   ;;  %2801 = vperm.xlu0 %4978, %v1937_v3   ;;  %v6655_v54 = vsub.s32 %v3153_v23, %v8478_v17  ;;  %v3181_v39 = vadd.s32 4294967248, %v6588_v40  ;;  %v3195_v14 = vadd.s32 4294967232, %v6588_v40  ;;  %v3230_v3 = vadd.s32 4294967192, %v6588_v40 }
 0x4ee   : > { %v3223_v23 = vadd.s32 4294967200, %v6588_v40  ;;  %v6690_v30 = vsub.s32 %v3216_v45, %v8478_v17  ;;  %v6703_v40 = vsub.s32 %v3209_v35, %v8478_v17  ;;  %v8498_v35 = vld [vmem:[#allocation38_spill] sm:$0xff] }
 0x4ef   : > { %v6700_v49 = vsub.s32 %v3230_v3, %v8478_v17  ;;  %v8497_v3 = vld [vmem:[#allocation24_spill] sm:$0xff]  ;;  %v3254_v5 = vrot.slane %v8498_v35, %v6635_v18 }
 0x4f0   : > { %v6670_v27 = vpop.permute.xlu1 %2999  ;;  %v6672_v10 = vpop.permute.xlu0 %2870  ;;  %v6709_v45 = vsub.s32 %v3223_v23, %v8478_v17  ;;  %v8494_v23 = vsub.f32 %v5232_v63, %v8457_v43  ;;  %v3157_v31 = vrot.slane %v8497_v3, %v6655_v54  ;;  %v2027_v43 = vsub.f32 %v5220_v57, %v8500_v42 }
 0x4f1   : > { %8481 = vst [vmem:[#allocation144_spill] sm:$0xff] %v6670_v27  ;;  %8482 = vst [vmem:[#allocation145_spill] sm:$0xff] %v6672_v10  ;;  %3068 = vperm.xlu1 %4979, %v2026_v48   ;;  %2891 = vperm.xlu0 %4978, %v1967_v20   ;;  %v6687_v10 = vsub.s32 %v3181_v39, %v8478_v17  ;;  %v6697_v20 = vsub.s32 %v3195_v14, %v8478_v17  ;;  %v8491_v14 = vld [vmem:[#allocation182_spill] sm:$0xff] }
 0x4f2   : > { %8485 = vst [vmem:[#allocation146_spill] sm:$0xff] %v6700_v49  ;;  %v6706_v39 = vsub.s32 %v3244_v6, %v8478_v17  ;;  %8487 = vst [vmem:[#allocation159_spill] sm:$0xff] %v6709_v45  ;;  %v6712_v27 = vsub.s32 %v3237_v15, %v8478_v17  ;;  %v3150_v6 = vrot.slane %v8493_v22, %v6645_v1  ;;  %v8502_v17 = vld [vmem:[#allocation40_spill] sm:$0xff] }
 0x4f3   : > { %v3263_v15 = vrot.slane %v8502_v17, %v6655_v54  ;;  %v3258_v22 = vrot.slane %v8506_v29, %v6645_v1 }
 0x4f4   : > { %8486 = vst [vmem:[#allocation157_spill] sm:$0xff] %v6706_v39  ;;  %8488 = vst [vmem:[#allocation160_spill] sm:$0xff] %v6712_v27  ;;  %v6714_v2 = vpop.permute.xlu1 %2732  ;;  %v6716_v48 = vpop.permute.xlu0 %2960 }
 0x4f5   : > { %8489 = vst [vmem:[#allocation161_spill] sm:$0xff] %v6714_v2  ;;  %8490 = vst [vmem:[#allocation171_spill] sm:$0xff] %v6716_v48  ;;  %2753 = vperm.xlu1 %4979, %v8494_v23   ;;  %2981 = vperm.xlu0 %4978, %v1997_v0   ;;  %v8501_v0 = vld [vmem:[#allocation25_spill] sm:$0xff]  ;;  %v3259_v38 = vsel %vm3151_vm1, %v3258_v22, %v3254_v5  ;;  %v8520_v22 = vld [vmem:[#allocation43_spill] sm:$0xff] }
 0x4f6   : > { %v3145_v23 = vrot.slane %v8501_v0, %v6635_v18  ;;  %v8509_v0 = vld [vmem:[#allocation9_spill] sm:$0xff]  ;;  %v8526_v5 = vld [vmem:[#allocation12_spill] sm:$0xff] }
 0x4f8   : > { %v6751_v44 = vpop.permute.xlu1 %2825  ;;  %v6753_v42 = vpop.permute.xlu0 %3047  ;;  %v3152_v2 = vsel %vm3151_vm1, %v3150_v6, %v3145_v23  ;;  %v8515_v23 = vld [vmem:[#allocation27_spill] sm:$0xff]  ;;  %v3268_v6 = vrot.slane %v8520_v22, %v6638_v51  ;;  %v8525_v22 = vsub.f32 %v5230_v62, %v8458_v16 }
 0x4f9   : > { %8507 = vst [vmem:[#allocation172_spill] sm:$0xff] %v6751_v44  ;;  %8508 = vst [vmem:[#allocation174_spill] sm:$0xff] %v6753_v42  ;;  %2846 = vperm.xlu1 %4979, %v8511_v21   ;;  %3071 = vperm.xlu0 %4978, %v2027_v43   ;;  %v3159_v3 = vsel %vm3158_vm2, %v3157_v31, %v3152_v2  ;;  %v8513_v42 = vld [vmem:[#allocation26_spill] sm:$0xff]  ;;  %v3164_v17 = vrot.slane %v8515_v23, %v6638_v51  ;;  %v8519_v44 = vld [vmem:[#allocation15_spill] sm:$0xff] }
 0x4fa   : > { %v3171_v48 = vrot.slane %v8513_v42, %v6677_v7  ;;  %v3264_v21 = vsel %vm3158_vm2, %v3263_v15, %v3259_v38  ;;  %v3273_v43 = vrot.slane %v8516_v24, %v6677_v7  ;;  %v8522_v38 = vld [vmem:[#allocation10_spill] sm:$0xff]  ;;  %v8524_v42 = vsub.f32 %v5222_v58, %v8474_v33 }
 0x4fb   : > { %v2040_v15 = vsub.f32 %v5206_v50, %v8522_v38  ;;  %v3166_v2 = vsel %vm3165_vm3, %v3164_v17, %v3159_v3  ;;  %v8527_v50 = vld [vmem:[#allocation28_spill] sm:$0xff]  ;;  %v3269_v35 = vsel %vm3165_vm3, %v3268_v6, %v3264_v21  ;;  %v8528_v3 = vld [vmem:[#allocation29_spill] sm:$0xff] }
 0x4fc   : > { %v6784_v4 = vpop.permute.xlu1 %2915  ;;  %v6786_v23 = vpop.permute.xlu0 %2735  ;;  %v3173_v31 = vsel %vm3172_vm4, %v3171_v48, %v3166_v2  ;;  %v3185_v38 = vrot.slane %v8527_v50, %v6687_v10  ;;  %v3178_v17 = vrot.slane %v8528_v3, %v6648_v11  ;;  %v3274_v33 = vsel %vm3172_vm4, %v3273_v43, %v3269_v35  ;;  %v8533_v6 = vld [vmem:[#allocation45_spill] sm:$0xff]  ;;  %v8534_v3 = vld [vmem:[#allocation56_spill] sm:$0xff] }
 0x4fd   : > { %8521 = vst [vmem:[#allocation2_spill] sm:$0xff] %v6786_v23  ;;  %2936 = vperm.xlu1 %4979, %v8524_v42   ;;  %2756 = vperm.xlu0 %4978, %v8525_v22   ;;  %v8529_v42 = vld [vmem:[#allocation44_spill] sm:$0xff]  ;;  %v8530_v22 = vld [vmem:[#allocation54_spill] sm:$0xff]  ;;  %v3278_v21 = vrot.slane %v8533_v6, %v6648_v11  ;;  %v3342_v24 = vrot.slane %v8534_v3, %v6655_v54  ;;  %v8538_v48 = vld [vmem:[#allocation57_spill] sm:$0xff] }
 0x4fe   : > { %v3283_v16 = vrot.slane %v8529_v42, %v6687_v10  ;;  %v3333_v29 = vrot.slane %v8530_v22, %v6635_v18  ;;  %v3180_v22 = vsel %vm3179_vm5, %v3178_v17, %v3173_v31  ;;  %v3337_v23 = vrot.slane %v8538_v48, %v6645_v1  ;;  %v8542_v42 = vld [vmem:[#allocation30_spill] sm:$0xff]  ;;  %v8543_v48 = vld [vmem:[#allocation31_spill] sm:$0xff] }
 0x4ff   : > { %v8539_v50 = vsub.f32 %v5218_v56, %v8492_v46  ;;  %v8540_v6 = vsub.f32 %v5232_v63, %v8464_v12  ;;  %v3187_v2 = vsel %vm7928_vm6, %v3185_v38, %v3180_v22  ;;  %v3199_v31 = vrot.slane %v8542_v42, %v6697_v20  ;;  %v8546_v22 = vld [vmem:[#allocation58_spill] sm:$0xff] }
 0x500   : > { %v6820_v57 = vpop.permute.xlu1 %3005  ;;  %v6822_v35 = vpop.permute.xlu0 %2828  ;;  %v3279_v17 = vsel %vm3179_vm5, %v3278_v21, %v3274_v33  ;;  %v3192_v43 = vrot.slane %v8543_v48, %v6662_v47  ;;  %v3338_v12 = vsel %vm3151_vm1, %v3337_v23, %v3333_v29  ;;  %v3352_v42 = vrot.slane %v8546_v22, %v6677_v7  ;;  %v8547_v33 = vld [vmem:[#allocation70_spill] sm:$0xff]  ;;  %v8550_v29 = vld [vmem:[#allocation59_spill] sm:$0xff] }
 0x501   : > { %8535 = vst [vmem:[#allocation182_spill] sm:$0xff] %v6820_v57  ;;  %8536 = vst [vmem:[#allocation183_spill] sm:$0xff] %v6822_v35  ;;  %3026 = vperm.xlu1 %4979, %v8539_v50   ;;  %2849 = vperm.xlu0 %4978, %v8540_v6   ;;  %v3284_v46 = vsel %vm7928_vm6, %v3283_v16, %v3279_v17  ;;  %v8544_v50 = vld [vmem:[#allocation46_spill] sm:$0xff]  ;;  %v8545_v6 = vld [vmem:[#allocation47_spill] sm:$0xff]  ;;  %v3343_v38 = vsel %vm3158_vm2, %v3342_v24, %v3338_v12 }
 0x502   : > { %v3293_v35 = vrot.slane %v8544_v50, %v6697_v20  ;;  %v3288_v57 = vrot.slane %v8545_v6, %v6662_v47  ;;  %v3412_v21 = vrot.slane %v8547_v33, %v6635_v18  ;;  %v3194_v16 = vsel %vm3193_vm7, %v3192_v43, %v3187_v2  ;;  %v8551_v17 = vld [vmem:[#allocation72_spill] sm:$0xff]  ;;  %v8553_v12 = vld [vmem:[#allocation33_spill] sm:$0xff] }
 0x503   : > { %v3347_v23 = vrot.slane %v8550_v29, %v6638_v51  ;;  %v3421_v50 = vrot.slane %v8551_v17, %v6655_v54  ;;  %v8552_v24 = vsub.f32 %v5228_v61, %v8473_v26  ;;  %v3206_v6 = vrot.slane %v8553_v12, %v6680_v41  ;;  %v8554_v2 = vld [vmem:[#allocation73_spill] sm:$0xff]  ;;  %v8555_v29 = vld [vmem:[#allocation32_spill] sm:$0xff] }
 0x504   : > { %v6854_v3 = vpop.permute.xlu1 %3050  ;;  %v6856_v48 = vpop.permute.xlu0 %2918  ;;  %v3201_v22 = vsel %vm3200_vm8, %v3199_v31, %v3194_v16  ;;  %v3289_v33 = vsel %vm3193_vm7, %v3288_v57, %v3284_v46  ;;  %v3416_v43 = vrot.slane %v8554_v2, %v6645_v1  ;;  %v8558_v57 = vld [vmem:[#allocation60_spill] sm:$0xff] }
 0x505   : > { %8548 = vst [vmem:[#allocation22_spill] sm:$0xff] %v6854_v3  ;;  %8549 = vst [vmem:[#allocation24_spill] sm:$0xff] %v6856_v48  ;;  %3110 = vperm.xlu1 %4979, %v2040_v15   ;;  %2939 = vperm.xlu0 %4978, %v8552_v24   ;;  %v3213_v48 = vrot.slane %v8555_v29, %v6703_v40  ;;  %v3294_v17 = vsel %vm3200_vm8, %v3293_v35, %v3289_v33  ;;  %v8556_v15 = vld [vmem:[#allocation48_spill] sm:$0xff]  ;;  %v8557_v24 = vld [vmem:[#allocation49_spill] sm:$0xff] }
 0x506   : > { %v3303_v3 = vrot.slane %v8556_v15, %v6703_v40  ;;  %v3348_v26 = vsel %vm3165_vm3, %v3347_v23, %v3343_v38  ;;  %v3298_v12 = vrot.slane %v8557_v24, %v6680_v41  ;;  %v3362_v46 = vrot.slane %v8558_v57, %v6687_v10  ;;  %v8560_v35 = vld [vmem:[#allocation61_spill] sm:$0xff]  ;;  %v8561_v23 = vld [vmem:[#allocation74_spill] sm:$0xff] }
 0x507   : > { %v3353_v31 = vsel %vm3172_vm4, %v3352_v42, %v3348_v26  ;;  %v3417_v16 = vsel %vm3151_vm1, %v3416_v43, %v3412_v21  ;;  %v3357_v33 = vrot.slane %v8560_v35, %v6648_v11  ;;  %v3431_v15 = vrot.slane %v8561_v23, %v6677_v7  ;;  %v8564_v43 = vld [vmem:[#allocation35_spill] sm:$0xff] }
 0x508   : > { %v6884_v2 = vpop.permute.xlu1 %2783  ;;  %v6886_v29 = vpop.permute.xlu0 %3008  ;;  %v3422_v38 = vsel %vm3158_vm2, %v3421_v50, %v3417_v16  ;;  %v8562_v42 = vsub.f32 %v5230_v62, %v8462_v34  ;;  %v8563_v21 = vsub.f32 %v5224_v59, %v8491_v14  ;;  %v3220_v26 = vrot.slane %v8564_v43, %v6690_v30  ;;  %v8565_v50 = vld [vmem:[#allocation75_spill] sm:$0xff]  ;;  %v8566_v34 = vld [vmem:[#allocation50_spill] sm:$0xff] }
 0x509   : > { %8559 = vst [vmem:[#allocation38_spill] sm:$0xff] %v6886_v29  ;;  %v3208_v24 = vsel %vm7929_vm9, %v3206_v6, %v3201_v22  ;;  %v3299_v57 = vsel %vm7929_vm9, %v3298_v12, %v3294_v17  ;;  %v3426_v16 = vrot.slane %v8565_v50, %v6638_v51  ;;  %v3358_v14 = vsel %vm3179_vm5, %v3357_v33, %v3353_v31  ;;  %v8568_v6 = vld [vmem:[#allocation62_spill] sm:$0xff]  ;;  %v8571_v33 = vld [vmem:[#allocation76_spill] sm:$0xff] }
 0x50a   : > { %2804 = vperm.xlu1 %4979, %v8562_v42   ;;  %3029 = vperm.xlu0 %4978, %v8563_v21   ;;  %v3215_v35 = vsel %vm3214_vm10, %v3213_v48, %v3208_v24  ;;  %v3304_v23 = vsel %vm3214_vm10, %v3303_v3, %v3299_v57  ;;  %v3313_v42 = vrot.slane %v8566_v34, %v6709_v45  ;;  %v8567_v21 = vld [vmem:[#allocation51_spill] sm:$0xff]  ;;  %v8575_v34 = vld [vmem:[#allocation34_spill] sm:$0xff] }
 0x50b   : > { %v3308_v29 = vrot.slane %v8567_v21, %v6690_v30  ;;  %v3363_v43 = vsel %vm7928_vm6, %v3362_v46, %v3358_v14  ;;  %v3372_v22 = vrot.slane %v8568_v6, %v6697_v20  ;;  %v3427_v17 = vsel %vm3165_vm3, %v3426_v16, %v3422_v38  ;;  %v8570_v3 = vld [vmem:[#allocation63_spill] sm:$0xff]  ;;  %v8598_v16 = vld [vmem:[#allocation69_spill] sm:$0xff] }
 0x50c   : > { %v6916_v12 = vpop.permute.xlu1 %2873  ;;  %v6918_v48 = vpop.permute.xlu0 %2738  ;;  %v3367_v24 = vrot.slane %v8570_v3, %v6662_v47  ;;  %v3432_v31 = vsel %vm3172_vm4, %v3431_v15, %v3427_v17  ;;  %v3441_v57 = vrot.slane %v8571_v33, %v6687_v10  ;;  %v8572_v46 = vsub.f32 %v5226_v60, %v8471_v32  ;;  %v8576_v15 = vld [vmem:[#allocation77_spill] sm:$0xff]  ;;  %v8577_v3 = vld [vmem:[#allocation52_spill] sm:$0xff] }
 0x50d   : > { %8569 = vst [vmem:[#allocation189_spill] sm:$0xff] %v6918_v48  ;;  %v8573_v38 = vsub.f32 %v5212_v53, %v8519_v44  ;;  %v3227_v14 = vrot.slane %v8575_v34, %v6709_v45  ;;  %v3309_v21 = vsel %vm3221_vm11, %v3308_v29, %v3304_v23  ;;  %v3436_v6 = vrot.slane %v8576_v15, %v6648_v11  ;;  %v8578_v44 = vld [vmem:[#allocation53_spill] sm:$0xff]  ;;  %v8579_v34 = vld [vmem:[#allocation64_spill] sm:$0xff] }
 0x50e   : > { %2894 = vperm.xlu1 %4979, %v8572_v46   ;;  %v3222_v17 = vsel %vm3221_vm11, %v3220_v26, %v3215_v35  ;;  %v3314_v32 = vsel %vm3228_vm12, %v3313_v42, %v3309_v21  ;;  %v3323_v33 = vrot.slane %v8577_v3, %v6712_v27  ;;  %v3368_v53 = vsel %vm3193_vm7, %v3367_v24, %v3363_v43  ;;  %v8580_v35 = vld [vmem:[#allocation65_spill] sm:$0xff]  ;;  %v8581_v24 = vld [vmem:[#allocation78_spill] sm:$0xff] }
 0x50f   : > { %3113 = vperm.xlu0 %4978, %v8573_v38   ;;  %v3318_v46 = vrot.slane %v8578_v44, %v6700_v49  ;;  %v3373_v38 = vsel %vm3200_vm8, %v3372_v22, %v3368_v53  ;;  %v3382_v29 = vrot.slane %v8579_v34, %v6703_v40  ;;  %v3437_v23 = vsel %vm3179_vm5, %v3436_v6, %v3432_v31  ;;  %v8584_v6 = vld [vmem:[#allocation37_spill] sm:$0xff] }
 0x510   : > { %v6949_v15 = vpop.permute.xlu1 %2963  ;;  %v6951_v26 = vpop.permute.xlu0 %2831  ;;  %v3377_v42 = vrot.slane %v8580_v35, %v6680_v41  ;;  %v3442_v43 = vsel %vm7928_vm6, %v3441_v57, %v3437_v23  ;;  %v3451_v21 = vrot.slane %v8581_v24, %v6697_v20  ;;  %v8582_v22 = vsub.f32 %v5222_v58, %v5739_v37  ;;  %v8585_v57 = vld [vmem:[#allocation79_spill] sm:$0xff]  ;;  %v8586_v23 = vld [vmem:[#allocation36_spill] sm:$0xff] }
 0x511   : > { %v8583_v31 = vsub.f32 %v5232_v63, %v8470_v55  ;;  %v3234_v3 = vrot.slane %v8584_v6, %v6700_v49  ;;  %v3229_v53 = vsel %vm3228_vm12, %v3227_v14, %v3222_v17  ;;  %v3319_v44 = vsel %vm3235_vm13, %v3318_v46, %v3314_v32  ;;  %v8587_v37 = vld [vmem:[#allocation55_spill] sm:$0xff]  ;;  %v8589_v17 = vld [vmem:[#allocation66_spill] sm:$0xff] }
 0x512   : > { %2984 = vperm.xlu1 %4979, %v8582_v22   ;;  %v3446_v34 = vrot.slane %v8585_v57, %v6662_v47  ;;  %v3241_v35 = vrot.slane %v8586_v23, %v6712_v27  ;;  %v3328_v24 = vrot.slane %v8587_v37, %v6706_v39  ;;  %v3324_v22 = vsel %vm3242_vm14, %v3323_v33, %v3319_v44  ;;  %v8590_v33 = vld [vmem:[#allocation80_spill] sm:$0xff] }
 0x513   : > { %2897 = vperm.xlu0 %4978, %v8583_v31   ;;  %v3378_v55 = vsel %vm7929_vm9, %v3377_v42, %v3373_v38  ;;  %v8588_v31 = vld [vmem:[#allocation67_spill] sm:$0xff]  ;;  %v3392_v32 = vrot.slane %v8589_v17, %v6709_v45  ;;  %v3461_v38 = vrot.slane %v8590_v33, %v6703_v40  ;;  %v8591_v42 = vld [vmem:[#allocation86_spill] sm:$0xff] }
 0x514   : > { %v3387_v6 = vrot.slane %v8588_v31, %v6690_v30  ;;  %v3383_v14 = vsel %vm3214_vm10, %v3382_v29, %v3378_v55  ;;  %v3447_v46 = vsel %vm3193_vm7, %v3446_v34, %v3442_v43  ;;  %v6982_v57 = vpop.permute.xlu1 %3053  ;;  %v6984_v23 = vpop.permute.xlu0 %2921  ;;  %v3491_v44 = vrot.slane %v8591_v42, %v6635_v18  ;;  %v8594_v34 = vld [vmem:[#allocation39_spill] sm:$0xff] }
 0x515   : > { %v3452_v37 = vsel %vm3200_vm8, %v3451_v21, %v3447_v46  ;;  %v8592_v29 = vsub.f32 %v5218_v56, %v8509_v0  ;;  %v8593_v43 = vsub.f32 %v5228_v61, %v5733_v36  ;;  %v3248_v55 = vrot.slane %v8594_v34, %v6706_v39  ;;  %v8595_v21 = vld [vmem:[#allocation81_spill] sm:$0xff]  ;;  %v8596_v46 = vld [vmem:[#allocation88_spill] sm:$0xff] }
 0x516   : > { %v3236_v31 = vsel %vm3235_vm13, %v3234_v3, %v3229_v53  ;;  %v3456_v17 = vrot.slane %v8595_v21, %v6680_v41  ;;  %v3500_v33 = vrot.slane %v8596_v46, %v6655_v54  ;;  %v3329_v0 = vsel %vm3249_vm15, %v3328_v24, %v3324_v22  ;;  %v8597_v36 = vld [vmem:[#allocation89_spill] sm:$0xff]  ;;  %v8599_v53 = vld [vmem:[#allocation68_spill] sm:$0xff]  ;;  %v8600_v22 = vld [vmem:[#allocation82_spill] sm:$0xff] }
 0x517   : > { %3074 = vperm.xlu1 %4979, %v8592_v29   ;;  %2987 = vperm.xlu0 %4978, %v8593_v43   ;;  %v3243_v42 = vsel %vm3242_vm14, %v3241_v35, %v3236_v31  ;;  %v3388_v29 = vsel %vm3221_vm11, %v3387_v6, %v3383_v14  ;;  %v3495_v43 = vrot.slane %v8597_v36, %v6645_v1  ;;  %v8632_v31 = vld [vmem:[#allocation140_spill] sm:$0xff] }
 0x518   : > { %v3397_v34 = vrot.slane %v8598_v16, %v6700_v49  ;;  %v3393_v3 = vsel %vm3228_vm12, %v3392_v32, %v3388_v29  ;;  %v3402_v21 = vrot.slane %v8599_v53, %v6712_v27  ;;  %v3457_v50 = vsel %vm7929_vm9, %v3456_v17, %v3452_v37  ;;  %v7015_v46 = vpop.permute.xlu1 %2786  ;;  %v7017_v35 = vpop.permute.xlu0 %3011  ;;  %v8604_v17 = vld [vmem:[#allocation83_spill] sm:$0xff]  ;;  %v8659_v37 = vld [vmem:[#allocation205_spill] sm:$0xff] }
 0x519   : > { %v3462_v24 = vsel %vm3214_vm10, %v3461_v38, %v3457_v50  ;;  %v3471_v6 = vrot.slane %v8600_v22, %v6709_v45  ;;  %v3496_v14 = vsel %vm3151_vm1, %v3495_v43, %v3491_v44  ;;  %v8601_v16 = vsub.f32 %v5230_v62, %v8466_v8  ;;  %v8660_v45 = vld [vmem:[#allocation172_spill] sm:$0xff] }
 0x51a   : > { %v8602_v32 = vsub.f32 %v5224_v59, %v8505_v9  ;;  %v3466_v29 = vrot.slane %v8604_v17, %v6690_v30  ;;  %v3501_v50 = vsel %vm3158_vm2, %v3500_v33, %v3496_v14  ;;  %v3510_v38 = vrot.slane %v6235_v19, %v6677_v7  ;;  %v8606_v9 = vld [vmem:[#allocation91_spill] sm:$0xff] }
 0x51b   : > { %2852 = vperm.xlu1 %4979, %v8601_v16   ;;  %v3250_v8 = vsel %vm3249_vm15, %v3248_v55, %v3243_v42  ;;  %v3398_v43 = vsel %vm3235_vm13, %v3397_v34, %v3393_v3  ;;  %v3505_v53 = vrot.slane %v8606_v9, %v6638_v51  ;;  %v8608_v16 = vld [vmem:[#allocation71_spill] sm:$0xff]  ;;  %v8610_v42 = vld [vmem:[#allocation84_spill] sm:$0xff]  ;;  %v3886_v9 = vrot.slane %v6491_v25, %v6635_v18 }
 0x51c   : > { %3077 = vperm.xlu0 %4978, %v8602_v32   ;;  %v7043_v22 = vsel %vm4515_vm0, %v3329_v0, %v3250_v8  ;;  %v3407_v32 = vrot.slane %v8608_v16, %v6706_v39  ;;  %v3403_v33 = vsel %vm3242_vm14, %v3402_v21, %v3398_v43  ;;  %v3467_v19 = vsel %vm3221_vm11, %v3466_v29, %v3462_v24  ;;  %v7049_v14 = vpop.permute.xlu1 %2876  ;;  %v7051_v17 = vpop.permute.xlu0 %2741  ;;  %v8613_v24 = vld [vmem:[#allocation85_spill] sm:$0xff] }
 0x51d   : > { %8607 = vst [vmem:[#allocation25_spill] sm:$0xff] %v7043_v22  ;;  %8609 = vst [vmem:[#allocation40_spill] sm:$0xff] %v7051_v17  ;;  %v3472_v55 = vsel %vm3228_vm12, %v3471_v6, %v3467_v19  ;;  %v3481_v34 = vrot.slane %v8610_v42, %v6712_v27  ;;  %v3506_v3 = vsel %vm3165_vm3, %v3505_v53, %v3501_v50  ;;  %v8614_v6 = vld [vmem:[#allocation97_spill] sm:$0xff]  ;;  %v8618_v19 = vld [vmem:[#allocation127_spill] sm:$0xff] }
 0x51e   : > { %v8611_v0 = vsub.f32 %v5226_v60, %v8476_v13  ;;  %v8612_v21 = vsub.f32 %v5230_v62, %v8472_v28  ;;  %v3476_v29 = vrot.slane %v8613_v24, %v6700_v49  ;;  %v3511_v8 = vsel %vm3172_vm4, %v3510_v38, %v3506_v3  ;;  %v8616_v13 = vld [vmem:[#allocation93_spill] sm:$0xff]  ;;  %v8617_v28 = vld [vmem:[#allocation167_spill] sm:$0xff]  ;;  %v8643_v27 = vld [vmem:[#allocation200_spill] sm:$0xff] }
 0x51f   : > { %v3520_v43 = vrot.slane %v8614_v6, %v6687_v10  ;;  %v7071_v50 = vsel %vm3249_vm15, %v3407_v32, %v3403_v33  ;;  %v3515_v53 = vrot.slane %v8616_v13, %v6648_v11  ;;  %v3895_v16 = vrot.slane %v8617_v28, %v6655_v54  ;;  %v8621_v32 = vld [vmem:[#allocation156_spill] sm:$0xff] }
 0x520   : > { %2942 = vperm.xlu1 %4979, %v8611_v0   ;;  %2900 = vperm.xlu0 %4978, %v8612_v21   ;;  %8615 = vst [vmem:[#allocation5_spill] sm:$0xff] %v7071_v50  ;;  %v3969_v42 = vrot.slane %v8618_v19, %v6645_v1  ;;  %v3477_v0 = vsel %vm3235_vm13, %v3476_v29, %v3472_v55  ;;  %v8620_v21 = vld [vmem:[#allocation196_spill] sm:$0xff]  ;;  %v7086_v24 = vpop.permute.xlu1 %2966  ;;  %v7088_v6 = vpop.permute.xlu0 %2834  ;;  %v8623_v19 = vld [vmem:[#allocation178_spill] sm:$0xff]  ;;  %v8624_v55 = vld [vmem:[#allocation185_spill] sm:$0xff] }
 0x521   : > { %v3890_v25 = vrot.slane %v8620_v21, %v6645_v1  ;;  %v3974_v33 = vrot.slane %v8621_v32, %v6655_v54  ;;  %v7091_v13 = vsel %vm3242_vm14, %v3481_v34, %v3477_v0  ;;  %v3516_v28 = vsel %vm3179_vm5, %v3515_v53, %v3511_v8  ;;  %v8626_v21 = vld [vmem:[#allocation180_spill] sm:$0xff]  ;;  %v8628_v32 = vld [vmem:[#allocation95_spill] sm:$0xff]  ;;  %v8629_v34 = vld [vmem:[#allocation194_spill] sm:$0xff] }
 0x522   : > { %8622 = vst [vmem:[#allocation41_spill] sm:$0xff] %v7091_v13  ;;  %v3965_v3 = vrot.slane %v8623_v19, %v6635_v18  ;;  %v8625_v29 = vsub.f32 %v5222_v58, %v8624_v55  ;;  %v8627_v36 = vsub.f32 %v5226_v60, %v8626_v21  ;;  %v7105_v50 = vsel %vm7928_vm6, %v3520_v43, %v3516_v28  ;;  %v8630_v55 = vld [vmem:[#allocation199_spill] sm:$0xff] }
 0x523   : > { %v3891_v53 = vsel %vm3151_vm1, %v3890_v25, %v3886_v9  ;;  %v3900_v22 = vrot.slane %v8632_v31, %v6638_v51  ;;  %v8633_v28 = vld [vmem:[#allocation155_spill] sm:$0xff]  ;;  %v8637_v31 = vld [vmem:[#allocation202_spill] sm:$0xff] }
 0x524   : > { %3032 = vperm.xlu1 %4979, %v8625_v29   ;;  %2990 = vperm.xlu0 %4978, %v8627_v36   ;;  %v3896_v0 = vsel %vm3158_vm2, %v3895_v16, %v3891_v53  ;;  %v3970_v19 = vsel %vm3151_vm1, %v3969_v42, %v3965_v3  ;;  %v3979_v29 = vrot.slane %v8630_v55, %v6638_v51  ;;  %v8631_v36 = vld [vmem:[#allocation126_spill] sm:$0xff]  ;;  %v8634_v9 = vld [vmem:[#allocation143_spill] sm:$0xff]  ;;  %v7123_v16 = vpop.permute.xlu1 %3056  ;;  %v7125_v42 = vpop.permute.xlu0 %2924  ;;  %v8635_v3 = vld [vmem:[#allocation197_spill] sm:$0xff] }
 0x525   : > { %v4048_v21 = vrot.slane %v8631_v36, %v6645_v1  ;;  %v3975_v43 = vsel %vm3158_vm2, %v3974_v33, %v3970_v19  ;;  %v3905_v8 = vrot.slane %v8633_v28, %v6677_v7  ;;  %v4127_v25 = vrot.slane %v8634_v9, %v6645_v1  ;;  %v8636_v55 = vld [vmem:[#allocation110_spill] sm:$0xff]  ;;  %v8639_v19 = vld [vmem:[#allocation11_spill] sm:$0xff]  ;;  %v8641_v9 = vld [vmem:[#allocation153_spill] sm:$0xff] }
 0x526   : > { %v4044_v53 = vrot.slane %v8635_v3, %v6635_v18  ;;  %v4053_v36 = vrot.slane %v8636_v55, %v6655_v54  ;;  %v3984_v39 = vrot.slane %v8637_v31, %v6677_v7  ;;  %v8638_v33 = vsub.f32 %v5210_v52, %v8526_v5  ;;  %v8644_v5 = vld [vmem:[#allocation203_spill] sm:$0xff]  ;;  %v8646_v3 = vld [vmem:[#allocation204_spill] sm:$0xff] }
 0x527   : > { %v8640_v28 = vsub.f32 %v5222_v58, %v8639_v19  ;;  %v4123_v55 = vrot.slane %v8643_v27, %v6635_v18  ;;  %v3901_v49 = vsel %vm3165_vm3, %v3900_v22, %v3896_v0  ;;  %v3980_v31 = vsel %vm3165_vm3, %v3979_v29, %v3975_v43  ;;  %v8645_v19 = vld [vmem:[#allocation113_spill] sm:$0xff] }
 0x528   : > { %3116 = vperm.xlu1 %4979, %v8638_v33   ;;  %v4049_v52 = vsel %vm3151_vm1, %v4048_v21, %v4044_v53  ;;  %v4132_v33 = vrot.slane %v8644_v5, %v6655_v54  ;;  %v3906_v38 = vsel %vm3172_vm4, %v3905_v8, %v3901_v49  ;;  %v3915_v58 = vrot.slane %v8646_v3, %v6687_v10  ;;  %v8647_v27 = vld [vmem:[#allocation169_spill] sm:$0xff]  ;;  %v7158_v0 = vpop.permute.xlu1 %2789  ;;  %v7160_v29 = vpop.permute.xlu0 %3014  ;;  %v8648_v53 = vld [vmem:[#allocation206_spill] sm:$0xff]  ;;  %v8651_v3 = vld [vmem:[#allocation175_spill] sm:$0xff] }
 0x529   : > { %3080 = vperm.xlu0 %4978, %v8640_v28   ;;  %v3910_v28 = vrot.slane %v8645_v19, %v6648_v11  ;;  %v4128_v44 = vsel %vm3151_vm1, %v4127_v25, %v4123_v55  ;;  %v4202_v22 = vrot.slane %v8647_v27, %v6635_v18  ;;  %v7163_v21 = vsel %vm3158_vm2, %v4053_v36, %v4049_v52  ;;  %v8649_v8 = vld [vmem:[#allocation173_spill] sm:$0xff]  ;;  %v8653_v5 = vld [vmem:[#allocation170_spill] sm:$0xff]  ;;  %v8654_v27 = vld [vmem:[#allocation115_spill] sm:$0xff] }
 0x52a   : > { %v3985_v43 = vsel %vm3172_vm4, %v3984_v39, %v3980_v31  ;;  %v4211_v49 = vrot.slane %v8648_v53, %v6655_v54  ;;  %v8650_v25 = vsub.f32 %v5232_v63, %v8649_v8  ;;  %v8652_v55 = vsub.f32 %v5230_v62, %v8651_v3  ;;  %v8655_v52 = vld [vmem:[#allocation131_spill] sm:$0xff]  ;;  %v8656_v31 = vld [vmem:[#allocation158_spill] sm:$0xff] }
 0x52b   : > { %v4206_v19 = vrot.slane %v8653_v5, %v6645_v1  ;;  %v3989_v36 = vrot.slane %v8654_v27, %v6648_v11  ;;  %v4137_v39 = vrot.slane %v8655_v52, %v6638_v51  ;;  %v3920_v53 = vrot.slane %v8656_v31, %v6662_v47 }
 0x52c   : > { %2945 = vperm.xlu1 %4979, %v8650_v25   ;;  %v4133_v17 = vsel %vm3158_vm2, %v4132_v33, %v4128_v44  ;;  %v3911_v8 = vsel %vm3179_vm5, %v3910_v28, %v3906_v38  ;;  %v8657_v25 = vld [vmem:[#allocation142_spill] sm:$0xff]  ;;  %v3994_v31 = vrot.slane %v8660_v45, %v6687_v10  ;;  %v7194_v13 = vpop.permute.xlu1 %2879  ;;  %v7196_v44 = vpop.permute.xlu0 %3095  ;;  %v8661_v33 = vld [vmem:[#allocation128_spill] sm:$0xff] }
 0x52d   : > { %2948 = vperm.xlu0 %4978, %v8652_v55   ;;  %v8658_v55 = vld [vmem:[#allocation171_spill] sm:$0xff]  ;;  %v3916_v5 = vsel %vm7928_vm6, %v3915_v58, %v3911_v8  ;;  %v4207_v27 = vsel %vm3151_vm1, %v4206_v19, %v4202_v22  ;;  %v4285_v28 = vrot.slane %v8661_v33, %v6645_v1  ;;  %v4221_v58 = vrot.slane %v6949_v15, %v6677_v7  ;;  %v8662_v22 = vld [vmem:[#allocation184_spill] sm:$0xff] }
 0x52e   : > { %v4216_v48 = vrot.slane %v8658_v55, %v6638_v51  ;;  %v4212_v38 = vsel %vm3158_vm2, %v4211_v49, %v4207_v27  ;;  %v8663_v19 = vsub.f32 %v5228_v61, %v8662_v22  ;;  %v8664_v8 = vld [vmem:[#allocation187_spill] sm:$0xff]  ;;  %v3990_v45 = vsel %vm3179_vm5, %v3989_v36, %v3985_v43  ;;  %v8666_v33 = vld [vmem:[#allocation144_spill] sm:$0xff] }
 0x52f   : > { %v8665_v55 = vsub.f32 %v5226_v60, %v8664_v8  ;;  %v4138_v52 = vsel %vm3165_vm3, %v4137_v39, %v4133_v17  ;;  %v3921_v49 = vsel %vm3193_vm7, %v3920_v53, %v3916_v5  ;;  %v4226_v27 = vrot.slane %v7086_v24, %v6648_v11  ;;  %v8668_v17 = vld [vmem:[#allocation174_spill] sm:$0xff] }
 0x530   : > { %3035 = vperm.xlu1 %4979, %v8663_v19   ;;  %v4281_v15 = vrot.slane %v8666_v33, %v6635_v18  ;;  %v4217_v3 = vsel %vm3165_vm3, %v4216_v48, %v4212_v38  ;;  %v4142_v22 = vrot.slane %v6784_v4, %v6677_v7  ;;  %v8667_v19 = vld [vmem:[#allocation183_spill] sm:$0xff]  ;;  %v3995_v43 = vsel %vm7928_vm6, %v3994_v31, %v3990_v45  ;;  %v8669_v39 = vld [vmem:[#allocation22_spill] sm:$0xff]  ;;  %v2970_v5 = vpop.permute.xlu1 %2969  ;;  %v8672_v45 = vld [vmem:[#allocation17_spill] sm:$0xff] }
 0x531   : > { %3038 = vperm.xlu0 %4978, %v8665_v55   ;;  %v3999_v8 = vrot.slane %v8667_v19, %v6662_v47  ;;  %v4360_v36 = vrot.slane %v8668_v17, %v6635_v18  ;;  %v4364_v53 = vrot.slane %v8669_v39, %v6645_v1  ;;  %v4004_v24 = vrot.slane %v6951_v26, %v6697_v20  ;;  %v7228_v55 = vpop.permute.xlu0 %2744  ;;  %v8671_v31 = vld [vmem:[#allocation3_spill] sm:$0xff]  ;;  %v8674_v19 = vld [vmem:[#allocation14_spill] sm:$0xff]  ;;  %v8676_v26 = vld [vmem:[#allocation24_spill] sm:$0xff] }
 0x532   : > { %8670 = vst [vmem:[#allocation9_spill] sm:$0xff] %v7228_v55  ;;  %v4222_v48 = vsel %vm3172_vm4, %v4221_v58, %v4217_v3  ;;  %v4369_v4 = vrot.slane %v6982_v57, %v6655_v54  ;;  %v4231_v38 = vrot.slane %v2970_v5, %v6687_v10  ;;  %v8673_v33 = vsub.f32 %v8671_v31, %v8672_v45  ;;  %v8677_v58 = vld [vmem:[#allocation145_spill] sm:$0xff] }
 0x533   : > { %v8675_v17 = vsub.f32 %v5218_v56, %v8674_v19  ;;  %v4147_v39 = vrot.slane %v8676_v26, %v6648_v11  ;;  %v4227_v55 = vsel %vm3179_vm5, %v4226_v27, %v4222_v48  ;;  %v4009_v3 = vrot.slane %v7088_v6, %v6680_v41 }
 0x534   : > { %3119 = vperm.xlu1 %4979, %v8673_v33   ;;  %v4374_v57 = vrot.slane %v7123_v16, %v6638_v51  ;;  %v4068_v5 = vrot.slane %v8677_v58, %v6648_v11  ;;  %v4143_v31 = vsel %vm3172_vm4, %v4142_v22, %v4138_v52  ;;  %v4000_v45 = vsel %vm3193_vm7, %v3999_v8, %v3995_v43  ;;  %v8678_v33 = vld [vmem:[#allocation182_spill] sm:$0xff]  ;;  %v3060_v48 = vpop.permute.xlu1 %3059  ;;  %v8679_v8 = vld [vmem:[#allocation179_spill] sm:$0xff] }
 0x535   : > { %3122 = vperm.xlu0 %4978, %v8675_v17   ;;  %v7252_v56 = vsel %vm7928_vm6, %v4231_v38, %v4227_v55  ;;  %v4290_v19 = vrot.slane %v8678_v33, %v6655_v54  ;;  %v4365_v27 = vsel %vm3151_vm1, %v4364_v53, %v4360_v36  ;;  %v4005_v6 = vsel %vm3200_vm8, %v4004_v24, %v4000_v45  ;;  %v2838_v17 = vpop.permute.xlu0 %2837  ;;  %v8681_v55 = vld [vmem:[#allocation186_spill] sm:$0xff] }
 0x536   : > { %v4152_v16 = vrot.slane %v6984_v23, %v6687_v10  ;;  %v4370_v26 = vsel %vm3158_vm2, %v4369_v4, %v4365_v27  ;;  %v4379_v52 = vrot.slane %v3060_v48, %v6677_v7  ;;  %v4014_v22 = vrot.slane %v2838_v17, %v6703_v40  ;;  %v8683_v58 = vld [vmem:[#allocation38_spill] sm:$0xff] }
 0x537   : > { %v8680_v43 = vsub.f32 %v5232_v63, %v8679_v8  ;;  %v8682_v36 = vsub.f32 %v5232_v63, %v8681_v55  ;;  %v4148_v53 = vsel %vm3179_vm5, %v4147_v39, %v4143_v31  ;;  %v4010_v23 = vsel %vm7929_vm9, %v4009_v3, %v4005_v6 }
 0x538   : > { %v4375_v24 = vsel %vm3165_vm3, %v4374_v57, %v4370_v26  ;;  %v4157_v4 = vrot.slane %v7125_v42, %v6662_v47  ;;  %v3925_v38 = vrot.slane %v6884_v2, %v6697_v20  ;;  %v4295_v45 = vrot.slane %v8683_v58, %v6638_v51  ;;  %v3099_v2 = vpop.permute.xlu1 %3098  ;;  %v8684_v26 = vld [vmem:[#allocation6_spill] sm:$0xff] }
 0x539   : > { %2993 = vperm.xlu1 %4979, %v8680_v43   ;;  %3041 = vperm.xlu0 %4978, %v8682_v36   ;;  %v7279_v33 = vsel %vm3172_vm4, %v4379_v52, %v4375_v24  ;;  %v7282_v27 = vsel %vm3214_vm10, %v4014_v22, %v4010_v23  ;;  %v4286_v39 = vsel %vm3151_vm1, %v4285_v28, %v4281_v15  ;;  %v2928_v31 = vpop.permute.xlu0 %2927  ;;  %v8686_v15 = vld [vmem:[#allocation19_spill] sm:$0xff] }
 0x53a   : > { %v4153_v3 = vsel %vm7928_vm6, %v4152_v16, %v4148_v53  ;;  %v3930_v57 = vrot.slane %v7015_v46, %v6680_v41  ;;  %v4300_v42 = vrot.slane %v7017_v35, %v6677_v7  ;;  %v4439_v6 = vrot.slane %v7196_v44, %v6635_v18 }
 0x53b   : > { %v4443_v48 = vrot.slane %v3099_v2, %v6645_v1  ;;  %v4162_v17 = vrot.slane %v2928_v31, %v6697_v20  ;;  %v8685_v28 = vsub.f32 %v5228_v61, %v8684_v26  ;;  %v8687_v16 = vsub.f32 %v5224_v59, %v8686_v15 }
 0x53c   : > { %v4291_v46 = vsel %vm3158_vm2, %v4290_v19, %v4286_v39  ;;  %v4158_v35 = vsel %vm3193_vm7, %v4157_v4, %v4153_v3  ;;  %v3935_v52 = vrot.slane %v7158_v0, %v6703_v40  ;;  %v4305_v44 = vrot.slane %v7160_v29, %v6648_v11  ;;  %v2793_v36 = vpop.permute.xlu1 %2792 }
 0x53d   : > { %3083 = vperm.xlu1 %4979, %v8685_v28   ;;  %3125 = vperm.xlu0 %4978, %v8687_v16   ;;  %v3926_v22 = vsel %vm3200_vm8, %v3925_v38, %v3921_v49  ;;  %v4296_v8 = vsel %vm3165_vm3, %v4295_v45, %v4291_v46  ;;  %v4444_v43 = vsel %vm3151_vm1, %v4443_v48, %v4439_v6  ;;  %v3018_v53 = vpop.permute.xlu0 %3017 }
 0x53e   : > { %v7310_v55 = vsel %vm3200_vm8, %v4162_v17, %v4158_v35  ;;  %v8688_v59 = vrot.slane %v8657_v25, %v6638_v51  ;;  %v4073_v0 = vrot.slane %v6916_v12, %v6687_v10  ;;  %v3931_v29 = vsel %vm7929_vm9, %v3930_v57, %v3926_v22  ;;  %v8689_v25 = vld [vmem:[#allocation181_spill] sm:$0xff]  ;;  %v8694_v57 = vld [vmem:[#allocation90_spill] sm:$0xff]  ;;  %v8696_v17 = vld [vmem:[#allocation99_spill] sm:$0xff] }
 0x53f   : > { %v4301_v49 = vsel %vm3172_vm4, %v4300_v42, %v4296_v8  ;;  %v4078_v23 = vrot.slane %v7049_v14, %v6662_v47  ;;  %v3940_v24 = vrot.slane %v2793_v36, %v6690_v30  ;;  %v4310_v4 = vrot.slane %v3018_v53, %v6687_v10  ;;  %v8707_v53 = vld [vmem:[#allocation195_spill] sm:$0xff] }
 0x540   : > { %v4059_v19 = vsel %vm3165_vm3, %v8688_v59, %v7163_v21  ;;  %v8690_v38 = vsub.f32 %v5230_v62, %v8689_v25  ;;  %v8691_v21 = vld [vmem:[#allocation7_spill] sm:$0xff]  ;;  %v8693_v58 = vrot.slane %v8659_v37, %v6677_v7  ;;  %v3936_v39 = vsel %vm3214_vm10, %v3935_v52, %v3931_v29  ;;  %v2883_v16 = vpop.permute.xlu1 %2882  ;;  %v8699_v52 = vld [vmem:[#allocation13_spill] sm:$0xff]  ;;  %v8706_v29 = vld [vmem:[#allocation198_spill] sm:$0xff] }
 0x541   : > { %v8692_v12 = vsub.f32 %v5232_v63, %v8691_v21  ;;  %v4306_v14 = vsel %vm3179_vm5, %v4305_v44, %v4301_v49  ;;  %v4083_v3 = vrot.slane %v7194_v13, %v6697_v20  ;;  %v3535_v42 = vrot.slane %v8694_v57, %v6680_v41  ;;  %v3102_v46 = vpop.permute.xlu0 %3101  ;;  %v8704_v59 = vld [vmem:[#allocation111_spill] sm:$0xff] }
 0x542   : > { %2996 = vperm.xlu1 %4979, %v8690_v38   ;;  %v4064_v45 = vsel %vm3172_vm4, %v8693_v58, %v4059_v19  ;;  %v3941_v31 = vsel %vm3221_vm11, %v3940_v24, %v3936_v39  ;;  %v7344_v6 = vsel %vm7928_vm6, %v4310_v4, %v4306_v14  ;;  %v8695_v37 = vrot.slane %v8628_v32, %v6662_v47  ;;  %v8708_v24 = vld [vmem:[#allocation201_spill] sm:$0xff] }
 0x543   : > { %3089 = vperm.xlu0 %4978, %v8692_v12   ;;  %v4069_v2 = vsel %vm3179_vm5, %v4068_v5, %v4064_v45  ;;  %v3530_v26 = vrot.slane %v8696_v17, %v6697_v20  ;;  %v8697_v13 = vrot.slane %v8641_v9, %v6635_v18  ;;  %v8698_v5 = vrot.slane %v8629_v34, %v6645_v1  ;;  %v8701_v9 = vld [vmem:[#allocation8_spill] sm:$0xff]  ;;  %v8703_v34 = vld [vmem:[#allocation130_spill] sm:$0xff]  ;;  %v8710_v45 = vld [vmem:[#allocation119_spill] sm:$0xff] }
 0x544   : > { %v3526_v48 = vsel %vm3193_vm7, %v8695_v37, %v7105_v50  ;;  %v4074_v15 = vsel %vm7928_vm6, %v4073_v0, %v4069_v2  ;;  %v4088_v32 = vrot.slane %v2883_v16, %v6680_v41  ;;  %v4448_v50 = vrot.slane %v3102_v46, %v6655_v54  ;;  %v8709_v12 = vld [vmem:[#allocation98_spill] sm:$0xff]  ;;  %v8711_v14 = vld [vmem:[#allocation129_spill] sm:$0xff]  ;;  %v2973_v57 = vpop.permute.xlu1 %2972 }
 0x545   : > { %v3812_v28 = vsel %vm3151_vm1, %v8698_v5, %v8697_v13  ;;  %v4079_v35 = vsel %vm3193_vm7, %v4078_v23, %v4074_v15  ;;  %v8700_v44 = vsub.f32 %v5226_v60, %v8699_v52  ;;  %v8702_v22 = vsub.f32 %v5230_v62, %v8701_v9  ;;  %v2796_v2 = vpop.permute.xlu0 %2795  ;;  %v8712_v13 = vld [vmem:[#allocation159_spill] sm:$0xff]  ;;  %v8713_v5 = vld [vmem:[#allocation188_spill] sm:$0xff] }
 0x546   : > { %v3570_v8 = vrot.slane %v8703_v34, %v6635_v18  ;;  %v8705_v19 = vrot.slane %v8704_v59, %v6655_v54  ;;  %v3826_v49 = vrot.slane %v8706_v29, %v6677_v7  ;;  %v4084_v36 = vsel %vm3200_vm8, %v4083_v3, %v4079_v35  ;;  %v8717_v15 = vld [vmem:[#allocation100_spill] sm:$0xff] }
 0x547   : > { %3086 = vperm.xlu1 %4979, %v8700_v44   ;;  %3092 = vperm.xlu0 %4978, %v8702_v22   ;;  %v3821_v23 = vrot.slane %v8707_v53, %v6638_v51  ;;  %v3831_v4 = vrot.slane %v8708_v24, %v6648_v11  ;;  %v4089_v25 = vsel %vm7929_vm9, %v4088_v32, %v4084_v36  ;;  %v8718_v32 = vld [vmem:[#allocation161_spill] sm:$0xff]  ;;  %v8719_v44 = vld [vmem:[#allocation2_spill] sm:$0xff]  ;;  %v8722_v53 = vld [vmem:[#allocation40_spill] sm:$0xff] }
 0x548   : > { %v3817_v0 = vsel %vm3158_vm2, %v8705_v19, %v3812_v28  ;;  %v7385_v38 = vsel %vm3158_vm2, %v4448_v50, %v4444_v43  ;;  %v3531_v21 = vsel %vm3200_vm8, %v3530_v26, %v3526_v48  ;;  %v3574_v58 = vrot.slane %v8709_v12, %v6645_v1  ;;  %v8715_v26 = vld [vmem:[#allocation18_spill] sm:$0xff]  ;;  %v8723_v24 = vld [vmem:[#allocation4_spill] sm:$0xff] }
 0x549   : > { %v3579_v39 = vrot.slane %v8710_v45, %v6655_v54  ;;  %v3836_v3 = vrot.slane %v8711_v14, %v6687_v10  ;;  %v3822_v37 = vsel %vm3165_vm3, %v3821_v23, %v3817_v0  ;;  %v4236_v17 = vrot.slane %v2973_v57, %v6662_v47  ;;  %v8721_v0 = vld [vmem:[#allocation189_spill] sm:$0xff]  ;;  %v2886_v36 = vpop.permute.xlu0 %2885 }
 0x54a   : > { %v3945_v43 = vrot.slane %v2796_v2, %v8712_v13  ;;  %v8714_v48 = vsub.f32 %v5230_v62, %v8713_v5  ;;  %v8716_v28 = vsub.f32 %v5226_v60, %v8715_v26  ;;  %v3584_v16 = vrot.slane %v8717_v15, %v6638_v51  ;;  %v8729_v2 = vld [vmem:[#allocation9_spill] sm:$0xff] }
 0x54b   : > { %v3575_v46 = vsel %vm3151_vm1, %v3574_v58, %v3570_v8  ;;  %v3827_v35 = vsel %vm3172_vm4, %v3826_v49, %v3822_v37  ;;  %v3841_v50 = vrot.slane %v8718_v32, %v6662_v47  ;;  %v3846_v9 = vrot.slane %v8719_v44, %v6697_v20  ;;  %v8720_v8 = vld [vmem:[#allocation102_spill] sm:$0xff]  ;;  %v3063_v49 = vpop.permute.xlu1 %3062  ;;  %v8726_v58 = vld [vmem:[#allocation20_spill] sm:$0xff] }
 0x54c   : > { %3044 = vperm.xlu1 %4979, %v8714_v48   ;;  %3134 = vperm.xlu0 %4978, %v8716_v28   ;;  %v3832_v52 = vsel %vm3179_vm5, %v3831_v4, %v3827_v35  ;;  %v4237_v22 = vsel %vm3193_vm7, %v4236_v17, %v7252_v56  ;;  %v7415_v60 = vsel %vm3228_vm12, %v3945_v43, %v3941_v31  ;;  %v8724_v4 = vld [vmem:[#allocation16_spill] sm:$0xff]  ;;  %v8730_v48 = vld [vmem:[#allocation101_spill] sm:$0xff]  ;;  %v8732_v35 = vld [vmem:[#allocation150_spill] sm:$0xff] }
 0x54d   : > { %v3580_v34 = vsel %vm3158_vm2, %v3579_v39, %v3575_v46  ;;  %v3589_v59 = vrot.slane %v8720_v8, %v6677_v7  ;;  %v3837_v19 = vsel %vm7928_vm6, %v3836_v3, %v3832_v52  ;;  %v3851_v29 = vrot.slane %v8721_v0, %v6680_v41  ;;  %v8728_v39 = vld [vmem:[#allocation92_spill] sm:$0xff]  ;;  %v8733_v52 = vld [vmem:[#allocation21_spill] sm:$0xff] }
 0x54e   : > { %v3856_v23 = vrot.slane %v8722_v53, %v6703_v40  ;;  %v4384_v56 = vrot.slane %v3063_v49, %v6648_v11  ;;  %v4093_v31 = vrot.slane %v2886_v36, %v6703_v40  ;;  %v8725_v12 = vsub.f32 %v8723_v24, %v8724_v4  ;;  %v8736_v8 = vld [vmem:[#allocation104_spill] sm:$0xff]  ;;  %v8738_v49 = vld [vmem:[#allocation162_spill] sm:$0xff] }
 0x54f   : > { %v8727_v45 = vsub.f32 %v5230_v62, %v8726_v58  ;;  %v3545_v14 = vrot.slane %v8728_v39, %v6690_v30  ;;  %v3536_v3 = vsel %vm7929_vm9, %v3535_v42, %v3531_v21  ;;  %v3842_v57 = vsel %vm3193_vm7, %v3841_v50, %v3837_v19  ;;  %v8731_v21 = vld [vmem:[#allocation132_spill] sm:$0xff]  ;;  %v2748_v46 = vpop.permute.xlu1 %2747  ;;  %v8737_v19 = vld [vmem:[#allocation109_spill] sm:$0xff]  ;;  %v8739_v53 = vld [vmem:[#allocation138_spill] sm:$0xff] }
 0x550   : > { %3128 = vperm.xlu1 %4979, %v8725_v12   ;;  %v3861_v37 = vrot.slane %v8729_v2, %v6690_v30  ;;  %v3585_v17 = vsel %vm3165_vm3, %v3584_v16, %v3580_v34  ;;  %v3847_v43 = vsel %vm3200_vm8, %v3846_v9, %v3842_v57  ;;  %v4385_v5 = vsel %vm3179_vm5, %v4384_v56, %v7279_v33  ;;  %v2976_v16 = vpop.permute.xlu0 %2975  ;;  %v8735_v9 = vld [vmem:[#allocation114_spill] sm:$0xff]  ;;  %v8740_v24 = vld [vmem:[#allocation116_spill] sm:$0xff] }
 0x551   : > { %3140 = vperm.xlu0 %4978, %v8727_v45   ;;  %v7444_v62 = vsel %vm3214_vm10, %v4093_v31, %v4089_v25  ;;  %v3540_v26 = vrot.slane %v8730_v48, %v6703_v40  ;;  %v3590_v42 = vsel %vm3172_vm4, %v3589_v59, %v3585_v17  ;;  %v3599_v28 = vrot.slane %v8731_v21, %v6687_v10  ;;  %v8741_v12 = vld [vmem:[#allocation166_spill] sm:$0xff]  ;;  %v8744_v17 = vld [vmem:[#allocation120_spill] sm:$0xff] }
 0x552   : > { %v3852_v15 = vsel %vm7929_vm9, %v3851_v29, %v3847_v43  ;;  %v3649_v32 = vrot.slane %v8732_v35, %v6635_v18  ;;  %v3866_v25 = vrot.slane %v2748_v46, %v8712_v13  ;;  %v4241_v50 = vrot.slane %v2976_v16, %v6697_v20  ;;  %v8747_v16 = vld [vmem:[#allocation146_spill] sm:$0xff] }
 0x553   : > { %v3857_v33 = vsel %vm3214_vm10, %v3856_v23, %v3852_v15  ;;  %v8734_v44 = vsub.f32 %v5228_v61, %v8733_v52  ;;  %v3594_v34 = vrot.slane %v8735_v9, %v6648_v11  ;;  %v3658_v59 = vrot.slane %v8736_v8, %v6655_v54  ;;  %v2841_v45 = vpop.permute.xlu1 %2840  ;;  %v8748_v35 = vld [vmem:[#allocation94_spill] sm:$0xff] }
 0x554   : > { %v3728_v0 = vrot.slane %v8737_v19, %v6635_v18  ;;  %v3862_v29 = vsel %vm3221_vm11, %v3861_v37, %v3857_v33  ;;  %v3653_v36 = vrot.slane %v8738_v49, %v6645_v1  ;;  %v3737_v23 = vrot.slane %v8739_v53, %v6655_v54  ;;  %v3066_v39 = vpop.permute.xlu0 %3065  ;;  %v8750_v52 = vld [vmem:[#allocation190_spill] sm:$0xff]  ;;  %v8751_v19 = vld [vmem:[#allocation149_spill] sm:$0xff] }
 0x555   : > { %3131 = vperm.xlu1 %4979, %v8734_v44   ;;  %v3867_v61 = vsel %vm3228_vm12, %v3866_v25, %v3862_v29  ;;  %v7473_v56 = vsel %vm3200_vm8, %v4241_v50, %v4237_v22  ;;  %v3541_v31 = vsel %vm3214_vm10, %v3540_v26, %v3536_v3  ;;  %v3604_v4 = vrot.slane %v8740_v24, %v6662_v47  ;;  %v8742_v3 = vld [vmem:[#allocation23_spill] sm:$0xff]  ;;  %v8749_v25 = vld [vmem:[#allocation148_spill] sm:$0xff] }
 0x556   : > { %v3595_v18 = vsel %vm3179_vm5, %v3594_v34, %v3590_v42  ;;  %v3732_v58 = vrot.slane %v8741_v12, %v6645_v1  ;;  %v3654_v54 = vsel %vm3151_vm1, %v3653_v36, %v3649_v32  ;;  %v4019_v2 = vrot.slane %v2841_v45, %v6690_v30  ;;  %v8745_v1 = vld [vmem:[#allocation123_spill] sm:$0xff]  ;;  %v8752_v29 = vld [vmem:[#allocation152_spill] sm:$0xff] }
 0x557   : > { %v3600_v57 = vsel %vm7928_vm6, %v3599_v28, %v3595_v18  ;;  %v4389_v22 = vrot.slane %v3066_v39, %v6687_v10  ;;  %v8743_v37 = vsub.f32 %v5232_v63, %v8742_v3  ;;  %v3663_v43 = vrot.slane %v8744_v17, %v6638_v51  ;;  %v8746_v28 = vld [vmem:[#allocation165_spill] sm:$0xff]  ;;  %v2931_v9 = vpop.permute.xlu1 %2930  ;;  %v8754_v18 = vld [vmem:[#allocation103_spill] sm:$0xff]  ;;  %v8757_v3 = vld [vmem:[#allocation118_spill] sm:$0xff] }
 0x558   : > { %v3659_v48 = vsel %vm3158_vm2, %v3658_v59, %v3654_v54  ;;  %v3668_v26 = vrot.slane %v8745_v1, %v6677_v7  ;;  %v3733_v42 = vsel %vm3151_vm1, %v3732_v58, %v3728_v0  ;;  %v3747_v15 = vrot.slane %v8746_v28, %v6677_v7  ;;  %v2751_v34 = vpop.permute.xlu0 %2750  ;;  %v8755_v58 = vld [vmem:[#allocation133_spill] sm:$0xff] }
 0x559   : > { %3137 = vperm.xlu1 %4979, %v8743_v37   ;;  %v3738_v21 = vsel %vm3158_vm2, %v3737_v23, %v3733_v42  ;;  %v4020_v46 = vsel %vm3221_vm11, %v4019_v2, %v7282_v27  ;;  %v7500_v63 = vsel %vm7928_vm6, %v4389_v22, %v4385_v5  ;;  %v3555_v32 = vrot.slane %v8748_v35, %v8747_v16  ;;  %v8753_v23 = vld [vmem:[#allocation125_spill] sm:$0xff] }
 0x55a   : > { %v3546_v33 = vsel %vm3221_vm11, %v3545_v14, %v3541_v31  ;;  %v3609_v50 = vrot.slane %v8749_v25, %v6697_v20  ;;  %v3742_v44 = vrot.slane %v8750_v52, %v6638_v51  ;;  %v3605_v8 = vsel %vm3193_vm7, %v3604_v4, %v3600_v57  ;;  %v8756_v57 = vld [vmem:[#allocation151_spill] sm:$0xff] }
 0x55b   : > { %v3664_v27 = vsel %vm3165_vm3, %v3663_v43, %v3659_v48  ;;  %v4167_v5 = vrot.slane %v2931_v9, %v6680_v41  ;;  %v3871_v59 = vrot.slane %v2751_v34, %v8747_v16  ;;  %v3673_v0 = vrot.slane %v8751_v19, %v6648_v11  ;;  %v3021_v2 = vpop.permute.xlu1 %3020  ;;  %v8758_v43 = vld [vmem:[#allocation137_spill] sm:$0xff] }
 0x55c   : > { %v3669_v14 = vsel %vm3172_vm4, %v3668_v26, %v3664_v27  ;;  %v3678_v49 = vrot.slane %v8752_v29, %v6687_v10  ;;  %v3743_v36 = vsel %vm3165_vm3, %v3742_v44, %v3738_v21  ;;  %v3757_v31 = vrot.slane %v8753_v23, %v6687_v10  ;;  %v2844_v22 = vpop.permute.xlu0 %2843  ;;  %v8759_v26 = vld [vmem:[#allocation177_spill] sm:$0xff]  ;;  %v8761_v44 = vld [vmem:[#allocation135_spill] sm:$0xff] }
 0x55d   : > { %v3748_v53 = vsel %vm3172_vm4, %v3747_v15, %v3743_v36  ;;  %v4168_v24 = vsel %vm7929_vm9, %v4167_v5, %v7310_v55  ;;  %v7525_v4 = vsel %vm3235_vm13, %v3871_v59, %v3867_v61  ;;  %v3550_v12 = vrot.slane %v8754_v18, %v8712_v13  ;;  %v8760_v15 = vld [vmem:[#allocation108_spill] sm:$0xff] }
 0x55e   : > { %v3614_v45 = vrot.slane %v8755_v58, %v6680_v41  ;;  %v3610_v39 = vsel %vm3200_vm8, %v3609_v50, %v3605_v8  ;;  %v3752_v54 = vrot.slane %v8756_v57, %v6648_v11  ;;  %v3619_v37 = vrot.slane %v8757_v3, %v6703_v40  ;;  %v8762_v8 = vld [vmem:[#allocation176_spill] sm:$0xff] }
 0x55f   : > { %v3674_v55 = vsel %vm3179_vm5, %v3673_v0, %v3669_v14  ;;  %v4315_v61 = vrot.slane %v3021_v2, %v6662_v47  ;;  %v4024_v17 = vrot.slane %v2844_v22, %v8712_v13  ;;  %v3683_v48 = vrot.slane %v8758_v43, %v6662_v47  ;;  %v3105_v5 = vpop.permute.xlu1 %3104  ;;  %v8769_v22 = vld [vmem:[#allocation191_spill] sm:$0xff] }
 0x560   : > { %v3679_v1 = vsel %vm7928_vm6, %v3678_v49, %v3674_v55  ;;  %v3688_v42 = vrot.slane %v8759_v26, %v6697_v20  ;;  %v3753_v21 = vsel %vm3179_vm5, %v3752_v54, %v3748_v53  ;;  %v3767_v35 = vrot.slane %v8760_v15, %v6697_v20  ;;  %v2934_v59 = vpop.permute.xlu0 %2933  ;;  %v8764_v49 = vld [vmem:[#allocation106_spill] sm:$0xff]  ;;  %v8768_v54 = vld [vmem:[#allocation147_spill] sm:$0xff] }
 0x561   : > { %v3758_v28 = vsel %vm7928_vm6, %v3757_v31, %v3753_v21  ;;  %v4316_v25 = vsel %vm3193_vm7, %v4315_v61, %v7344_v6  ;;  %v7551_v50 = vsel %vm3228_vm12, %v4024_v17, %v4020_v46  ;;  %v3551_v52 = vsel %vm3228_vm12, %v3550_v12, %v3546_v33  ;;  %v8763_v33 = vld [vmem:[#allocation164_spill] sm:$0xff]  ;;  %v8765_v31 = vld [vmem:[#allocation141_spill] sm:$0xff]  ;;  %v8770_v17 = vld [vmem:[#allocation107_spill] sm:$0xff] }
 0x562   : > { %v3624_v9 = vrot.slane %v8761_v44, %v6690_v30  ;;  %v3615_v34 = vsel %vm7929_vm9, %v3614_v45, %v3610_v39  ;;  %v3762_v27 = vrot.slane %v8762_v8, %v6662_v47  ;;  %v3684_v0 = vsel %vm3193_vm7, %v3683_v48, %v3679_v1  ;;  %v8766_v45 = vld [vmem:[#allocation160_spill] sm:$0xff]  ;;  %v8767_v39 = vld [vmem:[#allocation117_spill] sm:$0xff]  ;;  %v8771_v1 = vld [vmem:[#allocation139_spill] sm:$0xff] }
 0x563   : > { %v3620_v19 = vsel %vm3214_vm10, %v3619_v37, %v3615_v34  ;;  %v4453_v6 = vrot.slane %v3105_v5, %v6638_v51  ;;  %v4172_v46 = vrot.slane %v2934_v59, %v6703_v40  ;;  %v3693_v14 = vrot.slane %v8763_v33, %v6680_v41  ;;  %v2799_v37 = vpop.permute.xlu1 %2798  ;;  %v8776_v33 = vld [vmem:[#allocation136_spill] sm:$0xff] }
 0x564   : > { %v3689_v29 = vsel %vm3200_vm8, %v3688_v42, %v3684_v0  ;;  %v3698_v36 = vrot.slane %v8764_v49, %v6703_v40  ;;  %v3763_v53 = vsel %vm3193_vm7, %v3762_v27, %v3758_v28  ;;  %v3777_v18 = vrot.slane %v8765_v31, %v6703_v40  ;;  %v3024_v55 = vpop.permute.xlu0 %3023  ;;  %v8772_v28 = vld [vmem:[#allocation168_spill] sm:$0xff]  ;;  %v8775_v0 = vld [vmem:[#allocation121_spill] sm:$0xff]  ;;  %v8777_v49 = vld [vmem:[#allocation122_spill] sm:$0xff] }
 0x565   : > { %v3768_v23 = vsel %vm3200_vm8, %v3767_v35, %v3763_v53  ;;  %v4454_v51 = vsel %vm3165_vm3, %v4453_v6, %v7385_v38  ;;  %v7575_v12 = vsel %vm3214_vm10, %v4172_v46, %v4168_v24  ;;  %v3556_v58 = vsel %vm3235_vm13, %v3555_v32, %v3551_v52  ;;  %v8774_v27 = vld [vmem:[#allocation192_spill] sm:$0xff] }
 0x566   : > { %v3560_v57 = vrot.slane %v8767_v39, %v8766_v45  ;;  %v3629_v2 = vrot.slane %v8768_v54, %v8712_v13  ;;  %v3772_v3 = vrot.slane %v8769_v22, %v6680_v41  ;;  %vm4517_vm1 = vcmask 1042434   ;;  %v8778_v31 = vld [vmem:[#allocation124_spill] sm:$0xff]  ;;  %v8779_v39 = vld [vmem:[#allocation41_spill] sm:$0xff] }
 0x567   : > { %v3625_v61 = vsel %vm3221_vm11, %v3624_v9, %v3620_v19  ;;  %v3694_v38 = vsel %vm7929_vm9, %v3693_v14, %v3689_v29  ;;  %v3950_v24 = vrot.slane %v2799_v37, %v8747_v16  ;;  %v4320_v32 = vrot.slane %v3024_v55, %v6697_v20  ;;  %v8773_v9 = vld [vmem:[#allocation105_spill] sm:$0xff]  ;;  %v2889_v59 = vpop.permute.xlu1 %2888 }
 0x568   : > { %vm7930_vm2 = vcmask 1043459   ;;  %v3703_v43 = vrot.slane %v8770_v17, %v6690_v30  ;;  %v3699_v48 = vsel %vm3214_vm10, %v3698_v36, %v3694_v38  ;;  %v3708_v26 = vrot.slane %v8771_v1, %v8712_v13  ;;  %v3108_v19 = vpop.permute.xlu0 %3107  ;;  %v8781_v54 = vld [vmem:[#allocation157_spill] sm:$0xff]  ;;  %v8785_v1 = vld [vmem:[#allocation134_spill] sm:$0xff] }
 0x569   : > { %v3773_v42 = vsel %vm7929_vm9, %v3772_v3, %v3768_v23  ;;  %v3787_v15 = vrot.slane %v8772_v28, %v8712_v13  ;;  %v3951_v35 = vsel %vm3235_vm13, %v3950_v24, %v7415_v60  ;;  %v7600_v52 = vsel %vm3200_vm8, %v4320_v32, %v4316_v25  ;;  %v8783_v3 = vld [vmem:[#allocation96_spill] sm:$0xff]  ;;  %v8786_v28 = vld [vmem:[#allocation163_spill] sm:$0xff] }
 0x56a   : > { %v3778_v21 = vsel %vm3214_vm10, %v3777_v18, %v3773_v42  ;;  %vm4521_vm3 = vcmask 1044484   ;;  %v3561_v44 = vsel %vm3242_vm14, %v3560_v57, %v3556_v58  ;;  %v3634_v34 = vrot.slane %v8773_v9, %v8747_v16  ;;  %v8780_v57 = vld [vmem:[#allocation87_spill] sm:$0xff] }
 0x56b   : > { %v3630_v8 = vsel %vm3228_vm12, %v3629_v2, %v3625_v61  ;;  %v3782_v5 = vrot.slane %v8774_v27, %v6690_v30  ;;  %vm4523_vm6 = vcmask 1045509   ;;  %v3639_v60 = vrot.slane %v8775_v0, %v8766_v45  ;;  %v8784_v61 = vld [vmem:[#allocation154_spill] sm:$0xff]  ;;  %v2979_v24 = vpop.permute.xlu1 %2978  ;;  %v8787_v27 = vld [vmem:[#allocation25_spill] sm:$0xff] }
 0x56c   : > { %v3704_v25 = vsel %vm3221_vm11, %v3703_v43, %v3699_v48  ;;  %v4098_v6 = vrot.slane %v2889_v59, %v6690_v30  ;;  %v4458_v46 = vrot.slane %v3108_v19, %v6677_v7  ;;  %v3713_v14 = vrot.slane %v8776_v33, %v8747_v16  ;;  %v2802_v32 = vpop.permute.xlu0 %2801  ;;  %v8789_v19 = vld [vmem:[#allocation193_spill] sm:$0xff] }
 0x56d   : > { %v3709_v29 = vsel %vm3228_vm12, %v3708_v26, %v3704_v25  ;;  %v3718_v36 = vrot.slane %v8777_v49, %v8766_v45  ;;  %v3783_v53 = vsel %vm3221_vm11, %v3782_v5, %v3778_v21  ;;  %v3797_v18 = vrot.slane %v8778_v31, %v8766_v45  ;;  %v8788_v5 = vld [vmem:[#allocation5_spill] sm:$0xff] }
 0x56e   : > { %v3788_v23 = vsel %vm3228_vm12, %v3787_v15, %v3783_v53  ;;  %v4099_v58 = vsel %vm3221_vm11, %v4098_v6, %v7444_v62  ;;  %v7625_v7 = vsel %vm3172_vm4, %v4458_v46, %v4454_v51  ;;  %v8782_v2 = vrot.slane %v8780_v57, %v8781_v54  ;;  %v8790_v57 = vld [vmem:[#allocation112_spill] sm:$0xff] }
 0x56f   : > { %v3565_v37 = vrot.slane %v8783_v3, %v8781_v54  ;;  %v3635_v55 = vsel %vm3235_vm13, %v3634_v34, %v3630_v8  ;;  %v3792_v38 = vrot.slane %v8784_v61, %v8747_v16  ;;  %v3714_v51 = vsel %vm3235_vm13, %v3713_v14, %v3709_v29 }
 0x570   : > { %v3487_v22 = vsel %vm3249_vm15, %v8782_v2, %v8779_v39  ;;  %v3640_v62 = vsel %vm3242_vm14, %v3639_v60, %v3635_v55  ;;  %v4246_v17 = vrot.slane %v2979_v24, %v6680_v41  ;;  %v3955_v43 = vrot.slane %v2802_v32, %v8766_v45  ;;  %v3069_v60 = vpop.permute.xlu1 %3068  ;;  %v2892_v25 = vpop.permute.xlu0 %2891 }
 0x571   : > { %v3566_v48 = vsel %vm3249_vm15, %v3565_v37, %v3561_v44  ;;  %v3644_v26 = vrot.slane %v8785_v1, %v8781_v54  ;;  %v3719_v42 = vsel %vm3242_vm14, %v3718_v36, %v3714_v51  ;;  %v3793_v21 = vsel %vm3235_vm13, %v3792_v38, %v3788_v23 }
 0x572   : > { %v3723_v15 = vrot.slane %v8786_v28, %v8781_v54  ;;  %v3798_v9 = vsel %vm3242_vm14, %v3797_v18, %v3793_v21  ;;  %v4247_v34 = vsel %vm7929_vm9, %v4246_v17, %v7473_v56  ;;  %v3956_v8 = vsel %vm3242_vm14, %v3955_v43, %v3951_v35 }
 0x573   : > { %v4518_v44 = vsel %vm4517_vm1, %v8788_v5, %v8787_v27  ;;  %v3645_v59 = vsel %vm3249_vm15, %v3644_v26, %v3640_v62  ;;  %v3802_v0 = vrot.slane %v8789_v19, %v8781_v54  ;;  %vm4525_vm4 = vcmask 1046534  }
 0x574   : > { %v4520_v6 = vsel %vm7930_vm2, %v3487_v22, %v4518_v44  ;;  %v4394_v46 = vrot.slane %v3069_v60, %v6662_v47  ;;  %v4103_v56 = vrot.slane %v2892_v25, %v8712_v13  ;;  %v3724_v35 = vsel %vm3249_vm15, %v3723_v15, %v3719_v42  ;;  %v2754_v53 = vpop.permute.xlu1 %2753  ;;  %v2982_v23 = vpop.permute.xlu0 %2981 }
 0x575   : > { %v3803_v33 = vsel %vm3249_vm15, %v3802_v0, %v3798_v9  ;;  %v4522_v14 = vsel %vm4521_vm3, %v3566_v48, %v4520_v6  ;;  %vm4527_vm9 = vcmask 1047559   ;;  %v3876_v18 = vrot.slane %v2754_v53, %v8766_v45 }
 0x576   : > { %v4395_v29 = vsel %vm3193_vm7, %v4394_v46, %v7500_v63  ;;  %v4104_v49 = vsel %vm3228_vm12, %v4103_v56, %v4099_v58  ;;  %v4524_v36 = vsel %vm4523_vm6, %v3645_v59, %v4522_v14  ;;  %v4251_v39 = vrot.slane %v2982_v23, %v6703_v40 }
 0x577   : > { %v4526_v31 = vsel %vm4525_vm4, %v3724_v35, %v4524_v36  ;;  %vm2053_vm2 = vcmp.lt.s32.totalorder %v8790_v57, 64  ;;  %v3877_v22 = vsel %vm3242_vm14, %v3876_v18, %v7525_v4 }
 0x578   : > { %v4528_v2 = vsel %vm4527_vm9, %v3803_v33, %v4526_v31  ;;  %v7676_v63 = vsel %vm3214_vm10, %v4251_v39, %v4247_v34  ;;  %v2847_v58 = vpop.permute.xlu1 %2846  ;;  %v3072_v3 = vpop.permute.xlu0 %3071 }
 0x579   : > { %v7680_v37 = vsel %vm2053_vm2, %v4528_v2, 1e+30  ;;  %v4029_v55 = vrot.slane %v2847_v58, %v8747_v16  ;;  %v4399_v61 = vrot.slane %v3072_v3, %v6697_v20 }
 0x57b   : > { %v4030_v38 = vsel %vm3235_vm13, %v4029_v55, %v7551_v50  ;;  %v7688_v4 = vsel %vm3200_vm8, %v4399_v61, %v4395_v29 }
 0x57c   : > { %v2937_v24 = vpop.permute.xlu1 %2936  ;;  %v2757_v32 = vpop.permute.xlu0 %2756 }
 0x57d   : > { %4542 = vmin.xlane.f32.xlu1 %v7680_v37  ;;  %v4177_v62 = vrot.slane %v2937_v24, %v6690_v30  ;;  %v3881_v42 = vrot.slane %v2757_v32, %v8781_v54 }
 0x57f   : > { %v4178_v51 = vsel %vm3221_vm11, %v4177_v62, %v7575_v12  ;;  %v3882_v12 = vsel %vm3249_vm15, %v3881_v42, %v3877_v22 }
 0x580   : > { %v7693_v17 = vpop.permute.xlu1 %3026  ;;  %v2850_v43 = vpop.permute.xlu0 %2849 }
 0x581   : > { %v4034_v19 = vrot.slane %v2850_v43, %v8766_v45 }
 0x584   : > { %v3111_v48 = vpop.permute.xlu1 %3110  ;;  %v2940_v1 = vpop.permute.xlu0 %2939 }
 0x585   : > { %v4463_v26 = vrot.slane %v3111_v48, %v6648_v11  ;;  %v4182_v58 = vrot.slane %v2940_v1, %v8712_v13 }
 0x587   : > { %v7699_v50 = vsel %vm3179_vm5, %v4463_v26, %v7625_v7  ;;  %vm8792_vm5 = vcmask 654912  }
 0x588   : > { %v2805_v21 = vpop.permute.xlu1 %2804  ;;  %v7701_v28 = vpop.permute.xlu0 %3029 }
 0x589   : > { %v3960_v15 = vrot.slane %v2805_v21, %v8781_v54 }
 0x58b   : > { %v3961_v9 = vsel %vm3249_vm15, %v3960_v15, %v3956_v8  ;;  %v4035_v8 = vsel %vm3242_vm14, %v4034_v19, %v4030_v38 }
 0x58c   : > { %v4529_v34 = vsel %vm4515_vm0, %v3961_v9, %v3882_v12  ;;  %v2895_v27 = vpop.permute.xlu1 %2894  ;;  %v7707_v5 = vpop.permute.xlu0 %3113  ;;  %vm8791_vm0 = vcmask 1043459  }
 0x58d   : > { %v4108_v25 = vrot.slane %v2895_v27, %v8747_v16 }
 0x58f   : > { %v4109_v29 = vsel %vm3235_vm13, %v4108_v25, %v4104_v49  ;;  %v4183_v49 = vsel %vm3228_vm12, %v4182_v58, %v4178_v51 }
 0x590   : > { %v2985_v11 = vpop.permute.xlu1 %2984  ;;  %v2898_v44 = vpop.permute.xlu0 %2897 }
 0x591   : > { %v4113_v46 = vrot.slane %v2898_v44, %v8766_v45  ;;  %v4256_v51 = vrot.slane %v2985_v11, %v6690_v30  ;;  %v4330_v11 = vrot.slane %v7701_v28, %v6703_v40 }
 0x593   : > { %v4114_v53 = vsel %vm3242_vm14, %v4113_v46, %v4109_v29  ;;  %v4257_v25 = vsel %vm3221_vm11, %v4256_v51, %v7676_v63 }
 0x594   : > { %v7709_v59 = vpop.permute.xlu1 %3074  ;;  %v2988_v7 = vpop.permute.xlu0 %2987 }
 0x595   : > { %v4261_v9 = vrot.slane %v2988_v7, %v8712_v13 }
 0x597   : > { %v4262_v7 = vsel %vm3228_vm12, %v4261_v9, %v4257_v25 }
 0x598   : > { %v2853_v0 = vpop.permute.xlu1 %2852  ;;  %v3078_v60 = vpop.permute.xlu0 %3077 }
 0x599   : > { %v4039_v6 = vrot.slane %v2853_v0, %v8781_v54  ;;  %v4325_v0 = vrot.slane %v7693_v17, %v6680_v41 }
 0x59b   : > { %v4040_v56 = vsel %vm3249_vm15, %v4039_v6, %v4035_v8  ;;  %v4404_v6 = vrot.slane %v7709_v59, %v6680_v41  ;;  %v4409_v8 = vrot.slane %v3078_v60, %v6703_v40  ;;  %v4326_v29 = vsel %vm8792_vm5, %v4325_v0, %v7600_v52 }
 0x59c   : > { %v4530_v35 = vsel %vm4517_vm1, %v4040_v56, %v4529_v34  ;;  %v2943_v33 = vpop.permute.xlu1 %2942  ;;  %v2901_v14 = vpop.permute.xlu0 %2900  ;;  %vm8793_vm1 = vmmov %vm8792_vm5 }
 0x59d   : > { %v4118_v36 = vrot.slane %v2901_v14, %v8781_v54  ;;  %v4187_v3 = vrot.slane %v2943_v33, %v8747_v16  ;;  %v4405_v60 = vsel %vm8793_vm1, %v4404_v6, %v7688_v4 }
 0x59f   : > { %v4119_v23 = vsel %vm3249_vm15, %v4118_v36, %v4114_v53  ;;  %v4188_v32 = vsel %vm3235_vm13, %v4187_v3, %v4183_v49  ;;  %v4331_v53 = vsel %vm3214_vm10, %v4330_v11, %v4326_v29 }
 0x5a0   : > { %v4531_v31 = vsel %vm8791_vm0, %v4119_v23, %v4530_v35  ;;  %v3033_v18 = vpop.permute.xlu1 %3032  ;;  %v2991_v39 = vpop.permute.xlu0 %2990  ;;  %v4410_v23 = vsel %vm3214_vm10, %v4409_v8, %v4405_v60  ;;  %vm4723_vm0 = vcmask 0  }
 0x5a1   : > { %v4266_v44 = vrot.slane %v2991_v39, %v8747_v16  ;;  %v4335_v56 = vrot.slane %v3033_v18, %v6690_v30 }
 0x5a3   : > { %v4267_v35 = vsel %vm3235_vm13, %v4266_v44, %v4262_v7  ;;  %v4336_v39 = vsel %vm3221_vm11, %v4335_v56, %v4331_v53 }
 0x5a4   : > { %v7723_v2 = vpop.permute.xlu1 %3116  ;;  %v3081_v22 = vpop.permute.xlu0 %3080 }
 0x5a5   : > { %v4414_v17 = vrot.slane %v3081_v22, %v6690_v30 }
 0x5a7   : > { %v4415_v22 = vsel %vm3221_vm11, %v4414_v17, %v4410_v23 }
 0x5a8   : > { %v2946_v55 = vpop.permute.xlu1 %2945  ;;  %v2949_v61 = vpop.permute.xlu0 %2948 }
 0x5a9   : > { %v4192_v38 = vrot.slane %v2946_v55, %v8766_v45  ;;  %v4197_v24 = vrot.slane %v2949_v61, %v8781_v54  ;;  %v4468_v61 = vrot.slane %v7707_v5, %v6687_v10 }
 0x5ab   : > { %v4193_v62 = vsel %vm3242_vm14, %v4192_v38, %v4188_v32  ;;  %v4473_v32 = vrot.slane %v7723_v2, %v6662_v47 }
 0x5ac   : > { %v4198_v43 = vsel %vm3249_vm15, %v4197_v24, %v4193_v62  ;;  %v3036_v48 = vpop.permute.xlu1 %3035  ;;  %v3039_v26 = vpop.permute.xlu0 %3038 }
 0x5ad   : > { %v4532_v1 = vsel %vm4521_vm3, %v4198_v43, %v4531_v31  ;;  %v4340_v14 = vrot.slane %v3036_v48, %v8712_v13  ;;  %v4345_v58 = vrot.slane %v3039_v26, %v8747_v16 }
 0x5af   : > { %v4341_v3 = vsel %vm3228_vm12, %v4340_v14, %v4336_v39 }
 0x5b0   : > { %v3120_v42 = vpop.permute.xlu1 %3119  ;;  %v7734_v21 = vpop.permute.xlu0 %3122  ;;  %v4346_v43 = vsel %vm3235_vm13, %v4345_v58, %v4341_v3 }
 0x5b1   : > { %v4478_v48 = vrot.slane %v3120_v42, %v6697_v20  ;;  %v4483_v2 = vrot.slane %v7734_v21, %v6680_v41 }
 0x5b4   : > { %v2994_v15 = vpop.permute.xlu1 %2993  ;;  %v3042_v12 = vpop.permute.xlu0 %3041 }
 0x5b5   : > { %v4271_v19 = vrot.slane %v2994_v15, %v8766_v45  ;;  %v4350_v4 = vrot.slane %v3042_v12, %v8766_v45 }
 0x5b7   : > { %v4272_v59 = vsel %vm3242_vm14, %v4271_v19, %v4267_v35  ;;  %v4351_v15 = vsel %vm3242_vm14, %v4350_v4, %v4346_v43 }
 0x5b8   : > { %v3084_v34 = vpop.permute.xlu1 %3083  ;;  %v3126_v27 = vpop.permute.xlu0 %3125 }
 0x5b9   : > { %v4419_v28 = vrot.slane %v3084_v34, %v8712_v13  ;;  %v4488_v34 = vrot.slane %v3126_v27, %v6703_v40 }
 0x5bb   : > { %v4420_v55 = vsel %vm3228_vm12, %v4419_v28, %v4415_v22 }
 0x5bd   : > { %v2997_v46 = vpop.permute.xlu1 %2996 }
 0x5be   : > { %v4276_v33 = vrot.slane %v2997_v46, %v8781_v54  ;;  %v3090_v63 = vpop.permute.xlu0 %3089 }
 0x5bf   : > { %v4429_v49 = vrot.slane %v3090_v63, %v8766_v45 }
 0x5c0   : > { %v4277_v36 = vsel %vm3249_vm15, %v4276_v33, %v4272_v59 }
 0x5c1   : > { %v4533_v18 = vsel %vm4523_vm6, %v4277_v36, %v4532_v1  ;;  %vm8794_vm6 = vcmask 458112  }
 0x5c2   : > { %v3087_v31 = vpop.permute.xlu1 %3086  ;;  %v3093_v24 = vpop.permute.xlu0 %3092  ;;  %v4469_v5 = vsel %vm8794_vm6, %v4468_v61, %v7699_v50 }
 0x5c3   : > { %v4424_v52 = vrot.slane %v3087_v31, %v8747_v16  ;;  %v4434_v10 = vrot.slane %v3093_v24, %v8781_v54  ;;  %v4474_v47 = vsel %vm3193_vm7, %v4473_v32, %v4469_v5  ;;  %vm8795_vm7 = vmmov %vm8793_vm1 }
 0x5c4   : > { %v4479_v9 = vsel %vm3200_vm8, %v4478_v48, %v4474_v47  ;;  %vm4546_vm8 = vcmask 1040384  }
 0x5c5   : > { %v4425_v38 = vsel %vm3235_vm13, %v4424_v52, %v4420_v55  ;;  %v4484_v41 = vsel %vm8795_vm7, %v4483_v2, %v4479_v9 }
 0x5c6   : > { %v4430_v1 = vsel %vm3242_vm14, %v4429_v49, %v4425_v38  ;;  %v4489_v25 = vsel %vm3214_vm10, %v4488_v34, %v4484_v41 }
 0x5c7   : > { %v3045_v62 = vpop.permute.xlu1 %3044  ;;  %v4435_v20 = vsel %vm3249_vm15, %v4434_v10, %v4430_v1  ;;  %v3135_v44 = vpop.permute.xlu0 %3134  ;;  %v8796_v1 = vmov 0.0  }
 0x5c8   : > { %v4355_v26 = vrot.slane %v3045_v62, %v8781_v54  ;;  %v4503_v27 = vrot.slane %v3135_v44, %v8747_v16 }
 0x5ca   : > { %v4356_v12 = vsel %vm3249_vm15, %v4355_v26, %v4351_v15  ;;  %v4994_v26 = vmov 1.0  }
 0x5cb   : > { %v3129_v51 = vpop.permute.xlu1 %3128  ;;  %v4534_v42 = vsel %vm4525_vm4, %v4356_v12, %v4533_v18 }
 0x5cc   : > { %v4535_v19 = vsel %vm4527_vm9, %v4435_v20, %v4534_v42  ;;  %v4493_v50 = vrot.slane %v3129_v51, %v6690_v30  ;;  %v3141_v7 = vpop.permute.xlu0 %3140 }
 0x5cd   : > { %v4540_v0 = vsel %vm2053_vm2, %v4535_v19, 1e+30  ;;  %v4513_v46 = vrot.slane %v3141_v7, %v8781_v54 }
 0x5ce   : > { %4544 = vmin.xlane.f32.xlu0 %v4540_v0  ;;  %v4494_v11 = vsel %vm3221_vm11, %v4493_v50, %v4489_v25 }
 0x5d0   : > { %v3132_v21 = vpop.permute.xlu1 %3131 }
 0x5d1   : > { %v4498_v6 = vrot.slane %v3132_v21, %v8712_v13 }
 0x5d3   : > { %v4499_v40 = vsel %vm3228_vm12, %v4498_v6, %v4494_v11 }
 0x5d4   : > { %v3138_v8 = vpop.permute.xlu1 %3137  ;;  %v4504_v56 = vsel %vm3235_vm13, %v4503_v27, %v4499_v40  ;;  %v4980_v27 = vld [vmem:[%s5171_s28] sm:$0xff] }
 0x5d5   : > { %v4508_v30 = vrot.slane %v3138_v8, %v8766_v45 }
 0x5d7   : > { %v4509_v35 = vsel %vm3242_vm14, %v4508_v30, %v4504_v56 }
 0x5d8   : > { %v4514_v17 = vsel %vm3249_vm15, %v4513_v46, %v4509_v35  ;;  %v4981_v35 = vld [vmem:[%s5171_s28 + $0x8] sm:$0xff] }
 0x5d9   : > { %v4541_v13 = vsel %vm2053_vm2, %v4514_v17, 1e+30  ;;  %vm8797_vm2 = vmmov 0  }
 0x5da   : > { %v4547_v33 = vsel %vm4546_vm8, %v4541_v13, inf }
 0x5db   : > { %4548 = vmin.xlane.f32.xlu0 %v4547_v33 }
 0x606   : > { %v4543_v63 = vpop.xlane.xlu1 %4542 }
 0x607   : > { %vm4550_vm9 = vcmp.eq.f32.partialorder %v7680_v37, %v4543_v63 }
 0x608   : > { %v4553_v16 = vsel %vm4550_vm9, %v8790_v57, 128 }
 0x609   : > { %v4557_v45 = vshra.s32 %v4553_v16, 16  ;;  %v4556_v31 = vand.u32 65535, %v4553_v16  ;;  %v4982_v16 = vld [vmem:[%s5171_s28 + $0x10] sm:$0x1] }
 0x60b   : > { %v4559_v54 = vcvt.s32.f32 %v4557_v45  ;;  %v4558_v18 = vcvt.s32.f32 %v4556_v31 }
 0x60d   : > { %4560 = vmin.xlane.f32.xlu0 %v4559_v54 }
 0x657   : > { %v4545_v14 = vpop.xlane.xlu0 %4544 }
 0x658   : > { %vm4551_vm10 = vcmp.eq.f32.partialorder %v4540_v0, %v4545_v14 }
 0x659   : > { %v4554_v59 = vsel %vm4551_vm10, %v8790_v57, 128 }
 0x65a   : > { %v4571_v28 = vshra.s32 %v4554_v59, 16  ;;  %v4570_v58 = vand.u32 65535, %v4554_v59 }
 0x65c   : > { %v4573_v29 = vcvt.s32.f32 %v4571_v28  ;;  %v4572_v52 = vcvt.s32.f32 %v4570_v58 }
 0x65e   : > { %4574 = vmin.xlane.f32.xlu1 %v4573_v29 }
 0x664   : > { %v4549_v60 = vpop.xlane.xlu0 %4548 }
 0x665   : > { %vm4552_vm11 = vcmp.eq.f32.partialorder %v4541_v13, %v4549_v60 }
 0x666   : > { %v4555_v36 = vsel %vm4552_vm11, %v8790_v57, 128 }
 0x667   : > { %v4584_v53 = vsel %vm4546_vm8, %v4555_v36, 2147483647 }
 0x668   : > { %v4586_v23 = vshra.s32 %v4584_v53, 16  ;;  %v4585_v55 = vand.u32 65535, %v4584_v53 }
 0x66a   : > { %v4588_v37 = vcvt.s32.f32 %v4586_v23  ;;  %v4587_v49 = vcvt.s32.f32 %v4585_v55 }
 0x66c   : > { %4589 = vmin.xlane.f32.xlu0 %v4588_v37 }
 0x696   : > { %v4561_v39 = vpop.xlane.xlu0 %4560 }
 0x697   : > { %vm4562_vm12 = vcmp.eq.f32.partialorder %v4559_v54, %v4561_v39  ;;  %v4567_v24 = vcvt.f32.s32 %v4561_v39 }
 0x698   : > { %v4563_v22 = vsel %vm4562_vm12, %v4558_v18, inf }
 0x699   : > { %4564 = vmin.xlane.f32.xlu1 %v4563_v22  ;;  %v4568_v62 = vshll.u32 %v4567_v24, 16 }
 0x6e7   : > { %v4575_v3 = vpop.xlane.xlu1 %4574 }
 0x6e8   : > { %vm4576_vm13 = vcmp.eq.f32.partialorder %v4573_v29, %v4575_v3  ;;  %v4581_v15 = vcvt.f32.s32 %v4575_v3 }
 0x6e9   : > { %v4577_v4 = vsel %vm4576_vm13, %v4572_v52, inf }
 0x6ea   : > { %4578 = vmin.xlane.f32.xlu0 %v4577_v4  ;;  %v4582_v5 = vshll.u32 %v4581_v15, 16 }
 0x6f5   : > { %v4590_v61 = vpop.xlane.xlu0 %4589 }
 0x6f6   : > { %vm4591_vm14 = vcmp.eq.f32.partialorder %v4588_v37, %v4590_v61  ;;  %v4596_v42 = vcvt.f32.s32 %v4590_v61 }
 0x6f7   : > { %v4592_v38 = vsel %vm4591_vm14, %v4587_v49, inf }
 0x6f8   : > { %4593 = vmin.xlane.f32.xlu1 %v4592_v38  ;;  %v4597_v34 = vshll.u32 %v4596_v42, 16 }
 0x722   : > { %v4565_v32 = vpop.xlane.xlu1 %4564 }
 0x723   : > { %v4566_v43 = vcvt.f32.s32 %v4565_v32 }
 0x725   : > { %v4569_v48 = vadd.s32 %v4568_v62, %v4566_v43 }
 0x727   : > { %vm4599_vm15 = vcmp.eq.s32.totalorder %v8790_v57, %v4569_v48 }
 0x728   : > { %4957 = vmatmul.mubr.msk.f32.vlgmr.msra.gmra.mxu1 %vm4599_vm15, %v4994_v26  ;;  %v4837_v2 = vsel %vm4599_vm15, 1.0, %v8796_v1 }
 0x729   : > { %4959 = vmatprep.mubr.msk.f32.mxu1 %vm8797_vm2, %v8796_v1 }
 0x773   : > { %v4579_v10 = vpop.xlane.xlu0 %4578 }
 0x774   : > { %v4580_v12 = vcvt.f32.s32 %v4579_v10 }
 0x776   : > { %v4583_v47 = vadd.s32 %v4582_v5, %v4580_v12 }
 0x778   : > { %vm4600_vm3 = vcmp.eq.s32.totalorder %v8790_v57, %v4583_v47 }
 0x779   : > { %v4838_v51 = vsel %vm4600_vm3, 1.0, %v8796_v1  ;;  %4960 = vmatmul.mubr.msk.f32.gmra.mxu1 %vm4600_vm3, %v4994_v26 }
 0x77a   : > { %v4691_v20 = vadd.f32 %v4838_v51, %v4837_v2  ;;  %4962 = vmatprep.mubr.msk.f32.mxu1 %vm8797_vm2, %v8796_v1 }
 0x781   : > { %v4594_v9 = vpop.xlane.xlu1 %4593 }
 0x782   : > { %v4595_v44 = vcvt.f32.s32 %v4594_v9 }
 0x784   : > { %v4598_v19 = vadd.s32 %v4597_v34, %v4595_v44 }
 0x786   : > { %vm4601_vm4 = vcmp.eq.s32.totalorder %v8790_v57, %v4598_v19 }
 0x787   : > { %v4839_v50 = vsel %vm4601_vm4, 1.0, %v8796_v1  ;;  %4963 = vmatmul.mubr.msk.f32.gmra.mxu1 %vm4601_vm4, %v4994_v26 }
 0x788   : > { %v4692_v0 = vsel %vm4546_vm8, %v4839_v50, 0.0 }
 0x789   : > { %v4693_v41 = vadd.f32 %v4692_v0, %v4691_v20 }
 0x78b   : > { %v4694_v21 = vrot.slane %v4693_v41, 4 }
 0x78d   : > { %v4695_v25 = vadd.f32 %v4694_v21, %v4693_v41 }
 0x78f   : > { %v4696_v6 = vrot.slane %v4695_v25, 2 }
 0x791   : > { %v4697_v11 = vadd.f32 %v4696_v6, %v4695_v25 }
 0x793   : > { %v4698_v7 = vrot.slane %v4697_v11, 1 }
 0x795   : > { %v4699_v40 = vadd.f32 %v4698_v7, %v4697_v11 }
 0x797   : > { %4700 = vst [vmem:[%s211_s5] sm:$0x1] %v4699_v40 }
 0x7e8   : > { %v4674_v57 = vpop.f32.mrf.mxu1 }
 0x7e9   : > { %4688 = vst [vmem:[%s208_s8] sm:$0xff] %v4674_v57  ;;  %v4701_v8 = vsub.f32 %v4674_v57, %v4980_v27 }
 0x7ea   : > { %v4958_v30 = vpop.f32.mrf.mxu1 }
 0x7eb   : > { %v4704_v46 = vmul.f32 %v4701_v8, %v4701_v8 }
 0x7ed   : > { %4707 = vadd.xlane.f32.xlu0 %v4704_v46 }
 0x839   : > { %v4679_v56 = vpop.f32.mrf.mxu1 }
 0x83a   : > { %4689 = vst [vmem:[%s208_s8 + $0x8] sm:$0xff] %v4679_v56  ;;  %v4702_v17 = vsub.f32 %v4679_v56, %v4981_v35 }
 0x83b   : > { %v4961_v13 = vpop.f32.mrf.mxu1 }
 0x83c   : > { %v4705_v33 = vmul.f32 %v4702_v17, %v4702_v17 }
 0x83e   : > { %4709 = vadd.xlane.f32.xlu1 %v4705_v33 }
 0x847   : > { %v4684_v63 = vpop.f32.mrf.mxu1 }
 0x848   : > { %4690 = vst [vmem:[%s208_s8 + $0x10] sm:$0x1] %v4684_v63  ;;  %v4703_v45 = vsub.f32 %v4684_v63, %v4982_v16 }
 0x849   : > { %v4964_v54 = vpop.f32.mrf.mxu1 }
 0x84a   : > { %v4706_v14 = vmul.f32 %v4703_v45, %v4703_v45 }
 0x84c   : > { %v4711_v59 = vsel %vm4546_vm8, %v4706_v14, 0.0 }
 0x84d   : > { %4712 = vadd.xlane.f32.xlu0 %v4711_v59 }
 0x876   : > { %v4708_v28 = vpop.xlane.xlu0 %4707 }
 0x8c7   : > { %v4710_v29 = vpop.xlane.xlu1 %4709 }
 0x8c8   : > { %v4714_v60 = vadd.f32 %v4710_v29, %v4708_v28 }
 0x8d6   : > { %v4713_v36 = vpop.xlane.xlu0 %4712 }
 0x8d7   : > { %v4715_v53 = vsel %vm4546_vm8, %v4713_v36, 0.0 }
 0x8d8   : > { %v4716_v23 = vadd.f32 %v4715_v53, %v4714_v60 }
 0x8da   : > { %v4717_v37 = vrot.slane %v4716_v23, 4 }
 0x8dc   : > { %v4718_v31 = vadd.f32 %v4717_v37, %v4716_v23 }
 0x8de   : > { %v4719_v18 = vrot.slane %v4718_v31, 2 }
 0x8e0   : > { %v4720_v39 = vadd.f32 %v4719_v18, %v4718_v31 }
 0x8e2   : > { %v4721_v22 = vrot.slane %v4720_v39, 1 }
 0x8e4   : > { %v4722_v58 = vadd.f32 %v4721_v22, %v4720_v39 }
 0x8e6   : > { %4724 = vst.msk [vmem:[%s214_s11] sm:$0x1] %vm4723_vm0, %v4722_v58 }
 0x8e7 PF: > { %s15_s15 = sadd.s32 1, %s4989_s15  }
 0x8e8   : > { %p12_p4 = scmp.ge.s32.totalorder %s15_s15, 4  }
 0x8ea   :  { %14 = sbr.rel (!%p12_p4) target bundleno = 1 (0x1), region = 82 }

// kernel: _lambda_.8
= control target key start
LH: loop header
LB: loop body
LE: loop exit
PB: predicated region body
PF: predicated region fallthrough
CT: control target
= control target key end

     0   :  { %s1399_s13 = smov 0   ;;  %s1594_s0 = inlined_call_operand.vmem [shape: f32[2,9,128], index: 0, kind: input, shape index: {}]   ;;  %s1595_s1 = inlined_call_operand.vmem [shape: bf16[128,16], index: 1, kind: input, shape index: {}]   ;;  %s1596_s2 = inlined_call_operand.vmem [shape: f32[1,16], index: 2, kind: input, shape index: {}]   ;;  %s1597_s3 = inlined_call_operand.vmem [shape: bf16[36,9], index: 3, kind: input, shape index: {}]   ;;  %s1598_s4 = inlined_call_operand.vmem [shape: bf16[16,4], index: 4, kind: input, shape index: {}]   ;;  %s1599_s5 = inlined_call_operand.vmem [shape: bf16[16,4], index: 5, kind: input, shape index: {}]   ;;  %s1600_s6 = inlined_call_operand.vmem [shape: f32[1,4], index: 6, kind: input, shape index: {}]   ;;  %s1601_s7 = inlined_call_operand.vmem [shape: f32[1,4], index: 7, kind: input, shape index: {}]   ;;  %s1602_s8 = inlined_call_operand.vmem [shape: f32[64,36], index: 8, kind: input, shape index: {}]   ;;  %s1603_s9 = inlined_call_operand.vmem [shape: f32[64,36], index: 9, kind: input, shape index: {}]   ;;  %s1604_s10 = inlined_call_operand.vmem [shape: f32[2,64,4], index: 10, kind: output, shape index: {}]  }
   0x1 LB: > { %s1086_s14 = sadd.s32 4294967295, %s1339_s13   ;;  %p1090_p0 = scmp.ge.s32.totalorder %s1339_s13, 1  ;;  %s1339_s13 = sphi %s1399_s13, %s20_s13  }
   0x2   : > { %p312_p1 = scmp.lt.s32.totalorder %s1339_s13, 3 }
   0x4   : > { %p313_p2 = pnand %p1090_p0, %p312_p1 }
   0x5   : > { %p350_p3 = scmp.lt.s32.totalorder (!%p313_p2), %s1086_s14, 1 }
   0x6   : > { %316 = sbr.rel (%p313_p2) target bundleno = 914 (0x392), region = 60 }
   0xb   : > { %v1316_v0 = vld [vmem:[%s1595_s1 + $0x38] sm:$0xff]   ;;  %v1341_v1 = vmov 0.0   ;;  %v1317_v2 = vld [vmem:[%s1595_s1 + $0x30] sm:$0xff]   ;;  %vm1342_vm0 = vmmov 0   ;;  %v1318_v3 = vld [vmem:[%s1595_s1 + $0x28] sm:$0xff]   ;;  %s1606_s14 = smov (!%p350_p3, %s1086_s14), 1 }
   0xc   : > { %1189 = vmatprep.subr.bf16.mxu0 %v1341_v1  ;;  %1209 = vmatprep.subr.bf16.mxu1 %v1341_v1  ;;  %v1319_v4 = vld [vmem:[%s1595_s1 + $0x20] sm:$0xff]   ;;  %v1320_v5 = vld [vmem:[%s1595_s1 + $0x18] sm:$0xff]   ;;  %v1321_v6 = vld [vmem:[%s1595_s1 + $0x10] sm:$0xff]   ;;  %s1140_s27 = sshll.u32 %s1606_s14, 4  ;;  %vm523_vm1 = vcmask 1043456   ;;  %vm524_vm2 = vcmask 1044480  }
   0xd   : > { %1190 = vmatpush3.bf16.msra.mxu0 %v1316_v0  ;;  %1205 = vmatprep.mubr.msk.bf16.mxu0 %vm1342_vm0, %v1341_v1  ;;  %v1322_v7 = vld [vmem:[%s1595_s1 + $0x8] sm:$0xff]   ;;  %s354_s12 = scalar_lea.vmem %s1594_s0, %s1140_s27  ;;  %v1323_v8 = vld [vmem:[%s1595_s1] sm:$0xff]   ;;  %v1343_v35 = vmov 65535   ;;  %vm513_vm3 = vcmask 72704   ;;  %vm604_vm4 = vcmask 130048   ;;  %vm757_vm5 = vcmask 293888  }
   0xe   : > { %1191 = vmatprep.subr.bf16.mxu0 %v1341_v1  ;;  %1211 = vmatprep.mubr.msk.bf16.mxu1 %vm1342_vm0, %v1341_v1  ;;  %v361_v9 = vld [vmem:[%s354_s12] sm:$0xff]  ;;  %v362_v10 = vld [vmem:[%s354_s12 + $0x8] sm:$0x1]  ;;  %v525_v36 = vsel %vm523_vm1, 4294967295, %v1343_v35  ;;  %s1141_s29 = sshll.u32 %s1606_s14, 6  ;;  %vm1022_vm6 = vcmask 31744  }
   0xf   : > { %v363_v11 = vpack.c.bf16 %v362_v10, %v361_v9  ;;  %v1095_v12 = vld [vmem:[%s1596_s2] ss:$0 sm:$0xff]  ;;  %v526_v39 = vsel %vm524_vm2, %v525_v36, 0  ;;  %v1325_v43 = vld [vmem:[%s1597_s3 + $0x8] sm:$0xff]   ;;  %s1573_s12 = scalar_lea.vmem %s1604_s10, %s1141_s29 }
  0x10   : > { %v1324_v42 = vld [vmem:[%s1597_s3] sm:$0xff]   ;;  %v1326_v44 = vld [vmem:[%s1597_s3 + $0x10] ss:$0 sps:$4 sm:$0x33]   ;;  %v750_v36 = vld [vmem:[%s1603_s9 + $0x8] sm:$0xff] }
  0x11   : > { %1192 = vmatpush3.bf16.msra.mxu0 %v1317_v2  ;;  %v1327_v45 = vld [vmem:[%s1598_s4] sm:$0xff]  }
  0x12   : > { %1193 = vmatprep.subr.bf16.mxu0 %v1341_v1  ;;  %v1328_v46 = vld [vmem:[%s1599_s5] sm:$0xff]  }
  0x13   : > { %v749_v62 = vld [vmem:[%s1603_s9] sm:$0xff] }
  0x14   : > { %v741_v63 = vld [vmem:[%s1602_s8] sm:$0xff] }
  0x15   : > { %1194 = vmatpush3.bf16.msra.mxu0 %v1318_v3 }
  0x16   : > { %1195 = vmatprep.subr.bf16.mxu0 %v1341_v1 }
  0x19   : > { %1196 = vmatpush3.bf16.msra.mxu0 %v1319_v4 }
  0x1a   : > { %1197 = vmatprep.subr.bf16.mxu0 %v1341_v1 }
  0x1d   : > { %1198 = vmatpush3.bf16.msra.mxu0 %v1320_v5 }
  0x1e   : > { %1199 = vmatprep.subr.bf16.mxu0 %v1341_v1 }
  0x21   : > { %1200 = vmatpush3.bf16.msra.mxu0 %v1321_v6 }
  0x22   : > { %1201 = vmatprep.subr.bf16.mxu0 %v1341_v1 }
  0x25   : > { %1202 = vmatpush3.bf16.msra.mxu0 %v1322_v7 }
  0x26   : > { %1203 = vmatprep.subr.bf16.mxu0 %v1341_v1 }
  0x29   : > { %1204 = vmatpush3.bf16.msra.mxu0 %v1323_v8 }
  0x2a   : > { %1237 = vmatprep.subr.bf16.mxu0 %v1341_v1 }
  0x2c   : > { %1206 = vmatmul.mubr.bf16.vlgmr.msra.gmra.mxu0 %v363_v11 }
  0x2d   : > { %1239 = vmatprep.mubr.msk.bf16.mxu0 %vm1342_vm0, %v1341_v1  ;;  %1238 = vmatpush3.bf16.msra.mxu0 %v1328_v46  ;;  %v746_v46 = vld [vmem:[%s1602_s8 + $0x28] sm:$0xff] }
  0xec   : > { %v469_v13 = vpop.f32.mrf.mxu0 }
  0xed   : > { %v470_v14 = vadd.f32 %v1095_v12, %v469_v13 }
  0xee   : > { %v1207_v15 = vpop.f32.mrf.mxu0 }
  0xef   : > { %v476_v16 = vmul.f32 %v470_v14, %v470_v14 }
  0xf0   : > { %v472_v17 = vpop.f32.mrf.mxu0 }
  0xf1   : > { %v478_v18 = vmul.f32 %v476_v16, %v470_v14  ;;  %v473_v19 = vadd.f32 %v1095_v12, %v472_v17  ;;  %v1110_v16 = vld [vmem:[%s1600_s6] ss:$0 sm:$0xff] }
  0xf2   : > { %v1208_v20 = vpop.f32.mrf.mxu0  ;;  %v1115_v17 = vld [vmem:[%s1601_s7] ss:$0 sm:$0xff] }
  0xf3   : > { %v480_v21 = vmul.f32 0.044715, %v478_v18  ;;  %v477_v22 = vmul.f32 %v473_v19, %v473_v19 }
  0xf5   : > { %v482_v23 = vadd.f32 %v480_v21, %v470_v14  ;;  %v479_v24 = vmul.f32 %v477_v22, %v473_v19 }
  0xf7   : > { %v484_v25 = vmul.f32 0.7978846, %v482_v23  ;;  %v481_v26 = vmul.f32 0.044715, %v479_v24 }
  0xf9   : > { %1329 = vtanh.f32 %v484_v25  ;;  %v483_v27 = vadd.f32 %v481_v26, %v473_v19 }
  0xfb   : > { %v485_v28 = vmul.f32 0.7978846, %v483_v27 }
  0xfd   : > { %1331 = vtanh.f32 %v485_v28 }
 0x106   : > { %v1330_v29 = vpop.eup %1329 }
 0x107   : > { %v488_v30 = vadd.f32 1.0, %v1330_v29 }
 0x109   : > { %v490_v33 = vmul.f32 0.5, %v488_v30 }
 0x10a   : > { %v1332_v31 = vpop.eup %1331 }
 0x10b   : > { %v489_v32 = vadd.f32 1.0, %v1332_v31  ;;  %v492_v37 = vmul.f32 %v490_v33, %v470_v14 }
 0x10d   : > { %v491_v34 = vmul.f32 0.5, %v489_v32 }
 0x10f   : > { %v493_v38 = vmul.f32 %v491_v34, %v473_v19 }
 0x111   : > { %v494_v40 = vpack.c.bf16 %v493_v38, %v492_v37  ;;  %v751_v37 = vld [vmem:[%s1603_s9 + $0x10] sm:$0xff]  ;;  %v742_v38 = vld [vmem:[%s1602_s8 + $0x8] sm:$0xff] }
 0x113   : > { %v528_v41 = vand.u32 %v526_v39, %v494_v40  ;;  %v743_v39 = vld [vmem:[%s1602_s8 + $0x10] sm:$0xff]  ;;  %v752_v40 = vld [vmem:[%s1603_s9 + $0x18] sm:$0xff] }
 0x115   : > { %1210 = vmatpush3.bf16.msra.mxu1 %v528_v41  ;;  %v753_v41 = vld [vmem:[%s1603_s9 + $0x20] sm:$0xff] }
 0x116   : > { %1223 = vmatprep.subr.bf16.mxu1 %v1341_v1 }
 0x118   : > { %1212 = vmatmul.mubr.msk.bf16.vlgmr.msra.gmra.mxu1 %vm513_vm3, %v1324_v42  ;;  %v744_v42 = vld [vmem:[%s1602_s8 + $0x18] sm:$0xff] }
 0x119   : > { %1215 = vmatprep.mubr.msk.bf16.mxu1 %vm1342_vm0, %v1341_v1  ;;  %1224 = vmatpush3.bf16.msra.mxu1 %v1327_v45  ;;  %v755_v45 = vld [vmem:[%s1603_s9 + $0x30] sm:$0xff] }
 0x120   : > { %1216 = vmatmul.mubr.msk.bf16.gmra.mxu1 %vm513_vm3, %v1325_v43  ;;  %v745_v43 = vld [vmem:[%s1602_s8 + $0x20] sm:$0xff] }
 0x121   : > { %1219 = vmatprep.mubr.msk.bf16.mxu1 %vm1342_vm0, %v1341_v1 }
 0x128   : > { %1220 = vmatmul.mubr.msk.bf16.gmra.mxu1 %vm513_vm3, %v1326_v44  ;;  %v754_v44 = vld [vmem:[%s1603_s9 + $0x28] sm:$0xff] }
 0x129   : > { %1225 = vmatprep.mubr.msk.bf16.mxu1 %vm1342_vm0, %v1341_v1 }
 0x1d8   : > { %v564_v47 = vpop.f32.mrf.mxu1 }
 0x1da   : > { %v1213_v48 = vpop.f32.mrf.mxu1 }
 0x1db   : > { %v747_v48 = vld [vmem:[%s1602_s8 + $0x30] sm:$0xff] }
 0x1dc   : > { %v567_v49 = vpop.f32.mrf.mxu1 }
 0x1dd   : > { %v586_v50 = vpack.c.bf16 %v567_v49, %v564_v47  ;;  %v756_v47 = vld [vmem:[%s1603_s9 + $0x38] sm:$0xff] }
 0x1de   : > { %v1214_v51 = vpop.f32.mrf.mxu1  ;;  %v748_v49 = vld [vmem:[%s1602_s8 + $0x38] sm:$0xff] }
 0x1df   : > { %1226 = vmatmul.mubr.msk.bf16.vlgmr.msra.gmra.mxu1 %vm604_vm4, %v586_v50  ;;  %1240 = vmatmul.mubr.msk.bf16.vlgmr.msra.gmra.mxu0 %vm604_vm4, %v586_v50 }
 0x1e0   : > { %v572_v52 = vpop.f32.mrf.mxu1  ;;  %1229 = vmatprep.mubr.msk.bf16.mxu1 %vm1342_vm0, %v1341_v1  ;;  %1243 = vmatprep.mubr.msk.bf16.mxu0 %vm1342_vm0, %v1341_v1 }
 0x1e2   : > { %v1217_v53 = vpop.f32.mrf.mxu1 }
 0x1e4   : > { %v575_v54 = vpop.f32.mrf.mxu1 }
 0x1e5   : > { %v587_v55 = vpack.c.bf16 %v575_v54, %v572_v52 }
 0x1e6   : > { %v1218_v56 = vpop.f32.mrf.mxu1 }
 0x1e7   : > { %1230 = vmatmul.mubr.msk.bf16.gmra.mxu1 %vm604_vm4, %v587_v55  ;;  %1244 = vmatmul.mubr.msk.bf16.gmra.mxu0 %vm604_vm4, %v587_v55 }
 0x1e8   : > { %v580_v57 = vpop.f32.mrf.mxu1  ;;  %1233 = vmatprep.mubr.msk.bf16.mxu1 %vm1342_vm0, %v1341_v1  ;;  %1247 = vmatprep.mubr.msk.bf16.mxu0 %vm1342_vm0, %v1341_v1 }
 0x1e9   : > { %v588_v59 = vpack.c.bf16 %v580_v57, %v580_v57 }
 0x1ea   : > { %v1221_v58 = vpop.f32.mrf.mxu1 }
 0x1ec   : > { %v583_v60 = vpop.f32.mrf.mxu1 }
 0x1ee   : > { %v1222_v61 = vpop.f32.mrf.mxu1 }
 0x1ef   : > { %1234 = vmatmul.mubr.msk.bf16.gmra.mxu1 %vm604_vm4, %v588_v59  ;;  %1248 = vmatmul.mubr.msk.bf16.gmra.mxu0 %vm604_vm4, %v588_v59 }
 0x1f0   : > { %1261 = vmatprep.mubr.msk.f32.mxu1 %vm757_vm5, %v749_v62  ;;  %1283 = vmatprep.mubr.msk.f32.mxu0 %vm757_vm5, %v741_v63 }
 0x29f   : > { %v648_v0 = vpop.f32.mrf.mxu1  ;;  %v719_v1 = vpop.f32.mrf.mxu0 }
 0x2a0   : > { %v649_v34 = vadd.f32 %v1110_v16, %v648_v0  ;;  %v720_v35 = vadd.f32 %v1115_v17, %v719_v1 }
 0x2a1   : > { %v1227_v2 = vpop.f32.mrf.mxu1  ;;  %v1241_v3 = vpop.f32.mrf.mxu0 }
 0x2a3   : > { %v651_v4 = vpop.f32.mrf.mxu1  ;;  %v722_v5 = vpop.f32.mrf.mxu0 }
 0x2a4   : > { %v652_v32 = vadd.f32 %v1110_v16, %v651_v4  ;;  %v723_v33 = vadd.f32 %v1115_v17, %v722_v5 }
 0x2a5   : > { %v1228_v6 = vpop.f32.mrf.mxu1  ;;  %v1242_v7 = vpop.f32.mrf.mxu0 }
 0x2a7   : > { %v656_v8 = vpop.f32.mrf.mxu1  ;;  %v727_v9 = vpop.f32.mrf.mxu0 }
 0x2a8   : > { %v657_v28 = vadd.f32 %v1110_v16, %v656_v8  ;;  %v728_v29 = vadd.f32 %v1115_v17, %v727_v9 }
 0x2a9   : > { %v1231_v10 = vpop.f32.mrf.mxu1  ;;  %v1245_v11 = vpop.f32.mrf.mxu0 }
 0x2ab   : > { %v659_v12 = vpop.f32.mrf.mxu1  ;;  %v730_v13 = vpop.f32.mrf.mxu0 }
 0x2ac   : > { %v660_v24 = vadd.f32 %v1110_v16, %v659_v12  ;;  %v731_v25 = vadd.f32 %v1115_v17, %v730_v13 }
 0x2ad   : > { %v1232_v14 = vpop.f32.mrf.mxu1  ;;  %v1246_v15 = vpop.f32.mrf.mxu0 }
 0x2af   : > { %v664_v18 = vpop.f32.mrf.mxu1  ;;  %v735_v19 = vpop.f32.mrf.mxu0 }
 0x2b0   : > { %v665_v20 = vadd.f32 %v1110_v16, %v664_v18  ;;  %v736_v21 = vadd.f32 %v1115_v17, %v735_v19 }
 0x2b1   : > { %v1235_v22 = vpop.f32.mrf.mxu1  ;;  %v1249_v23 = vpop.f32.mrf.mxu0 }
 0x2b2   : > { %1251 = vmatprep.subr.msk.mxu1 %vm523_vm1, %v736_v21  ;;  %1273 = vmatprep.subr.msk.mxu0 %vm523_vm1, %v665_v20 }
 0x2b3   : > { %v667_v26 = vpop.f32.mrf.mxu1  ;;  %v738_v27 = vpop.f32.mrf.mxu0  ;;  %1252 = vmatpush3.msk.msra.mxu1 %vm523_vm1, %v736_v21  ;;  %1274 = vmatpush3.msk.msra.mxu0 %vm523_vm1, %v665_v20 }
 0x2b4   : > { %1253 = vmatprep.subr.mxu1 %v731_v25  ;;  %1275 = vmatprep.subr.mxu0 %v660_v24 }
 0x2b5   : > { %v1236_v30 = vpop.f32.mrf.mxu1  ;;  %v1250_v31 = vpop.f32.mrf.mxu0  ;;  %1254 = vmatpush3.msra.mxu1 %v731_v25  ;;  %1276 = vmatpush3.msra.mxu0 %v660_v24 }
 0x2b6   : > { %1255 = vmatprep.subr.mxu1 %v728_v29  ;;  %1277 = vmatprep.subr.mxu0 %v657_v28 }
 0x2b7   : > { %1256 = vmatpush3.msra.mxu1 %v728_v29  ;;  %1278 = vmatpush3.msra.mxu0 %v657_v28 }
 0x2b8   : > { %1257 = vmatprep.subr.mxu1 %v723_v33  ;;  %1279 = vmatprep.subr.mxu0 %v652_v32 }
 0x2b9   : > { %1258 = vmatpush3.msra.mxu1 %v723_v33  ;;  %1280 = vmatpush3.msra.mxu0 %v652_v32 }
 0x2ba   : > { %1259 = vmatprep.subr.mxu1 %v720_v35  ;;  %1281 = vmatprep.subr.mxu0 %v649_v34 }
 0x2bb   : > { %1260 = vmatpush3.msra.mxu1 %v720_v35  ;;  %1282 = vmatpush3.msra.mxu0 %v649_v34 }
 0x2bc   : > { %1295 = vmatprep.subr.msk.mxu1 %vm523_vm1, %v665_v20  ;;  %1262 = vmatmul.mubr.msk.f32.vlgmr.msra.gmra.mxu1 %vm757_vm5, %v750_v36 }
 0x2bd   : > { %1300 = vmatpush3.msk.msra.mxu1 %vm523_vm1, %v665_v20  ;;  %1264 = vmatprep.mubr.msk.f32.mxu1 %vm757_vm5, %v751_v37 }
 0x2be   : > { %1296 = vmatprep.subr.mxu1 %v660_v24  ;;  %1284 = vmatmul.mubr.msk.f32.vlgmr.msra.gmra.mxu0 %vm757_vm5, %v742_v38 }
 0x2bf   : > { %1301 = vmatpush3.msra.mxu1 %v660_v24  ;;  %1286 = vmatprep.mubr.msk.f32.mxu0 %vm757_vm5, %v743_v39 }
 0x2c0   : > { %1297 = vmatprep.subr.mxu1 %v657_v28  ;;  %1265 = vmatmul.mubr.msk.f32.gmra.mxu1 %vm757_vm5, %v752_v40 }
 0x2c1   : > { %1302 = vmatpush3.msra.mxu1 %v657_v28  ;;  %1267 = vmatprep.mubr.msk.f32.mxu1 %vm757_vm5, %v753_v41 }
 0x2c2   : > { %1298 = vmatprep.subr.mxu1 %v652_v32  ;;  %1287 = vmatmul.mubr.msk.f32.gmra.mxu0 %vm757_vm5, %v744_v42 }
 0x2c3   : > { %1303 = vmatpush3.msra.mxu1 %v652_v32  ;;  %1289 = vmatprep.mubr.msk.f32.mxu0 %vm757_vm5, %v745_v43 }
 0x2c4   : > { %1299 = vmatprep.subr.mxu1 %v649_v34  ;;  %1268 = vmatmul.mubr.msk.f32.gmra.mxu1 %vm757_vm5, %v754_v44 }
 0x2c5   : > { %1304 = vmatpush3.msra.mxu1 %v649_v34  ;;  %1270 = vmatprep.mubr.msk.f32.mxu1 %vm757_vm5, %v755_v45 }
 0x2c6   : > { %1290 = vmatmul.mubr.msk.f32.gmra.mxu0 %vm757_vm5, %v746_v46 }
 0x2c8   : > { %1271 = vmatmul.mubr.msk.f32.gmra.mxu1 %vm757_vm5, %v756_v47 }
 0x2c9   : > { %1292 = vmatprep.mubr.msk.f32.mxu1 %vm757_vm5, %v747_v48 }
 0x2cc   : > { %1293 = vmatmul.mubr.msk.f32.vlgmr.msra.gmra.mxu1 %vm757_vm5, %v748_v49 }
 0x37c   : > { %v1263_v50 = vpop.f32.mrf.mxu1 }
 0x37e   : > { %v851_v51 = vpop.f32.mrf.mxu1  ;;  %v1285_v52 = vpop.f32.mrf.mxu0 }
 0x37f   : > { %v989_v53 = vadd.f32 %v1285_v52, %v1263_v50 }
 0x380   : > { %v1266_v54 = vpop.f32.mrf.mxu1  ;;  %v983_v55 = vpop.f32.mrf.mxu0 }
 0x381   : > { %1024 = vst.msk [vmem:[%s1573_s12 + $0x8] sm:$0xff] %vm1022_vm6, %v989_v53  ;;  %v984_v56 = vadd.f32 %v983_v55, %v851_v51 }
 0x382   : > { %v861_v57 = vpop.f32.mrf.mxu1  ;;  %v1288_v58 = vpop.f32.mrf.mxu0 }
 0x383   : > { %1023 = vst.msk [vmem:[%s1573_s12] sm:$0xff] %vm1022_vm6, %v984_v56  ;;  %v999_v59 = vadd.f32 %v1288_v58, %v1266_v54 }
 0x384   : > { %v1269_v60 = vpop.f32.mrf.mxu1  ;;  %v993_v61 = vpop.f32.mrf.mxu0 }
 0x385   : > { %1026 = vst.msk [vmem:[%s1573_s12 + $0x18] sm:$0xff] %vm1022_vm6, %v999_v59  ;;  %v994_v62 = vadd.f32 %v993_v61, %v861_v57 }
 0x386   : > { %v871_v63 = vpop.f32.mrf.mxu1  ;;  %v1291_v0 = vpop.f32.mrf.mxu0 }
 0x387   : > { %1025 = vst.msk [vmem:[%s1573_s12 + $0x10] sm:$0xff] %vm1022_vm6, %v994_v62  ;;  %v1009_v1 = vadd.f32 %v1291_v0, %v1269_v60 }
 0x388   : > { %v1272_v2 = vpop.f32.mrf.mxu1  ;;  %v1003_v3 = vpop.f32.mrf.mxu0 }
 0x389   : > { %1028 = vst.msk [vmem:[%s1573_s12 + $0x28] sm:$0xff] %vm1022_vm6, %v1009_v1  ;;  %v1004_v4 = vadd.f32 %v1003_v3, %v871_v63 }
 0x38a   : > { %v881_v5 = vpop.f32.mrf.mxu1 }
 0x38b   : > { %1027 = vst.msk [vmem:[%s1573_s12 + $0x20] sm:$0xff] %vm1022_vm6, %v1004_v4 }
 0x38c   : > { %v1294_v6 = vpop.f32.mrf.mxu1 }
 0x38d   : > { %v1019_v7 = vadd.f32 %v1294_v6, %v1272_v2 }
 0x38e   : > { %v1013_v8 = vpop.f32.mrf.mxu1 }
 0x38f   : > { %1030 = vst.msk [vmem:[%s1573_s12 + $0x38] sm:$0xff] %vm1022_vm6, %v1019_v7  ;;  %v1014_v9 = vadd.f32 %v1013_v8, %v881_v5 }
 0x391   : > { %1029 = vst.msk [vmem:[%s1573_s12 + $0x30] sm:$0xff] %vm1022_vm6, %v1014_v9 }
 0x392 PF: > { %s20_s13 = sadd.s32 1, %s1339_s13  }
 0x393   : > { %p17_p4 = scmp.ge.s32.totalorder %s20_s13, 4  }
 0x395   :  { %19 = sbr.rel (!%p17_p4) target bundleno = 1 (0x1), region = 90 }

</bundles_post_ra>
